<compile_context>
chip_gen: v6e
topology: v6e:2x2x1
jax: 0.10.0
libtpu: 0.0.40
codegen_flags: <defaults>
</compile_context>

<pallas_src>
import functools

import jax
import jax.numpy as jnp
from jax import lax
from jax.experimental import pallas as pl
from jax.experimental.pallas import tpu as pltpu


def _round_up(v, m):
    return -(-v // m) * m


def _mappingnet_kernel(valid_ref, x_ref, wf_ref, bf_ref, we_ref, be_ref, o_ref,
                       *, layers, k_first, k_enc, dil_enc):
    """first conv -> layers x (LeakyReLU + dilated conv + residual) -> masked
    mean over the valid time prefix (== AdaptiveAvgPool1d(1))."""
    x = x_ref[...]                                   # (Bb, Tp, Cin_p), bf16
    Bb, Tp, Cin = x.shape
    C = o_ref.shape[-1]

    pad_first = _round_up(k_first - 1, 8)
    pad_enc = _round_up(dil_enc * (k_enc - 1), 8)
    crop = (dil_enc * (k_enc - 1)) // 2              # == 3 for this module

    # ---- first: Conv1d(coeff_nc, C, kernel_size=7, padding=0) as one matmul.
    # Taps are sliced directly from the bf16 tile; no f32 copy of the input.
    L = Tp - pad_first
    im = jnp.concatenate([x[:, k:k + L, :] for k in range(k_first)], axis=-1)
    im = im.reshape(Bb * L, k_first * Cin)           # bf16 im2col buffer
    out = jnp.dot(im, wf_ref[...],
                  preferred_element_type=jnp.float32).reshape(Bb, L, C)
    out = out + bf_ref[0]

    # ---- encoder_i: LeakyReLU(0.1) + Conv1d(C, C, k=3, dilation=3) + residual
    for layer in range(layers):
        # LeakyReLU(0.1) as max(x, 0.1x); cast ONCE to bf16 before tap slicing.
        act = jnp.maximum(out, 0.1 * out).astype(jnp.bfloat16)
        Ln = L - pad_enc
        im = jnp.concatenate(
            [act[:, k * dil_enc:k * dil_enc + Ln, :] for k in range(k_enc)],
            axis=-1).reshape(Bb * Ln, k_enc * C)     # bf16 im2col buffer
        y = jnp.dot(im, we_ref[layer],
                    preferred_element_type=jnp.float32).reshape(Bb, Ln, C)
        # conv(act) + bias + residual crop (module: out[:, :, 3:-3])
        out = y + (out[:, crop:crop + Ln, :] + be_ref[layer])
        L = Ln

    # ---- pooling: AdaptiveAvgPool1d(1) == mean over the VALID time prefix.
    valid_len = valid_ref[0]                         # dynamic, from SMEM
    t_idx = lax.broadcasted_iota(jnp.int32, (1, L, 1), 1)
    masked = jnp.where(t_idx < valid_len, out, 0.0)
    o_ref[...] = (jnp.sum(masked, axis=1, keepdims=True)
                  / valid_len.astype(jnp.float32)).astype(o_ref.dtype)


def mapping_net_pallas(x_ncl, params, *, layers=3, dil_enc=3, block_b=None,
                       t_pad_to=None, vmem_limit_bytes=None):
    """x_ncl: (B, coeff_nc, T) to mirror PyTorch NCL input. Returns (B, C, 1)."""
    w_first = params["w_first"]                      # (Kf, Cin, C)
    w_enc = params["w_enc"]                          # (L, Ke, C, C)
    k_first, Cin, C = w_first.shape
    n_layers, k_enc = w_enc.shape[0], w_enc.shape[1]
    assert n_layers == layers
    # The PyTorch module hardcodes the residual crop [:, :, 3:-3]; that only
    # matches a dilated conv when dil*(k-1) == 6.  Derive and check it.
    total_shrink = dil_enc * (k_enc - 1)
    assert total_shrink % 2 == 0, "residual crop requires even dil*(k-1)"

    B, Cin_x, T = x_ncl.shape
    assert Cin_x == Cin
    valid_len = T - (k_first - 1) - layers * total_shrink
    assert valid_len >= 1, "sequence too short for this receptive field"

    # Padded time lengths: every intermediate length is a multiple of 8.
    pad_first = _round_up(k_first - 1, 8)
    pad_enc = _round_up(total_shrink, 8)
    T_pad = _round_up(max(T, valid_len + pad_first + layers * pad_enc), 8)
    if t_pad_to is not None:
        # Optional T bucketing: one compiled binary per bucket, valid_len is
        # dynamic (scalar prefetch), so varying T never forces a recompile.
        assert t_pad_to % 8 == 0 and t_pad_to >= T_pad
        T_pad = t_pad_to
    cin_pad = _round_up(Cin, 128) - Cin

    # channels-last, bf16, lane-aligned channels, padded time.
    x = jnp.transpose(x_ncl, (0, 2, 1)).astype(jnp.bfloat16)       # (B, T, Cin)
    x = jnp.pad(x, ((0, 0), (0, T_pad - T), (0, cin_pad)))
    Cin_p = Cin + cin_pad

    # Host-side im2col weight layouts (done once), bf16 for the MXU.
    # Note(perf, v5e): the first-conv K could be packed 7*73 -> 512 (drops 43%
    # of zero columns) at the cost of lane-unaligned concats in-kernel; not
    # applied here since it needs benchmarking and only matters on v5e.
    wf = jnp.pad(w_first, ((0, 0), (0, cin_pad), (0, 0)))
    wf = wf.reshape(k_first * Cin_p, C).astype(jnp.bfloat16)       # (Kf*Cin_p, C)
    we = w_enc.reshape(layers, k_enc * C, C).astype(jnp.bfloat16)  # (L, Ke*C, C)
    bf = params["b_first"].reshape(1, C).astype(jnp.float32)
    be = params["b_enc"].astype(jnp.float32)                       # (L, C)

    # Grid sizing: one step with the whole batch by default (best on the
    # single-TC v5e/v6e: no per-step overhead, largest MXU M, weights loaded
    # once).  On v7x pass block_b=B//2 to use both TensorCores for large B.
    if block_b is None:
        block_b = B
    assert B % block_b == 0
    grid_b = B // block_b

    if vmem_limit_bytes is None and block_b > 8:
        # Intermediates scale with block_b; raise the scoped VMEM limit above
        # the 16/32 MiB defaults once the rough estimate gets close.
        im_bytes = block_b * T_pad * max(k_first * Cin_p, k_enc * C) * 2
        act_bytes = block_b * T_pad * C * 4 * 4
        w_bytes = (wf.size + we.size) * 2 + (bf.size + be.size) * 4
        in_bytes = block_b * T_pad * Cin_p * 2
        est = im_bytes + act_bytes + 2 * (w_bytes + in_bytes)
        if est > 12 * 2 ** 20:
            vmem_limit_bytes = min(2 * est, 48 * 2 ** 20)

    kernel = functools.partial(
        _mappingnet_kernel, layers=layers, k_first=k_first, k_enc=k_enc,
        dil_enc=dil_enc)

    def resident(arr):
        n = arr.ndim
        # Same block every grid step -> stays VMEM-resident across the grid.
        return pl.BlockSpec(arr.shape, lambda b, v: (0,) * n)

    pooled = pl.pallas_call(
        kernel,
        out_shape=jax.ShapeDtypeStruct((B, 1, C), jnp.float32),
        grid_spec=pltpu.PrefetchScalarGridSpec(
            num_scalar_prefetch=1,                 # valid_len lives in SMEM
            grid=(grid_b,),
            in_specs=[
                pl.BlockSpec((block_b, T_pad, Cin_p), lambda b, v: (b, 0, 0)),
                resident(wf), resident(bf), resident(we), resident(be),
            ],
            out_specs=pl.BlockSpec((block_b, 1, C), lambda b, v: (b, 0, 0)),
        ),
        compiler_params=pltpu.CompilerParams(
            dimension_semantics=("parallel",),
            vmem_limit_bytes=vmem_limit_bytes),
    )(jnp.array([valid_len], jnp.int32), x, wf, bf, we, be)

    return jnp.transpose(pooled, (0, 2, 1))        # (B, C, 1) like AdaptiveAvgPool1d(1)


def mapping_net_reference(x_ncl, params, *, layers=3, dil_enc=3):
    """Pure-JAX reference (PyTorch semantics) with the same bf16 quantization
    of matmul operands as the kernel, so only f32 accumulation order differs."""
    dn = ("NCH", "OIH", "NCH")
    q = lambda a: a.astype(jnp.bfloat16).astype(jnp.float32)
    wf = jnp.transpose(q(params["w_first"]), (2, 1, 0))   # (Cout, Cin, K)
    out = lax.conv_general_dilated(
        q(x_ncl), wf, window_strides=(1,), padding="VALID",
        dimension_numbers=dn) + params["b_first"][None, :, None]
    for layer in range(layers):
        act = q(jnp.maximum(out, 0.1 * out))
        wl = jnp.transpose(q(params["w_enc"][layer]), (2, 1, 0))
        y = lax.conv_general_dilated(
            act, wl, window_strides=(1,), padding="VALID",
            rhs_dilation=(dil_enc,), dimension_numbers=dn)
        out = y + params["b_enc"][layer][None, :, None] + out[:, :, 3:-3]
    return jnp.mean(out, axis=2, keepdims=True)


def init_params(key, coeff_nc, descriptor_nc, layers, k_first=7, k_enc=3):
    k1, k2, k3, k4 = jax.random.split(key, 4)
    return {
        # stored as (K, Cin, Cout): reshapes directly to the im2col layout
        "w_first": 0.05 * jax.random.normal(
            k1, (k_first, coeff_nc, descriptor_nc), jnp.float32),
        "b_first": 0.05 * jax.random.normal(k2, (descriptor_nc,), jnp.float32),
        "w_enc": 0.05 * jax.random.normal(
            k3, (layers, k_enc, descriptor_nc, descriptor_nc), jnp.float32),
        "b_enc": 0.05 * jax.random.normal(k4, (layers, descriptor_nc), jnp.float32),
    }


if __name__ == "__main__":
    # Model-consistent small shapes: coeff_nc=73, descriptor_nc=256, 3 layers.
    B, COEFF_NC, DESC_NC, LAYERS, T = 4, 73, 256, 3, 70

    key = jax.random.PRNGKey(0)
    k_x, k_p = jax.random.split(key)
    x = jax.random.normal(k_x, (B, COEFF_NC, T), jnp.float32)   # PyTorch NCL input
    params = init_params(k_p, COEFF_NC, DESC_NC, LAYERS)

    out = mapping_net_pallas(x, params, layers=LAYERS)
    out = jax.block_until_ready(out)

    ref = mapping_net_reference(x, params, layers=LAYERS)
    ref = jax.block_until_ready(ref)

    assert out.shape == (B, DESC_NC, 1), out.shape
    assert jnp.allclose(out, ref, rtol=5e-3, atol=5e-3), \
        float(jnp.max(jnp.abs(out - ref)))

    print("KERNEL_OK")
</pallas_src>

<mosaic_0001>
module attributes {stable_mosaic.version = 11 : i64} {
  func.func @_mappingnet_kernel(%arg0: i32, %arg1: memref<1xi32, #tpu.memory_space<smem>>, %arg2: memref<4x80x128xbf16, #tpu.memory_space<vmem>>, %arg3: memref<896x256xbf16, #tpu.memory_space<vmem>>, %arg4: memref<1x256xf32, #tpu.memory_space<vmem>>, %arg5: memref<3x768x256xbf16, #tpu.memory_space<vmem>>, %arg6: memref<3x256xf32, #tpu.memory_space<vmem>>, %arg7: memref<4x1x256xf32, #tpu.memory_space<vmem>>) attributes {dimension_semantics = [#tpu.dimension_semantics<parallel>], iteration_bounds = array<i64: 1>, scalar_prefetch = 1 : i64, scratch_operands = 0 : i64, tpu.core_type = #tpu.core_type<tc>, window_params = [{transform_indices = @transform_0, window_bounds = array<i64: 4, 80, 128>}, {pipeline_mode = #tpu.pipeline_mode<synchronous>, transform_indices = @transform_1, window_bounds = array<i64: 896, 256>}, {pipeline_mode = #tpu.pipeline_mode<synchronous>, transform_indices = @transform_2, window_bounds = array<i64: 1, 256>}, {pipeline_mode = #tpu.pipeline_mode<synchronous>, transform_indices = @transform_3, window_bounds = array<i64: 3, 768, 256>}, {pipeline_mode = #tpu.pipeline_mode<synchronous>, transform_indices = @transform_4, window_bounds = array<i64: 3, 256>}, {transform_indices = @transform_5, window_bounds = array<i64: 4, 1, 256>}]} {
    %c0 = arith.constant 0 : index
    %c0_0 = arith.constant 0 : index
    %c0_1 = arith.constant 0 : index
    %0 = vector.load %arg2[%c0, %c0_0, %c0_1] : memref<4x80x128xbf16, #tpu.memory_space<vmem>>, vector<4x80x128xbf16>
    %1 = vector.extract_strided_slice %0 {offsets = [0, 0, 0], sizes = [4, 72, 128], strides = [1, 1, 1]} : vector<4x80x128xbf16> to vector<4x72x128xbf16>
    %2 = vector.extract_strided_slice %0 {offsets = [0, 1, 0], sizes = [4, 72, 128], strides = [1, 1, 1]} : vector<4x80x128xbf16> to vector<4x72x128xbf16>
    %3 = vector.extract_strided_slice %0 {offsets = [0, 2, 0], sizes = [4, 72, 128], strides = [1, 1, 1]} : vector<4x80x128xbf16> to vector<4x72x128xbf16>
    %4 = vector.extract_strided_slice %0 {offsets = [0, 3, 0], sizes = [4, 72, 128], strides = [1, 1, 1]} : vector<4x80x128xbf16> to vector<4x72x128xbf16>
    %5 = vector.extract_strided_slice %0 {offsets = [0, 4, 0], sizes = [4, 72, 128], strides = [1, 1, 1]} : vector<4x80x128xbf16> to vector<4x72x128xbf16>
    %6 = vector.extract_strided_slice %0 {offsets = [0, 5, 0], sizes = [4, 72, 128], strides = [1, 1, 1]} : vector<4x80x128xbf16> to vector<4x72x128xbf16>
    %7 = vector.extract_strided_slice %0 {offsets = [0, 6, 0], sizes = [4, 72, 128], strides = [1, 1, 1]} : vector<4x80x128xbf16> to vector<4x72x128xbf16>
    %8 = tpu.concatenate %1, %2, %3, %4, %5, %6, %7 in 2 : vector<4x72x128xbf16>, vector<4x72x128xbf16>, vector<4x72x128xbf16>, vector<4x72x128xbf16>, vector<4x72x128xbf16>, vector<4x72x128xbf16>, vector<4x72x128xbf16> -> vector<4x72x896xbf16>
    %9 = vector.shape_cast %8 : vector<4x72x896xbf16> to vector<288x896xbf16>
    %c0_2 = arith.constant 0 : index
    %c0_3 = arith.constant 0 : index
    %10 = vector.load %arg3[%c0_2, %c0_3] : memref<896x256xbf16, #tpu.memory_space<vmem>>, vector<896x256xbf16>
    %cst = arith.constant dense<0.000000e+00> : vector<288x256xf32>
    %11 = tpu.matmul %9, %10, %cst {dimension_numbers = #tpu.dot_dimension_numbers<[1], [0], [0], [1], [0, 0, 1, 1], [], []>} : vector<288x896xbf16>, vector<896x256xbf16>, vector<288x256xf32> -> vector<288x256xf32>
    %12 = vector.shape_cast %11 : vector<288x256xf32> to vector<4x72x256xf32>
    %c0_4 = arith.constant 0 : index
    %c0_5 = arith.constant 0 : index
    %13 = vector.load %arg4[%c0_4, %c0_5] : memref<1x256xf32, #tpu.memory_space<vmem>>, vector<1x256xf32>
    %14 = vector.shape_cast %13 : vector<1x256xf32> to vector<256xf32>
    %15 = vector.shape_cast %14 : vector<256xf32> to vector<1x1x256xf32>
    %16 = vector.broadcast %15 : vector<1x1x256xf32> to vector<4x72x256xf32>
    %17 = arith.addf %12, %16 : vector<4x72x256xf32>
    %cst_6 = arith.constant 1.000000e-01 : f32
    %18 = vector.broadcast %cst_6 : f32 to vector<4x72x256xf32>
    %19 = arith.mulf %18, %17 : vector<4x72x256xf32>
    %20 = arith.maximumf %17, %19 : vector<4x72x256xf32>
    %21 = arith.truncf %20 : vector<4x72x256xf32> to vector<4x72x256xbf16>
    %22 = vector.extract_strided_slice %21 {offsets = [0, 0, 0], sizes = [4, 64, 256], strides = [1, 1, 1]} : vector<4x72x256xbf16> to vector<4x64x256xbf16>
    %23 = vector.extract_strided_slice %21 {offsets = [0, 3, 0], sizes = [4, 64, 256], strides = [1, 1, 1]} : vector<4x72x256xbf16> to vector<4x64x256xbf16>
    %24 = vector.extract_strided_slice %21 {offsets = [0, 6, 0], sizes = [4, 64, 256], strides = [1, 1, 1]} : vector<4x72x256xbf16> to vector<4x64x256xbf16>
    %25 = tpu.concatenate %22, %23, %24 in 2 : vector<4x64x256xbf16>, vector<4x64x256xbf16>, vector<4x64x256xbf16> -> vector<4x64x768xbf16>
    %26 = vector.shape_cast %25 : vector<4x64x768xbf16> to vector<256x768xbf16>
    %c0_7 = arith.constant 0 : index
    %c0_8 = arith.constant 0 : index
    %c0_9 = arith.constant 0 : index
    %27 = vector.load %arg5[%c0_7, %c0_8, %c0_9] : memref<3x768x256xbf16, #tpu.memory_space<vmem>>, vector<1x768x256xbf16>
    %28 = vector.shape_cast %27 : vector<1x768x256xbf16> to vector<768x256xbf16>
    %cst_10 = arith.constant dense<0.000000e+00> : vector<256x256xf32>
    %29 = tpu.matmul %26, %28, %cst_10 {dimension_numbers = #tpu.dot_dimension_numbers<[1], [0], [0], [1], [0, 0, 1, 1], [], []>} : vector<256x768xbf16>, vector<768x256xbf16>, vector<256x256xf32> -> vector<256x256xf32>
    %30 = vector.shape_cast %29 : vector<256x256xf32> to vector<4x64x256xf32>
    %31 = vector.extract_strided_slice %17 {offsets = [0, 3, 0], sizes = [4, 64, 256], strides = [1, 1, 1]} : vector<4x72x256xf32> to vector<4x64x256xf32>
    %c0_11 = arith.constant 0 : index
    %c0_12 = arith.constant 0 : index
    %32 = vector.load %arg6[%c0_11, %c0_12] : memref<3x256xf32, #tpu.memory_space<vmem>>, vector<1x256xf32>
    %33 = vector.shape_cast %32 : vector<1x256xf32> to vector<256xf32>
    %34 = vector.shape_cast %33 : vector<256xf32> to vector<1x1x256xf32>
    %35 = vector.broadcast %34 : vector<1x1x256xf32> to vector<4x64x256xf32>
    %36 = arith.addf %31, %35 : vector<4x64x256xf32>
    %37 = arith.addf %30, %36 : vector<4x64x256xf32>
    %cst_13 = arith.constant 1.000000e-01 : f32
    %38 = vector.broadcast %cst_13 : f32 to vector<4x64x256xf32>
    %39 = arith.mulf %38, %37 : vector<4x64x256xf32>
    %40 = arith.maximumf %37, %39 : vector<4x64x256xf32>
    %41 = arith.truncf %40 : vector<4x64x256xf32> to vector<4x64x256xbf16>
    %42 = vector.extract_strided_slice %41 {offsets = [0, 0, 0], sizes = [4, 56, 256], strides = [1, 1, 1]} : vector<4x64x256xbf16> to vector<4x56x256xbf16>
    %43 = vector.extract_strided_slice %41 {offsets = [0, 3, 0], sizes = [4, 56, 256], strides = [1, 1, 1]} : vector<4x64x256xbf16> to vector<4x56x256xbf16>
    %44 = vector.extract_strided_slice %41 {offsets = [0, 6, 0], sizes = [4, 56, 256], strides = [1, 1, 1]} : vector<4x64x256xbf16> to vector<4x56x256xbf16>
    %45 = tpu.concatenate %42, %43, %44 in 2 : vector<4x56x256xbf16>, vector<4x56x256xbf16>, vector<4x56x256xbf16> -> vector<4x56x768xbf16>
    %46 = vector.shape_cast %45 : vector<4x56x768xbf16> to vector<224x768xbf16>
    %c1 = arith.constant 1 : index
    %c0_14 = arith.constant 0 : index
    %c0_15 = arith.constant 0 : index
    %47 = vector.load %arg5[%c1, %c0_14, %c0_15] : memref<3x768x256xbf16, #tpu.memory_space<vmem>>, vector<1x768x256xbf16>
    %48 = vector.shape_cast %47 : vector<1x768x256xbf16> to vector<768x256xbf16>
    %cst_16 = arith.constant dense<0.000000e+00> : vector<224x256xf32>
    %49 = tpu.matmul %46, %48, %cst_16 {dimension_numbers = #tpu.dot_dimension_numbers<[1], [0], [0], [1], [0, 0, 1, 1], [], []>} : vector<224x768xbf16>, vector<768x256xbf16>, vector<224x256xf32> -> vector<224x256xf32>
    %50 = vector.shape_cast %49 : vector<224x256xf32> to vector<4x56x256xf32>
    %51 = vector.extract_strided_slice %37 {offsets = [0, 3, 0], sizes = [4, 56, 256], strides = [1, 1, 1]} : vector<4x64x256xf32> to vector<4x56x256xf32>
    %c1_17 = arith.constant 1 : index
    %c0_18 = arith.constant 0 : index
    %52 = vector.load %arg6[%c1_17, %c0_18] : memref<3x256xf32, #tpu.memory_space<vmem>>, vector<1x256xf32>
    %53 = vector.shape_cast %52 : vector<1x256xf32> to vector<256xf32>
    %54 = vector.shape_cast %53 : vector<256xf32> to vector<1x1x256xf32>
    %55 = vector.broadcast %54 : vector<1x1x256xf32> to vector<4x56x256xf32>
    %56 = arith.addf %51, %55 : vector<4x56x256xf32>
    %57 = arith.addf %50, %56 : vector<4x56x256xf32>
    %cst_19 = arith.constant 1.000000e-01 : f32
    %58 = vector.broadcast %cst_19 : f32 to vector<4x56x256xf32>
    %59 = arith.mulf %58, %57 : vector<4x56x256xf32>
    %60 = arith.maximumf %57, %59 : vector<4x56x256xf32>
    %61 = arith.truncf %60 : vector<4x56x256xf32> to vector<4x56x256xbf16>
    %62 = vector.extract_strided_slice %61 {offsets = [0, 0, 0], sizes = [4, 48, 256], strides = [1, 1, 1]} : vector<4x56x256xbf16> to vector<4x48x256xbf16>
    %63 = vector.extract_strided_slice %61 {offsets = [0, 3, 0], sizes = [4, 48, 256], strides = [1, 1, 1]} : vector<4x56x256xbf16> to vector<4x48x256xbf16>
    %64 = vector.extract_strided_slice %61 {offsets = [0, 6, 0], sizes = [4, 48, 256], strides = [1, 1, 1]} : vector<4x56x256xbf16> to vector<4x48x256xbf16>
    %65 = tpu.concatenate %62, %63, %64 in 2 : vector<4x48x256xbf16>, vector<4x48x256xbf16>, vector<4x48x256xbf16> -> vector<4x48x768xbf16>
    %66 = vector.shape_cast %65 : vector<4x48x768xbf16> to vector<192x768xbf16>
    %c2 = arith.constant 2 : index
    %c0_20 = arith.constant 0 : index
    %c0_21 = arith.constant 0 : index
    %67 = vector.load %arg5[%c2, %c0_20, %c0_21] : memref<3x768x256xbf16, #tpu.memory_space<vmem>>, vector<1x768x256xbf16>
    %68 = vector.shape_cast %67 : vector<1x768x256xbf16> to vector<768x256xbf16>
    %cst_22 = arith.constant dense<0.000000e+00> : vector<192x256xf32>
    %69 = tpu.matmul %66, %68, %cst_22 {dimension_numbers = #tpu.dot_dimension_numbers<[1], [0], [0], [1], [0, 0, 1, 1], [], []>} : vector<192x768xbf16>, vector<768x256xbf16>, vector<192x256xf32> -> vector<192x256xf32>
    %70 = vector.shape_cast %69 : vector<192x256xf32> to vector<4x48x256xf32>
    %71 = vector.extract_strided_slice %57 {offsets = [0, 3, 0], sizes = [4, 48, 256], strides = [1, 1, 1]} : vector<4x56x256xf32> to vector<4x48x256xf32>
    %c2_23 = arith.constant 2 : index
    %c0_24 = arith.constant 0 : index
    %72 = vector.load %arg6[%c2_23, %c0_24] : memref<3x256xf32, #tpu.memory_space<vmem>>, vector<1x256xf32>
    %73 = vector.shape_cast %72 : vector<1x256xf32> to vector<256xf32>
    %74 = vector.shape_cast %73 : vector<256xf32> to vector<1x1x256xf32>
    %75 = vector.broadcast %74 : vector<1x1x256xf32> to vector<4x48x256xf32>
    %76 = arith.addf %71, %75 : vector<4x48x256xf32>
    %77 = arith.addf %70, %76 : vector<4x48x256xf32>
    %c0_25 = arith.constant 0 : index
    %78 = memref.load %arg1[%c0_25] : memref<1xi32, #tpu.memory_space<smem>>
    %79 = tpu.iota {dimensions = array<i32: 1>} : vector<1x48x1xi32>
    %80 = vector.broadcast %78 : i32 to vector<1x48x1xi32>
    %81 = arith.cmpi slt, %79, %80 : vector<1x48x1xi32>
    %cst_26 = arith.constant 0.000000e+00 : f32
    %82 = vector.shape_cast %81 : vector<1x48x1xi1> to vector<1x48x1xi1>
    %83 = vector.broadcast %82 : vector<1x48x1xi1> to vector<4x48x256xi1>
    %84 = vector.broadcast %cst_26 : f32 to vector<4x48x256xf32>
    %85 = arith.select %83, %77, %84 : vector<4x48x256xi1>, vector<4x48x256xf32>
    %cst_27 = arith.constant dense<0.000000e+00> : vector<4x256xf32>
    %86 = vector.multi_reduction <add>, %85, %cst_27 [1] : vector<4x48x256xf32> to vector<4x256xf32>
    %87 = vector.shape_cast %86 : vector<4x256xf32> to vector<4x1x256xf32>
    %88 = arith.sitofp %78 : i32 to f32
    %89 = vector.broadcast %88 : f32 to vector<4x1x256xf32>
    %90 = arith.divf %87, %89 : vector<4x1x256xf32>
    %c0_28 = arith.constant 0 : index
    %c0_29 = arith.constant 0 : index
    %c0_30 = arith.constant 0 : index
    %91 = vector.load %arg7[%c0_28, %c0_29, %c0_30] : memref<4x1x256xf32, #tpu.memory_space<vmem>>, vector<4x1x256xf32>
    tpu.vector_store %arg7[%c0_28, %c0_29, %c0_30], %90 {strides = array<i32>} : memref<4x1x256xf32, #tpu.memory_space<vmem>>, vector<4x1x256xf32>,
    return
  }
  func.func @transform_0(%arg0: i32, %arg1: memref<1xi32, #tpu.memory_space<smem>>) -> (i32, i32, i32) {
    %c0_i32 = arith.constant 0 : i32
    %c0_i32_0 = arith.constant 0 : i32
    %c0_i32_1 = arith.constant 0 : i32
    return %arg0, %c0_i32, %c0_i32_0 : i32, i32, i32
  }
  func.func @transform_1(%arg0: i32, %arg1: memref<1xi32, #tpu.memory_space<smem>>) -> (i32, i32) {
    %c0_i32 = arith.constant 0 : i32
    %c0_i32_0 = arith.constant 0 : i32
    %c0_i32_1 = arith.constant 0 : i32
    return %c0_i32, %c0_i32_0 : i32, i32
  }
  func.func @transform_2(%arg0: i32, %arg1: memref<1xi32, #tpu.memory_space<smem>>) -> (i32, i32) {
    %c0_i32 = arith.constant 0 : i32
    %c0_i32_0 = arith.constant 0 : i32
    %c0_i32_1 = arith.constant 0 : i32
    return %c0_i32, %c0_i32_0 : i32, i32
  }
  func.func @transform_3(%arg0: i32, %arg1: memref<1xi32, #tpu.memory_space<smem>>) -> (i32, i32, i32) {
    %c0_i32 = arith.constant 0 : i32
    %c0_i32_0 = arith.constant 0 : i32
    %c0_i32_1 = arith.constant 0 : i32
    %c0_i32_2 = arith.constant 0 : i32
    return %c0_i32, %c0_i32_0, %c0_i32_1 : i32, i32, i32
  }
  func.func @transform_4(%arg0: i32, %arg1: memref<1xi32, #tpu.memory_space<smem>>) -> (i32, i32) {
    %c0_i32 = arith.constant 0 : i32
    %c0_i32_0 = arith.constant 0 : i32
    %c0_i32_1 = arith.constant 0 : i32
    return %c0_i32, %c0_i32_0 : i32, i32
  }
  func.func @transform_5(%arg0: i32, %arg1: memref<1xi32, #tpu.memory_space<smem>>) -> (i32, i32, i32) {
    %c0_i32 = arith.constant 0 : i32
    %c0_i32_0 = arith.constant 0 : i32
    %c0_i32_1 = arith.constant 0 : i32
    return %arg0, %c0_i32, %c0_i32_0 : i32, i32, i32
  }
}

</mosaic_0001>

<bundles_post_ra>
// kernel: tpu_custom_call.1
= control target key start
LH: loop header
LB: loop body
LE: loop exit
PB: predicated region body
PF: predicated region fallthrough
CT: control target
= control target key end

     0   :  { %12 = vsyncpa [#allocation5], 0  ;;  %s17302_s0 = inlined_call_operand.<no memory space> [shape: s32[1], index: 0, kind: input, shape index: {}]   ;;  %s17303_s1 = inlined_call_operand.hbm [shape: bf16[4,80,128], index: 1, kind: input, shape index: {}]   ;;  %s17304_s2 = inlined_call_operand.hbm [shape: bf16[896,256], index: 2, kind: input, shape index: {}]   ;;  %s17305_s3 = inlined_call_operand.hbm [shape: f32[1,256], index: 3, kind: input, shape index: {}]   ;;  %s17306_s4 = inlined_call_operand.hbm [shape: bf16[3,768,256], index: 4, kind: input, shape index: {}]   ;;  %s17307_s5 = inlined_call_operand.hbm [shape: f32[3,256], index: 5, kind: input, shape index: {}]   ;;  %s17308_s6 = inlined_call_operand.hbm [shape: f32[4,1,256], index: 6, kind: output, shape index: {}]  }
   0x1   :  { %13 = vsyncpa [#allocation8], 0 }
   0x2   :  { %14 = vsyncpa [#allocation11], 0 }
   0x3   :  { %15 = vsyncpa [#allocation6], 0  ;;  %s10805_s21 = smov [#allocation7]  }
   0x4   :  { %s33_s22 = sshll.u32 %s10805_s21, 4  ;;  %s34_s22 = int_to_ptr.vmem [resolvable:$true] %s33_s22 }
   0x5   :  { %s10685_s23 = scalar_lea.vmem %s34_s22, 14336  ;;  %p10690_p1 = scmp.lt.s32.totalorder %s34_s22, %s34_s22 }
   0x6   :  { %p10686_p0 = scmp.ne.s32.totalorder %s34_s22, %s10685_s23  ;;  %p10691_p2 = scmp.lt.s32.totalorder %s10685_s23, %s10685_s23 }
   0x8   :  { %p10692_p3 = por %p10691_p2, %p10690_p1 }
   0xa   :  { %p10693_p4 = pnand %p10692_p3, %p10686_p0 }
   0xc   :  { %10696 = shalt.err (!%p10693_p4)
}
   0xd   :  { %s10806_s24 = smov 128   ;;  %s10807_s25 = smov 8  }
   0xe   :  { %39 = dma.hbm_to_vmem [thread:$0]  %s17304_s2, 14336, %s34_s22, [#allocation8], %s10806_s24, %s10806_s24, %s10807_s25  }
   0xf   :  { %s10808_s28 = smov [#allocation10]   ;;  %s10809_s30 = smov [#allocation4]  }
  0x10   :  { %s55_s29 = sshll.u32 %s10808_s28, 4  ;;  %s21_s7 = sshll.u32 %s10809_s30, 4  ;;  %s56_s29 = int_to_ptr.vmem [resolvable:$true] %s55_s29  ;;  %s22_s7 = int_to_ptr.vmem [resolvable:$true] %s21_s7 }
  0x11   :  { %s10705_s8 = scalar_lea.vmem %s56_s29, 36864  ;;  %p10710_p6 = scmp.lt.s32.totalorder %s56_s29, %s56_s29 }
  0x12   :  { %p10706_p5 = scmp.ne.s32.totalorder %s56_s29, %s10705_s8  ;;  %p10711_p7 = scmp.lt.s32.totalorder %s10705_s8, %s10705_s8 }
  0x14   :  { %p10712_p8 = por %p10711_p7, %p10710_p6 }
  0x16   :  { %p10713_p9 = pnand %p10712_p8, %p10706_p5 }
  0x18   :  { %10716 = shalt.err (!%p10713_p9)
}
  0x19   :  { %61 = dma.hbm_to_vmem [thread:$0]  %s17306_s4, 36864, %s56_s29, [#allocation11], %s10806_s24, %s10806_s24, %s10807_s25  }
  0x1a   :  { %s10725_s11 = scalar_lea.vmem %s22_s7, 2560  ;;  %p10730_p11 = scmp.lt.s32.totalorder %s22_s7, %s22_s7 }
  0x1b   :  { %p10726_p10 = scmp.ne.s32.totalorder %s22_s7, %s10725_s11  ;;  %p10731_p12 = scmp.lt.s32.totalorder %s10725_s11, %s10725_s11 }
  0x1d   :  { %p10732_p13 = por %p10731_p12, %p10730_p11 }
  0x1f   :  { %p10733_p0 = pnand %p10732_p13, %p10726_p10 }
  0x21   :  { %10736 = shalt.err (!%p10733_p0)
}
  0x22   :  { %s10810_s2 = smov 64   ;;  %s10811_s12 = smov 4  }
  0x23   :  { %27 = dma.hbm_to_vmem [thread:$0]  %s17303_s1, 2560, %s22_s7, [#allocation5], %s10810_s2, %s10810_s2, %s10811_s12  }
  0x24   :  { %s10812_s15 = smov [#allocation9]   ;;  %s10813_s17 = smov [#allocation12]  }
  0x25   :  { %s46_s16 = sshll.u32 %s10812_s15, 4  ;;  %s68_s18 = sshll.u32 %s10813_s17, 4  ;;  %s47_s16 = int_to_ptr.vmem [resolvable:$true] %s46_s16  ;;  %s69_s18 = int_to_ptr.vmem [resolvable:$true] %s68_s18 }
  0x26   :  { %s10745_s4 = scalar_lea.vmem %s47_s16, 32  ;;  %p10750_p2 = scmp.lt.s32.totalorder %s47_s16, %s47_s16 }
  0x27   :  { %p10746_p1 = scmp.ne.s32.totalorder %s47_s16, %s10745_s4  ;;  %p10751_p3 = scmp.lt.s32.totalorder %s10745_s4, %s10745_s4 }
  0x29   :  { %p10752_p4 = por %p10751_p3, %p10750_p2 }
  0x2b   :  { %p10753_p5 = pnand %p10752_p4, %p10746_p1 }
  0x2d   :  { %10756 = shalt.err (!%p10753_p5)
}
  0x2e   :  { %49 = dma.hbm_to_vmem [thread:$0]  %s17305_s3, 32, %s47_s16, [#allocation8]  }
  0x2f   :  { %s10765_s21 = scalar_lea.vmem %s69_s18, 128  ;;  %p10770_p7 = scmp.lt.s32.totalorder %s69_s18, %s69_s18 }
  0x30   :  { %p10766_p6 = scmp.ne.s32.totalorder %s69_s18, %s10765_s21  ;;  %p10771_p8 = scmp.lt.s32.totalorder %s10765_s21, %s10765_s21 }
  0x32   :  { %p10772_p9 = por %p10771_p8, %p10770_p7 }
  0x34   :  { %p10773_p10 = pnand %p10772_p9, %p10766_p6 }
  0x36   :  { %10776 = shalt.err (!%p10773_p10)
}
  0x37   :  { %71 = dma.hbm_to_vmem [thread:$0]  %s17307_s5, 128, %s69_s18, [#allocation11]  }
  0x38   :  { %10797 = dma.done.wait [#allocation5], 2560  }
  0x39   :  { %10798 = vsyncadd [#allocation5], 4294964736 }
  0x3a   :  { %10799 = dma.done.wait [#allocation8], 14368  }
  0x3b   :  { %10800 = vsyncadd [#allocation8], 4294952928 }
  0x3c   :  { %10801 = dma.done.wait [#allocation11], 36992  }
  0x3d   :  { %10802 = vsyncadd [#allocation11], 4294930304  ;;  %v10037_v0 = vld [vmem:[#allocation7 + $0x74] ss:$8 sps:$4 sm:$0xff]   ;;  %v10041_v2 = vld [vmem:[#allocation7 + $0x70] ss:$8 sps:$4 sm:$0xff]   ;;  %s9423_s23 = scvt.s32.f32 %s17302_s0 }
  0x3e   :  { %v10039_v1 = vld [vmem:[#allocation7 + $0x174] ss:$8 sps:$4 sm:$0xff]   ;;  %1782 = vmatprep.subr.bf16.mxu0 %v10037_v0  ;;  %v10042_v3 = vld [vmem:[#allocation7 + $0x170] ss:$8 sps:$4 sm:$0xff]   ;;  %v10043_v4 = vld [vmem:[#allocation7 + $0x64] ss:$8 sps:$4 sm:$0xff]  }
  0x3f   :  { %1995 = vmatprep.subr.bf16.mxu1 %v10039_v1  ;;  %1783 = vmatpush1.bf16.msra.mxu0 %v10041_v2  ;;  %v10045_v5 = vld [vmem:[#allocation7 + $0x164] ss:$8 sps:$4 sm:$0xff]   ;;  %v10047_v6 = vld [vmem:[#allocation7 + $0x60] ss:$8 sps:$4 sm:$0xff]   ;;  %v10049_v8 = vld [vmem:[#allocation7 + $0x54] ss:$8 sps:$4 sm:$0xff]  }
  0x40   :  { %1996 = vmatpush1.bf16.msra.mxu1 %v10042_v3  ;;  %1784 = vmatprep.subr.bf16.mxu0 %v10043_v4  ;;  %v10048_v7 = vld [vmem:[#allocation7 + $0x160] ss:$8 sps:$4 sm:$0xff]   ;;  %v10051_v9 = vld [vmem:[#allocation7 + $0x154] ss:$8 sps:$4 sm:$0xff]   ;;  %v10053_v10 = vld [vmem:[#allocation7 + $0x50] ss:$8 sps:$4 sm:$0xff]  }
  0x41   :  { %1997 = vmatprep.subr.bf16.mxu1 %v10045_v5  ;;  %v10054_v11 = vld [vmem:[#allocation7 + $0x150] ss:$8 sps:$4 sm:$0xff]   ;;  %v10055_v12 = vld [vmem:[#allocation7 + $0x44] ss:$8 sps:$4 sm:$0xff]   ;;  %v10059_v14 = vld [vmem:[#allocation7 + $0x40] ss:$8 sps:$4 sm:$0xff]  }
  0x42   :  { %v10057_v13 = vld [vmem:[#allocation7 + $0x144] ss:$8 sps:$4 sm:$0xff]   ;;  %v10060_v15 = vld [vmem:[#allocation7 + $0x140] ss:$8 sps:$4 sm:$0xff]   ;;  %v10061_v16 = vld [vmem:[#allocation7 + $0x34] ss:$8 sps:$4 sm:$0xff]  }
  0x43   :  { %1785 = vmatpush1.bf16.msra.mxu0 %v10047_v6  ;;  %v10063_v17 = vld [vmem:[#allocation7 + $0x134] ss:$8 sps:$4 sm:$0xff]   ;;  %v10065_v18 = vld [vmem:[#allocation7 + $0x30] ss:$8 sps:$4 sm:$0xff]   ;;  %v10067_v20 = vld [vmem:[#allocation7 + $0x24] ss:$8 sps:$4 sm:$0xff]  }
  0x44   :  { %1998 = vmatpush1.bf16.msra.mxu1 %v10048_v7  ;;  %1786 = vmatprep.subr.bf16.mxu0 %v10049_v8  ;;  %v10066_v19 = vld [vmem:[#allocation7 + $0x130] ss:$8 sps:$4 sm:$0xff]   ;;  %v10069_v21 = vld [vmem:[#allocation7 + $0x124] ss:$8 sps:$4 sm:$0xff]   ;;  %v10071_v22 = vld [vmem:[#allocation7 + $0x20] ss:$8 sps:$4 sm:$0xff]  }
  0x45   :  { %1999 = vmatprep.subr.bf16.mxu1 %v10051_v9  ;;  %v10072_v23 = vld [vmem:[#allocation7 + $0x120] ss:$8 sps:$4 sm:$0xff]   ;;  %v10073_v24 = vld [vmem:[#allocation7 + $0x14] ss:$8 sps:$4 sm:$0xff]   ;;  %v10077_v26 = vld [vmem:[#allocation7 + $0x10] ss:$8 sps:$4 sm:$0xff]  }
  0x46   :  { %v10075_v25 = vld [vmem:[#allocation7 + $0x114] ss:$8 sps:$4 sm:$0xff]   ;;  %v10078_v27 = vld [vmem:[#allocation7 + $0x110] ss:$8 sps:$4 sm:$0xff]   ;;  %v10079_v28 = vld [vmem:[#allocation7 + $0x4] ss:$8 sps:$4 sm:$0xff]  }
  0x47   :  { %1787 = vmatpush1.bf16.msra.mxu0 %v10053_v10  ;;  %v10081_v29 = vld [vmem:[#allocation7 + $0x104] ss:$8 sps:$4 sm:$0xff]   ;;  %v10083_v30 = vld [vmem:[#allocation7] ss:$8 sps:$4 sm:$0xff]   ;;  %v10085_v32 = vld [vmem:[#allocation7 + $0xf4] ss:$8 sps:$4 sm:$0xff]  }
  0x48   :  { %2000 = vmatpush1.bf16.msra.mxu1 %v10054_v11  ;;  %1788 = vmatprep.subr.bf16.mxu0 %v10055_v12  ;;  %v10084_v31 = vld [vmem:[#allocation7 + $0x100] ss:$8 sps:$4 sm:$0xff]   ;;  %v10087_v33 = vld [vmem:[#allocation7 + $0x1f4] ss:$8 sps:$4 sm:$0xff]   ;;  %v10089_v34 = vld [vmem:[#allocation7 + $0xf0] ss:$8 sps:$4 sm:$0xff]  }
  0x49   :  { %2001 = vmatprep.subr.bf16.mxu1 %v10057_v13  ;;  %v10090_v35 = vld [vmem:[#allocation7 + $0x1f0] ss:$8 sps:$4 sm:$0xff]   ;;  %v10091_v36 = vld [vmem:[#allocation7 + $0xe4] ss:$8 sps:$4 sm:$0xff]   ;;  %v10095_v38 = vld [vmem:[#allocation7 + $0xe0] ss:$8 sps:$4 sm:$0xff]  }
  0x4a   :  { %v10093_v37 = vld [vmem:[#allocation7 + $0x1e4] ss:$8 sps:$4 sm:$0xff]   ;;  %v10096_v39 = vld [vmem:[#allocation7 + $0x1e0] ss:$8 sps:$4 sm:$0xff]   ;;  %v10097_v40 = vld [vmem:[#allocation7 + $0xd4] ss:$8 sps:$4 sm:$0xff]  }
  0x4b   :  { %1789 = vmatpush1.bf16.msra.mxu0 %v10059_v14  ;;  %v10099_v41 = vld [vmem:[#allocation7 + $0x1d4] ss:$8 sps:$4 sm:$0xff]   ;;  %v10101_v42 = vld [vmem:[#allocation7 + $0xd0] ss:$8 sps:$4 sm:$0xff]   ;;  %v10103_v44 = vld [vmem:[#allocation7 + $0xc4] ss:$8 sps:$4 sm:$0xff]  }
  0x4c   :  { %2002 = vmatpush1.bf16.msra.mxu1 %v10060_v15  ;;  %1790 = vmatprep.subr.bf16.mxu0 %v10061_v16  ;;  %v10102_v43 = vld [vmem:[#allocation7 + $0x1d0] ss:$8 sps:$4 sm:$0xff]   ;;  %v10105_v45 = vld [vmem:[#allocation7 + $0x1c4] ss:$8 sps:$4 sm:$0xff]   ;;  %v10107_v46 = vld [vmem:[#allocation7 + $0xc0] ss:$8 sps:$4 sm:$0xff]  }
  0x4d   :  { %2003 = vmatprep.subr.bf16.mxu1 %v10063_v17  ;;  %v10108_v47 = vld [vmem:[#allocation7 + $0x1c0] ss:$8 sps:$4 sm:$0xff]   ;;  %vm228_vm0 = vsmask.f32 7424  ;;  %v10109_v50 = vld [vmem:[#allocation7 + $0xb4] ss:$8 sps:$4 sm:$0xff]  }
  0x4e   :  { %v10869_v48 = vld [vmem:[#allocation4] sm:$0xff]   ;;  %v10871_v49 = vld [vmem:[#allocation4 + $0x8] sm:$0xff]   ;;  %v10111_v51 = vld [vmem:[#allocation7 + $0x1b4] ss:$8 sps:$4 sm:$0xff]   ;;  %vm422_vm1 = vsmask.f32 6400 }
  0x4f   :  { %1791 = vmatpush1.bf16.msra.mxu0 %v10065_v18  ;;  %v10113_v52 = vld [vmem:[#allocation7 + $0xb0] ss:$8 sps:$4 sm:$0xff]   ;;  %v10874_v53 = vshrl.u32 %v10869_v48, 16  ;;  %v10877_v54 = vshll.u32 %v10869_v48, 16  ;;  %v10880_v55 = vshll.u32 %v10871_v49, 16  ;;  %v10883_v56 = vshrl.u32 %v10871_v49, 16 }
  0x50   :  { %2004 = vmatpush1.bf16.msra.mxu1 %v10066_v19  ;;  %1792 = vmatprep.subr.bf16.mxu0 %v10067_v20  ;;  %v10114_v57 = vld [vmem:[#allocation7 + $0x1b0] ss:$8 sps:$4 sm:$0xff]   ;;  %v10115_v58 = vld [vmem:[#allocation7 + $0xa4] ss:$8 sps:$4 sm:$0xff]   ;;  %v10119_v5 = vld [vmem:[#allocation7 + $0xa0] ss:$8 sps:$4 sm:$0xff]  }
  0x51   :  { %2005 = vmatprep.subr.bf16.mxu1 %v10069_v21  ;;  %v10117_v59 = vld [vmem:[#allocation7 + $0x1a4] ss:$8 sps:$4 sm:$0xff]   ;;  %v234_v60 = vrot.slane %v10877_v54, 1  ;;  %v239_v61 = vrot.slane %v10880_v55, 1  ;;  %v423_v62 = vrot.slane %v10874_v53, 1  ;;  %v424_v63 = vrot.slane %v10877_v54, 2 }
  0x52   :  { %v426_v0 = vrot.slane %v10883_v56, 1  ;;  %v427_v1 = vrot.slane %v10880_v55, 2  ;;  %v10892_v4 = vld [vmem:[#allocation4 + $0x10] sm:$0xff]   ;;  %v10120_v6 = vld [vmem:[#allocation7 + $0x1a0] ss:$8 sps:$4 sm:$0xff]   ;;  %v10902_v18 = vld [vmem:[#allocation4 + $0x18] sm:$0xff]  }
  0x53   :  { %1793 = vmatpush1.bf16.msra.mxu0 %v10071_v22  ;;  %v235_v2 = vor.u32 %v234_v60, %v10874_v53  ;;  %v425_v3 = vor.u32 %v424_v63, %v423_v62  ;;  %v10121_v9 = vld [vmem:[#allocation7 + $0x94] ss:$8 sps:$4 sm:$0xff]   ;;  %v10897_v12 = vshll.u32 %v10892_v4, 16  ;;  %v10900_v13 = vshrl.u32 %v10892_v4, 16  ;;  %v10125_v14 = vld [vmem:[#allocation7 + $0x90] ss:$8 sps:$4 sm:$0xff]  }
  0x54   :  { %2006 = vmatpush1.bf16.msra.mxu1 %v10072_v23  ;;  %1794 = vmatprep.subr.bf16.mxu0 %v10073_v24  ;;  %v428_v7 = vor.u32 %v427_v1, %v426_v0  ;;  %v10123_v10 = vld [vmem:[#allocation7 + $0x194] ss:$8 sps:$4 sm:$0xff]   ;;  %v10126_v15 = vld [vmem:[#allocation7 + $0x190] ss:$8 sps:$4 sm:$0xff]   ;;  %v10127_v16 = vld [vmem:[#allocation7 + $0x84] ss:$8 sps:$4 sm:$0xff]  }
  0x55   :  { %2007 = vmatprep.subr.bf16.mxu1 %v10075_v25  ;;  %v240_v8 = vsel %vm228_vm0, %v235_v2, %v239_v61  ;;  %v10129_v17 = vld [vmem:[#allocation7 + $0x184] ss:$8 sps:$4 sm:$0xff]   ;;  %v10131_v19 = vld [vmem:[#allocation7 + $0x80] ss:$8 sps:$4 sm:$0xff]   ;;  %v430_v21 = vrot.slane %v10900_v13, 1  ;;  %v431_v22 = vrot.slane %v10897_v12, 2 }
  0x56   :  { %v429_v11 = vsel %vm422_vm1, %v425_v3, %v428_v7  ;;  %1814 = vmatprep.mubr.bf16.mxu0 %v240_v8  ;;  %v10132_v20 = vld [vmem:[#allocation7 + $0x180] ss:$8 sps:$4 sm:$0xff]   ;;  %v10137_v23 = vld [vmem:[#allocation7 + $0x274] ss:$8 sps:$4 sm:$0xff]   ;;  %v97_v25 = vld [vmem:[#allocation4 + $0x24] sm:$0xf] }
  0x57   :  { %1795 = vmatpush1.bf16.msra.mxu0 %v10077_v26  ;;  %2027 = vmatprep.mubr.bf16.mxu1 %v429_v11  ;;  %v10906_v24 = vld [vmem:[#allocation4 + $0x20] sm:$0xf]  ;;  %v386_v26 = vrot.slane %v10869_v48, 1  ;;  %vm385_vm2 = vcmask 1046528   ;;  %v10164_v62 = vld [vmem:[#allocation7 + $0x354] ss:$8 sps:$4 sm:$0xff]  }
  0x58   :  { %2008 = vmatpush1.bf16.msra.mxu1 %v10078_v27  ;;  %1796 = vmatprep.subr.bf16.mxu0 %v10079_v28  ;;  %v387_v27 = vrot.slane %v10871_v49, 1  ;;  %v10140_v28 = vld [vmem:[#allocation7 + $0x374] ss:$8 sps:$4 sm:$0xff]   ;;  %v10950_v63 = vld [vmem:[#allocation4 + $0x38] sm:$0xf]  ;;  %vm499_vm4 = vcmask 1045504  }
  0x59   :  { %2009 = vmatprep.subr.bf16.mxu1 %v10081_v29  ;;  %v10911_v29 = vshll.u32 %v10902_v18, 16  ;;  %v10954_v2 = vld [vmem:[#allocation4 + $0x3c] sm:$0xf]  ;;  %vm536_vm3 = vsmask.f32 5376  ;;  %vm613_vm5 = vcmask 1044480  }
  0x5b   :  { %1797 = vmatpush1.bf16.msra.mxu0 %v10083_v30  ;;  %v10914_v30 = vshrl.u32 %v10902_v18, 16  ;;  %v255_v0 = vrot.slane %v10911_v29, 1 }
  0x5c   :  { %2010 = vmatpush1.bf16.msra.mxu1 %v10084_v31  ;;  %1798 = vmatprep.subr.bf16.mxu0 %v10085_v32  ;;  %v10135_v31 = vld [vmem:[#allocation7 + $0x270] ss:$8 sps:$4 sm:$0xff]   ;;  %v243_v32 = vor.u32 %v10883_v56, %v239_v61  ;;  %v10149_v61 = vld [vmem:[#allocation7 + $0x360] ss:$8 sps:$4 sm:$0xff]  }
  0x5d   :  { %2011 = vmatprep.subr.bf16.mxu1 %v10087_v33  ;;  %v247_v33 = vrot.slane %v10897_v12, 1 }
  0x5f   :  { %1799 = vmatpush2.bf16.msra.mxu0 %v10089_v34  ;;  %v432_v34 = vor.u32 %v431_v22, %v430_v21  ;;  %v259_v21 = vor.u32 %v10914_v30, %v255_v0 }
  0x60   :  { %2012 = vmatpush2.bf16.msra.mxu1 %v10090_v35  ;;  %1800 = vmatprep.subr.bf16.mxu0 %v10091_v36  ;;  %v10919_v35 = vcombine.low %v10906_v24, %v97_v25  ;;  %v10138_v36 = vld [vmem:[#allocation7 + $0x370] ss:$8 sps:$4 sm:$0xff]   ;;  %v10153_v25 = vld [vmem:[#allocation7 + $0x240] ss:$8 sps:$4 sm:$0xff]  }
  0x61   :  { %2013 = vmatprep.subr.bf16.mxu1 %v10093_v37  ;;  %v10921_v37 = vld [vmem:[#allocation4 + $0x28] sm:$0xf] }
  0x63   :  { %1801 = vmatpush2.bf16.msra.mxu0 %v10095_v38  ;;  %v388_v38 = vsel %vm385_vm2, %v386_v26, %v387_v27 }
  0x64   :  { %2014 = vmatpush2.bf16.msra.mxu1 %v10096_v39  ;;  %1802 = vmatprep.subr.bf16.mxu0 %v10097_v40  ;;  %v10924_v39 = vld [vmem:[#allocation4 + $0x2c] sm:$0xf]  ;;  %v10926_v40 = vld [vmem:[#allocation4 + $0x30] sm:$0xf] }
  0x65   :  { %2015 = vmatprep.subr.bf16.mxu1 %v10099_v41  ;;  %v10928_v41 = vld [vmem:[#allocation4 + $0x34] sm:$0xf] }
  0x66   :  { %v10948_v60 = vcombine.low %v10926_v40, %v10928_v41 }
  0x67   :  { %1803 = vmatpush2.bf16.msra.mxu0 %v10101_v42  ;;  %v434_v42 = vrot.slane %v10914_v30, 1 }
  0x68   :  { %2016 = vmatpush2.bf16.msra.mxu1 %v10102_v43  ;;  %1804 = vmatprep.subr.bf16.mxu0 %v10103_v44  ;;  %v435_v43 = vrot.slane %v10911_v29, 2  ;;  %v248_v44 = vsel %vm228_vm0, %v243_v32, %v247_v33 }
  0x69   :  { %2017 = vmatprep.subr.bf16.mxu1 %v10105_v45  ;;  %v433_v45 = vsel %vm422_vm1, %v428_v7, %v432_v34 }
  0x6a   :  { %v436_v1 = vor.u32 %v435_v43, %v434_v42  ;;  %v10996_v43 = vld [vmem:[#allocation4 + $0x44] sm:$0xf] }
  0x6b   :  { %1805 = vmatpush2.bf16.msra.mxu0 %v10107_v46  ;;  %v10144_v46 = vld [vmem:[#allocation7 + $0x264] ss:$8 sps:$4 sm:$0xff]  }
  0x6c   :  { %2018 = vmatpush2.bf16.msra.mxu1 %v10108_v47  ;;  %1806 = vmatprep.subr.bf16.mxu0 %v10109_v50  ;;  %v10151_v47 = vld [vmem:[#allocation7 + $0x364] ss:$8 sps:$4 sm:$0xff]   ;;  %v10935_v50 = vshll.u32 %v10919_v35, 16 }
  0x6d   :  { %2019 = vmatprep.subr.bf16.mxu1 %v10111_v51  ;;  %v10938_v51 = vshrl.u32 %v10919_v35, 16 }
  0x6e   :  { %v263_v22 = vrot.slane %v10935_v50, 1 }
  0x6f   :  { %1807 = vmatpush2.bf16.msra.mxu0 %v10113_v52  ;;  %v389_v52 = vrot.slane %v10892_v4, 1  ;;  %v438_v3 = vrot.slane %v10938_v51, 1 }
  0x70   :  { %2020 = vmatpush2.bf16.msra.mxu1 %v10114_v57  ;;  %1808 = vmatprep.subr.bf16.mxu0 %v10115_v58  ;;  %v10142_v57 = vld [vmem:[#allocation7 + $0x260] ss:$8 sps:$4 sm:$0xff]   ;;  %v10148_v58 = vld [vmem:[#allocation7 + $0x254] ss:$8 sps:$4 sm:$0xff]  }
  0x71   :  { %2021 = vmatprep.subr.bf16.mxu1 %v10117_v59  ;;  %v10944_v59 = vcombine.low %v10921_v37, %v10924_v39  ;;  %v390_v11 = vsel %vm385_vm2, %v387_v27, %v389_v52 }
  0x73   :  { %1809 = vmatpush2.bf16.msra.mxu0 %v10119_v5  ;;  %v439_v5 = vrot.slane %v10935_v50, 2  ;;  %v10959_v7 = vshrl.u32 %v10944_v59, 16  ;;  %v10962_v8 = vshll.u32 %v10944_v59, 16 }
  0x74   :  { %2022 = vmatpush2.bf16.msra.mxu1 %v10120_v6  ;;  %1810 = vmatprep.subr.bf16.mxu0 %v10121_v9  ;;  %v10146_v6 = vld [vmem:[#allocation7 + $0x250] ss:$8 sps:$4 sm:$0xff]   ;;  %v10965_v9 = vshll.u32 %v10948_v60, 16 }
  0x75   :  { %2023 = vmatprep.subr.bf16.mxu1 %v10123_v10  ;;  %v10968_v10 = vshrl.u32 %v10948_v60, 16  ;;  %v273_v26 = vrot.slane %v10962_v8, 1  ;;  %v442_v27 = vrot.slane %v10959_v7, 1  ;;  %v10985_v32 = vor.u32 %v439_v5, %v438_v3  ;;  %v10189_v5 = vld [vmem:[#allocation7 + $0x330] ss:$8 sps:$4 sm:$0xff]  }
  0x77   :  { %1811 = vmatpush2.bf16.msra.mxu0 %v10125_v14  ;;  %v10973_v14 = vcombine.low %v10950_v63, %v10954_v2 }
  0x78   :  { %2024 = vmatpush2.bf16.msra.mxu1 %v10126_v15  ;;  %1812 = vmatprep.subr.bf16.mxu0 %v10127_v16  ;;  %v437_v16 = vsel %vm422_vm1, %v432_v34, %v436_v1  ;;  %v10161_v34 = vld [vmem:[#allocation7 + $0x234] ss:$8 sps:$4 sm:$0xff]  }
  0x79   :  { %2025 = vmatprep.subr.bf16.mxu1 %v10129_v17  ;;  %17635 = vst [vmem:[#allocation18_spill] sm:$0xff] %v10973_v14  ;;  %v10155_v17 = vld [vmem:[#allocation7 + $0x244] ss:$8 sps:$4 sm:$0xff]   ;;  %v10994_v42 = vshrl.u32 %v10973_v14, 16 }
  0x7b   :  { %1813 = vmatpush2.bf16.msra.mxu0 %v10131_v19  ;;  %v10162_v19 = vld [vmem:[#allocation7 + $0x350] ss:$8 sps:$4 sm:$0xff]  }
  0x7c   :  { %2026 = vmatpush2.bf16.msra.mxu1 %v10132_v20  ;;  %2208 = vmatprep.subr.bf16.mxu0 %v10137_v23  ;;  %v391_v20 = vrot.slane %v10902_v18, 1  ;;  %v10179_v23 = vld [vmem:[#allocation7 + $0x344] ss:$8 sps:$4 sm:$0xff]  }
  0x7d   :  { %2421 = vmatprep.subr.bf16.mxu1 %v10140_v28  ;;  %v443_v28 = vrot.slane %v10962_v8, 2 }
  0x7e   :  { %1815 = vmatmul.mubr.bf16.vlgmr.msra.gmra.mxu0 %v10869_v48  ;;  %v251_v48 = vor.u32 %v10900_v13, %v247_v33  ;;  %v446_v33 = vrot.slane %v10965_v9, 2 }
  0x7f   :  { %2028 = vmatmul.mubr.bf16.vlgmr.msra.gmra.mxu1 %v388_v38  ;;  %2209 = vmatpush1.bf16.msra.mxu0 %v10135_v31  ;;  %v445_v31 = vrot.slane %v10968_v10, 1  ;;  %v10177_v38 = vld [vmem:[#allocation7 + $0x340] ss:$8 sps:$4 sm:$0xff]  }
  0x80   :  { %2422 = vmatpush1.bf16.msra.mxu1 %v10138_v36  ;;  %1824 = vmatprep.mubr.bf16.mxu0 %v248_v44  ;;  %v256_v15 = vsel %vm228_vm0, %v251_v48, %v255_v0  ;;  %v10989_v36 = vshll.u32 %v10973_v14, 16  ;;  %v10191_v44 = vld [vmem:[#allocation7 + $0x334] ss:$8 sps:$4 sm:$0xff]   ;;  %v449_v0 = vrot.slane %v10994_v42, 1 }
  0x81   :  { %2037 = vmatprep.mubr.bf16.mxu1 %v433_v45  ;;  %2210 = vmatprep.subr.bf16.mxu0 %v10144_v46  ;;  %v392_v45 = vsel %vm385_vm2, %v389_v52, %v391_v20  ;;  %v264_v46 = vsel %vm228_vm0, %v259_v21, %v263_v22  ;;  %v447_v48 = vor.u32 %v446_v33, %v445_v31  ;;  %v10167_v21 = vld [vmem:[#allocation7 + $0x220] ss:$8 sps:$4 sm:$0xff]   ;;  %v107_v31 = vld [vmem:[#allocation4 + $0x4c] sm:$0xf]  ;;  %v395_v33 = vrot.slane %v10944_v59, 1 }
  0x82   :  { %2423 = vmatprep.subr.bf16.mxu1 %v10151_v47  ;;  %v441_v47 = vsel %vm422_vm1, %v436_v1, %v10985_v32  ;;  %v450_v3 = vrot.slane %v10989_v36, 2  ;;  %v10169_v1 = vld [vmem:[#allocation7 + $0x224] ss:$8 sps:$4 sm:$0xff]  }
  0x83   :  { %2211 = vmatpush1.bf16.msra.mxu0 %v10142_v57  ;;  %v274_v57 = vor.u32 %v273_v26, %v10959_v7 }
  0x84   :  { %2424 = vmatpush1.bf16.msra.mxu1 %v10149_v61  ;;  %2212 = vmatprep.subr.bf16.mxu0 %v10148_v58  ;;  %v278_v58 = vrot.slane %v10965_v9, 1  ;;  %v444_v61 = vor.u32 %v443_v28, %v442_v27  ;;  %v10200_v27 = vld [vmem:[#allocation7 + $0x320] ss:$8 sps:$4 sm:$0xff]  }
  0x85   :  { %2425 = vmatprep.subr.bf16.mxu1 %v10164_v62  ;;  %v10159_v62 = vld [vmem:[#allocation7 + $0x230] ss:$8 sps:$4 sm:$0xff]   ;;  %v11025_v28 = vld [vmem:[#allocation4 + $0x48] sm:$0xf] }
  0x86   :  { %1825 = vmatmul.mubr.bf16.gmra.mxu0 %v10871_v49  ;;  %v10991_v49 = vld [vmem:[#allocation4 + $0x40] sm:$0xf] }
  0x87   :  { %2038 = vmatmul.mubr.bf16.gmra.mxu1 %v390_v11  ;;  %1834 = vmatprep.mubr.bf16.mxu0 %v256_v15  ;;  %v11010_v52 = vcombine.low %v10991_v49, %v10996_v43  ;;  %v10202_v11 = vld [vmem:[#allocation7 + $0x324] ss:$8 sps:$4 sm:$0xff]   ;;  %v267_v15 = vor.u32 %v10938_v51, %v263_v22  ;;  %v10174_v22 = vld [vmem:[#allocation7 + $0x214] ss:$8 sps:$4 sm:$0xff]  }
  0x88   :  { %2047 = vmatprep.mubr.bf16.mxu1 %v437_v16  ;;  %2213 = vmatpush1.bf16.msra.mxu0 %v10146_v6  ;;  %v393_v6 = vrot.slane %v10919_v35, 1  ;;  %v279_v16 = vsel %vm228_vm0, %v274_v57, %v278_v58 }
  0x89   :  { %2426 = vmatpush1.bf16.msra.mxu1 %v10162_v19  ;;  %2214 = vmatprep.subr.bf16.mxu0 %v10155_v17  ;;  %17636 = vst [vmem:[#allocation19_spill] sm:$0xff] %v11010_v52  ;;  %v282_v17 = vor.u32 %v10968_v10, %v278_v58  ;;  %v286_v19 = vrot.slane %v10989_v36, 1  ;;  %v11023_v26 = vshrl.u32 %v11010_v52, 16 }
  0x8a   :  { %2427 = vmatprep.subr.bf16.mxu1 %v10179_v23  ;;  %v448_v23 = vsel %vm422_vm1, %v444_v61, %v447_v48  ;;  %v10172_v61 = vld [vmem:[#allocation7 + $0x210] ss:$8 sps:$4 sm:$0xff]  }
  0x8b   :  { %v453_v57 = vrot.slane %v11023_v26, 1 }
  0x8c   :  { %2215 = vmatpush1.bf16.msra.mxu0 %v10153_v25  ;;  %v451_v25 = vor.u32 %v450_v3, %v449_v0  ;;  %v10213_v0 = vld [vmem:[#allocation7 + $0x310] ss:$8 sps:$4 sm:$0xff]   ;;  %v710_v3 = vunpack.c.h.b16 %v279_v16 }
  0x8d   :  { %2428 = vmatpush1.bf16.msra.mxu1 %v10177_v38  ;;  %2216 = vmatprep.subr.bf16.mxu0 %v10161_v34  ;;  %v396_v34 = vrot.slane %v10948_v60, 1  ;;  %v394_v38 = vsel %vm385_vm2, %v391_v20, %v393_v6  ;;  %v10182_v20 = vld [vmem:[#allocation7 + $0x204] ss:$8 sps:$4 sm:$0xff]  }
  0x8e   :  { %2429 = vmatprep.subr.bf16.mxu1 %v10191_v44  ;;  %1835 = vmatmul.mubr.bf16.gmra.mxu0 %v10892_v4  ;;  %v11020_v4 = vshll.u32 %v11010_v52, 16  ;;  %v9554_v44 = vcombine.low %v267_v15, %v279_v16  ;;  %v10180_v16 = vld [vmem:[#allocation7 + $0x200] ss:$8 sps:$4 sm:$0xff]  }
  0x8f   :  { %2048 = vmatmul.mubr.bf16.gmra.mxu1 %v392_v45  ;;  %1844 = vmatprep.mubr.bf16.mxu0 %v264_v46  ;;  %v9556_v45 = vcombine.low %v10985_v32, %v448_v23  ;;  %v11034_v46 = vsel %vm228_vm0, %v282_v17, %v286_v19  ;;  %v10215_v32 = vld [vmem:[#allocation7 + $0x314] ss:$8 sps:$4 sm:$0xff]   ;;  %v290_v17 = vor.u32 %v10994_v42, %v286_v19 }
  0x90   :  { %2057 = vmatprep.mubr.bf16.mxu1 %v441_v47  ;;  %2217 = vmatpush1.bf16.msra.mxu0 %v10159_v62  ;;  %v11037_v47 = vsel %vm422_vm1, %v447_v48, %v451_v25  ;;  %v454_v58 = vrot.slane %v11020_v4, 2  ;;  %v11042_v62 = vcombine.low %v11025_v28, %v107_v31  ;;  %v397_v48 = vsel %vm385_vm2, %v395_v33, %v396_v34  ;;  %v10188_v31 = vld [vmem:[#allocation7 + $0x2f4] ss:$8 sps:$4 sm:$0xff]  }
  0x91   :  { %2430 = vmatpush1.bf16.msra.mxu1 %v10189_v5  ;;  %2218 = vmatprep.subr.bf16.mxu0 %v10169_v1  ;;  %v398_v5 = vrot.slane %v10973_v14, 1  ;;  %v716_v1 = vunpack.c.l.b16 %v11034_v46  ;;  %v718_v15 = vunpack.c.l.b16 %v11037_v47  ;;  %v9555_v33 = vcombine.low %v393_v6, %v397_v48 }
  0x92   :  { %2431 = vmatprep.subr.bf16.mxu1 %v10202_v11  ;;  %17637 = vst [vmem:[#allocation20_spill] sm:$0xff] %v11042_v62  ;;  %v712_v11 = vunpack.c.h.b16 %v448_v23  ;;  %v9553_v23 = vcombine.low %v10906_v24, %v10921_v37  ;;  %v711_v24 = vunpack.c.h.b16 %v397_v48  ;;  %v722_v6 = vunpack.c.h.b16 %v11034_v46 }
  0x93   :  { %v1010_v19 = vpack.c.b16 %v716_v1, %v710_v3  ;;  %v9560_v46 = vcombine.low %v10924_v39, %v10926_v40  ;;  %v10204_v39 = vld [vmem:[#allocation7 + $0x2c0] ss:$8 sps:$4 sm:$0xff]  }
  0x94   :  { %2219 = vmatpush1.bf16.msra.mxu0 %v10167_v21  ;;  %v294_v21 = vrot.slane %v11020_v4, 1 }
  0x95   :  { %2432 = vmatpush1.bf16.msra.mxu1 %v10200_v27  ;;  %2220 = vmatprep.subr.bf16.mxu0 %v10174_v22  ;;  %v455_v27 = vor.u32 %v454_v58, %v453_v57  ;;  %v11055_v22 = vshrl.u32 %v11042_v62, 16  ;;  %v10195_v57 = vld [vmem:[#allocation7 + $0x2e4] ss:$8 sps:$4 sm:$0xff]  }
  0x96   :  { %1845 = vmatmul.mubr.bf16.gmra.mxu0 %v10902_v18  ;;  %v11052_v18 = vshll.u32 %v11042_v62, 16  ;;  %2433 = vmatprep.subr.bf16.mxu1 %v10215_v32  ;;  %v295_v58 = vsel %vm228_vm0, %v290_v17, %v294_v21  ;;  %v10228_v32 = vld [vmem:[#allocation7 + $0x300] ss:$8 sps:$4 sm:$0xff]   ;;  %v298_v17 = vor.u32 %v11023_v26, %v294_v21 }
  0x97   :  { %2058 = vmatmul.mubr.bf16.gmra.mxu1 %v394_v38  ;;  %1854 = vmatprep.mubr.bf16.mxu0 %v9554_v44  ;;  %v1012_v38 = vpack.c.b16 %v718_v15, %v712_v11  ;;  %v399_v44 = vsel %vm385_vm2, %v396_v34, %v398_v5  ;;  %v456_v14 = vsel %vm422_vm1, %v451_v25, %v455_v27  ;;  %v10193_v34 = vld [vmem:[#allocation7 + $0x2e0] ss:$8 sps:$4 sm:$0xff]   ;;  %v728_v3 = vunpack.c.l.b16 %v295_v58  ;;  %v10199_v15 = vld [vmem:[#allocation7 + $0x2d4] ss:$8 sps:$4 sm:$0xff]  }
  0x98   :  { %2067 = vmatprep.mubr.bf16.mxu1 %v9556_v45  ;;  %17638 = vst [vmem:[#allocation21_spill] sm:$0xff] %v11052_v18  ;;  %2221 = vmatpush1.bf16.msra.mxu0 %v10172_v61  ;;  %v10186_v45 = vld [vmem:[#allocation7 + $0x2f0] ss:$8 sps:$4 sm:$0xff]   ;;  %v457_v61 = vrot.slane %v11055_v22, 1  ;;  %v717_v37 = vunpack.c.l.b16 %v399_v44  ;;  %v724_v25 = vunpack.c.h.b16 %v11037_v47  ;;  %v730_v1 = vunpack.c.l.b16 %v456_v14 }
  0x99   :  { %2222 = vmatprep.subr.bf16.mxu0 %v10182_v20  ;;  %2434 = vmatpush1.bf16.msra.mxu1 %v10213_v0  ;;  %v458_v20 = vrot.slane %v11052_v18, 2  ;;  %v10230_v0 = vld [vmem:[#allocation7 + $0x304] ss:$8 sps:$4 sm:$0xff]   ;;  %v400_v11 = vrot.slane %v11010_v52, 1  ;;  %v1017_v47 = vpack.c.b16 %v728_v3, %v722_v6 }
  0x9a   :  { %2435 = vmatprep.subr.bf16.mxu1 %v10230_v0  ;;  %v1011_v48 = vpack.c.b16 %v717_v37, %v711_v24  ;;  %v736_v0 = vunpack.c.h.b16 %v456_v14  ;;  %v10212_v24 = vld [vmem:[#allocation7 + $0x2b4] ss:$8 sps:$4 sm:$0xff]  }
  0x9b   :  { %v11078_v37 = vld [vmem:[#allocation4 + $0x50] sm:$0xff]  }
  0x9c   :  { %2223 = vmatpush1.bf16.msra.mxu0 %v10180_v16  ;;  %v302_v16 = vrot.slane %v11052_v18, 1 }
  0x9d   :  { %2224 = vmatprep.subr.bf16.mxu0 %v10188_v31  ;;  %v11069_v31 = vor.u32 %v458_v20, %v457_v61  ;;  %2436 = vmatpush1.bf16.msra.mxu1 %v10228_v32  ;;  %v734_v20 = vunpack.c.h.b16 %v295_v58  ;;  %v10210_v58 = vld [vmem:[#allocation7 + $0x2b0] ss:$8 sps:$4 sm:$0xff]  }
  0x9e   :  { %1855 = vmatmul.mubr.bf16.gmra.mxu0 %v9553_v23  ;;  %v10197_v23 = vld [vmem:[#allocation7 + $0x2d0] ss:$8 sps:$4 sm:$0xff]   ;;  %v303_v21 = vsel %vm228_vm0, %v298_v17, %v302_v16  ;;  %v306_v14 = vor.u32 %v11055_v22, %v302_v16  ;;  %v10225_v16 = vld [vmem:[#allocation7 + $0x294] ss:$8 sps:$4 sm:$0xff]  }
  0x9f   :  { %2068 = vmatmul.mubr.bf16.gmra.mxu1 %v9555_v33  ;;  %1864 = vmatprep.mubr.bf16.mxu0 %v1010_v19  ;;  %v1019_v33 = vpack.c.b16 %v730_v1, %v724_v25  ;;  %v401_v19 = vsel %vm385_vm2, %v398_v5, %v400_v11  ;;  %v460_v61 = vsel %vm422_vm1, %v455_v27, %v11069_v31  ;;  %v740_v40 = vunpack.c.l.b16 %v303_v21  ;;  %v10220_v1 = vld [vmem:[#allocation7 + $0x2a4] ss:$8 sps:$4 sm:$0xff]  }
  0xa0   :  { %2077 = vmatprep.mubr.bf16.mxu1 %v1012_v38  ;;  %2225 = vmatpush2.bf16.msra.mxu0 %v10186_v45  ;;  %v10206_v38 = vld [vmem:[#allocation7 + $0x2c4] ss:$8 sps:$4 sm:$0xff]   ;;  %v723_v45 = vunpack.c.h.b16 %v399_v44  ;;  %v742_v32 = vunpack.c.l.b16 %v460_v61  ;;  %v402_v5 = vrot.slane %v11042_v62, 1  ;;  %v9561_v27 = vcombine.low %v10928_v41, %v10950_v63  ;;  %v11082_v44 = vld [vmem:[#allocation4 + $0x58] sm:$0xff]   ;;  %v10218_v63 = vld [vmem:[#allocation7 + $0x2a0] ss:$8 sps:$4 sm:$0xff]  }
  0xa1   :  { %2226 = vmatprep.subr.bf16.mxu0 %v10195_v57  ;;  %v729_v57 = vunpack.c.l.b16 %v401_v19  ;;  %v754_v41 = vunpack.c.l.b16 %v11069_v31  ;;  %v11099_v31 = vld [vmem:[#allocation4 + $0x60] sm:$0xff]  }
  0xa2   :  { %v1026_v3 = vpack.c.b16 %v742_v32, %v736_v0  ;;  %v403_v25 = vsel %vm385_vm2, %v400_v11, %v402_v5  ;;  %v11091_v11 = vshll.u32 %v11078_v37, 16 }
  0xa3   :  { %v1018_v6 = vpack.c.b16 %v729_v57, %v723_v45  ;;  %v741_v17 = vunpack.c.l.b16 %v403_v25 }
  0xa4   :  { %2227 = vmatpush2.bf16.msra.mxu0 %v10193_v34  ;;  %v1024_v34 = vpack.c.b16 %v740_v40, %v734_v20  ;;  %17640 = vst [vmem:[#allocation23_spill] sm:$0xff] %v11091_v11  ;;  %v312_v20 = vrot.slane %v11091_v11, 1  ;;  %v10233_v40 = vld [vmem:[#allocation7 + $0x284] ss:$8 sps:$4 sm:$0xff]   ;;  %v462_v0 = vrot.slane %v11091_v11, 2 }
  0xa5   :  { %2228 = vmatprep.subr.bf16.mxu0 %v10199_v15  ;;  %v735_v15 = vunpack.c.h.b16 %v401_v19  ;;  %v11097_v19 = vshrl.u32 %v11082_v44, 16  ;;  %v11204_v11 = vld [vmem:[#allocation4 + $0x90] sm:$0xf] }
  0xa6   :  { %1865 = vmatmul.mubr.bf16.gmra.mxu0 %v9560_v46  ;;  %v746_v46 = vunpack.c.h.b16 %v303_v21 }
  0xa7   :  { %2078 = vmatmul.mubr.bf16.gmra.mxu1 %v1011_v48  ;;  %1874 = vmatprep.mubr.bf16.mxu0 %v1017_v47  ;;  %v752_v48 = vunpack.c.l.b16 %v306_v14  ;;  %v11088_v47 = vshrl.u32 %v11078_v37, 16  ;;  %17642 = vst [vmem:[#allocation25_spill] sm:$0xff] %v11097_v19  ;;  %v1025_v21 = vpack.c.b16 %v741_v17, %v735_v15  ;;  %v464_v32 = vrot.slane %v11097_v19, 1 }
  0xa8   :  { %2087 = vmatprep.mubr.bf16.mxu1 %v1019_v33  ;;  %2229 = vmatpush2.bf16.msra.mxu0 %v10197_v23  ;;  %v748_v23 = vunpack.c.h.b16 %v460_v61  ;;  %v11094_v33 = vshll.u32 %v11082_v44, 16  ;;  %v10223_v61 = vld [vmem:[#allocation7 + $0x290] ss:$8 sps:$4 sm:$0xff]  }
  0xa9   :  { %2230 = vmatprep.subr.bf16.mxu0 %v10206_v38  ;;  %17639 = vst [vmem:[#allocation22_spill] sm:$0xff] %v11088_v47  ;;  %v9562_v38 = vcombine.low %v10954_v2, %v10991_v49  ;;  %v1031_v45 = vpack.c.b16 %v752_v48, %v746_v46  ;;  %v747_v2 = vunpack.c.h.b16 %v403_v25  ;;  %v753_v49 = vunpack.c.l.b16 %v402_v5 }
  0xaa   :  { %17641 = vst [vmem:[#allocation24_spill] sm:$0xff] %v11094_v33  ;;  %v1033_v57 = vpack.c.b16 %v754_v41, %v748_v23  ;;  %v9563_v5 = vcombine.low %v10996_v43, %v11025_v28  ;;  %v404_v48 = vrot.slane %v11078_v37, 1  ;;  %v405_v43 = vrot.slane %v11082_v44, 1 }
  0xab   :  { %v1032_v25 = vpack.c.b16 %v753_v49, %v747_v2 }
  0xac   :  { %2231 = vmatpush2.bf16.msra.mxu0 %v10204_v39  ;;  %v461_v39 = vrot.slane %v11088_v47, 1 }
  0xad   :  { %2232 = vmatprep.subr.bf16.mxu0 %v10212_v24  ;;  %v465_v24 = vrot.slane %v11094_v33, 2 }
  0xae   :  { %1875 = vmatmul.mubr.bf16.gmra.mxu0 %v9561_v27  ;;  %v10231_v27 = vld [vmem:[#allocation7 + $0x280] ss:$8 sps:$4 sm:$0xff]  }
  0xaf   :  { %2088 = vmatmul.mubr.bf16.gmra.mxu1 %v1018_v6  ;;  %1884 = vmatprep.mubr.bf16.mxu0 %v1024_v34  ;;  %v317_v6 = vrot.slane %v11094_v33, 1  ;;  %v313_v34 = vor.u32 %v312_v20, %v11088_v47  ;;  %v466_v14 = vor.u32 %v465_v24, %v464_v32  ;;  %v11138_v20 = vld [vmem:[#allocation4 + $0x7c] sm:$0xf] }
  0xb0   :  { %2097 = vmatprep.mubr.bf16.mxu1 %v1026_v3  ;;  %2233 = vmatpush2.bf16.msra.mxu0 %v10210_v58  ;;  %v11110_v58 = vshll.u32 %v11099_v31, 16  ;;  %v463_v3 = vor.u32 %v462_v0, %v461_v39  ;;  %v11140_v39 = vld [vmem:[#allocation4 + $0x80] sm:$0xf]  ;;  %v406_v0 = vsel %vm385_vm2, %v404_v48, %v405_v43 }
  0xb1   :  { %2234 = vmatprep.subr.bf16.mxu0 %v10220_v1  ;;  %v11114_v1 = vshrl.u32 %v11099_v31, 16  ;;  %v318_v15 = vsel %vm228_vm0, %v313_v34, %v317_v6  ;;  %v321_v28 = vor.u32 %v11097_v19, %v317_v6  ;;  %v407_v34 = vrot.slane %v11099_v31, 1 }
  0xb2   :  { %17643 = vst [vmem:[#allocation26_spill] sm:$0xff] %v11110_v58  ;;  %v467_v17 = vsel %vm422_vm1, %v463_v3, %v466_v14  ;;  %v469_v41 = vrot.slane %v11110_v58, 2  ;;  %v325_v23 = vrot.slane %v11110_v58, 1 }
  0xb3   :  { %17644 = vst [vmem:[#allocation27_spill] sm:$0xff] %v11114_v1  ;;  %v468_v46 = vrot.slane %v11114_v1, 1 }
  0xb4   :  { %2235 = vmatpush2.bf16.msra.mxu0 %v10218_v63  ;;  %v11122_v63 = vld [vmem:[#allocation4 + $0x68] sm:$0xff]   ;;  %v326_v32 = vsel %vm228_vm0, %v321_v28, %v325_v23  ;;  %v329_v3 = vor.u32 %v11114_v1, %v325_v23  ;;  %v408_v28 = vsel %vm385_vm2, %v405_v43, %v407_v34 }
  0xb5   :  { %2236 = vmatprep.subr.bf16.mxu0 %v10225_v16  ;;  %v11128_v16 = vld [vmem:[#allocation4 + $0x70] sm:$0xf]  ;;  %v409_v43 = vrot.slane %v11122_v63, 1 }
  0xb6   :  { %1885 = vmatmul.mubr.bf16.gmra.mxu0 %v9562_v38  ;;  %v117_v38 = vld [vmem:[#allocation4 + $0x74] sm:$0xf] }
  0xb7   :  { %2098 = vmatmul.mubr.bf16.gmra.mxu1 %v1025_v21  ;;  %1894 = vmatprep.mubr.bf16.mxu0 %v1031_v45  ;;  %v470_v21 = vor.u32 %v469_v41, %v468_v46  ;;  %v11134_v45 = vshrl.u32 %v11122_v63, 16 }
  0xb8   :  { %2107 = vmatprep.mubr.bf16.mxu1 %v1033_v57  ;;  %2237 = vmatpush2.bf16.msra.mxu0 %v10223_v61  ;;  %v11131_v61 = vshll.u32 %v11122_v63, 16  ;;  %v11136_v57 = vld [vmem:[#allocation4 + $0x78] sm:$0xf] }
  0xb9   :  { %2238 = vmatprep.subr.bf16.mxu0 %v10233_v40  ;;  %17646 = vst [vmem:[#allocation29_spill] sm:$0xff] %v11134_v45  ;;  %v11142_v40 = vld [vmem:[#allocation4 + $0x84] sm:$0xf]  ;;  %v471_v24 = vsel %vm422_vm1, %v466_v14, %v470_v21  ;;  %v472_v2 = vrot.slane %v11134_v45, 1  ;;  %v11155_v6 = vcombine.low %v11136_v57, %v11138_v20 }
  0xba   :  { %17645 = vst [vmem:[#allocation28_spill] sm:$0xff] %v11131_v61  ;;  %v473_v49 = vrot.slane %v11131_v61, 2  ;;  %v333_v14 = vrot.slane %v11131_v61, 1 }
  0xbb   :  { %17648 = vst [vmem:[#allocation31_spill] sm:$0xff] %v11155_v6  ;;  %v11175_v41 = vshrl.u32 %v11155_v6, 16  ;;  %v11178_v48 = vshll.u32 %v11155_v6, 16 }
  0xbc   :  { %2239 = vmatpush2.bf16.msra.mxu0 %v10231_v27  ;;  %v11150_v27 = vcombine.low %v11128_v16, %v117_v38  ;;  %v334_v23 = vsel %vm228_vm0, %v329_v3, %v333_v14 }
  0xbd   :  { %17652 = vst [vmem:[#allocation35_spill] sm:$0xff] %v11175_v41  ;;  %17653 = vst [vmem:[#allocation36_spill] sm:$0xff] %v11178_v48  ;;  %v351_v61 = vrot.slane %v11178_v48, 1  ;;  %v480_v58 = vrot.slane %v11175_v41, 1  ;;  %v481_v1 = vrot.slane %v11178_v48, 2 }
  0xbe   :  { %1895 = vmatmul.mubr.bf16.gmra.mxu0 %v9563_v5  ;;  %17647 = vst [vmem:[#allocation30_spill] sm:$0xff] %v11150_v27  ;;  %v11162_v5 = vcombine.low %v11140_v39, %v11142_v40  ;;  %v11172_v46 = vshrl.u32 %v11150_v27, 16 }
  0xbf   :  { %2108 = vmatmul.mubr.bf16.gmra.mxu1 %v1032_v25  ;;  %1904 = vmatprep.mubr.bf16.mxu0 %v318_v15  ;;  %v11164_v25 = vld [vmem:[#allocation4 + $0x88] sm:$0xf]  ;;  %v474_v15 = vor.u32 %v473_v49, %v472_v2  ;;  %v352_v48 = vor.u32 %v351_v61, %v11175_v41  ;;  %v127_v61 = vld [vmem:[#allocation4 + $0x9c] sm:$0xf] }
  0xc0   :  { %2117 = vmatprep.mubr.bf16.mxu1 %v467_v17  ;;  %17649 = vst [vmem:[#allocation32_spill] sm:$0xff] %v11162_v5  ;;  %v11169_v17 = vshll.u32 %v11150_v27, 16  ;;  %17651 = vst [vmem:[#allocation34_spill] sm:$0xff] %v11172_v46  ;;  %v11183_v38 = vshll.u32 %v11162_v5, 16 }
  0xc2   :  { %17650 = vst [vmem:[#allocation33_spill] sm:$0xff] %v11169_v17  ;;  %17654 = vst [vmem:[#allocation37_spill] sm:$0xff] %v11183_v38  ;;  %v477_v2 = vrot.slane %v11169_v17, 2  ;;  %v341_v3 = vrot.slane %v11169_v17, 1  ;;  %v484_v19 = vrot.slane %v11183_v38, 2 }
  0xc6   :  { %1905 = vmatmul.mubr.bf16.gmra.mxu0 %v11078_v37  ;;  %v11166_v37 = vld [vmem:[#allocation4 + $0x8c] sm:$0xf] }
  0xc7   :  { %2118 = vmatmul.mubr.bf16.gmra.mxu1 %v406_v0  ;;  %1914 = vmatprep.mubr.bf16.mxu0 %v326_v32  ;;  %v11186_v0 = vshrl.u32 %v11162_v5, 16  ;;  %v475_v32 = vsel %vm422_vm1, %v470_v21, %v474_v15  ;;  %v11193_v49 = vcombine.low %v11164_v25, %v11166_v37  ;;  %v337_v21 = vor.u32 %v11134_v45, %v333_v14 }
  0xc8   :  { %2127 = vmatprep.mubr.bf16.mxu1 %v471_v24  ;;  %v476_v24 = vrot.slane %v11172_v46, 1  ;;  %v356_v14 = vrot.slane %v11183_v38, 1  ;;  %v482_v45 = vor.u32 %v481_v1, %v480_v58 }
  0xc9   :  { %17655 = vst [vmem:[#allocation38_spill] sm:$0xff] %v11186_v0  ;;  %17656 = vst [vmem:[#allocation39_spill] sm:$0xff] %v11193_v49  ;;  %v483_v33 = vrot.slane %v11186_v0, 1  ;;  %v11209_v17 = vshll.u32 %v11193_v49, 16  ;;  %v11212_v47 = vshrl.u32 %v11193_v49, 16 }
  0xca   :  { %v360_v1 = vor.u32 %v11186_v0, %v356_v14 }
  0xcb   :  { %17657 = vst [vmem:[#allocation40_spill] sm:$0xff] %v11209_v17  ;;  %v485_v62 = vor.u32 %v484_v19, %v483_v33  ;;  %v411_v33 = vrot.slane %v11150_v27, 1  ;;  %v357_v19 = vsel %vm228_vm0, %v352_v48, %v356_v14 }
  0xcd   :  { %v486_v58 = vsel %vm422_vm1, %v482_v45, %v485_v62 }
  0xce   :  { %1915 = vmatmul.mubr.bf16.gmra.mxu0 %v11082_v44  ;;  %v11206_v44 = vld [vmem:[#allocation4 + $0x94] sm:$0xf] }
  0xcf   :  { %2128 = vmatmul.mubr.bf16.gmra.mxu1 %v408_v28  ;;  %1924 = vmatprep.mubr.bf16.mxu0 %v334_v23  ;;  %v478_v28 = vor.u32 %v477_v2, %v476_v24  ;;  %v410_v23 = vsel %vm385_vm2, %v407_v34, %v409_v43  ;;  %v487_v24 = vrot.slane %v11212_v47, 1  ;;  %v488_v2 = vrot.slane %v11209_v17, 2 }
  0xd0   :  { %2137 = vmatprep.mubr.bf16.mxu1 %v475_v32  ;;  %v342_v32 = vsel %vm228_vm0, %v337_v21, %v341_v3  ;;  %v11223_v18 = vcombine.low %v11204_v11, %v11206_v44  ;;  %v345_v34 = vor.u32 %v11172_v46, %v341_v3  ;;  %v11227_v21 = vld [vmem:[#allocation4 + $0x98] sm:$0xf] }
  0xd1   :  { %v479_v52 = vsel %vm422_vm1, %v474_v15, %v478_v28  ;;  %v364_v15 = vrot.slane %v11209_v17, 1  ;;  %v489_v38 = vor.u32 %v488_v2, %v487_v24  ;;  %v9567_v27 = vcombine.low %v478_v28, %v486_v58 }
  0xd2   :  { %v11238_v3 = vshrl.u32 %v11223_v18, 16  ;;  %v9565_v48 = vcombine.low %v345_v34, %v357_v19  ;;  %v11244_v45 = vcombine.low %v11227_v21, %v127_v61  ;;  %v416_v61 = vrot.slane %v11193_v49, 1 }
  0xd3   :  { %v365_v14 = vsel %vm228_vm0, %v360_v1, %v364_v15  ;;  %v490_v24 = vsel %vm422_vm1, %v485_v62, %v489_v38  ;;  %v368_v1 = vor.u32 %v11212_v47, %v364_v15  ;;  %v10237_v62 = vld [vmem:[#allocation10 + $0x74] ss:$8 sps:$4 sm:$0xff]  }
  0xd4   :  { %v491_v2 = vrot.slane %v11238_v3, 1  ;;  %v824_v28 = vunpack.c.l.b16 %v365_v14  ;;  %v826_v34 = vunpack.c.l.b16 %v490_v24  ;;  %v11256_v46 = vshll.u32 %v11244_v45, 16  ;;  %4006 = vmatprep.subr.bf16.mxu0 %v10237_v62 }
  0xd6   :  { %1925 = vmatmul.mubr.bf16.gmra.mxu0 %v11099_v31  ;;  %v11235_v31 = vshll.u32 %v11223_v18, 16 }
  0xd7   :  { %2138 = vmatmul.mubr.bf16.gmra.mxu1 %v410_v23  ;;  %1934 = vmatprep.mubr.bf16.mxu0 %v342_v32  ;;  %v413_v23 = vrot.slane %v11155_v6, 1  ;;  %v412_v32 = vsel %vm385_vm2, %v409_v43, %v411_v33  ;;  %v818_v6 = vunpack.c.h.b16 %v357_v19  ;;  %v820_v43 = vunpack.c.h.b16 %v486_v58 }
  0xd8   :  { %2147 = vmatprep.mubr.bf16.mxu1 %v479_v52  ;;  %17658 = vst [vmem:[#allocation41_spill] sm:$0xff] %v11235_v31  ;;  %v414_v52 = vrot.slane %v11162_v5, 1  ;;  %v492_v17 = vrot.slane %v11235_v31, 2  ;;  %v372_v0 = vrot.slane %v11235_v31, 1  ;;  %v830_v31 = vunpack.c.h.b16 %v365_v14 }
  0xd9   :  { %v1069_v58 = vpack.c.b16 %v824_v28, %v818_v6  ;;  %v9571_v28 = vcombine.low %v11138_v20, %v11140_v39  ;;  %v420_v20 = vrot.slane %v11244_v45, 1  ;;  %v9572_v39 = vcombine.low %v11142_v40, %v11164_v25 }
  0xda   :  { %v415_v5 = vsel %vm385_vm2, %v413_v23, %v414_v52  ;;  %v493_v41 = vor.u32 %v492_v17, %v491_v2  ;;  %v1071_v23 = vpack.c.b16 %v826_v34, %v820_v43  ;;  %v373_v15 = vsel %vm228_vm0, %v368_v1, %v372_v0 }
  0xdb   :  { %v9566_v19 = vcombine.low %v411_v33, %v415_v5  ;;  %v496_v2 = vrot.slane %v11256_v46, 2  ;;  %v819_v49 = vunpack.c.h.b16 %v415_v5  ;;  %v418_v33 = vrot.slane %v11223_v18, 1 }
  0xdc   :  { %v9573_v40 = vcombine.low %v11166_v37, %v11204_v11  ;;  %v9574_v11 = vcombine.low %v11206_v44, %v11227_v21 }
  0xdd   :  { %v419_v14 = vsel %vm385_vm2, %v416_v61, %v418_v33 }
  0xde   :  { %1935 = vmatmul.mubr.bf16.gmra.mxu0 %v11122_v63  ;;  %v11259_v63 = vshrl.u32 %v11244_v45, 16 }
  0xdf   :  { %2148 = vmatmul.mubr.bf16.gmra.mxu1 %v412_v32  ;;  %1944 = vmatprep.mubr.bf16.mxu0 %v9565_v48  ;;  %v417_v32 = vsel %vm385_vm2, %v414_v52, %v416_v61  ;;  %v494_v48 = vsel %vm422_vm1, %v489_v38, %v493_v41  ;;  %v376_v52 = vor.u32 %v11238_v3, %v372_v0  ;;  %v380_v38 = vrot.slane %v11256_v46, 1 }
  0xe0   :  { %2157 = vmatprep.mubr.bf16.mxu1 %v9567_v27  ;;  %v9564_v27 = vcombine.low %v11128_v16, %v11136_v57  ;;  %v495_v17 = vrot.slane %v11259_v63, 1  ;;  %v825_v62 = vunpack.c.l.b16 %v417_v32  ;;  %v836_v16 = vunpack.c.l.b16 %v373_v15 }
  0xe1   :  { %v832_v57 = vunpack.c.h.b16 %v490_v24  ;;  %v838_v6 = vunpack.c.l.b16 %v494_v48  ;;  %v842_v0 = vunpack.c.h.b16 %v373_v15 }
  0xe2   :  { %v497_v43 = vor.u32 %v496_v2, %v495_v17  ;;  %v1070_v34 = vpack.c.b16 %v825_v62, %v819_v49  ;;  %v1076_v1 = vpack.c.b16 %v836_v16, %v830_v31  ;;  %v844_v17 = vunpack.c.h.b16 %v494_v48 }
  0xe3   :  { %v1078_v5 = vpack.c.b16 %v838_v6, %v832_v57  ;;  %v384_v62 = vor.u32 %v11259_v63, %v380_v38 }
  0xe4   :  { %v498_v24 = vsel %vm422_vm1, %v493_v41, %v497_v43  ;;  %v421_v41 = vsel %vm385_vm2, %v418_v33, %v420_v20  ;;  %v862_v6 = vunpack.c.l.b16 %v497_v43  ;;  %v537_v33 = vrot.slane %v10874_v53, 2 }
  0xe5   :  { %v850_v2 = vunpack.c.l.b16 %v498_v24  ;;  %v849_v15 = vunpack.c.l.b16 %v421_v41  ;;  %v860_v16 = vunpack.c.l.b16 %v384_v62  ;;  %v856_v57 = vunpack.c.h.b16 %v498_v24  ;;  %v10669_v24 = vld [vmem:[#allocation4] sm:$0xff]  }
  0xe6   :  { %1945 = vmatmul.mubr.bf16.gmra.mxu0 %v9564_v27  ;;  %v381_v27 = vsel %vm228_vm0, %v376_v52, %v380_v38  ;;  %v538_v38 = vrot.slane %v10877_v54, 3  ;;  %v544_v54 = vrot.slane %v10900_v13, 2 }
  0xe7   :  { %2158 = vmatmul.mubr.bf16.gmra.mxu1 %v9566_v19  ;;  %1954 = vmatprep.mubr.bf16.mxu0 %v1069_v58  ;;  %v831_v19 = vunpack.c.h.b16 %v417_v32  ;;  %v837_v58 = vunpack.c.l.b16 %v419_v14  ;;  %v1085_v61 = vpack.c.b16 %v850_v2, %v844_v17  ;;  %v843_v32 = vunpack.c.h.b16 %v419_v14 }
  0xe8   :  { %2167 = vmatprep.mubr.bf16.mxu1 %v1071_v23  ;;  %v848_v23 = vunpack.c.l.b16 %v381_v27  ;;  %v854_v48 = vunpack.c.h.b16 %v381_v27  ;;  %v861_v14 = vunpack.c.l.b16 %v420_v20  ;;  %v539_v43 = vor.u32 %v538_v38, %v537_v33 }
  0xe9   :  { %v1077_v49 = vpack.c.b16 %v837_v58, %v831_v19  ;;  %v1084_v25 = vpack.c.b16 %v849_v15, %v843_v32  ;;  %v500_v19 = vrot.slane %v10669_v24, 2  ;;  %v10670_v58 = vld [vmem:[#allocation4 + $0x8] sm:$0xff]   ;;  %v548_v2 = vrot.slane %v10914_v30, 2  ;;  %v10243_v15 = vld [vmem:[#allocation10 + $0x54] ss:$8 sps:$4 sm:$0xff]  }
  0xea   :  { %v1083_v31 = vpack.c.b16 %v848_v23, %v842_v0  ;;  %v1090_v52 = vpack.c.b16 %v860_v16, %v854_v48  ;;  %v501_v0 = vrot.slane %v10670_v58, 2  ;;  %v614_v23 = vrot.slane %v10669_v24, 3  ;;  %v10238_v32 = vld [vmem:[#allocation10 + $0x60] ss:$8 sps:$4 sm:$0xff]  }
  0xeb   :  { %v615_v17 = vrot.slane %v10670_v58, 3  ;;  %v549_v20 = vrot.slane %v10911_v29, 3  ;;  %v552_v29 = vrot.slane %v10938_v51, 2  ;;  %v553_v16 = vrot.slane %v10935_v50, 3 }
  0xec   :  { %v502_v21 = vsel %vm499_vm4, %v500_v19, %v501_v0  ;;  %v556_v38 = vrot.slane %v10959_v7, 2  ;;  %v557_v51 = vrot.slane %v10962_v8, 3  ;;  %v559_v50 = vrot.slane %v10968_v10, 2  ;;  %v10247_v10 = vld [vmem:[#allocation10 + $0x30] ss:$8 sps:$4 sm:$0xff]  }
  0xed   :  { %v616_v13 = vsel %vm613_vm5, %v614_v23, %v615_v17  ;;  %v550_v62 = vor.u32 %v549_v20, %v548_v2  ;;  %v554_v33 = vor.u32 %v553_v16, %v552_v29  ;;  %v563_v7 = vrot.slane %v10994_v42, 2  ;;  %v10250_v42 = vld [vmem:[#allocation10 + $0x20] ss:$8 sps:$4 sm:$0xff]   ;;  %v10253_v2 = vld [vmem:[#allocation10 + $0x10] ss:$8 sps:$4 sm:$0xff]  }
  0xee   :  { %1955 = vmatmul.mubr.bf16.gmra.mxu0 %v9571_v28  ;;  %v1092_v28 = vpack.c.b16 %v862_v6, %v856_v57  ;;  %v10241_v6 = vld [vmem:[#allocation10 + $0x50] ss:$8 sps:$4 sm:$0xff]   ;;  %v564_v8 = vrot.slane %v10989_v36, 3  ;;  %v10255_v36 = vld [vmem:[#allocation10 + $0x14] ss:$8 sps:$4 sm:$0xff]   ;;  %v509_v58 = vrot.slane %v10944_v59, 2 }
  0xef   :  { %2168 = vmatmul.mubr.bf16.gmra.mxu1 %v1070_v34  ;;  %1964 = vmatprep.mubr.bf16.mxu0 %v1076_v1  ;;  %v540_v34 = vrot.slane %v10883_v56, 2  ;;  %v541_v1 = vrot.slane %v10880_v55, 3  ;;  %v545_v56 = vrot.slane %v10897_v12, 3  ;;  %v17340_v55 = vmov 0   ;;  %v10258_v20 = vld [vmem:[#allocation10 + $0x4] ss:$8 sps:$4 sm:$0xff]  }
  0xf0   :  { %2177 = vmatprep.mubr.bf16.mxu1 %v1078_v5  ;;  %v855_v5 = vunpack.c.h.b16 %v421_v41  ;;  %v565_v24 = vor.u32 %v564_v8, %v563_v7 }
  0xf1   :  { %v542_v27 = vor.u32 %v541_v1, %v540_v34  ;;  %v546_v44 = vor.u32 %v545_v56, %v544_v54  ;;  %v560_v34 = vrot.slane %v10965_v9, 3  ;;  %v10244_v1 = vld [vmem:[#allocation10 + $0x40] ss:$8 sps:$4 sm:$0xff]   ;;  %v10252_v9 = vld [vmem:[#allocation10 + $0x24] ss:$8 sps:$4 sm:$0xff]   ;;  %v621_v54 = vrot.slane %v10919_v35, 3 }
  0xf2   :  { %v1091_v37 = vpack.c.b16 %v861_v14, %v855_v5  ;;  %v10249_v5 = vld [vmem:[#allocation10 + $0x34] ss:$8 sps:$4 sm:$0xff]  }
  0xf3   :  { %v543_v53 = vsel %vm536_vm3, %v539_v43, %v542_v27  ;;  %v547_v12 = vsel %vm536_vm3, %v542_v27, %v546_v44  ;;  %v551_v57 = vsel %vm536_vm3, %v546_v44, %v550_v62  ;;  %v555_v27 = vsel %vm536_vm3, %v550_v62, %v554_v33  ;;  %v10261_v62 = vld [vmem:[#allocation10 + $0xf4] ss:$8 sps:$4 sm:$0xff]  }
  0xf4   :  { %v623_v44 = vrot.slane %v10944_v59, 3 }
  0xf6   :  { %1965 = vmatmul.mubr.bf16.gmra.mxu0 %v9572_v39  ;;  %v10235_v39 = vld [vmem:[#allocation10 + $0x70] ss:$8 sps:$4 sm:$0xff]  }
  0xf7   :  { %2178 = vmatmul.mubr.bf16.gmra.mxu1 %v1077_v49  ;;  %1974 = vmatprep.mubr.bf16.mxu0 %v1083_v31  ;;  %v10240_v49 = vld [vmem:[#allocation10 + $0x64] ss:$8 sps:$4 sm:$0xff]  }
  0xf8   :  { %2187 = vmatprep.mubr.bf16.mxu1 %v1085_v61  ;;  %v10671_v31 = vld [vmem:[#allocation4 + $0x10] sm:$0xff]  }
  0xf9   :  { %v503_v61 = vrot.slane %v10671_v31, 2  ;;  %v617_v41 = vrot.slane %v10671_v31, 3 }
  0xfb   :  { %v504_v48 = vsel %vm499_vm4, %v501_v0, %v503_v61  ;;  %v618_v30 = vsel %vm613_vm5, %v615_v17, %v617_v41  ;;  %v510_v0 = vrot.slane %v10948_v60, 2 }
  0xfe   :  { %1975 = vmatmul.mubr.bf16.gmra.mxu0 %v9573_v40  ;;  %v10246_v40 = vld [vmem:[#allocation10 + $0x44] ss:$8 sps:$4 sm:$0xff]  }
  0xff   :  { %2188 = vmatmul.mubr.bf16.gmra.mxu1 %v1084_v25  ;;  %1984 = vmatprep.mubr.bf16.mxu0 %v1090_v52  ;;  %v10672_v25 = vld [vmem:[#allocation4 + $0x18] sm:$0xff]  }
 0x100   :  { %2197 = vmatprep.mubr.bf16.mxu1 %v1092_v28  ;;  %v505_v52 = vrot.slane %v10672_v25, 2  ;;  %v619_v28 = vrot.slane %v10672_v25, 3  ;;  %v10259_v25 = vld [vmem:[#allocation10 + $0xf0] ss:$8 sps:$4 sm:$0xff]  }
 0x102   :  { %v506_v14 = vsel %vm499_vm4, %v503_v61, %v505_v52  ;;  %v620_v43 = vsel %vm613_vm5, %v617_v41, %v619_v28  ;;  %v622_v23 = vsel %vm613_vm5, %v619_v28, %v621_v54  ;;  %v10256_v41 = vld [vmem:[#allocation10] ss:$8 sps:$4 sm:$0xff]  }
 0x106   :  { %1985 = vmatmul.mubr.bf16.gmra.mxu0 %v9574_v11  ;;  %v558_v11 = vor.u32 %v557_v51, %v556_v38 }
 0x107   :  { %2198 = vmatmul.mubr.bf16.gmra.mxu1 %v1091_v37  ;;  %2240 = vmatprep.mubr.bf16.mxu0 %v543_v53  ;;  %v561_v37 = vor.u32 %v560_v34, %v559_v50  ;;  %v507_v53 = vrot.slane %v10919_v35, 2  ;;  %v624_v35 = vrot.slane %v10948_v60, 3  ;;  %v17661_v34 = vld [vmem:[#allocation19_spill] sm:$0xff] }
 0x108   :  { %2453 = vmatprep.mubr.bf16.mxu1 %v17340_v55 }
 0x109   :  { %v562_v56 = vsel %vm536_vm3, %v558_v11, %v561_v37  ;;  %v508_v19 = vsel %vm499_vm4, %v505_v52, %v507_v53  ;;  %v625_v59 = vsel %vm613_vm5, %v623_v44, %v624_v35  ;;  %v10265_v11 = vld [vmem:[#allocation10 + $0x170] ss:$8 sps:$4 sm:$0xff]  }
 0x10a   :  { %v9558_v17 = vcombine.low %v554_v33, %v562_v56  ;;  %v714_v60 = vunpack.c.h.b16 %v562_v56  ;;  %v715_v33 = vunpack.c.h.b16 %v625_v59  ;;  %v10268_v56 = vld [vmem:[#allocation10 + $0x160] ss:$8 sps:$4 sm:$0xff]  }
 0x10e   :  { %2241 = vmatmul.mubr.bf16.vlgmr.msra.gmra.mxu0 %v502_v21  ;;  %v566_v21 = vsel %vm536_vm3, %v561_v37, %v565_v24 }
 0x10f   :  { %2454 = vmatmul.mubr.bf16.vlgmr.msra.gmra.mxu1 %v616_v13  ;;  %2250 = vmatprep.mubr.bf16.mxu0 %v547_v12  ;;  %v567_v13 = vrot.slane %v11023_v26, 2  ;;  %v568_v12 = vrot.slane %v11020_v4, 3  ;;  %v720_v61 = vunpack.c.l.b16 %v566_v21  ;;  %v726_v51 = vunpack.c.h.b16 %v566_v21  ;;  %v10274_v21 = vld [vmem:[#allocation10 + $0x150] ss:$8 sps:$4 sm:$0xff]  }
 0x110   :  { %2463 = vmatprep.mubr.bf16.mxu1 %v17340_v55  ;;  %4007 = vmatpush1.bf16.msra.mxu0 %v10235_v39  ;;  %v511_v39 = vsel %vm499_vm4, %v509_v58, %v510_v0 }
 0x111   :  { %4008 = vmatprep.subr.bf16.mxu0 %v10240_v49  ;;  %v17659_v49 = vld [vmem:[#allocation18_spill] sm:$0xff]  ;;  %v569_v4 = vor.u32 %v568_v12, %v567_v13  ;;  %v713_v52 = vunpack.c.h.b16 %v511_v39 }
 0x112   :  { %v512_v31 = vrot.slane %v17659_v49, 2  ;;  %v626_v26 = vrot.slane %v17659_v49, 3  ;;  %v10271_v13 = vld [vmem:[#allocation10 + $0xd0] ss:$8 sps:$4 sm:$0xff]   ;;  %v10273_v12 = vld [vmem:[#allocation10 + $0xd4] ss:$8 sps:$4 sm:$0xff]  }
 0x113   :  { %v570_v16 = vsel %vm536_vm3, %v565_v24, %v569_v4 }
 0x114   :  { %4009 = vmatpush1.bf16.msra.mxu0 %v10238_v32  ;;  %v9557_v32 = vcombine.low %v507_v53, %v511_v39  ;;  %v627_v29 = vsel %vm613_vm5, %v624_v35, %v626_v26  ;;  %v732_v50 = vunpack.c.l.b16 %v570_v16  ;;  %v10270_v53 = vld [vmem:[#allocation10 + $0x164] ss:$8 sps:$4 sm:$0xff]   ;;  %v738_v58 = vunpack.c.h.b16 %v570_v16  ;;  %v10276_v35 = vld [vmem:[#allocation10 + $0x154] ss:$8 sps:$4 sm:$0xff]  }
 0x115   :  { %4010 = vmatprep.subr.bf16.mxu0 %v10243_v15  ;;  %v9559_v15 = vcombine.low %v621_v54, %v625_v59  ;;  %v721_v38 = vunpack.c.l.b16 %v627_v29  ;;  %v10279_v59 = vld [vmem:[#allocation10 + $0x144] ss:$8 sps:$4 sm:$0xff]  }
 0x116   :  { %2251 = vmatmul.mubr.bf16.gmra.mxu0 %v504_v48  ;;  %v1014_v48 = vpack.c.b16 %v720_v61, %v714_v60  ;;  %v1021_v8 = vpack.c.b16 %v732_v50, %v726_v51  ;;  %v10277_v60 = vld [vmem:[#allocation10 + $0x140] ss:$8 sps:$4 sm:$0xff]  }
 0x117   :  { %2464 = vmatmul.mubr.bf16.gmra.mxu1 %v618_v30  ;;  %2260 = vmatprep.mubr.bf16.mxu0 %v551_v57  ;;  %v513_v30 = vsel %vm499_vm4, %v510_v0, %v512_v31  ;;  %v571_v57 = vrot.slane %v11055_v22, 2  ;;  %v628_v22 = vrot.slane %v17661_v34, 3  ;;  %v1015_v7 = vpack.c.b16 %v721_v38, %v715_v33 }
 0x118   :  { %2473 = vmatprep.mubr.bf16.mxu1 %v17340_v55  ;;  %4011 = vmatpush1.bf16.msra.mxu0 %v10241_v6  ;;  %v17660_v6 = vld [vmem:[#allocation21_spill] sm:$0xff]  ;;  %v719_v28 = vunpack.c.l.b16 %v513_v30  ;;  %v725_v24 = vunpack.c.h.b16 %v513_v30 }
 0x119   :  { %4012 = vmatprep.subr.bf16.mxu0 %v10246_v40  ;;  %v572_v40 = vrot.slane %v17660_v6, 3  ;;  %v10283_v6 = vld [vmem:[#allocation10 + $0x130] ss:$8 sps:$4 sm:$0xff]  }
 0x11a   :  { %v1013_v37 = vpack.c.b16 %v719_v28, %v713_v52  ;;  %v10282_v52 = vld [vmem:[#allocation10 + $0xc4] ss:$8 sps:$4 sm:$0xff]  }
 0x11c   :  { %4013 = vmatpush1.bf16.msra.mxu0 %v10244_v1  ;;  %v514_v1 = vrot.slane %v17661_v34, 2 }
 0x11d   :  { %4014 = vmatprep.subr.bf16.mxu0 %v10249_v5  ;;  %v10264_v5 = vld [vmem:[#allocation10 + $0xe4] ss:$8 sps:$4 sm:$0xff]  }
 0x11e   :  { %2261 = vmatmul.mubr.bf16.gmra.mxu0 %v506_v14  ;;  %v10267_v14 = vld [vmem:[#allocation10 + $0x174] ss:$8 sps:$4 sm:$0xff]  }
 0x11f   :  { %2474 = vmatmul.mubr.bf16.gmra.mxu1 %v620_v43  ;;  %2270 = vmatprep.mubr.bf16.mxu0 %v555_v27  ;;  %v11340_v43 = vor.u32 %v572_v40, %v571_v57  ;;  %v10262_v27 = vld [vmem:[#allocation10 + $0xe0] ss:$8 sps:$4 sm:$0xff]  }
 0x120   :  { %2483 = vmatprep.mubr.bf16.mxu1 %v17340_v55  ;;  %4015 = vmatpush1.bf16.msra.mxu0 %v10247_v10  ;;  %v515_v10 = vsel %vm499_vm4, %v512_v31, %v514_v1 }
 0x121   :  { %4016 = vmatprep.subr.bf16.mxu0 %v10252_v9  ;;  %4199 = vmatprep.subr.bf16.mxu1 %v10267_v14  ;;  %v629_v9 = vsel %vm613_vm5, %v626_v26, %v628_v22  ;;  %v574_v54 = vsel %vm536_vm3, %v569_v4, %v11340_v43  ;;  %v737_v4 = vunpack.c.h.b16 %v515_v10  ;;  %v756_v30 = vunpack.c.l.b16 %v11340_v43  ;;  %v17663_v14 = vld [vmem:[#allocation22_spill] sm:$0xff] }
 0x122   :  { %4200 = vmatpush1.bf16.msra.mxu1 %v10265_v11  ;;  %v744_v0 = vunpack.c.l.b16 %v574_v54  ;;  %v575_v43 = vrot.slane %v17663_v14, 2  ;;  %v10298_v14 = vld [vmem:[#allocation10 + $0x1f0] ss:$8 sps:$4 sm:$0xff]  }
 0x123   :  { %4201 = vmatprep.subr.bf16.mxu1 %v10270_v53 }
 0x124   :  { %4017 = vmatpush1.bf16.msra.mxu0 %v10250_v42  ;;  %v731_v42 = vunpack.c.l.b16 %v515_v10  ;;  %v1028_v39 = vpack.c.b16 %v744_v0, %v738_v58  ;;  %v10291_v0 = vld [vmem:[#allocation10 + $0x114] ss:$8 sps:$4 sm:$0xff]  }
 0x125   :  { %4018 = vmatprep.subr.bf16.mxu0 %v10255_v36  ;;  %v727_v36 = vunpack.c.h.b16 %v627_v29  ;;  %v10285_v29 = vld [vmem:[#allocation10 + $0x134] ss:$8 sps:$4 sm:$0xff]  }
 0x126   :  { %2271 = vmatmul.mubr.bf16.gmra.mxu0 %v508_v19  ;;  %v733_v19 = vunpack.c.l.b16 %v629_v9  ;;  %4202 = vmatpush1.bf16.msra.mxu1 %v10268_v56 }
 0x127   :  { %2484 = vmatmul.mubr.bf16.gmra.mxu1 %v622_v23  ;;  %2280 = vmatprep.mubr.bf16.mxu0 %v9558_v17  ;;  %v17662_v23 = vld [vmem:[#allocation20_spill] sm:$0xff] }
 0x128   :  { %2493 = vmatprep.mubr.bf16.mxu1 %v17340_v55  ;;  %4019 = vmatpush1.bf16.msra.mxu0 %v10253_v2  ;;  %v516_v17 = vrot.slane %v17662_v23, 2  ;;  %v630_v44 = vrot.slane %v17662_v23, 3  ;;  %v1020_v2 = vpack.c.b16 %v731_v42, %v725_v24 }
 0x129   :  { %4020 = vmatprep.subr.bf16.mxu0 %v10258_v20  ;;  %4203 = vmatprep.subr.bf16.mxu1 %v10276_v35  ;;  %v1022_v20 = vpack.c.b16 %v733_v19, %v727_v36 }
 0x12a   :  { %v11352_v49 = vsel %vm499_vm4, %v514_v1, %v516_v17  ;;  %v11357_v31 = vsel %vm613_vm5, %v628_v22, %v630_v44  ;;  %4204 = vmatpush1.bf16.msra.mxu1 %v10274_v21  ;;  %v10288_v1 = vld [vmem:[#allocation10 + $0x124] ss:$8 sps:$4 sm:$0xff]   ;;  %v755_v42 = vunpack.c.l.b16 %v516_v17  ;;  %v757_v19 = vunpack.c.l.b16 %v630_v44 }
 0x12b   :  { %4205 = vmatprep.subr.bf16.mxu1 %v10279_v59  ;;  %v749_v24 = vunpack.c.h.b16 %v11352_v49  ;;  %v751_v36 = vunpack.c.h.b16 %v11357_v31  ;;  %v10297_v59 = vld [vmem:[#allocation10 + $0x104] ss:$8 sps:$4 sm:$0xff]  }
 0x12c   :  { %4021 = vmatpush1.bf16.msra.mxu0 %v10256_v41  ;;  %v743_v41 = vunpack.c.l.b16 %v11352_v49 }
 0x12d   :  { %4022 = vmatprep.subr.bf16.mxu0 %v10261_v62  ;;  %v739_v62 = vunpack.c.h.b16 %v629_v9  ;;  %v10286_v9 = vld [vmem:[#allocation10 + $0x120] ss:$8 sps:$4 sm:$0xff]   ;;  %v1034_v49 = vpack.c.b16 %v755_v42, %v749_v24  ;;  %v1036_v23 = vpack.c.b16 %v757_v19, %v751_v36  ;;  %v10306_v19 = vld [vmem:[#allocation10 + $0x1e4] ss:$8 sps:$4 sm:$0xff]  }
 0x12e   :  { %2281 = vmatmul.mubr.bf16.gmra.mxu0 %v9557_v32  ;;  %v745_v32 = vunpack.c.l.b16 %v11357_v31  ;;  %4206 = vmatpush1.bf16.msra.mxu1 %v10277_v60  ;;  %v1027_v38 = vpack.c.b16 %v743_v41, %v737_v4  ;;  %v10294_v31 = vld [vmem:[#allocation10 + $0xb4] ss:$8 sps:$4 sm:$0xff]   ;;  %v17670_v42 = vld [vmem:[#allocation28_spill] sm:$0xff] }
 0x12f   :  { %2494 = vmatmul.mubr.bf16.gmra.mxu1 %v9559_v15  ;;  %2290 = vmatprep.mubr.bf16.mxu0 %v1014_v48  ;;  %v750_v48 = vunpack.c.h.b16 %v574_v54  ;;  %v17667_v4 = vld [vmem:[#allocation27_spill] sm:$0xff]  ;;  %v587_v36 = vrot.slane %v17670_v42, 3 }
 0x130   :  { %2503 = vmatprep.mubr.bf16.mxu1 %v17340_v55  ;;  %4023 = vmatpush2.bf16.msra.mxu0 %v10259_v25  ;;  %v10280_v25 = vld [vmem:[#allocation10 + $0xc0] ss:$8 sps:$4 sm:$0xff]   ;;  %v1029_v51 = vpack.c.b16 %v745_v32, %v739_v62  ;;  %v582_v41 = vrot.slane %v17667_v4, 2  ;;  %v17668_v62 = vld [vmem:[#allocation26_spill] sm:$0xff] }
 0x131   :  { %4024 = vmatprep.subr.bf16.mxu0 %v10264_v5  ;;  %4207 = vmatprep.subr.bf16.mxu1 %v10285_v29  ;;  %v1035_v34 = vpack.c.b16 %v756_v30, %v750_v48  ;;  %v583_v32 = vrot.slane %v17668_v62, 3  ;;  %v10292_v48 = vld [vmem:[#allocation10 + $0xb0] ss:$8 sps:$4 sm:$0xff]   ;;  %v10295_v30 = vld [vmem:[#allocation10 + $0x100] ss:$8 sps:$4 sm:$0xff]  }
 0x132   :  { %4208 = vmatpush1.bf16.msra.mxu1 %v10283_v6  ;;  %v10673_v6 = vld [vmem:[#allocation4 + $0x50] sm:$0xff]  }
 0x133   :  { %4209 = vmatprep.subr.bf16.mxu1 %v10288_v1 }
 0x134   :  { %4025 = vmatpush2.bf16.msra.mxu0 %v10262_v27  ;;  %v17664_v27 = vld [vmem:[#allocation23_spill] sm:$0xff] }
 0x135   :  { %4026 = vmatprep.subr.bf16.mxu0 %v10273_v12  ;;  %v576_v11 = vrot.slane %v17664_v27, 3 }
 0x136   :  { %2291 = vmatmul.mubr.bf16.gmra.mxu0 %v1013_v37  ;;  %v17665_v37 = vld [vmem:[#allocation25_spill] sm:$0xff]  ;;  %4210 = vmatpush1.bf16.msra.mxu1 %v10286_v9 }
 0x137   :  { %2504 = vmatmul.mubr.bf16.gmra.mxu1 %v1015_v7  ;;  %2300 = vmatprep.mubr.bf16.mxu0 %v1021_v8  ;;  %v578_v7 = vrot.slane %v17665_v37, 2  ;;  %v17666_v8 = vld [vmem:[#allocation24_spill] sm:$0xff] }
 0x138   :  { %2513 = vmatprep.mubr.bf16.mxu1 %v17340_v55  ;;  %4027 = vmatpush2.bf16.msra.mxu0 %v10271_v13  ;;  %v579_v10 = vrot.slane %v17666_v8, 3  ;;  %v577_v13 = vor.u32 %v576_v11, %v575_v43 }
 0x139   :  { %4028 = vmatprep.subr.bf16.mxu0 %v10282_v52  ;;  %4211 = vmatprep.subr.bf16.mxu1 %v10291_v0 }
 0x13a   :  { %v580_v12 = vor.u32 %v579_v10, %v578_v7 }
 0x13c   :  { %4029 = vmatpush2.bf16.msra.mxu0 %v10280_v25  ;;  %v518_v25 = vrot.slane %v10673_v6, 2 }
 0x13d   :  { %4030 = vmatprep.subr.bf16.mxu0 %v10294_v31 }
 0x13e   :  { %v1816_v61 = vpop.f32.mrf.mxu0  ;;  %2301 = vmatmul.mubr.bf16.gmra.mxu0 %v1020_v2  ;;  %v10289_v2 = vld [vmem:[#allocation10 + $0x110] ss:$8 sps:$4 sm:$0xff]  }
 0x13f   :  { %v2029_v26 = vpop.f32.mrf.mxu1  ;;  %2514 = vmatmul.mubr.bf16.gmra.mxu1 %v1022_v20  ;;  %2310 = vmatprep.mubr.bf16.mxu0 %v1028_v39 }
 0x140   :  { %v11361_v15 = vadd.f32 %v2029_v26, %v1816_v61  ;;  %2523 = vmatprep.mubr.bf16.mxu1 %v17340_v55  ;;  %v1818_v16 = vpop.f32.mrf.mxu0  ;;  %v581_v26 = vsel %vm536_vm3, %v577_v13, %v580_v12  ;;  %4212 = vmatpush1.bf16.msra.mxu1 %v10289_v2 }
 0x141   :  { %v2031_v57 = vpop.f32.mrf.mxu1  ;;  %4213 = vmatprep.subr.bf16.mxu1 %v10297_v59  ;;  %4031 = vmatpush2.bf16.msra.mxu0 %v10292_v48  ;;  %v10312_v48 = vld [vmem:[#allocation10 + $0x94] ss:$8 sps:$4 sm:$0xff]  }
 0x142   :  { %v11365_v40 = vadd.f32 %v2031_v57, %v1818_v16  ;;  %v1820_v28 = vpop.f32.mrf.mxu0 }
 0x143   :  { %v2033_v33 = vpop.f32.mrf.mxu1 }
 0x144   :  { %v11367_v50 = vadd.f32 %v2033_v33, %v1820_v28  ;;  %v1822_v22 = vpop.f32.mrf.mxu0  ;;  %v10674_v28 = vld [vmem:[#allocation4 + $0x58] sm:$0xff]   ;;  %4214 = vmatpush1.bf16.msra.mxu1 %v10295_v30 }
 0x145   :  { %v2035_v5 = vpop.f32.mrf.mxu1  ;;  %v519_v33 = vrot.slane %v10674_v28, 2 }
 0x146   :  { %v11373_v53 = vadd.f32 %v2035_v5, %v1822_v22  ;;  %v1826_v54 = vpop.f32.mrf.mxu0  ;;  %2311 = vmatmul.mubr.bf16.gmra.mxu0 %v1027_v38  ;;  %v632_v38 = vrot.slane %v10673_v6, 3  ;;  %v584_v5 = vor.u32 %v583_v32, %v582_v41  ;;  %v10307_v32 = vld [vmem:[#allocation10 + $0x1d0] ss:$8 sps:$4 sm:$0xff]  }
 0x147   :  { %v2039_v56 = vpop.f32.mrf.mxu1  ;;  %2524 = vmatmul.mubr.bf16.gmra.mxu1 %v1029_v51  ;;  %2320 = vmatprep.mubr.bf16.mxu0 %v1035_v34  ;;  %v633_v51 = vrot.slane %v10674_v28, 3  ;;  %v10300_v34 = vld [vmem:[#allocation10 + $0x1f4] ss:$8 sps:$4 sm:$0xff]   ;;  %v520_v7 = vsel %vm499_vm4, %v518_v25, %v519_v33  ;;  %v17672_v25 = vld [vmem:[#allocation33_spill] sm:$0xff] }
 0x148   :  { %v11381_v58 = vadd.f32 %v2039_v56, %v1826_v54  ;;  %2533 = vmatprep.mubr.bf16.mxu1 %v17340_v55  ;;  %v1828_v35 = vpop.f32.mrf.mxu0  ;;  %4215 = vmatprep.subr.bf16.mxu1 %v10300_v34  ;;  %v585_v54 = vsel %vm536_vm3, %v580_v12, %v584_v5  ;;  %v17669_v56 = vld [vmem:[#allocation29_spill] sm:$0xff]  ;;  %v591_v28 = vrot.slane %v17672_v25, 3 }
 0x149   :  { %v2041_v21 = vpop.f32.mrf.mxu1  ;;  %v634_v8 = vsel %vm613_vm5, %v632_v38, %v633_v51  ;;  %v586_v24 = vrot.slane %v17669_v56, 2  ;;  %4216 = vmatpush2.bf16.msra.mxu1 %v10298_v14  ;;  %v10310_v38 = vld [vmem:[#allocation10 + $0x90] ss:$8 sps:$4 sm:$0xff]   ;;  %v10316_v56 = vld [vmem:[#allocation10 + $0x80] ss:$8 sps:$4 sm:$0xff]  }
 0x14a   :  { %v11384_v20 = vadd.f32 %v2041_v21, %v1828_v35  ;;  %v1830_v17 = vpop.f32.mrf.mxu0  ;;  %v10303_v35 = vld [vmem:[#allocation10 + $0xa4] ss:$8 sps:$4 sm:$0xff]   ;;  %v10304_v21 = vld [vmem:[#allocation10 + $0x1e0] ss:$8 sps:$4 sm:$0xff]   ;;  %4217 = vmatprep.subr.bf16.mxu1 %v10306_v19 }
 0x14b   :  { %v2043_v39 = vpop.f32.mrf.mxu1  ;;  %4032 = vmatprep.subr.bf16.mxu0 %v10303_v35  ;;  %v17674_v35 = vld [vmem:[#allocation36_spill] sm:$0xff] }
 0x14c   :  { %v11386_v44 = vadd.f32 %v2043_v39, %v1830_v17  ;;  %v1832_v60 = vpop.f32.mrf.mxu0  ;;  %v11407_v17 = vld [vmem:[#allocation4 + $0x60] sm:$0xff]  }
 0x14d   :  { %v2045_v61 = vpop.f32.mrf.mxu1  ;;  %v521_v39 = vrot.slane %v11407_v17, 2  ;;  %4218 = vmatpush2.bf16.msra.mxu1 %v10304_v21  ;;  %v595_v21 = vrot.slane %v17674_v35, 3 }
 0x14e   :  { %v11391_v29 = vadd.f32 %v2045_v61, %v1832_v60  ;;  %v1836_v16 = vpop.f32.mrf.mxu0  ;;  %2321 = vmatmul.mubr.bf16.gmra.mxu0 %v1034_v49  ;;  %v10301_v49 = vld [vmem:[#allocation10 + $0xa0] ss:$8 sps:$4 sm:$0xff]   ;;  %v588_v60 = vor.u32 %v587_v36, %v586_v24  ;;  %v17673_v36 = vld [vmem:[#allocation35_spill] sm:$0xff] }
 0x14f   :  { %v2049_v57 = vpop.f32.mrf.mxu1  ;;  %2534 = vmatmul.mubr.bf16.gmra.mxu1 %v1036_v23  ;;  %2330 = vmatprep.mubr.bf16.mxu0 %v581_v26  ;;  %v635_v23 = vrot.slane %v11407_v17, 3  ;;  %v10309_v26 = vld [vmem:[#allocation10 + $0x1d4] ss:$8 sps:$4 sm:$0xff]   ;;  %v522_v62 = vsel %vm499_vm4, %v519_v33, %v521_v39  ;;  %v10315_v33 = vld [vmem:[#allocation10 + $0x1c4] ss:$8 sps:$4 sm:$0xff]   ;;  %v594_v19 = vrot.slane %v17673_v36, 2 }
 0x150   :  { %v11393_v52 = vadd.f32 %v2049_v57, %v1836_v16  ;;  %2543 = vmatprep.mubr.bf16.mxu1 %v17340_v55  ;;  %v1838_v1 = vpop.f32.mrf.mxu0  ;;  %4033 = vmatpush2.bf16.msra.mxu0 %v10301_v49  ;;  %v17671_v57 = vld [vmem:[#allocation34_spill] sm:$0xff]  ;;  %v17676_v49 = vld [vmem:[#allocation37_spill] sm:$0xff] }
 0x151   :  { %v2051_v22 = vpop.f32.mrf.mxu1  ;;  %v636_v16 = vsel %vm613_vm5, %v633_v51, %v635_v23  ;;  %v590_v6 = vrot.slane %v17671_v57, 2  ;;  %4219 = vmatprep.subr.bf16.mxu1 %v10309_v26  ;;  %4034 = vmatprep.subr.bf16.mxu0 %v10312_v48  ;;  %v10313_v51 = vld [vmem:[#allocation10 + $0x1c0] ss:$8 sps:$4 sm:$0xff]   ;;  %v10321_v26 = vld [vmem:[#allocation10 + $0x1b4] ss:$8 sps:$4 sm:$0xff]  }
 0x152   :  { %v11396_v43 = vadd.f32 %v2051_v22, %v1838_v1  ;;  %v1840_v27 = vpop.f32.mrf.mxu0  ;;  %v589_v22 = vsel %vm536_vm3, %v584_v5, %v588_v60  ;;  %4220 = vmatpush2.bf16.msra.mxu1 %v10307_v32  ;;  %v10324_v17 = vld [vmem:[#allocation10 + $0x1a4] ss:$8 sps:$4 sm:$0xff]   ;;  %v10327_v36 = vld [vmem:[#allocation10 + $0x194] ss:$8 sps:$4 sm:$0xff]  }
 0x153   :  { %v2053_v11 = vpop.f32.mrf.mxu1  ;;  %4221 = vmatprep.subr.bf16.mxu1 %v10315_v33 }
 0x154   :  { %v11398_v37 = vadd.f32 %v2053_v11, %v1840_v27  ;;  %v1842_v10 = vpop.f32.mrf.mxu0  ;;  %4035 = vmatpush2.bf16.msra.mxu0 %v10310_v38 }
 0x155   :  { %v2055_v9 = vpop.f32.mrf.mxu1 }
 0x156   :  { %v11405_v0 = vadd.f32 %v2055_v9, %v1842_v10  ;;  %v1846_v13 = vpop.f32.mrf.mxu0  ;;  %2331 = vmatmul.mubr.bf16.gmra.mxu0 %v520_v7  ;;  %v10318_v7 = vld [vmem:[#allocation10 + $0x84] ss:$8 sps:$4 sm:$0xff]   ;;  %4222 = vmatpush2.bf16.msra.mxu1 %v10313_v51 }
 0x157   :  { %v2059_v2 = vpop.f32.mrf.mxu1  ;;  %2544 = vmatmul.mubr.bf16.gmra.mxu1 %v634_v8  ;;  %2340 = vmatprep.mubr.bf16.mxu0 %v585_v54  ;;  %v11430_v10 = vld [vmem:[#allocation4 + $0x68] sm:$0xff]   ;;  %v11434_v54 = vor.u32 %v591_v28, %v590_v6  ;;  %v596_v28 = vor.u32 %v595_v21, %v594_v19  ;;  %v17679_v21 = vld [vmem:[#allocation31_spill] sm:$0xff] }
 0x158   :  { %v11410_v12 = vadd.f32 %v2059_v2, %v1846_v13  ;;  %2553 = vmatprep.mubr.bf16.mxu1 %v17340_v55  ;;  %v1848_v31 = vpop.f32.mrf.mxu0  ;;  %v523_v5 = vrot.slane %v11430_v10, 2  ;;  %v637_v9 = vrot.slane %v11430_v10, 3  ;;  %v17675_v13 = vld [vmem:[#allocation38_spill] sm:$0xff]  ;;  %4036 = vmatprep.subr.bf16.mxu0 %v10318_v7 }
 0x159   :  { %v2061_v59 = vpop.f32.mrf.mxu1  ;;  %v597_v2 = vrot.slane %v17675_v13, 2  ;;  %4037 = vmatpush2.bf16.msra.mxu0 %v10316_v56  ;;  %v593_v57 = vsel %vm536_vm3, %v588_v60, %v11434_v54  ;;  %4223 = vmatprep.subr.bf16.mxu1 %v10321_v26  ;;  %v17678_v60 = vld [vmem:[#allocation30_spill] sm:$0xff]  ;;  %v527_v13 = vrot.slane %v17679_v21, 2 }
 0x15a   :  { %v11414_v61 = vadd.f32 %v2061_v59, %v1848_v31  ;;  %v1850_v4 = vpop.f32.mrf.mxu0  ;;  %v598_v31 = vrot.slane %v17676_v49, 3  ;;  %v524_v48 = vsel %vm499_vm4, %v521_v39, %v523_v5  ;;  %v525_v51 = vrot.slane %v17678_v60, 2 }
 0x15b   :  { %v2063_v41 = vpop.f32.mrf.mxu1 }
 0x15c   :  { %v11419_v30 = vadd.f32 %v2063_v41, %v1850_v4  ;;  %v1852_v34 = vpop.f32.mrf.mxu0  ;;  %v599_v38 = vor.u32 %v598_v31, %v597_v2  ;;  %v17680_v2 = vld [vmem:[#allocation32_spill] sm:$0xff]  ;;  %v641_v31 = vrot.slane %v17679_v21, 3 }
 0x15d   :  { %v2065_v1 = vpop.f32.mrf.mxu1  ;;  %v528_v49 = vrot.slane %v17680_v2, 2  ;;  %v642_v26 = vrot.slane %v17680_v2, 3 }
 0x15e   :  { %v11425_v14 = vadd.f32 %v2065_v1, %v1852_v34  ;;  %v1856_v27 = vpop.f32.mrf.mxu0  ;;  %2341 = vmatmul.mubr.bf16.gmra.mxu0 %v522_v62  ;;  %v10319_v62 = vld [vmem:[#allocation10 + $0x1b0] ss:$8 sps:$4 sm:$0xff]   ;;  %v601_v34 = vrot.slane %v11212_v47, 2  ;;  %v17677_v1 = vld [vmem:[#allocation40_spill] sm:$0xff]  ;;  %v639_v47 = vrot.slane %v17678_v60, 3  ;;  %v600_v56 = vsel %vm536_vm3, %v596_v28, %v599_v38 }
 0x15f   :  { %v2069_v11 = vpop.f32.mrf.mxu1  ;;  %2554 = vmatmul.mubr.bf16.gmra.mxu1 %v636_v16  ;;  %2350 = vmatprep.mubr.bf16.mxu0 %v589_v22  ;;  %v638_v16 = vsel %vm613_vm5, %v635_v23, %v637_v9  ;;  %v602_v22 = vrot.slane %v17677_v1, 3  ;;  %v10322_v23 = vld [vmem:[#allocation10 + $0x1a0] ss:$8 sps:$4 sm:$0xff]   ;;  %v605_v28 = vrot.slane %v11238_v3, 2  ;;  %v822_v3 = vunpack.c.h.b16 %v600_v56 }
 0x160   :  { %v11427_v8 = vadd.f32 %v2069_v11, %v1856_v27  ;;  %2563 = vmatprep.mubr.bf16.mxu1 %v17340_v55  ;;  %v1858_v24 = vpop.f32.mrf.mxu0  ;;  %4224 = vmatpush2.bf16.msra.mxu1 %v10319_v62  ;;  %v526_v62 = vsel %vm499_vm4, %v523_v5, %v525_v51 }
 0x161   :  { %v2071_v42 = vpop.f32.mrf.mxu1  ;;  %4225 = vmatprep.subr.bf16.mxu1 %v10324_v17  ;;  %v10330_v17 = vld [vmem:[#allocation10 + $0x184] ss:$8 sps:$4 sm:$0xff]  }
 0x162   :  { %v11440_v59 = vadd.f32 %v2071_v42, %v1858_v24  ;;  %v1860_v4 = vpop.f32.mrf.mxu0  ;;  %v603_v24 = vor.u32 %v602_v22, %v601_v34  ;;  %v17682_v34 = vld [vmem:[#allocation41_spill] sm:$0xff] }
 0x163   :  { %v2073_v41 = vpop.f32.mrf.mxu1  ;;  %v606_v1 = vrot.slane %v17682_v34, 3 }
 0x164   :  { %v11442_v32 = vadd.f32 %v2073_v41, %v1860_v4  ;;  %v1862_v6 = vpop.f32.mrf.mxu0  ;;  %4226 = vmatpush2.bf16.msra.mxu1 %v10322_v23  ;;  %v10325_v4 = vld [vmem:[#allocation10 + $0x190] ss:$8 sps:$4 sm:$0xff]  }
 0x165   :  { %v2075_v25 = vpop.f32.mrf.mxu1  ;;  %4227 = vmatprep.subr.bf16.mxu1 %v10327_v36 }
 0x166   :  { %v11452_v33 = vadd.f32 %v2075_v25, %v1862_v6  ;;  %v1866_v27 = vpop.f32.mrf.mxu0  ;;  %2351 = vmatmul.mubr.bf16.gmra.mxu0 %v524_v48  ;;  %v640_v48 = vsel %vm613_vm5, %v637_v9, %v639_v47  ;;  %v11472_v25 = vsel %vm536_vm3, %v599_v38, %v603_v24  ;;  %v529_v9 = vsel %vm499_vm4, %v527_v13, %v528_v49  ;;  %v10328_v38 = vld [vmem:[#allocation10 + $0x180] ss:$8 sps:$4 sm:$0xff]  }
 0x167   :  { %v2079_v39 = vpop.f32.mrf.mxu1  ;;  %2564 = vmatmul.mubr.bf16.gmra.mxu1 %v638_v16  ;;  %2360 = vmatprep.mubr.bf16.mxu0 %v593_v57  ;;  %v9569_v16 = vcombine.low %v11434_v54, %v600_v56  ;;  %v643_v54 = vsel %vm613_vm5, %v641_v31, %v642_v26  ;;  %v9568_v31 = vcombine.low %v525_v51, %v529_v9 }
 0x168   :  { %v11454_v11 = vadd.f32 %v2079_v39, %v1866_v27  ;;  %2573 = vmatprep.mubr.bf16.mxu1 %v17340_v55  ;;  %v1868_v7 = vpop.f32.mrf.mxu0  ;;  %4228 = vmatpush2.bf16.msra.mxu1 %v10325_v4  ;;  %v17684_v39 = vld [vmem:[#allocation39_spill] sm:$0xff]  ;;  %v9570_v4 = vcombine.low %v639_v47, %v643_v54 }
 0x169   :  { %v2081_v10 = vpop.f32.mrf.mxu1  ;;  %v530_v23 = vrot.slane %v17684_v39, 2  ;;  %4229 = vmatprep.subr.bf16.mxu1 %v10330_v17 }
 0x16a   :  { %v11460_v42 = vadd.f32 %v2081_v10, %v1868_v7  ;;  %v1870_v19 = vpop.f32.mrf.mxu0  ;;  %v828_v7 = vunpack.c.l.b16 %v11472_v25  ;;  %v644_v10 = vrot.slane %v17684_v39, 3  ;;  %v823_v39 = vunpack.c.h.b16 %v643_v54 }
 0x16b   :  { %v2083_v35 = vpop.f32.mrf.mxu1  ;;  %v531_v56 = vsel %vm499_vm4, %v528_v49, %v530_v23 }
 0x16c   :  { %v11466_v41 = vadd.f32 %v2083_v35, %v1870_v19  ;;  %v1872_v57 = vpop.f32.mrf.mxu0  ;;  %v607_v35 = vor.u32 %v606_v1, %v605_v28  ;;  %4230 = vmatpush2.bf16.msra.mxu1 %v10328_v38  ;;  %v609_v28 = vrot.slane %v11259_v63, 2  ;;  %v610_v1 = vrot.slane %v11256_v46, 3 }
 0x16d   :  { %v2085_v6 = vpop.f32.mrf.mxu1  ;;  %v834_v63 = vunpack.c.h.b16 %v11472_v25 }
 0x16e   :  { %17681 = vst [vmem:[#allocation18_spill] sm:$0xff] %v11466_v41  ;;  %v11476_v22 = vadd.f32 %v2085_v6, %v1872_v57  ;;  %v1876_v27 = vpop.f32.mrf.mxu0  ;;  %2361 = vmatmul.mubr.bf16.gmra.mxu0 %v526_v62  ;;  %v608_v34 = vsel %vm536_vm3, %v603_v24, %v607_v35  ;;  %v646_v24 = vrot.slane %v11223_v18, 3 }
 0x16f   :  { %v2089_v5 = vpop.f32.mrf.mxu1  ;;  %2574 = vmatmul.mubr.bf16.gmra.mxu1 %v640_v48  ;;  %2370 = vmatprep.mubr.bf16.mxu0 %v9569_v16  ;;  %v1073_v48 = vpack.c.b16 %v828_v7, %v822_v3  ;;  %v645_v16 = vsel %vm613_vm5, %v642_v26, %v644_v10  ;;  %v532_v26 = vrot.slane %v11223_v18, 2  ;;  %v840_v46 = vunpack.c.l.b16 %v608_v34 }
 0x170   :  { %17683 = vst [vmem:[#allocation21_spill] sm:$0xff] %v11476_v22  ;;  %v11481_v60 = vadd.f32 %v2089_v5, %v1876_v27  ;;  %2583 = vmatprep.mubr.bf16.mxu1 %v17340_v55  ;;  %v1878_v36 = vpop.f32.mrf.mxu0  ;;  %v821_v27 = vunpack.c.h.b16 %v529_v9  ;;  %v827_v5 = vunpack.c.l.b16 %v531_v56  ;;  %v829_v49 = vunpack.c.l.b16 %v645_v16 }
 0x171   :  { %v2091_v19 = vpop.f32.mrf.mxu1  ;;  %v11503_v7 = vor.u32 %v610_v1, %v609_v28  ;;  %v647_v25 = vsel %vm613_vm5, %v644_v10, %v646_v24 }
 0x172   :  { %17685 = vst [vmem:[#allocation19_spill] sm:$0xff] %v11481_v60  ;;  %v11486_v21 = vadd.f32 %v2091_v19, %v1878_v36  ;;  %v1880_v13 = vpop.f32.mrf.mxu0 }
 0x173   :  { %v2093_v2 = vpop.f32.mrf.mxu1  ;;  %v612_v28 = vsel %vm536_vm3, %v607_v35, %v11503_v7 }
 0x174   :  { %17686 = vst [vmem:[#allocation20_spill] sm:$0xff] %v11486_v21  ;;  %v11488_v62 = vadd.f32 %v2093_v2, %v1880_v13  ;;  %v1882_v57 = vpop.f32.mrf.mxu0  ;;  %v1072_v13 = vpack.c.b16 %v827_v5, %v821_v27  ;;  %v1074_v2 = vpack.c.b16 %v829_v49, %v823_v39  ;;  %v835_v39 = vunpack.c.h.b16 %v645_v16 }
 0x175   :  { %v2095_v6 = vpop.f32.mrf.mxu1  ;;  %v841_v49 = vunpack.c.l.b16 %v647_v25  ;;  %v852_v35 = vunpack.c.l.b16 %v612_v28 }
 0x176   :  { %17687 = vst [vmem:[#allocation22_spill] sm:$0xff] %v11488_v62  ;;  %v11495_v17 = vadd.f32 %v2095_v6, %v1882_v57  ;;  %v1886_v51 = vpop.f32.mrf.mxu0  ;;  %2371 = vmatmul.mubr.bf16.gmra.mxu0 %v9568_v31  ;;  %v10333_v57 = vld [vmem:[#allocation10 + $0x274] ss:$8 sps:$4 sm:$0xff]  }
 0x177   :  { %v2099_v47 = vpop.f32.mrf.mxu1  ;;  %2584 = vmatmul.mubr.bf16.gmra.mxu1 %v9570_v4  ;;  %2380 = vmatprep.mubr.bf16.mxu0 %v1073_v48  ;;  %v1080_v4 = vpack.c.b16 %v840_v46, %v834_v63  ;;  %v533_v48 = vsel %vm499_vm4, %v530_v23, %v532_v26  ;;  %v534_v23 = vrot.slane %v11244_v45, 2  ;;  %v846_v63 = vunpack.c.h.b16 %v608_v34 }
 0x178   :  { %17688 = vst [vmem:[#allocation23_spill] sm:$0xff] %v11495_v17  ;;  %v11498_v38 = vadd.f32 %v2099_v47, %v1886_v51  ;;  %2593 = vmatprep.mubr.bf16.mxu1 %v17340_v55  ;;  %v1888_v9 = vpop.f32.mrf.mxu0  ;;  %v833_v51 = vunpack.c.h.b16 %v531_v56  ;;  %4392 = vmatprep.subr.bf16.mxu0 %v10333_v57  ;;  %v839_v5 = vunpack.c.l.b16 %v533_v48  ;;  %v648_v46 = vrot.slane %v11244_v45, 3 }
 0x179   :  { %v2101_v3 = vpop.f32.mrf.mxu1  ;;  %v1081_v16 = vpack.c.b16 %v841_v49, %v835_v39  ;;  %v1087_v57 = vpack.c.b16 %v852_v35, %v846_v63 }
 0x17a   :  { %17689 = vst [vmem:[#allocation25_spill] sm:$0xff] %v11498_v38  ;;  %v11505_v36 = vadd.f32 %v2101_v3, %v1888_v9  ;;  %v1890_v54 = vpop.f32.mrf.mxu0 }
 0x17b   :  { %v2103_v19 = vpop.f32.mrf.mxu1 }
 0x17c   :  { %17690 = vst [vmem:[#allocation24_spill] sm:$0xff] %v11505_v36  ;;  %v11507_v31 = vadd.f32 %v2103_v19, %v1890_v54  ;;  %v1892_v6 = vpop.f32.mrf.mxu0 }
 0x17d   :  { %v2105_v18 = vpop.f32.mrf.mxu1 }
 0x17e   :  { %17691 = vst [vmem:[#allocation27_spill] sm:$0xff] %v11507_v31  ;;  %v11513_v1 = vadd.f32 %v2105_v18, %v1892_v6  ;;  %v1896_v47 = vpop.f32.mrf.mxu0  ;;  %2381 = vmatmul.mubr.bf16.gmra.mxu0 %v1072_v13  ;;  %v1079_v13 = vpack.c.b16 %v839_v5, %v833_v51  ;;  %v535_v6 = vsel %vm499_vm4, %v532_v26, %v534_v23  ;;  %v858_v26 = vunpack.c.h.b16 %v612_v28 }
 0x17f   :  { %v2109_v27 = vpop.f32.mrf.mxu1  ;;  %2594 = vmatmul.mubr.bf16.gmra.mxu1 %v1074_v2  ;;  %2390 = vmatprep.mubr.bf16.mxu0 %v1080_v4  ;;  %v649_v4 = vsel %vm613_vm5, %v646_v24, %v648_v46  ;;  %v864_v24 = vunpack.c.l.b16 %v11503_v7  ;;  %v857_v7 = vunpack.c.h.b16 %v535_v6  ;;  %v863_v28 = vunpack.c.l.b16 %v534_v23 }
 0x180   :  { %17692 = vst [vmem:[#allocation26_spill] sm:$0xff] %v11513_v1  ;;  %v11516_v10 = vadd.f32 %v2109_v27, %v1896_v47  ;;  %2603 = vmatprep.mubr.bf16.mxu1 %v17340_v55  ;;  %v1898_v56 = vpop.f32.mrf.mxu0  ;;  %v845_v27 = vunpack.c.h.b16 %v533_v48  ;;  %v853_v51 = vunpack.c.l.b16 %v649_v4 }
 0x181   :  { %v2111_v9 = vpop.f32.mrf.mxu1 }
 0x182   :  { %17693 = vst [vmem:[#allocation29_spill] sm:$0xff] %v11516_v10  ;;  %v11520_v3 = vadd.f32 %v2111_v9, %v1898_v56  ;;  %v1900_v54 = vpop.f32.mrf.mxu0  ;;  %v851_v56 = vunpack.c.l.b16 %v535_v6  ;;  %v847_v9 = vunpack.c.h.b16 %v647_v25  ;;  %v1094_v25 = vpack.c.b16 %v864_v24, %v858_v26 }
 0x183   :  { %v2113_v19 = vpop.f32.mrf.mxu1 }
 0x184   :  { %17694 = vst [vmem:[#allocation28_spill] sm:$0xff] %v11520_v3  ;;  %v11522_v2 = vadd.f32 %v2113_v19, %v1900_v54  ;;  %v11526_v18 = vpop.f32.mrf.mxu0  ;;  %v1086_v19 = vpack.c.b16 %v851_v56, %v845_v27  ;;  %v17700_v27 = vmov 0  }
 0x185   :  { %v11528_v34 = vpop.f32.mrf.mxu1 }
 0x186   :  { %17695 = vst [vmem:[#allocation34_spill] sm:$0xff] %v11522_v2  ;;  %v1906_v45 = vpop.f32.mrf.mxu0  ;;  %2391 = vmatmul.mubr.bf16.gmra.mxu0 %v1079_v13  ;;  %v1088_v13 = vpack.c.b16 %v853_v51, %v847_v9 }
 0x187   :  { %v2119_v47 = vpop.f32.mrf.mxu1  ;;  %2604 = vmatmul.mubr.bf16.gmra.mxu1 %v1081_v16  ;;  %2400 = vmatprep.mubr.bf16.mxu0 %v1087_v57 }
 0x188   :  { %v11530_v5 = vadd.f32 %v2119_v47, %v1906_v45  ;;  %2613 = vmatprep.mubr.bf16.mxu1 %v17340_v55  ;;  %v1908_v39 = vpop.f32.mrf.mxu0  ;;  %v859_v55 = vunpack.c.h.b16 %v649_v4 }
 0x189   :  { %v2121_v49 = vpop.f32.mrf.mxu1 }
 0x18a   :  { %17696 = vst [vmem:[#allocation33_spill] sm:$0xff] %v11530_v5  ;;  %v11534_v63 = vadd.f32 %v2121_v49, %v1908_v39  ;;  %v1910_v35 = vpop.f32.mrf.mxu0  ;;  %v865_v39 = vunpack.c.l.b16 %v648_v46 }
 0x18b   :  { %v2123_v54 = vpop.f32.mrf.mxu1 }
 0x18c   :  { %17697 = vst [vmem:[#allocation35_spill] sm:$0xff] %v11534_v63  ;;  %v11536_v48 = vadd.f32 %v2123_v54, %v1910_v35  ;;  %v11538_v16 = vpop.f32.mrf.mxu0  ;;  %v1093_v35 = vpack.c.b16 %v863_v28, %v857_v7  ;;  %v1095_v54 = vpack.c.b16 %v865_v39, %v859_v55 }
 0x18d   :  { %v11540_v45 = vpop.f32.mrf.mxu1 }
 0x18e   :  { %17698 = vst [vmem:[#allocation36_spill] sm:$0xff] %v11536_v48  ;;  %v1916_v57 = vpop.f32.mrf.mxu0  ;;  %2401 = vmatmul.mubr.bf16.gmra.mxu0 %v1086_v19 }
 0x18f   :  { %v2129_v47 = vpop.f32.mrf.mxu1  ;;  %2614 = vmatmul.mubr.bf16.gmra.mxu1 %v1088_v13  ;;  %2410 = vmatprep.mubr.bf16.mxu0 %v1094_v25 }
 0x190   :  { %v11542_v49 = vadd.f32 %v2129_v47, %v1916_v57  ;;  %2623 = vmatprep.mubr.bf16.mxu1 %v17700_v27  ;;  %v1918_v56 = vpop.f32.mrf.mxu0 }
 0x191   :  { %v2131_v9 = vpop.f32.mrf.mxu1 }
 0x192   :  { %17699 = vst [vmem:[#allocation38_spill] sm:$0xff] %v11542_v49  ;;  %v11545_v51 = vadd.f32 %v2131_v9, %v1918_v56  ;;  %v1920_v26 = vpop.f32.mrf.mxu0 }
 0x193   :  { %v2133_v24 = vpop.f32.mrf.mxu1 }
 0x194   :  { %17701 = vst [vmem:[#allocation37_spill] sm:$0xff] %v11545_v51  ;;  %v11547_v48 = vadd.f32 %v2133_v24, %v1920_v26  ;;  %v11549_v19 = vpop.f32.mrf.mxu0 }
 0x195   :  { %v11551_v23 = vpop.f32.mrf.mxu1 }
 0x196   :  { %17702 = vst [vmem:[#allocation40_spill] sm:$0xff] %v11547_v48  ;;  %v1926_v46 = vpop.f32.mrf.mxu0  ;;  %2411 = vmatmul.mubr.bf16.gmra.mxu0 %v1093_v35 }
 0x197   :  { %v2139_v6 = vpop.f32.mrf.mxu1  ;;  %2624 = vmatmul.mubr.bf16.gmra.mxu1 %v1095_v54 }
 0x198   :  { %v11553_v4 = vadd.f32 %v2139_v6, %v1926_v46  ;;  %v1928_v13 = vpop.f32.mrf.mxu0 }
 0x199   :  { %v2141_v25 = vpop.f32.mrf.mxu1 }
 0x19a   :  { %17703 = vst [vmem:[#allocation30_spill] sm:$0xff] %v11553_v4  ;;  %v11555_v57 = vadd.f32 %v2141_v25, %v1928_v13  ;;  %v1930_v47 = vpop.f32.mrf.mxu0 }
 0x19b   :  { %v2143_v27 = vpop.f32.mrf.mxu1 }
 0x19c   :  { %17704 = vst [vmem:[#allocation31_spill] sm:$0xff] %v11555_v57  ;;  %v11557_v7 = vadd.f32 %v2143_v27, %v1930_v47  ;;  %v11559_v55 = vpop.f32.mrf.mxu0 }
 0x19d   :  { %v11561_v28 = vpop.f32.mrf.mxu1 }
 0x19e   :  { %17705 = vst [vmem:[#allocation32_spill] sm:$0xff] %v11557_v7  ;;  %v1936_v39 = vpop.f32.mrf.mxu0 }
 0x19f   :  { %v2149_v56 = vpop.f32.mrf.mxu1 }
 0x1a0   :  { %v11563_v9 = vadd.f32 %v2149_v56, %v1936_v39  ;;  %v1938_v26 = vpop.f32.mrf.mxu0 }
 0x1a1   :  { %v2151_v24 = vpop.f32.mrf.mxu1 }
 0x1a2   :  { %17706 = vst [vmem:[#allocation41_spill] sm:$0xff] %v11563_v9  ;;  %v11565_v35 = vadd.f32 %v2151_v24, %v1938_v26  ;;  %v1940_v54 = vpop.f32.mrf.mxu0 }
 0x1a3   :  { %v2153_v46 = vpop.f32.mrf.mxu1 }
 0x1a4   :  { %17707 = vst [vmem:[#allocation39_spill] sm:$0xff] %v11565_v35  ;;  %v11567_v6 = vadd.f32 %v2153_v46, %v1940_v54  ;;  %v11569_v13 = vpop.f32.mrf.mxu0 }
 0x1a5   :  { %v11571_v25 = vpop.f32.mrf.mxu1 }
 0x1a6   :  { %17708 = vst [vmem:[#allocation42_spill] sm:$0xff] %v11567_v6  ;;  %v1946_v47 = vpop.f32.mrf.mxu0 }
 0x1a7   :  { %v2159_v27 = vpop.f32.mrf.mxu1 }
 0x1a8   :  { %v11573_v7 = vadd.f32 %v2159_v27, %v1946_v47  ;;  %v1948_v57 = vpop.f32.mrf.mxu0 }
 0x1a9   :  { %v2161_v4 = vpop.f32.mrf.mxu1 }
 0x1aa   :  { %17709 = vst [vmem:[#allocation43_spill] sm:$0xff] %v11573_v7  ;;  %v11575_v39 = vadd.f32 %v2161_v4, %v1948_v57  ;;  %v1950_v56 = vpop.f32.mrf.mxu0 }
 0x1ab   :  { %v2163_v9 = vpop.f32.mrf.mxu1 }
 0x1ac   :  { %17710 = vst [vmem:[#allocation44_spill] sm:$0xff] %v11575_v39  ;;  %v11577_v26 = vadd.f32 %v2163_v9, %v1950_v56  ;;  %v11579_v24 = vpop.f32.mrf.mxu0 }
 0x1ad   :  { %v11581_v54 = vpop.f32.mrf.mxu1 }
 0x1ae   :  { %17711 = vst [vmem:[#allocation45_spill] sm:$0xff] %v11577_v26  ;;  %v1956_v46 = vpop.f32.mrf.mxu0 }
 0x1af   :  { %v2169_v6 = vpop.f32.mrf.mxu1 }
 0x1b0   :  { %v11583_v35 = vadd.f32 %v2169_v6, %v1956_v46  ;;  %v1958_v51 = vpop.f32.mrf.mxu0 }
 0x1b1   :  { %v2171_v48 = vpop.f32.mrf.mxu1 }
 0x1b2   :  { %17712 = vst [vmem:[#allocation46_spill] sm:$0xff] %v11583_v35  ;;  %v11585_v47 = vadd.f32 %v2171_v48, %v1958_v51  ;;  %v1960_v27 = vpop.f32.mrf.mxu0 }
 0x1b3   :  { %v2173_v7 = vpop.f32.mrf.mxu1 }
 0x1b4   :  { %17713 = vst [vmem:[#allocation47_spill] sm:$0xff] %v11585_v47  ;;  %v11587_v4 = vadd.f32 %v2173_v7, %v1960_v27  ;;  %v11589_v57 = vpop.f32.mrf.mxu0 }
 0x1b5   :  { %v11591_v9 = vpop.f32.mrf.mxu1 }
 0x1b6   :  { %17714 = vst [vmem:[#allocation48_spill] sm:$0xff] %v11587_v4  ;;  %v1966_v56 = vpop.f32.mrf.mxu0 }
 0x1b7   :  { %v2179_v26 = vpop.f32.mrf.mxu1 }
 0x1b8   :  { %v11593_v39 = vadd.f32 %v2179_v26, %v1966_v56  ;;  %v1968_v49 = vpop.f32.mrf.mxu0 }
 0x1b9   :  { %v2181_v63 = vpop.f32.mrf.mxu1 }
 0x1ba   :  { %17715 = vst [vmem:[#allocation49_spill] sm:$0xff] %v11593_v39  ;;  %v11595_v6 = vadd.f32 %v2181_v63, %v1968_v49  ;;  %v1970_v46 = vpop.f32.mrf.mxu0 }
 0x1bb   :  { %v2183_v35 = vpop.f32.mrf.mxu1 }
 0x1bc   :  { %17716 = vst [vmem:[#allocation50_spill] sm:$0xff] %v11595_v6  ;;  %v11597_v48 = vadd.f32 %v2183_v35, %v1970_v46  ;;  %v11599_v51 = vpop.f32.mrf.mxu0  ;;  %v17341_v46 = vlaneseq }
 0x1bd   :  { %v11601_v7 = vpop.f32.mrf.mxu1 }
 0x1be   :  { %17717 = vst [vmem:[#allocation51_spill] sm:$0xff] %v11597_v48  ;;  %v1976_v27 = vpop.f32.mrf.mxu0 }
 0x1bf   :  { %v2189_v4 = vpop.f32.mrf.mxu1 }
 0x1c0   :  { %v11603_v47 = vadd.f32 %v2189_v4, %v1976_v27  ;;  %v1978_v5 = vpop.f32.mrf.mxu0  ;;  %v11616_v27 = vshrl.u32 %v17341_v46, 7 }
 0x1c1   :  { %v2191_v2 = vpop.f32.mrf.mxu1 }
 0x1c2   :  { %17718 = vst [vmem:[#allocation52_spill] sm:$0xff] %v11603_v47  ;;  %v11605_v26 = vadd.f32 %v2191_v2, %v1978_v5  ;;  %v1980_v56 = vpop.f32.mrf.mxu0  ;;  %17722 = vst [vmem:[#allocation56_spill] sm:$0xff] %v11616_v27  ;;  %v11627_v47 = vsub.s32 0, %v11616_v27  ;;  %v11630_v1 = vsub.s32 1, %v11616_v27 }
 0x1c3   :  { %v2193_v39 = vpop.f32.mrf.mxu1 }
 0x1c4   :  { %17719 = vst [vmem:[#allocation53_spill] sm:$0xff] %v11605_v26  ;;  %v11607_v63 = vadd.f32 %v2193_v39, %v1980_v56  ;;  %v11609_v49 = vpop.f32.mrf.mxu0  ;;  %17725 = vst [vmem:[#allocation59_spill] sm:$0xff] %v11627_v47 }
 0x1c5   :  { %v11611_v35 = vpop.f32.mrf.mxu1  ;;  %17726 = vst [vmem:[#allocation60_spill] sm:$0xff] %v11630_v1 }
 0x1c6   :  { %17720 = vst [vmem:[#allocation54_spill] sm:$0xff] %v11607_v63  ;;  %v1986_v48 = vpop.f32.mrf.mxu0 }
 0x1c7   :  { %v2199_v6 = vpop.f32.mrf.mxu1 }
 0x1c8   :  { %v11613_v10 = vadd.f32 %v2199_v6, %v1986_v48  ;;  %v1988_v3 = vpop.f32.mrf.mxu0  ;;  %v2634_v6 = vld [vmem:[#allocation9] sm:$0x3] }
 0x1c9   :  { %v2201_v4 = vpop.f32.mrf.mxu1 }
 0x1ca   :  { %17721 = vst [vmem:[#allocation55_spill] sm:$0xff] %v11613_v10  ;;  %v11618_v2 = vadd.f32 %v2201_v4, %v1988_v3  ;;  %v1990_v5 = vpop.f32.mrf.mxu0  ;;  %v11634_v4 = vrot.slane %v2634_v6, %v11627_v47 }
 0x1cb   :  { %v2203_v26 = vpop.f32.mrf.mxu1 }
 0x1cc   :  { %17723 = vst [vmem:[#allocation57_spill] sm:$0xff] %v11618_v2  ;;  %v11620_v39 = vadd.f32 %v2203_v26, %v1990_v5  ;;  %v11622_v56 = vpop.f32.mrf.mxu0  ;;  %v11638_v2 = vrot.slane %v2634_v6, %v11630_v1 }
 0x1cd   :  { %v11624_v63 = vpop.f32.mrf.mxu1 }
 0x1ce   :  { %17724 = vst [vmem:[#allocation58_spill] sm:$0xff] %v11620_v39  ;;  %v2242_v48 = vpop.f32.mrf.mxu0 }
 0x1cf   :  { %v2455_v10 = vpop.f32.mrf.mxu1  ;;  %v2243_v3 = vadd.f32 %v2242_v48, %v11361_v15 }
 0x1d0   :  { %v2244_v26 = vpop.f32.mrf.mxu0 }
 0x1d1   :  { %v2457_v5 = vpop.f32.mrf.mxu1  ;;  %v2456_v46 = vadd.f32 %v2455_v10, %v2243_v3  ;;  %v2245_v39 = vadd.f32 %v2244_v26, %v11365_v40 }
 0x1d2   :  { %v2246_v31 = vpop.f32.mrf.mxu0 }
 0x1d3   :  { %v2459_v38 = vpop.f32.mrf.mxu1  ;;  %v2458_v36 = vadd.f32 %v2457_v5, %v2245_v39  ;;  %v2247_v17 = vadd.f32 %v2246_v31, %v11367_v50  ;;  %v11642_v27 = vadd.f32 %v11634_v4, %v2456_v46 }
 0x1d4   :  { %v2248_v15 = vpop.f32.mrf.mxu0 }
 0x1d5   :  { %v2461_v48 = vpop.f32.mrf.mxu1  ;;  %v2460_v62 = vadd.f32 %v2459_v38, %v2247_v17  ;;  %v11645_v60 = vadd.f32 %v11638_v2, %v2458_v36  ;;  %v2249_v10 = vadd.f32 %v2248_v15, %v11373_v53  ;;  %v2718_v6 = vmul.f32 0.1, %v11642_v27 }
 0x1d6   :  { %v2252_v40 = vpop.f32.mrf.mxu0 }
 0x1d7   :  { %v2465_v3 = vpop.f32.mrf.mxu1  ;;  %v11650_v26 = vadd.f32 %v11634_v4, %v2460_v62  ;;  %v2462_v39 = vadd.f32 %v2461_v48, %v2249_v10  ;;  %v2253_v50 = vadd.f32 %v2252_v40, %v11381_v58  ;;  %v2719_v17 = vmul.f32 0.1, %v11645_v60 }
 0x1d8   :  { %v2254_v31 = vpop.f32.mrf.mxu0  ;;  %v2790_v48 = vmax.f32 %v11642_v27, %v2718_v6 }
 0x1d9   :  { %v2467_v46 = vpop.f32.mrf.mxu1  ;;  %v2255_v5 = vadd.f32 %v2254_v31, %v11384_v20  ;;  %v2720_v38 = vmul.f32 0.1, %v11650_v26  ;;  %v11657_v53 = vadd.f32 %v11638_v2, %v2462_v39  ;;  %v2466_v36 = vadd.f32 %v2465_v3, %v2253_v50  ;;  %v4585_v3 = vld [vmem:[#allocation12] ss:$4 sm:$0x3] }
 0x1da   :  { %v2256_v15 = vpop.f32.mrf.mxu0  ;;  %v2791_v50 = vmax.f32 %v11645_v60, %v2719_v17  ;;  %v10331_v17 = vld [vmem:[#allocation10 + $0x270] ss:$8 sps:$4 sm:$0xff]  }
 0x1db   :  { %v2469_v22 = vpop.f32.mrf.mxu1  ;;  %v2468_v21 = vadd.f32 %v2467_v46, %v2255_v5  ;;  %v2257_v62 = vadd.f32 %v2256_v15, %v11386_v44  ;;  %v2792_v58 = vmax.f32 %v11650_v26, %v2720_v38  ;;  %v2721_v10 = vmul.f32 0.1, %v11657_v53 }
 0x1dc   :  { %v2258_v20 = vpop.f32.mrf.mxu0  ;;  %v11664_v31 = vadd.f32 %v11634_v4, %v2466_v36 }
 0x1dd   :  { %v2471_v40 = vpop.f32.mrf.mxu1  ;;  %v2470_v41 = vadd.f32 %v2469_v22, %v2257_v62  ;;  %v2259_v39 = vadd.f32 %v2258_v20, %v11391_v29  ;;  %v11668_v46 = vpack.c.bf16 %v2792_v58, %v2790_v48  ;;  %v2793_v44 = vmax.f32 %v11657_v53, %v2721_v10  ;;  %v10336_v10 = vld [vmem:[#allocation10 + $0x264] ss:$8 sps:$4 sm:$0xff]  }
 0x1de   :  { %v11672_v6 = vadd.f32 %v11638_v2, %v2468_v21  ;;  %v2262_v5 = vpop.f32.mrf.mxu0  ;;  %v2722_v15 = vmul.f32 0.1, %v11664_v31  ;;  %v11682_v48 = vadd.f32 %v11528_v34, %v11526_v18  ;;  %v11685_v21 = vrot.slane %v4585_v3, %v11627_v47 }
 0x1df   :  { %17727 = vst [vmem:[#allocation61_spill] sm:$0xff] %v11668_v46  ;;  %v2475_v38 = vpop.f32.mrf.mxu1  ;;  %v11676_v36 = vadd.f32 %v11634_v4, %v2470_v41  ;;  %v2472_v22 = vadd.f32 %v2471_v40, %v2259_v39  ;;  %v11678_v20 = vpack.c.bf16 %v2793_v44, %v2791_v50  ;;  %v11688_v58 = vrot.slane %v4585_v3, %v11630_v1 }
 0x1e0   :  { %v2264_v62 = vpop.f32.mrf.mxu0  ;;  %v11692_v41 = vadd.f32 %v11540_v45, %v11538_v16  ;;  %v2723_v40 = vmul.f32 0.1, %v11672_v6  ;;  %v11702_v3 = vadd.f32 %v11551_v23, %v11549_v19  ;;  %v11706_v44 = vadd.f32 %v11561_v28, %v11559_v55 }
 0x1e1   :  { %v2477_v29 = vpop.f32.mrf.mxu1  ;;  %17728 = vst [vmem:[#allocation62_spill] sm:$0xff] %v11678_v20  ;;  %v2724_v39 = vmul.f32 0.1, %v11676_v36  ;;  %v11697_v50 = vadd.f32 %v11638_v2, %v2472_v22  ;;  %4038 = vmatprep.mubr.bf16.mxu0 %v11678_v20  ;;  %v2263_v16 = vadd.f32 %v2262_v5, %v11393_v52  ;;  %v2265_v45 = vadd.f32 %v2264_v62, %v11396_v43 }
 0x1e2   :  { %17729 = vst [vmem:[#allocation63_spill] sm:$0xff] %v11692_v41  ;;  %v2266_v18 = vpop.f32.mrf.mxu0  ;;  %17730 = vst [vmem:[#allocation64_spill] sm:$0xff] %v11702_v3  ;;  %4039 = vmatmul.mubr.bf16.vlgmr.msra.gmra.mxu0 %v11668_v46  ;;  %v2794_v22 = vmax.f32 %v11664_v31, %v2722_v15  ;;  %v10334_v3 = vld [vmem:[#allocation10 + $0x260] ss:$8 sps:$4 sm:$0xff]   ;;  %v11717_v55 = vadd.f32 %v11571_v25, %v11569_v13  ;;  %v11721_v52 = vadd.f32 %v11581_v54, %v11579_v24 }
 0x1e3   :  { %v2479_v34 = vpop.f32.mrf.mxu1  ;;  %v2796_v1 = vmax.f32 %v11676_v36, %v2724_v39  ;;  %v2725_v47 = vmul.f32 0.1, %v11697_v50  ;;  %v2267_v41 = vadd.f32 %v2266_v18, %v11398_v37  ;;  %4393 = vmatpush1.bf16.msra.mxu0 %v10331_v17  ;;  %v11725_v43 = vadd.f32 %v11685_v21, %v11642_v27  ;;  %v10339_v37 = vld [vmem:[#allocation10 + $0x254] ss:$8 sps:$4 sm:$0xff]   ;;  %v10337_v18 = vld [vmem:[#allocation10 + $0x250] ss:$8 sps:$4 sm:$0xff]  }
 0x1e4   :  { %v2268_v19 = vpop.f32.mrf.mxu0  ;;  %4394 = vmatprep.subr.bf16.mxu0 %v10336_v10  ;;  %v11730_v5 = vadd.f32 %v11688_v58, %v11645_v60  ;;  %v2795_v15 = vmax.f32 %v11672_v6, %v2723_v40  ;;  %v11738_v54 = vadd.f32 %v11591_v9, %v11589_v57  ;;  %v11746_v60 = vadd.f32 %v11685_v21, %v11650_v26  ;;  %v10342_v26 = vld [vmem:[#allocation10 + $0x244] ss:$8 sps:$4 sm:$0xff]  }
 0x1e5   :  { %v2481_v23 = vpop.f32.mrf.mxu1  ;;  %17731 = vst [vmem:[#allocation65_spill] sm:$0xff] %v11725_v43  ;;  %v2269_v28 = vadd.f32 %v2268_v19, %v11405_v0  ;;  %v2797_v13 = vmax.f32 %v11697_v50, %v2725_v47  ;;  %v11734_v24 = vpack.c.bf16 %v2796_v1, %v2794_v22  ;;  %v11742_v0 = vadd.f32 %v11601_v7, %v11599_v51 }
 0x1e6   :  { %17732 = vst [vmem:[#allocation66_spill] sm:$0xff] %v11730_v5  ;;  %v2272_v25 = vpop.f32.mrf.mxu0  ;;  %17734 = vst [vmem:[#allocation68_spill] sm:$0xff] %v11738_v54  ;;  %v2478_v27 = vadd.f32 %v2477_v29, %v2265_v45  ;;  %v2476_v17 = vadd.f32 %v2475_v38, %v2263_v16  ;;  %v2480_v10 = vadd.f32 %v2479_v34, %v2267_v41  ;;  %v2920_v51 = vshrl.u32 %v11678_v20, 16  ;;  %v17795_v54 = vld [vmem:[#allocation33_spill] sm:$0xff] }
 0x1e7   :  { %v2485_v62 = vpop.f32.mrf.mxu1  ;;  %17733 = vst [vmem:[#allocation67_spill] sm:$0xff] %v11734_v24  ;;  %17735 = vst [vmem:[#allocation69_spill] sm:$0xff] %v11742_v0  ;;  %v2482_v47 = vadd.f32 %v2481_v23, %v2269_v28  ;;  %v11748_v1 = vpack.c.bf16 %v2797_v13, %v2795_v15  ;;  %4395 = vmatpush1.bf16.msra.mxu0 %v10334_v3  ;;  %v11752_v57 = vadd.f32 %v11611_v35, %v11609_v49  ;;  %v10340_v23 = vld [vmem:[#allocation10 + $0x240] ss:$8 sps:$4 sm:$0xff]   ;;  %v10345_v13 = vld [vmem:[#allocation10 + $0x234] ss:$8 sps:$4 sm:$0xff]  }
 0x1e8   :  { %17736 = vst [vmem:[#allocation70_spill] sm:$0xff] %v11746_v60  ;;  %v2274_v40 = vpop.f32.mrf.mxu0  ;;  %v2273_v9 = vadd.f32 %v2272_v25, %v11410_v12  ;;  %v2923_v7 = vshll.u32 %v11678_v20, 16  ;;  %4396 = vmatprep.subr.bf16.mxu0 %v10339_v37  ;;  %v11759_v38 = vadd.f32 %v11624_v63, %v11622_v56  ;;  %v11770_v3 = vadd.f32 %v11685_v21, %v11664_v31 }
 0x1e9   :  { %v2487_v39 = vpop.f32.mrf.mxu1  ;;  %17737 = vst [vmem:[#allocation71_spill] sm:$0xff] %v11748_v1  ;;  %17738 = vst [vmem:[#allocation72_spill] sm:$0xff] %v11752_v57  ;;  %v11764_v34 = vadd.f32 %v11638_v2, %v2482_v47  ;;  %4048 = vmatprep.mubr.bf16.mxu0 %v11748_v1  ;;  %v11774_v63 = vadd.f32 %v11688_v58, %v11672_v6  ;;  %v2655_v56 = vadd.f32 %v11638_v2, %v2478_v27 }
 0x1ea   :  { %17739 = vst [vmem:[#allocation73_spill] sm:$0xff] %v11759_v38  ;;  %v2276_v12 = vpop.f32.mrf.mxu0  ;;  %17740 = vst [vmem:[#allocation74_spill] sm:$0xff] %v11770_v3  ;;  %4049 = vmatmul.mubr.bf16.gmra.mxu0 %v11734_v24  ;;  %v11780_v16 = vadd.f32 %v11688_v58, %v11657_v53  ;;  %v11784_v45 = vadd.f32 %v11685_v21, %v11676_v36  ;;  %v11787_v22 = vadd.f32 %v11634_v4, %v2476_v17 }
 0x1eb   :  { %v2489_v49 = vpop.f32.mrf.mxu1  ;;  %17741 = vst [vmem:[#allocation75_spill] sm:$0xff] %v11774_v63  ;;  %v11790_v31 = vadd.f32 %v11634_v4, %v2480_v10  ;;  %4397 = vmatpush1.bf16.msra.mxu0 %v10337_v18  ;;  %v2729_v28 = vmul.f32 0.1, %v11764_v34  ;;  %v2486_v37 = vadd.f32 %v2485_v62, %v2273_v9  ;;  %v2922_v15 = vrot.slane %v2920_v51, 1  ;;  %v10343_v9 = vld [vmem:[#allocation10 + $0x230] ss:$8 sps:$4 sm:$0xff]  }
 0x1ec   :  { %17742 = vst [vmem:[#allocation76_spill] sm:$0xff] %v11780_v16  ;;  %17743 = vst [vmem:[#allocation77_spill] sm:$0xff] %v11784_v45  ;;  %v2278_v6 = vpop.f32.mrf.mxu0  ;;  %v2925_v53 = vrot.slane %v2923_v7, 2  ;;  %4398 = vmatprep.subr.bf16.mxu0 %v10342_v26  ;;  %v2275_v36 = vadd.f32 %v2274_v40, %v11414_v61  ;;  %v2928_v10 = vshrl.u32 %v11748_v1, 16  ;;  %v2931_v47 = vshll.u32 %v11748_v1, 16 }
 0x1ed   :  { %v2491_v19 = vpop.f32.mrf.mxu1  ;;  %v2279_v25 = vadd.f32 %v2278_v6, %v11425_v14  ;;  %v2727_v29 = vmul.f32 0.1, %v2655_v56  ;;  %v2277_v62 = vadd.f32 %v2276_v12, %v11419_v30  ;;  %v2726_v51 = vmul.f32 0.1, %v11787_v22  ;;  %v10348_v12 = vld [vmem:[#allocation10 + $0x224] ss:$8 sps:$4 sm:$0xff]  }
 0x1ee   :  { %v2282_v27 = vpop.f32.mrf.mxu0  ;;  %v2728_v61 = vmul.f32 0.1, %v11790_v31  ;;  %v2930_v7 = vrot.slane %v2928_v10, 1  ;;  %v2933_v26 = vrot.slane %v2931_v47, 2  ;;  %v11807_v18 = vadd.f32 %v11688_v58, %v11697_v50 }
 0x1ef   :  { %v2495_v17 = vpop.f32.mrf.mxu1  ;;  %4399 = vmatpush1.bf16.msra.mxu0 %v10340_v23  ;;  %v2801_v41 = vmax.f32 %v11764_v34, %v2729_v28  ;;  %v11811_v30 = vadd.f32 %v11634_v4, %v2486_v37  ;;  %v11815_v35 = vadd.f32 %v11685_v21, %v11787_v22  ;;  %v2488_v10 = vadd.f32 %v2487_v39, %v2275_v36 }
 0x1f0   :  { %v2284_v40 = vpop.f32.mrf.mxu0  ;;  %17744 = vst [vmem:[#allocation78_spill] sm:$0xff] %v11807_v18  ;;  %4400 = vmatprep.subr.bf16.mxu0 %v10345_v13  ;;  %v2492_v47 = vadd.f32 %v2491_v19, %v2279_v25  ;;  %v2926_v23 = vor.u32 %v2925_v53, %v2922_v15  ;;  %v2799_v50 = vmax.f32 %v2655_v56, %v2727_v29  ;;  %v2903_v39 = vshrl.u32 %v11668_v46, 16  ;;  %v10346_v29 = vld [vmem:[#allocation10 + $0x220] ss:$8 sps:$4 sm:$0xff]   ;;  %v10351_v53 = vld [vmem:[#allocation10 + $0x214] ss:$8 sps:$4 sm:$0xff]  }
 0x1f1   :  { %v11802_v14 = vpop.f32.mrf.mxu1  ;;  %17745 = vst [vmem:[#allocation79_spill] sm:$0xff] %v11815_v35  ;;  %v2490_v5 = vadd.f32 %v2489_v49, %v2277_v62  ;;  %v2283_v28 = vadd.f32 %v2282_v27, %v11427_v8  ;;  %v11822_v18 = vor.u32 %v2933_v26, %v2930_v7  ;;  %v2798_v37 = vmax.f32 %v11787_v22, %v2726_v51 }
 0x1f2   :  { %v11817_v63 = vpop.f32.mrf.mxu0  ;;  %v11826_v13 = vadd.f32 %v11688_v58, %v2655_v56  ;;  %v2800_v45 = vmax.f32 %v11790_v31, %v2728_v61  ;;  %v11836_v8 = vadd.f32 %v11685_v21, %v11790_v31  ;;  %v11839_v49 = vmul.f32 0.1, %v11811_v30 }
 0x1f3   :  { %v11819_v6 = vpop.f32.mrf.mxu1  ;;  %4401 = vmatpush1.bf16.msra.mxu0 %v10343_v9  ;;  %v2935_v56 = vsel %vm422_vm1, %v2926_v23, %v11822_v18  ;;  %v11843_v22 = vpack.c.bf16 %v2801_v41, %v2799_v50  ;;  %v11846_v36 = vadd.f32 %v11638_v2, %v2488_v10  ;;  %v11849_v25 = vadd.f32 %v11638_v2, %v2492_v47 }
 0x1f4   :  { %17746 = vst [vmem:[#allocation80_spill] sm:$0xff] %v11826_v13  ;;  %v11830_v19 = vpop.f32.mrf.mxu0  ;;  %17747 = vst [vmem:[#allocation81_spill] sm:$0xff] %v11836_v8  ;;  %4402 = vmatprep.subr.bf16.mxu0 %v10348_v12  ;;  %4231 = vmatprep.mubr.bf16.mxu1 %v2935_v56  ;;  %v2906_v31 = vshll.u32 %v11668_v46, 16  ;;  %v2911_v27 = vshrl.u32 %v11734_v24, 16  ;;  %v11856_v51 = vadd.f32 %v11634_v4, %v2490_v5  ;;  %v2914_v7 = vshll.u32 %v11734_v24, 16 }
 0x1f5   :  { %v11832_v15 = vpop.f32.mrf.mxu1  ;;  %17748 = vst [vmem:[#allocation82_spill] sm:$0xff] %v11843_v22  ;;  %v2496_v41 = vadd.f32 %v2495_v17, %v2283_v28  ;;  %v2285_v61 = vadd.f32 %v2284_v40, %v11440_v59  ;;  %4058 = vmatprep.mubr.bf16.mxu0 %v11843_v22  ;;  %v2905_v26 = vrot.slane %v2903_v39, 1  ;;  %v11861_v47 = vpack.c.bf16 %v2800_v45, %v2798_v37  ;;  %v10349_v56 = vld [vmem:[#allocation10 + $0x210] ss:$8 sps:$4 sm:$0xff]   ;;  %v10354_v40 = vld [vmem:[#allocation10 + $0x204] ss:$8 sps:$4 sm:$0xff]  }
 0x1f6   :  { %v2292_v62 = vpop.f32.mrf.mxu0  ;;  %v2908_v12 = vrot.slane %v2906_v31, 2  ;;  %v2913_v10 = vrot.slane %v2911_v27, 1  ;;  %v11868_v59 = vadd.f32 %v11688_v58, %v11764_v34  ;;  %v11874_v28 = vadd.f32 %v11685_v21, %v11811_v30  ;;  %v10352_v8 = vld [vmem:[#allocation10 + $0x200] ss:$8 sps:$4 sm:$0xff]  }
 0x1f7   :  { %v11853_v9 = vpop.f32.mrf.mxu1  ;;  %17749 = vst [vmem:[#allocation83_spill] sm:$0xff] %v11861_v47  ;;  %4403 = vmatpush1.bf16.msra.mxu0 %v10346_v29  ;;  %v2733_v37 = vmul.f32 0.1, %v11849_v25  ;;  %v2916_v39 = vrot.slane %v2914_v7, 2  ;;  %v2731_v34 = vmul.f32 0.1, %v11846_v36  ;;  %v2662_v27 = vadd.f32 %v11634_v4, %v2496_v41 }
 0x1f8   :  { %v2294_v23 = vpop.f32.mrf.mxu0  ;;  %17750 = vst [vmem:[#allocation84_spill] sm:$0xff] %v11868_v59  ;;  %4404 = vmatprep.subr.bf16.mxu0 %v10351_v53  ;;  %17751 = vst [vmem:[#allocation85_spill] sm:$0xff] %v11874_v28  ;;  %4059 = vmatmul.mubr.bf16.gmra.mxu0 %v11861_v47  ;;  %v11885_v53 = vadd.f32 %v11688_v58, %v11846_v36  ;;  %v2498_v5 = vadd.f32 %v11802_v14, %v2285_v61  ;;  %v11890_v17 = vmul.f32 0.1, %v11856_v51 }
 0x1f9   :  { %v2507_v50 = vpop.f32.mrf.mxu1  ;;  %v2909_v7 = vor.u32 %v2908_v12, %v2905_v26  ;;  %v11892_v3 = vor.u32 %v2916_v39, %v2913_v10  ;;  %v2295_v45 = vadd.f32 %v2294_v23, %v11460_v42  ;;  %v2287_v35 = vadd.f32 %v11817_v63, %v11442_v32  ;;  %v10357_v26 = vld [vmem:[#allocation10 + $0x2f4] ss:$8 sps:$4 sm:$0xff]  }
 0x1fa   :  { %v11878_v29 = vpop.f32.mrf.mxu0  ;;  %17752 = vst [vmem:[#allocation86_spill] sm:$0xff] %v11885_v53  ;;  %v2293_v41 = vadd.f32 %v2292_v62, %v11454_v11  ;;  %v2946_v14 = vshrl.u32 %v11843_v22, 16  ;;  %v2949_v61 = vshll.u32 %v11843_v22, 16  ;;  %v2805_v42 = vmax.f32 %v11849_v25, %v2733_v37 }
 0x1fb   :  { %v11880_v31 = vpop.f32.mrf.mxu1  ;;  %4405 = vmatpush1.bf16.msra.mxu0 %v10349_v56  ;;  %v2918_v10 = vsel %vm422_vm1, %v2909_v7, %v11892_v3  ;;  %v2289_v23 = vadd.f32 %v11830_v19, %v11452_v33  ;;  %v2734_v11 = vmul.f32 0.1, %v2662_v27  ;;  %v2663_v63 = vadd.f32 %v11638_v2, %v2498_v5  ;;  %v10355_v19 = vld [vmem:[#allocation10 + $0x2f0] ss:$8 sps:$4 sm:$0xff]  }
 0x1fc   :  { %v11895_v13 = vpop.f32.mrf.mxu0  ;;  %4406 = vmatprep.subr.bf16.mxu0 %v10354_v40  ;;  %4232 = vmatmul.mubr.bf16.vlgmr.msra.gmra.mxu1 %v2918_v10  ;;  %v2948_v62 = vrot.slane %v2946_v14, 1  ;;  %v2951_v40 = vrot.slane %v2949_v61, 2  ;;  %v2803_v39 = vmax.f32 %v11846_v36, %v2731_v34  ;;  %v11917_v37 = vadd.f32 %v11685_v21, %v11856_v51  ;;  %v10360_v36 = vld [vmem:[#allocation10 + $0x2e4] ss:$8 sps:$4 sm:$0xff]  }
 0x1fd   :  { %v11897_v59 = vpop.f32.mrf.mxu1  ;;  %v2508_v7 = vadd.f32 %v2507_v50, %v2295_v45  ;;  %v2804_v16 = vmax.f32 %v11856_v51, %v11890_v17  ;;  %v2500_v5 = vadd.f32 %v11819_v6, %v2287_v35  ;;  %v2506_v14 = vadd.f32 %v11853_v9, %v2293_v41 }
 0x1fe   :  { %v2302_v56 = vpop.f32.mrf.mxu0  ;;  %17753 = vst [vmem:[#allocation87_spill] sm:$0xff] %v11917_v37  ;;  %v11923_v61 = vor.u32 %v2951_v40, %v2948_v62  ;;  %v2502_v34 = vadd.f32 %v11832_v15, %v2289_v23  ;;  %v11926_v10 = vpack.c.bf16 %v2805_v42, %v2803_v39  ;;  %v2937_v50 = vshrl.u32 %v11861_v47, 16 }
 0x1ff   :  { %v11910_v32 = vpop.f32.mrf.mxu1  ;;  %4407 = vmatpush1.bf16.msra.mxu0 %v10352_v8  ;;  %v2940_v8 = vshll.u32 %v11861_v47, 16  ;;  %v11934_v51 = vmax.f32 %v2662_v27, %v2734_v11  ;;  %v11937_v35 = vadd.f32 %v11685_v21, %v2662_v27  ;;  %v2735_v6 = vmul.f32 0.1, %v2663_v63  ;;  %v10358_v27 = vld [vmem:[#allocation10 + $0x2e0] ss:$8 sps:$4 sm:$0xff]  }
 0x200   :  { %v2304_v28 = vpop.f32.mrf.mxu0  ;;  %4408 = vmatprep.subr.bf16.mxu0 %v10357_v26  ;;  %17754 = vst [vmem:[#allocation88_spill] sm:$0xff] %v11926_v10  ;;  %v11940_v9 = vadd.f32 %v11688_v58, %v2663_v63  ;;  %v11943_v15 = vadd.f32 %v11638_v2, %v2508_v7  ;;  %v2953_v17 = vsel %vm422_vm1, %v11822_v18, %v11923_v61  ;;  %v2939_v41 = vrot.slane %v2937_v50, 1  ;;  %v10363_v7 = vld [vmem:[#allocation10 + $0x2d4] ss:$8 sps:$4 sm:$0xff]   ;;  %v17760_v11 = vld [vmem:[#allocation20_spill] sm:$0xff] }
 0x201   :  { %v2517_v33 = vpop.f32.mrf.mxu1  ;;  %17755 = vst [vmem:[#allocation89_spill] sm:$0xff] %v11937_v35  ;;  %4068 = vmatprep.mubr.bf16.mxu0 %v11926_v10  ;;  %v2942_v26 = vrot.slane %v2940_v8, 2  ;;  %v11955_v62 = vadd.f32 %v11634_v4, %v2500_v5  ;;  %v11958_v40 = vadd.f32 %v11634_v4, %v2506_v14  ;;  %4241 = vmatprep.mubr.bf16.mxu1 %v2953_v17  ;;  %v17759_v8 = vld [vmem:[#allocation18_spill] sm:$0xff]  ;;  %v10364_v47 = vld [vmem:[#allocation10 + $0x2c0] ss:$8 sps:$4 sm:$0xff]  }
 0x202   :  { %v11930_v45 = vpop.f32.mrf.mxu0  ;;  %17756 = vst [vmem:[#allocation90_spill] sm:$0xff] %v11940_v9  ;;  %v17757_v18 = vmax.f32 %v11811_v30, %v11839_v49  ;;  %v11966_v50 = vadd.f32 %v11638_v2, %v2502_v34  ;;  %v2297_v5 = vadd.f32 %v11878_v29, %v17759_v8  ;;  %v2305_v53 = vadd.f32 %v2304_v28, %v17760_v11  ;;  %v17762_v49 = vld [vmem:[#allocation19_spill] sm:$0xff]  ;;  %v10372_v35 = vld [vmem:[#allocation10 + $0x2a4] ss:$8 sps:$4 sm:$0xff]  }
 0x203   :  { %v11932_v12 = vpop.f32.mrf.mxu1  ;;  %4409 = vmatpush2.bf16.msra.mxu0 %v10355_v19  ;;  %v11968_v19 = vor.u32 %v2942_v26, %v2939_v41  ;;  %v2964_v34 = vshrl.u32 %v11926_v10, 16  ;;  %v2967_v41 = vshll.u32 %v11926_v10, 16  ;;  %v2807_v26 = vmax.f32 %v2663_v63, %v2735_v6  ;;  %v10366_v6 = vld [vmem:[#allocation10 + $0x2c4] ss:$8 sps:$4 sm:$0xff]  }
 0x204   :  { %v11949_v42 = vpop.f32.mrf.mxu0  ;;  %v11963_v39 = vpack.c.bf16 %v2804_v16, %v17757_v18  ;;  %4410 = vmatprep.subr.bf16.mxu0 %v10360_v36  ;;  %v17761_v16 = vld [vmem:[#allocation21_spill] sm:$0xff]  ;;  %v2303_v36 = vadd.f32 %v2302_v56, %v17762_v49  ;;  %v2739_v29 = vmul.f32 0.1, %v11943_v15  ;;  %v2738_v56 = vmul.f32 0.1, %v11958_v40 }
 0x205   :  { %v11951_v23 = vpop.f32.mrf.mxu1  ;;  %v2299_v30 = vadd.f32 %v11895_v13, %v17761_v16  ;;  %v2944_v28 = vsel %vm422_vm1, %v11892_v3, %v11968_v19  ;;  %v10361_v13 = vld [vmem:[#allocation10 + $0x2d0] ss:$8 sps:$4 sm:$0xff]   ;;  %v2518_v16 = vadd.f32 %v2517_v33, %v2305_v53  ;;  %v2966_v49 = vrot.slane %v2964_v34, 1 }
 0x206   :  { %17758 = vst [vmem:[#allocation91_spill] sm:$0xff] %v11963_v39  ;;  %v11973_v14 = vpop.f32.mrf.mxu0  ;;  %4069 = vmatmul.mubr.bf16.gmra.mxu0 %v11963_v39  ;;  %v2955_v11 = vshrl.u32 %v11963_v39, 16  ;;  %4242 = vmatmul.mubr.bf16.gmra.mxu1 %v2944_v28  ;;  %v2969_v63 = vrot.slane %v2967_v41, 2  ;;  %v11995_v37 = vadd.f32 %v11688_v58, %v11849_v25  ;;  %v2736_v3 = vmul.f32 0.1, %v11955_v62 }
 0x207   :  { %v11975_v17 = vpop.f32.mrf.mxu1  ;;  %4411 = vmatpush2.bf16.msra.mxu0 %v10358_v27  ;;  %v2737_v43 = vmul.f32 0.1, %v11966_v50  ;;  %v2510_v60 = vadd.f32 %v11880_v31, %v2297_v5  ;;  %v2512_v53 = vadd.f32 %v11897_v59, %v2299_v30  ;;  %v2516_v33 = vadd.f32 %v11910_v32, %v2303_v36 }
 0x208   :  { %v11988_v18 = vpop.f32.mrf.mxu0  ;;  %4412 = vmatprep.subr.bf16.mxu0 %v10363_v7  ;;  %17763 = vst [vmem:[#allocation18_spill] sm:$0xff] %v11995_v37  ;;  %v12006_v7 = vor.u32 %v2969_v63, %v2966_v49  ;;  %v2958_v34 = vshll.u32 %v11963_v39, 16  ;;  %v12010_v41 = vpack.c.bf16 %v2807_v26, %v2807_v26  ;;  %v2811_v28 = vmax.f32 %v11943_v15, %v2739_v29  ;;  %v10369_v26 = vld [vmem:[#allocation10 + $0x2b4] ss:$8 sps:$4 sm:$0xff]  }
 0x209   :  { %v11990_v8 = vpop.f32.mrf.mxu1  ;;  %v2957_v37 = vrot.slane %v2955_v11, 1  ;;  %v12019_v59 = vpack.c.bf16 %v11934_v51, %v11934_v51  ;;  %v2810_v30 = vmax.f32 %v11958_v40, %v2738_v56  ;;  %v12024_v36 = vadd.f32 %v11638_v2, %v2518_v16 }
 0x20a   :  { %v12000_v27 = vpop.f32.mrf.mxu0  ;;  %17764 = vst [vmem:[#allocation20_spill] sm:$0xff] %v12010_v41  ;;  %v12028_v29 = vadd.f32 %v11685_v21, %v11955_v62  ;;  %v2809_v11 = vmax.f32 %v11966_v50, %v2737_v43  ;;  %v2971_v51 = vsel %vm422_vm1, %v11923_v61, %v12006_v7  ;;  %v2808_v56 = vmax.f32 %v11955_v62, %v2736_v3 }
 0x20b   :  { %v12002_v10 = vpop.f32.mrf.mxu1  ;;  %4413 = vmatpush2.bf16.msra.mxu0 %v10361_v13  ;;  %17765 = vst [vmem:[#allocation21_spill] sm:$0xff] %v12019_v59  ;;  %v2960_v13 = vrot.slane %v2958_v34, 2  ;;  %v12040_v16 = vadd.f32 %v11634_v4, %v2510_v60  ;;  %v12046_v32 = vadd.f32 %v11634_v4, %v2516_v33  ;;  %4251 = vmatprep.mubr.bf16.mxu1 %v2971_v51  ;;  %v2982_v61 = vshrl.u32 %v12010_v41, 16  ;;  %v10367_v60 = vld [vmem:[#allocation10 + $0x2b0] ss:$8 sps:$4 sm:$0xff]  }
 0x20c   :  { %v12013_v31 = vpop.f32.mrf.mxu0  ;;  %4414 = vmatprep.subr.bf16.mxu0 %v10366_v6  ;;  %17766 = vst [vmem:[#allocation19_spill] sm:$0xff] %v12028_v29  ;;  %v12043_v6 = vadd.f32 %v11638_v2, %v2512_v53  ;;  %v2985_v34 = vshll.u32 %v12010_v41, 16  ;;  %v12052_v25 = vpack.c.bf16 %v2811_v28, %v2809_v11  ;;  %v2743_v3 = vmul.f32 0.1, %v12024_v36  ;;  %v17768_v53 = vld [vmem:[#allocation22_spill] sm:$0xff]  ;;  %v17769_v51 = vld [vmem:[#allocation23_spill] sm:$0xff] }
 0x20d   :  { %v12015_v5 = vpop.f32.mrf.mxu1  ;;  %v12048_v43 = vor.u32 %v2960_v13, %v2957_v37  ;;  %v2307_v33 = vadd.f32 %v11930_v45, %v17768_v53  ;;  %v2309_v37 = vadd.f32 %v11949_v42, %v17769_v51  ;;  %v12063_v13 = vpack.c.bf16 %v2810_v30, %v2808_v56  ;;  %v10375_v42 = vld [vmem:[#allocation10 + $0x294] ss:$8 sps:$4 sm:$0xff]  }
 0x20e   :  { %v12034_v49 = vpop.f32.mrf.mxu0  ;;  %17767 = vst [vmem:[#allocation92_spill] sm:$0xff] %v12052_v25  ;;  %v2984_v11 = vrot.slane %v2982_v61, 1  ;;  %v2987_v41 = vrot.slane %v2985_v34, 2  ;;  %4078 = vmatprep.mubr.bf16.mxu0 %v12052_v25  ;;  %v2741_v30 = vmul.f32 0.1, %v12043_v6  ;;  %v12083_v61 = vadd.f32 %v11688_v58, %v11966_v50 }
 0x20f   :  { %v12036_v63 = vpop.f32.mrf.mxu1  ;;  %4415 = vmatpush2.bf16.msra.mxu0 %v10364_v47  ;;  %17770 = vst [vmem:[#allocation22_spill] sm:$0xff] %v12063_v13  ;;  %v2962_v28 = vsel %vm422_vm1, %v11968_v19, %v12048_v43  ;;  %v17771_v47 = vld [vmem:[#allocation24_spill] sm:$0xff]  ;;  %v2973_v19 = vshrl.u32 %v12019_v59, 16  ;;  %v2742_v34 = vmul.f32 0.1, %v12046_v32  ;;  %v2815_v50 = vmax.f32 %v12024_v36, %v2743_v3 }
 0x210   :  { %v12054_v9 = vpop.f32.mrf.mxu0  ;;  %4416 = vmatprep.subr.bf16.mxu0 %v10369_v26  ;;  %v2315_v39 = vadd.f32 %v11988_v18, %v17771_v47  ;;  %4252 = vmatmul.mubr.bf16.gmra.mxu1 %v2962_v28  ;;  %v17772_v26 = vld [vmem:[#allocation25_spill] sm:$0xff]  ;;  %17773 = vst [vmem:[#allocation23_spill] sm:$0xff] %v12083_v61  ;;  %v12087_v18 = vadd.f32 %v11685_v21, %v11958_v40  ;;  %v2976_v40 = vshll.u32 %v12019_v59, 16 }
 0x211   :  { %v12056_v62 = vpop.f32.mrf.mxu1  ;;  %v2313_v56 = vadd.f32 %v11973_v14, %v17772_v26  ;;  %4079 = vmatmul.mubr.bf16.gmra.mxu0 %v12063_v13  ;;  %v2988_v53 = vor.u32 %v2987_v41, %v2984_v11  ;;  %v10370_v14 = vld [vmem:[#allocation10 + $0x2a0] ss:$8 sps:$4 sm:$0xff]   ;;  %v12096_v47 = vadd.f32 %v11688_v58, %v11943_v15  ;;  %v2520_v26 = vadd.f32 %v11932_v12, %v2307_v33 }
 0x212   :  { %v12071_v46 = vpop.f32.mrf.mxu0  ;;  %17774 = vst [vmem:[#allocation24_spill] sm:$0xff] %v12087_v18  ;;  %v2740_v41 = vmul.f32 0.1, %v12040_v16  ;;  %v2522_v11 = vadd.f32 %v11951_v23, %v2309_v37  ;;  %v2528_v61 = vadd.f32 %v11990_v8, %v2315_v39  ;;  %v12112_v12 = vadd.f32 %v11685_v21, %v12040_v16  ;;  %v17778_v8 = vld [vmem:[#allocation27_spill] sm:$0xff] }
 0x213   :  { %v12073_v45 = vpop.f32.mrf.mxu1  ;;  %4417 = vmatpush2.bf16.msra.mxu0 %v10367_v60  ;;  %17775 = vst [vmem:[#allocation25_spill] sm:$0xff] %v12096_v47  ;;  %v2989_v60 = vsel %vm422_vm1, %v12006_v7, %v2988_v53  ;;  %v2526_v3 = vadd.f32 %v11975_v17, %v2313_v56  ;;  %v2975_v33 = vrot.slane %v2973_v19, 1  ;;  %v12119_v7 = vadd.f32 %v11688_v58, %v12043_v6 }
 0x214   :  { %v12090_v51 = vpop.f32.mrf.mxu0  ;;  %4418 = vmatprep.subr.bf16.mxu0 %v10372_v35  ;;  %17776 = vst [vmem:[#allocation93_spill] sm:$0xff] %v12112_v12  ;;  %v2813_v35 = vmax.f32 %v12043_v6, %v2741_v30  ;;  %4261 = vmatprep.mubr.bf16.mxu1 %v2989_v60  ;;  %v2814_v39 = vmax.f32 %v12046_v32, %v2742_v34  ;;  %v10373_v30 = vld [vmem:[#allocation10 + $0x290] ss:$8 sps:$4 sm:$0xff]   ;;  %v2978_v6 = vrot.slane %v2976_v40, 2  ;;  %v10378_v34 = vld [vmem:[#allocation10 + $0x284] ss:$8 sps:$4 sm:$0xff]  }
 0x215   :  { %v12092_v28 = vpop.f32.mrf.mxu1  ;;  %17777 = vst [vmem:[#allocation94_spill] sm:$0xff] %v12119_v7  ;;  %v2317_v37 = vadd.f32 %v12000_v27, %v17778_v8  ;;  %v12130_v17 = vadd.f32 %v11685_v21, %v12046_v32  ;;  %v12133_v56 = vadd.f32 %v11634_v4, %v2520_v26  ;;  %v2812_v60 = vmax.f32 %v12040_v16, %v2740_v41  ;;  %v17781_v40 = vld [vmem:[#allocation26_spill] sm:$0xff] }
 0x216   :  { %v12106_v29 = vpop.f32.mrf.mxu0  ;;  %v12135_v19 = vpack.c.bf16 %v2815_v50, %v2813_v35  ;;  %v12140_v8 = vadd.f32 %v11638_v2, %v2522_v11  ;;  %v12151_v50 = vadd.f32 %v11634_v4, %v2526_v3  ;;  %v2319_v35 = vadd.f32 %v12013_v31, %v17781_v40  ;;  %v17784_v11 = vld [vmem:[#allocation28_spill] sm:$0xff]  ;;  %v17790_v7 = vld [vmem:[#allocation34_spill] sm:$0xff] }
 0x217   :  { %v12108_v15 = vpop.f32.mrf.mxu1  ;;  %4419 = vmatpush2.bf16.msra.mxu0 %v10370_v14  ;;  %17779 = vst [vmem:[#allocation27_spill] sm:$0xff] %v12130_v17  ;;  %v12143_v14 = vadd.f32 %v11638_v2, %v2528_v61  ;;  %v12158_v16 = vadd.f32 %v11688_v58, %v12024_v36  ;;  %v2530_v61 = vadd.f32 %v12002_v10, %v2317_v37  ;;  %v12172_v36 = vmul.f32 0.1, %v12133_v56 }
 0x218   :  { %v12124_v53 = vpop.f32.mrf.mxu0  ;;  %17780 = vst [vmem:[#allocation95_spill] sm:$0xff] %v12135_v19  ;;  %4420 = vmatprep.subr.bf16.mxu0 %v10375_v42  ;;  %v2979_v42 = vor.u32 %v2978_v6, %v2975_v33  ;;  %4088 = vmatprep.mubr.bf16.mxu0 %v12135_v19  ;;  %v12161_v41 = vpack.c.bf16 %v2814_v39, %v2812_v60  ;;  %v10376_v33 = vld [vmem:[#allocation10 + $0x280] ss:$8 sps:$4 sm:$0xff]   ;;  %v2745_v39 = vmul.f32 0.1, %v12140_v8 }
 0x219   :  { %v12126_v59 = vpop.f32.mrf.mxu1  ;;  %17782 = vst [vmem:[#allocation26_spill] sm:$0xff] %v12158_v16  ;;  %v2325_v27 = vadd.f32 %v12054_v9, %v17784_v11  ;;  %v12178_v9 = vadd.f32 %v11685_v21, %v12133_v56  ;;  %v2747_v37 = vmul.f32 0.1, %v12143_v14  ;;  %v17787_v11 = vld [vmem:[#allocation29_spill] sm:$0xff]  ;;  %v12206_v31 = vadd.f32 %v11634_v4, %v2530_v61 }
 0x21a   :  { %v12145_v32 = vpop.f32.mrf.mxu0  ;;  %17783 = vst [vmem:[#allocation96_spill] sm:$0xff] %v12161_v41  ;;  %v2980_v10 = vsel %vm422_vm1, %v12048_v43, %v2979_v42  ;;  %4089 = vmatmul.mubr.bf16.gmra.mxu0 %v12161_v41  ;;  %v12190_v43 = vadd.f32 %v11688_v58, %v12140_v8  ;;  %v2532_v42 = vadd.f32 %v12015_v5, %v2319_v35  ;;  %v3008_v35 = vshrl.u32 %v12052_v25, 16 }
 0x21b   :  { %v12147_v23 = vpop.f32.mrf.mxu1  ;;  %4421 = vmatpush2.bf16.msra.mxu0 %v10373_v30  ;;  %17785 = vst [vmem:[#allocation28_spill] sm:$0xff] %v12178_v9  ;;  %4262 = vmatmul.mubr.bf16.gmra.mxu1 %v2980_v10  ;;  %v2538_v30 = vadd.f32 %v12056_v62, %v2325_v27  ;;  %v2323_v6 = vadd.f32 %v12034_v49, %v17787_v11  ;;  %v3011_v11 = vshll.u32 %v12052_v25, 16 }
 0x21c   :  { %v12165_v26 = vpop.f32.mrf.mxu0  ;;  %4422 = vmatprep.subr.bf16.mxu0 %v10378_v34  ;;  %17786 = vst [vmem:[#allocation97_spill] sm:$0xff] %v12190_v43  ;;  %v2746_v34 = vmul.f32 0.1, %v12151_v50  ;;  %v12199_v62 = vadd.f32 %v11685_v21, %v12151_v50  ;;  %v12203_v27 = vadd.f32 %v11688_v58, %v12143_v14  ;;  %v2816_v5 = vmax.f32 %v12133_v56, %v12172_v36 }
 0x21d   :  { %v12167_v3 = vpop.f32.mrf.mxu1  ;;  %v12215_v49 = vadd.f32 %v11638_v2, %v2538_v30  ;;  %v2817_v61 = vmax.f32 %v12140_v8, %v2745_v39  ;;  %v2819_v16 = vmax.f32 %v12143_v14, %v2747_v37  ;;  %v2327_v12 = vadd.f32 %v12071_v46, %v17790_v7 }
 0x21e   :  { %v12184_v60 = vpop.f32.mrf.mxu0  ;;  %17788 = vst [vmem:[#allocation29_spill] sm:$0xff] %v12199_v62  ;;  %17789 = vst [vmem:[#allocation98_spill] sm:$0xff] %v12203_v27  ;;  %v2818_v36 = vmax.f32 %v12151_v50, %v2746_v34  ;;  %v2677_v30 = vadd.f32 %v11638_v2, %v2532_v42  ;;  %v2536_v25 = vadd.f32 %v12036_v63, %v2323_v6  ;;  %v12235_v14 = vmul.f32 0.1, %v12206_v31 }
 0x21f   :  { %v12186_v40 = vpop.f32.mrf.mxu1  ;;  %4423 = vmatpush2.bf16.msra.mxu0 %v10376_v33  ;;  %v2329_v46 = vadd.f32 %v12090_v51, %v11682_v48  ;;  %v12245_v50 = vadd.f32 %v11685_v21, %v12206_v31  ;;  %v2751_v63 = vmul.f32 0.1, %v12215_v49  ;;  %v3010_v6 = vrot.slane %v3008_v35, 1 }
 0x220   :  { %v12208_v17 = vpop.f32.mrf.mxu0  ;;  %v3013_v37 = vrot.slane %v3011_v11, 2  ;;  %v2540_v34 = vadd.f32 %v12073_v45, %v2327_v12  ;;  %v3016_v42 = vshrl.u32 %v12135_v19, 16  ;;  %v3019_v8 = vshll.u32 %v12135_v19, 16 }
 0x221   :  { %v12210_v47 = vpop.f32.mrf.mxu1  ;;  %17791 = vst [vmem:[#allocation34_spill] sm:$0xff] %v12245_v50  ;;  %v12251_v10 = vpack.c.bf16 %v2819_v16, %v2817_v61  ;;  %v2749_v56 = vmul.f32 0.1, %v2677_v30  ;;  %v12258_v27 = vadd.f32 %v11688_v58, %v2677_v30  ;;  %v12261_v62 = vadd.f32 %v11634_v4, %v2536_v25 }
 0x222   :  { %v12224_v33 = vpop.f32.mrf.mxu0  ;;  %v2991_v35 = vshrl.u32 %v12063_v13, 16  ;;  %v3018_v45 = vrot.slane %v3016_v42, 1  ;;  %v3021_v12 = vrot.slane %v3019_v8, 2  ;;  %v2994_v16 = vshll.u32 %v12063_v13, 16 }
 0x223   :  { %v12226_v18 = vpop.f32.mrf.mxu1  ;;  %17792 = vst [vmem:[#allocation99_spill] sm:$0xff] %v12251_v10  ;;  %17793 = vst [vmem:[#allocation100_spill] sm:$0xff] %v12258_v27  ;;  %4098 = vmatprep.mubr.bf16.mxu0 %v12251_v10  ;;  %v2999_v11 = vshrl.u32 %v12161_v41, 16  ;;  %v2823_v9 = vmax.f32 %v12215_v49, %v2751_v63  ;;  %v3014_v19 = vor.u32 %v3013_v37, %v3010_v6  ;;  %v3002_v25 = vshll.u32 %v12161_v41, 16  ;;  %v17796_v37 = vld [vmem:[#allocation35_spill] sm:$0xff] }
 0x224   :  { %v12239_v7 = vpop.f32.mrf.mxu0  ;;  %v2993_v22 = vrot.slane %v2991_v35, 1  ;;  %v3022_v24 = vor.u32 %v3021_v12, %v3018_v45  ;;  %v2996_v20 = vrot.slane %v2994_v16, 2  ;;  %v12273_v8 = vpack.c.bf16 %v2818_v36, %v2816_v5  ;;  %v17797_v5 = vld [vmem:[#allocation63_spill] sm:$0xff] }
 0x225   :  { %v12241_v39 = vpop.f32.mrf.mxu1  ;;  %v3001_v42 = vrot.slane %v2999_v11, 1  ;;  %v2821_v38 = vmax.f32 %v2677_v30, %v2749_v56  ;;  %v2542_v57 = vadd.f32 %v12092_v28, %v2329_v46  ;;  %v3004_v0 = vrot.slane %v3002_v25, 2 }
 0x226   :  { %v12253_v48 = vpop.f32.mrf.mxu0  ;;  %17794 = vst [vmem:[#allocation101_spill] sm:$0xff] %v12273_v8  ;;  %v2333_v63 = vadd.f32 %v12106_v29, %v17795_v54  ;;  %v3023_v6 = vsel %vm422_vm1, %v3014_v19, %v3022_v24  ;;  %4099 = vmatmul.mubr.bf16.gmra.mxu0 %v12273_v8  ;;  %v2335_v35 = vadd.f32 %v12124_v53, %v17796_v37  ;;  %v3034_v45 = vshrl.u32 %v12251_v10, 16  ;;  %v17798_v19 = vld [vmem:[#allocation36_spill] sm:$0xff] }
 0x227   :  { %v12255_v51 = vpop.f32.mrf.mxu1  ;;  %v2339_v36 = vadd.f32 %v12165_v26, %v17797_v5  ;;  %v2750_v28 = vmul.f32 0.1, %v12261_v62  ;;  %4271 = vmatprep.mubr.bf16.mxu1 %v3023_v6  ;;  %v2997_v54 = vor.u32 %v2996_v20, %v2993_v22  ;;  %v12294_v29 = vor.u32 %v3004_v0, %v3001_v42 }
 0x228   :  { %v12267_v61 = vpop.f32.mrf.mxu0  ;;  %v2337_v30 = vadd.f32 %v12145_v32, %v17798_v19  ;;  %v12300_v53 = vadd.f32 %v11685_v21, %v12261_v62  ;;  %v2680_v26 = vadd.f32 %v11634_v4, %v2540_v34  ;;  %v3037_v46 = vshll.u32 %v12251_v10, 16 }
 0x229   :  { %v12269_v43 = vpop.f32.mrf.mxu1  ;;  %v12304_v16 = vpack.c.bf16 %v2823_v9, %v2821_v38  ;;  %v12311_v20 = vadd.f32 %v11638_v2, %v2542_v57  ;;  %v3006_v0 = vsel %vm422_vm1, %v2997_v54, %v12294_v29  ;;  %v2546_v22 = vadd.f32 %v12108_v15, %v2333_v63  ;;  %v17806_v15 = vld [vmem:[#allocation64_spill] sm:$0xff] }
 0x22a   :  { %v12275_v1 = vpop.f32.mrf.mxu0  ;;  %17799 = vst [vmem:[#allocation33_spill] sm:$0xff] %v12300_v53  ;;  %v3036_v32 = vrot.slane %v3034_v45, 1  ;;  %4272 = vmatmul.mubr.bf16.gmra.mxu1 %v3006_v0  ;;  %v2548_v34 = vadd.f32 %v12126_v59, %v2335_v35  ;;  %v2552_v42 = vadd.f32 %v12167_v3, %v2339_v36  ;;  %v3039_v38 = vrot.slane %v3037_v46, 2 }
 0x22b   :  { %v12277_v13 = vpop.f32.mrf.mxu1  ;;  %17800 = vst [vmem:[#allocation35_spill] sm:$0xff] %v12304_v16  ;;  %4108 = vmatprep.mubr.bf16.mxu0 %v12304_v16  ;;  %v3025_v9 = vshrl.u32 %v12273_v8, 16  ;;  %v2820_v37 = vmax.f32 %v12206_v31, %v12235_v14  ;;  %v2822_v63 = vmax.f32 %v12261_v62, %v2750_v28  ;;  %v2550_v59 = vadd.f32 %v12147_v23, %v2337_v30 }
 0x22c   :  { %v12289_v12 = vpop.f32.mrf.mxu0  ;;  %v12332_v35 = vadd.f32 %v11688_v58, %v12215_v49  ;;  %v2752_v5 = vmul.f32 0.1, %v2680_v26  ;;  %v12335_v36 = vadd.f32 %v11685_v21, %v2680_v26  ;;  %v2753_v62 = vmul.f32 0.1, %v12311_v20 }
 0x22d   :  { %v12291_v56 = vpop.f32.mrf.mxu1  ;;  %v12344_v23 = vadd.f32 %v11634_v4, %v2546_v22  ;;  %v12346_v14 = vor.u32 %v3039_v38, %v3036_v32  ;;  %v12349_v49 = vadd.f32 %v11638_v2, %v2548_v34  ;;  %v12352_v28 = vadd.f32 %v11638_v2, %v2552_v42  ;;  %v17803_v32 = vld [vmem:[#allocation38_spill] sm:$0xff] }
 0x22e   :  { %v12306_v11 = vpop.f32.mrf.mxu0  ;;  %17801 = vst [vmem:[#allocation63_spill] sm:$0xff] %v12332_v35  ;;  %17802 = vst [vmem:[#allocation36_spill] sm:$0xff] %v12335_v36  ;;  %v3027_v19 = vrot.slane %v3025_v9, 1  ;;  %v3028_v30 = vshll.u32 %v12273_v8, 16  ;;  %v12360_v31 = vadd.f32 %v11634_v4, %v2550_v59  ;;  %v2343_v34 = vadd.f32 %v12184_v60, %v17803_v32  ;;  %v17805_v9 = vld [vmem:[#allocation40_spill] sm:$0xff] }
 0x22f   :  { %v12308_v25 = vpop.f32.mrf.mxu1  ;;  %v3041_v22 = vsel %vm422_vm1, %v3022_v24, %v12346_v14  ;;  %v12366_v38 = vpack.c.bf16 %v2822_v63, %v2820_v37  ;;  %v2347_v3 = vadd.f32 %v12224_v33, %v17805_v9  ;;  %v2349_v8 = vadd.f32 %v12239_v7, %v17806_v15  ;;  %v17807_v37 = vld [vmem:[#allocation37_spill] sm:$0xff] }
 0x230   :  { %v12320_v6 = vpop.f32.mrf.mxu0  ;;  %4281 = vmatprep.mubr.bf16.mxu1 %v3041_v22  ;;  %v3030_v42 = vrot.slane %v3028_v30, 2  ;;  %v3052_v53 = vshrl.u32 %v12304_v16, 16  ;;  %v2825_v24 = vmax.f32 %v12311_v20, %v2753_v62  ;;  %v2754_v60 = vmul.f32 0.1, %v12344_v23 }
 0x231   :  { %v12322_v57 = vpop.f32.mrf.mxu1  ;;  %17804 = vst [vmem:[#allocation38_spill] sm:$0xff] %v12366_v38  ;;  %4109 = vmatmul.mubr.bf16.gmra.mxu0 %v12366_v38  ;;  %v2345_v63 = vadd.f32 %v12208_v17, %v17807_v37  ;;  %v3055_v33 = vshll.u32 %v12304_v16, 16  ;;  %v2757_v30 = vmul.f32 0.1, %v12352_v28  ;;  %v2560_v15 = vadd.f32 %v12226_v18, %v2347_v3 }
 0x232   :  { %v12337_v45 = vpop.f32.mrf.mxu0  ;;  %v3031_v7 = vor.u32 %v3030_v42, %v3027_v19  ;;  %v2562_v22 = vadd.f32 %v12241_v39, %v2349_v8  ;;  %v2824_v62 = vmax.f32 %v2680_v26, %v2752_v5  ;;  %v2755_v50 = vmul.f32 0.1, %v12349_v49 }
 0x233   :  { %v12339_v54 = vpop.f32.mrf.mxu1  ;;  %v2756_v10 = vmul.f32 0.1, %v12360_v31  ;;  %v3043_v17 = vshrl.u32 %v12366_v38, 16  ;;  %v2556_v19 = vadd.f32 %v12186_v40, %v2343_v34  ;;  %v3054_v42 = vrot.slane %v3052_v53, 1 }
 0x234   :  { %v12355_v46 = vpop.f32.mrf.mxu0  ;;  %v3032_v37 = vsel %vm422_vm1, %v12294_v29, %v3031_v7  ;;  %v3057_v18 = vrot.slane %v3055_v33, 2  ;;  %v12400_v8 = vpack.c.bf16 %v2825_v24, %v2825_v24  ;;  %v2558_v26 = vadd.f32 %v12210_v47, %v2345_v63 }
 0x235   :  { %v12357_v0 = vpop.f32.mrf.mxu1  ;;  %4282 = vmatmul.mubr.bf16.gmra.mxu1 %v3032_v37  ;;  %v12404_v5 = vadd.f32 %v11634_v4, %v2560_v15  ;;  %v3046_v16 = vshll.u32 %v12366_v38, 16  ;;  %v2829_v53 = vmax.f32 %v12352_v28, %v2757_v30  ;;  %v12411_v34 = vadd.f32 %v11638_v2, %v2562_v22 }
 0x236   :  { %v12373_v59 = vpop.f32.mrf.mxu0  ;;  %17809 = vst [vmem:[#allocation64_spill] sm:$0xff] %v12400_v8  ;;  %v12415_v24 = vpack.c.bf16 %v2824_v62, %v2824_v62  ;;  %v12419_v47 = vadd.f32 %v11688_v58, %v12311_v20  ;;  %v2826_v63 = vmax.f32 %v12344_v23, %v2754_v60  ;;  %v3045_v15 = vrot.slane %v3043_v17, 1 }
 0x237   :  { %v12375_v27 = vpop.f32.mrf.mxu1  ;;  %v2827_v37 = vmax.f32 %v12349_v49, %v2755_v50  ;;  %v2828_v40 = vmax.f32 %v12360_v31, %v2756_v10  ;;  %v2686_v30 = vadd.f32 %v11634_v4, %v2556_v19  ;;  %v3058_v29 = vor.u32 %v3057_v18, %v3054_v42  ;;  %v17814_v42 = vld [vmem:[#allocation30_spill] sm:$0xff] }
 0x238   :  { %v12386_v32 = vpop.f32.mrf.mxu0  ;;  %17811 = vst [vmem:[#allocation102_spill] sm:$0xff] %v12415_v24  ;;  %v2687_v62 = vadd.f32 %v11638_v2, %v2558_v26  ;;  %v2760_v36 = vmul.f32 0.1, %v12404_v5  ;;  %v3048_v20 = vrot.slane %v3046_v16, 2  ;;  %v3070_v35 = vshrl.u32 %v12400_v8, 16  ;;  %v17815_v26 = vld [vmem:[#allocation31_spill] sm:$0xff] }
 0x239   :  { %v12388_v9 = vpop.f32.mrf.mxu1  ;;  %v2761_v60 = vmul.f32 0.1, %v12411_v34  ;;  %v3059_v50 = vsel %vm422_vm1, %v12346_v14, %v3058_v29  ;;  %v3073_v10 = vshll.u32 %v12400_v8, 16  ;;  %v12436_v17 = vpack.c.bf16 %v2829_v53, %v2827_v37 }
 0x23a   :  { %v12396_v3 = vpop.f32.mrf.mxu0  ;;  %4291 = vmatprep.mubr.bf16.mxu1 %v3059_v50  ;;  %v3049_v19 = vor.u32 %v3048_v20, %v3045_v15  ;;  %v2353_v18 = vadd.f32 %v12253_v48, %v17814_v42  ;;  %v2355_v41 = vadd.f32 %v12267_v61, %v17815_v26  ;;  %v3072_v16 = vrot.slane %v3070_v35, 1 }
 0x23b   :  { %v12398_v39 = vpop.f32.mrf.mxu1  ;;  %17813 = vst [vmem:[#allocation104_spill] sm:$0xff] %v12436_v17  ;;  %4118 = vmatprep.mubr.bf16.mxu0 %v12436_v17  ;;  %v12447_v8 = vpack.c.bf16 %v2828_v40, %v2826_v63  ;;  %v2359_v53 = vadd.f32 %v12289_v12, %v11706_v44  ;;  %v12456_v61 = vadd.f32 %v11685_v21, %v12344_v23  ;;  %v2759_v40 = vmul.f32 0.1, %v2687_v62 }
 0x23c   :  { %17808 = vst [vmem:[#allocation40_spill] sm:$0xff] %v12398_v39  ;;  %v12413_v33 = vpop.f32.mrf.mxu0  ;;  %v3075_v39 = vrot.slane %v3073_v10, 2  ;;  %v12460_v35 = vadd.f32 %v11688_v58, %v12349_v49  ;;  %v3050_v37 = vsel %vm422_vm1, %v3031_v7, %v3049_v19  ;;  %v2832_v12 = vmax.f32 %v12404_v5, %v2760_v36 }
 0x23d   :  { %17810 = vst [vmem:[#allocation37_spill] sm:$0xff] %v12413_v33  ;;  %v12425_v22 = vpop.f32.mrf.mxu1  ;;  %v17816_v33 = vld [vmem:[#allocation32_spill] sm:$0xff]  ;;  %17817 = vst [vmem:[#allocation30_spill] sm:$0xff] %v12447_v8  ;;  %4292 = vmatmul.mubr.bf16.gmra.mxu1 %v3050_v37  ;;  %4119 = vmatmul.mubr.bf16.gmra.mxu0 %v12447_v8  ;;  %v2572_v44 = vadd.f32 %v12291_v56, %v2359_v53  ;;  %v2566_v63 = vadd.f32 %v12255_v51, %v2353_v18  ;;  %v3061_v23 = vshrl.u32 %v12415_v24, 16 }
 0x23e   :  { %17812 = vst [vmem:[#allocation103_spill] sm:$0xff] %v12425_v22  ;;  %v12427_v38 = vpop.f32.mrf.mxu0  ;;  %v2357_v14 = vadd.f32 %v12275_v1, %v17816_v33  ;;  %v2758_v1 = vmul.f32 0.1, %v2686_v30  ;;  %v3076_v33 = vor.u32 %v3075_v39, %v3072_v16  ;;  %v3064_v20 = vshll.u32 %v12415_v24, 16 }
 0x23f   :  { %v12451_v15 = vpop.f32.mrf.mxu1  ;;  %v2833_v7 = vmax.f32 %v12411_v34, %v2761_v60  ;;  %v2568_v50 = vadd.f32 %v12269_v43, %v2355_v41  ;;  %v12481_v36 = vadd.f32 %v11685_v21, %v12360_v31  ;;  %v12485_v18 = vadd.f32 %v11688_v58, %v12352_v28 }
 0x240   :  { %v12442_v22 = vpop.f32.mrf.mxu0  ;;  %v3077_v39 = vsel %vm422_vm1, %v3058_v29, %v3076_v33  ;;  %v2570_v10 = vadd.f32 %v12277_v13, %v2357_v14  ;;  %v2830_v41 = vmax.f32 %v2686_v30, %v2758_v1  ;;  %v12488_v43 = vadd.f32 %v11685_v21, %v2686_v30 }
 0x241   :  { %v12475_v42 = vpop.f32.mrf.mxu1  ;;  %4301 = vmatprep.mubr.bf16.mxu1 %v3077_v39  ;;  %v2831_v13 = vmax.f32 %v2687_v62, %v2759_v40  ;;  %v12491_v29 = vadd.f32 %v11638_v2, %v2572_v44  ;;  %v12494_v60 = vadd.f32 %v11688_v58, %v2687_v62  ;;  %v12497_v26 = vadd.f32 %v11634_v4, %v2566_v63  ;;  %v17820_v40 = vld [vmem:[#allocation41_spill] sm:$0xff]  ;;  %v17821_v44 = vld [vmem:[#allocation39_spill] sm:$0xff] }
 0x242   :  { %v12469_v49 = vpop.f32.mrf.mxu0  ;;  %v3063_v31 = vrot.slane %v3061_v23, 1  ;;  %v3066_v16 = vrot.slane %v3064_v20, 2  ;;  %v2691_v28 = vadd.f32 %v11638_v2, %v2568_v50  ;;  %v12503_v53 = vadd.f32 %v11634_v4, %v2570_v10 }
 0x243   :  { %v12505_v30 = vpack.c.bf16 %v2833_v7, %v2831_v13  ;;  %v12507_v37 = vpack.c.bf16 %v2832_v12, %v2830_v41  ;;  %v12509_v1 = vpop.f32.mrf.mxu1  ;;  %v2363_v33 = vadd.f32 %v12306_v11, %v17820_v40  ;;  %v2365_v63 = vadd.f32 %v12320_v6, %v17821_v44 }
 0x244   :  { %v12499_v14 = vpop.f32.mrf.mxu0  ;;  %v3067_v62 = vor.u32 %v3066_v16, %v3063_v31  ;;  %v2369_v23 = vadd.f32 %v12355_v46, %v11717_v55  ;;  %v12520_v7 = vadd.f32 %v11685_v21, %v12404_v5  ;;  %v12524_v12 = vadd.f32 %v11688_v58, %v12411_v34  ;;  %v17822_v55 = vld [vmem:[#allocation42_spill] sm:$0xff] }
 0x245   :  { %17818 = vst [vmem:[#allocation31_spill] sm:$0xff] %v12505_v30  ;;  %17819 = vst [vmem:[#allocation32_spill] sm:$0xff] %v12507_v37  ;;  %v2765_v50 = vmul.f32 0.1, %v12491_v29  ;;  %4128 = vmatprep.mubr.bf16.mxu0 %v12505_v30  ;;  %v12529_v11 = vmul.f32 0.1, %v12497_v26  ;;  %v2367_v46 = vadd.f32 %v12337_v45, %v17822_v55  ;;  %v12540_v34 = vadd.f32 %v11685_v21, %v12497_v26 }
 0x246   :  { %v3068_v6 = vsel %vm422_vm1, %v3049_v19, %v3067_v62  ;;  %4129 = vmatmul.mubr.bf16.gmra.mxu0 %v12507_v37  ;;  %v2582_v5 = vadd.f32 %v12357_v0, %v2369_v23  ;;  %v12536_v39 = vpop.f32.mrf.mxu0  ;;  %v2763_v10 = vmul.f32 0.1, %v2691_v28  ;;  %v12543_v41 = vadd.f32 %v11688_v58, %v2691_v28  ;;  %v12546_v19 = vpop.f32.mrf.mxu1 }
 0x247   :  { %v2764_v13 = vmul.f32 0.1, %v12503_v53  ;;  %4302 = vmatmul.mubr.bf16.gmra.mxu1 %v3068_v6  ;;  %v2576_v0 = vadd.f32 %v12308_v25, %v2363_v33  ;;  %v2578_v16 = vadd.f32 %v12322_v57, %v2365_v63  ;;  %v12555_v40 = vadd.f32 %v11685_v21, %v12503_v53  ;;  %v17825_v25 = vld [vmem:[#allocation43_spill] sm:$0xff] }
 0x248   :  { %17823 = vst [vmem:[#allocation41_spill] sm:$0xff] %v12543_v41  ;;  %v2837_v44 = vmax.f32 %v12491_v29, %v2765_v50  ;;  %v3096_v23 = vshrl.u32 %v12436_v17, 16  ;;  %v2834_v6 = vmax.f32 %v12497_v26, %v12529_v11  ;;  %v2580_v55 = vadd.f32 %v12339_v54, %v2367_v46  ;;  %v12567_v33 = vpop.f32.mrf.mxu0  ;;  %v12572_v45 = vpop.f32.mrf.mxu1  ;;  %v17826_v11 = vld [vmem:[#allocation44_spill] sm:$0xff] }
 0x249   :  { %17824 = vst [vmem:[#allocation39_spill] sm:$0xff] %v12555_v40  ;;  %v12563_v31 = vadd.f32 %v11638_v2, %v2582_v5  ;;  %v2373_v57 = vadd.f32 %v12373_v59, %v17825_v25  ;;  %v2835_v51 = vmax.f32 %v2691_v28, %v2763_v10  ;;  %v2836_v62 = vmax.f32 %v12503_v53, %v2764_v13 }
 0x24a   :  { %v12575_v26 = vadd.f32 %v11634_v4, %v2576_v0  ;;  %v2695_v54 = vadd.f32 %v11638_v2, %v2578_v16  ;;  %v2375_v46 = vadd.f32 %v12386_v32, %v17826_v11  ;;  %v3099_v59 = vshll.u32 %v12436_v17, 16  ;;  %v12591_v50 = vpop.f32.mrf.mxu0 }
 0x24b   :  { %v3098_v5 = vrot.slane %v3096_v23, 1  ;;  %v3104_v25 = vshrl.u32 %v12505_v30, 16  ;;  %v3107_v28 = vshll.u32 %v12505_v30, 16  ;;  %v12583_v10 = vpack.c.bf16 %v2837_v44, %v2835_v51  ;;  %v12595_v51 = vpop.f32.mrf.mxu1 }
 0x24c   :  { %v12587_v13 = vadd.f32 %v11634_v4, %v2580_v55  ;;  %v2769_v0 = vmul.f32 0.1, %v12563_v31  ;;  %v2586_v16 = vadd.f32 %v12375_v27, %v2373_v57  ;;  %v3101_v32 = vrot.slane %v3099_v59, 2  ;;  %v12609_v30 = vpop.f32.mrf.mxu0 }
 0x24d   :  { %17827 = vst [vmem:[#allocation42_spill] sm:$0xff] %v12583_v10  ;;  %v3106_v11 = vrot.slane %v3104_v25, 1  ;;  %v3109_v23 = vrot.slane %v3107_v28, 2  ;;  %4138 = vmatprep.mubr.bf16.mxu0 %v12583_v10  ;;  %v3079_v63 = vshrl.u32 %v12447_v8, 16  ;;  %v12598_v44 = vmul.f32 0.1, %v12575_v26  ;;  %v12615_v41 = vpop.f32.mrf.mxu1 }
 0x24e   :  { %v2767_v55 = vmul.f32 0.1, %v2695_v54  ;;  %v2588_v53 = vadd.f32 %v12388_v9, %v2375_v46  ;;  %v3082_v56 = vshll.u32 %v12447_v8, 16  ;;  %v12604_v27 = vadd.f32 %v11685_v21, %v12575_v26 }
 0x24f   :  { %v3102_v57 = vor.u32 %v3101_v32, %v3098_v5  ;;  %v3110_v59 = vor.u32 %v3109_v23, %v3106_v11  ;;  %v3087_v25 = vshrl.u32 %v12507_v37, 16  ;;  %v2841_v28 = vmax.f32 %v12563_v31, %v2769_v0  ;;  %v17831_v11 = vld [vmem:[#allocation46_spill] sm:$0xff]  ;;  %v17832_v23 = vld [vmem:[#allocation47_spill] sm:$0xff] }
 0x250   :  { %17828 = vst [vmem:[#allocation43_spill] sm:$0xff] %v12604_v27  ;;  %v3081_v20 = vrot.slane %v3079_v63, 1  ;;  %v3084_v48 = vrot.slane %v3082_v56, 2  ;;  %v3090_v17 = vshll.u32 %v12507_v37, 16  ;;  %v2698_v9 = vadd.f32 %v11634_v4, %v2586_v16  ;;  %v17830_v63 = vld [vmem:[#allocation45_spill] sm:$0xff] }
 0x251   :  { %v3111_v46 = vsel %vm422_vm1, %v3102_v57, %v3110_v59  ;;  %v3089_v8 = vrot.slane %v3087_v25, 1  ;;  %v12613_v24 = vpack.c.bf16 %v2836_v62, %v2834_v6  ;;  %v2839_v5 = vmax.f32 %v2695_v54, %v2767_v55 }
 0x252   :  { %v2768_v32 = vmul.f32 0.1, %v12587_v13  ;;  %4311 = vmatprep.mubr.bf16.mxu1 %v3111_v46  ;;  %v3092_v0 = vrot.slane %v3090_v17, 2  ;;  %v2377_v56 = vadd.f32 %v12396_v3, %v17830_v63  ;;  %v2383_v16 = vadd.f32 %v12427_v38, %v17831_v11  ;;  %v17833_v46 = vld [vmem:[#allocation37_spill] sm:$0xff]  ;;  %v12631_v3 = vpop.f32.mrf.mxu0 }
 0x253   :  { %17829 = vst [vmem:[#allocation44_spill] sm:$0xff] %v12613_v24  ;;  %4139 = vmatmul.mubr.bf16.gmra.mxu0 %v12613_v24  ;;  %v2385_v57 = vadd.f32 %v12442_v22, %v17832_v23  ;;  %v3122_v62 = vshrl.u32 %v12583_v10, 16  ;;  %v3125_v6 = vshll.u32 %v12583_v10, 16  ;;  %v3085_v55 = vor.u32 %v3084_v48, %v3081_v20  ;;  %v12636_v22 = vpop.f32.mrf.mxu1  ;;  %v17835_v48 = vld [vmem:[#allocation40_spill] sm:$0xff] }
 0x254   :  { %v3093_v25 = vor.u32 %v3092_v0, %v3089_v8  ;;  %v2379_v17 = vadd.f32 %v17833_v46, %v11721_v52  ;;  %v12629_v37 = vpack.c.bf16 %v2841_v28, %v2839_v5  ;;  %v12634_v63 = vadd.f32 %v11688_v58, %v2695_v54 }
 0x255   :  { %v2770_v38 = vmul.f32 0.1, %v2698_v9  ;;  %v3124_v11 = vrot.slane %v3122_v62, 1  ;;  %v3127_v40 = vrot.slane %v3125_v6, 2  ;;  %v12640_v23 = vadd.f32 %v11688_v58, %v12491_v29 }
 0x256   :  { %17834 = vst [vmem:[#allocation45_spill] sm:$0xff] %v12634_v63  ;;  %v2699_v8 = vadd.f32 %v11638_v2, %v2588_v53  ;;  %v3094_v52 = vsel %vm422_vm1, %v3085_v55, %v3093_v25  ;;  %v2590_v20 = vadd.f32 %v17835_v48, %v2377_v56  ;;  %4148 = vmatprep.mubr.bf16.mxu0 %v12629_v37  ;;  %v17837_v56 = vld [vmem:[#allocation103_spill] sm:$0xff]  ;;  %v12659_v55 = vpop.f32.mrf.mxu0  ;;  %v17840_v48 = vld [vmem:[#allocation48_spill] sm:$0xff] }
 0x257   :  { %v2840_v54 = vmax.f32 %v12587_v13, %v2768_v32  ;;  %4312 = vmatmul.mubr.bf16.gmra.mxu1 %v3094_v52  ;;  %v2596_v28 = vadd.f32 %v12451_v15, %v2383_v16  ;;  %v2598_v5 = vadd.f32 %v12475_v42, %v2385_v57  ;;  %v12649_v0 = vor.u32 %v3127_v40, %v3124_v11  ;;  %v17842_v32 = vld [vmem:[#allocation50_spill] sm:$0xff] }
 0x258   :  { %v2838_v29 = vmax.f32 %v12575_v26, %v12598_v44  ;;  %v12656_v62 = vadd.f32 %v11685_v21, %v12587_v13  ;;  %v2592_v6 = vadd.f32 %v17837_v56, %v2379_v17  ;;  %v2842_v15 = vmax.f32 %v2698_v9, %v2770_v38  ;;  %v12667_v26 = vpop.f32.mrf.mxu1  ;;  %v12690_v56 = vpop.f32.mrf.mxu0 }
 0x259   :  { %v12663_v42 = vadd.f32 %v11685_v21, %v2698_v9  ;;  %v3129_v40 = vsel %vm422_vm1, %v3110_v59, %v12649_v0  ;;  %v2771_v44 = vmul.f32 0.1, %v2699_v8  ;;  %v12670_v16 = vadd.f32 %v11634_v4, %v2590_v20 }
 0x25a   :  { %17836 = vst [vmem:[#allocation46_spill] sm:$0xff] %v12656_v62  ;;  %4321 = vmatprep.mubr.bf16.mxu1 %v3129_v40  ;;  %v3113_v13 = vshrl.u32 %v12613_v24, 16  ;;  %v3116_v57 = vshll.u32 %v12613_v24, 16  ;;  %v12675_v46 = vadd.f32 %v11688_v58, %v2699_v8  ;;  %v12678_v9 = vadd.f32 %v11634_v4, %v2596_v28  ;;  %v17841_v40 = vld [vmem:[#allocation49_spill] sm:$0xff] }
 0x25b   :  { %17838 = vst [vmem:[#allocation47_spill] sm:$0xff] %v12663_v42  ;;  %v12681_v17 = vadd.f32 %v11638_v2, %v2598_v5  ;;  %v12683_v59 = vpack.c.bf16 %v2840_v54, %v2838_v29  ;;  %v12686_v38 = vadd.f32 %v11638_v2, %v2592_v6  ;;  %v2387_v20 = vadd.f32 %v12469_v49, %v17840_v48  ;;  %v12699_v6 = vpop.f32.mrf.mxu1  ;;  %v17843_v48 = vld [vmem:[#allocation68_spill] sm:$0xff] }
 0x25c   :  { %17839 = vst [vmem:[#allocation37_spill] sm:$0xff] %v12675_v46  ;;  %v3115_v11 = vrot.slane %v3113_v13, 1  ;;  %v3118_v52 = vrot.slane %v3116_v57, 2  ;;  %v2393_v28 = vadd.f32 %v12536_v39, %v17841_v40  ;;  %v2395_v5 = vadd.f32 %v12567_v33, %v17842_v32 }
 0x25d   :  { %4149 = vmatmul.mubr.bf16.gmra.mxu0 %v12683_v59  ;;  %v3140_v54 = vshrl.u32 %v12629_v37, 16  ;;  %v3143_v29 = vshll.u32 %v12629_v37, 16  ;;  %v2843_v13 = vmax.f32 %v2699_v8, %v2771_v44  ;;  %v2772_v57 = vmul.f32 0.1, %v12670_v16  ;;  %v12710_v44 = vpop.f32.mrf.mxu0 }
 0x25e   :  { %v3119_v49 = vor.u32 %v3118_v52, %v3115_v11  ;;  %v2389_v53 = vadd.f32 %v12499_v14, %v17843_v48  ;;  %v2774_v24 = vmul.f32 0.1, %v12678_v9  ;;  %v2775_v39 = vmul.f32 0.1, %v12681_v17 }
 0x25f   :  { %v3142_v40 = vrot.slane %v3140_v54, 1  ;;  %v3145_v10 = vrot.slane %v3143_v29, 2  ;;  %v2773_v33 = vmul.f32 0.1, %v12686_v38  ;;  %v2600_v63 = vadd.f32 %v12509_v1, %v2387_v20  ;;  %v12715_v54 = vpop.f32.mrf.mxu1  ;;  %v17846_v1 = vld [vmem:[#allocation69_spill] sm:$0xff] }
 0x260   :  { %v3120_v32 = vsel %vm422_vm1, %v3093_v25, %v3119_v49  ;;  %v2608_v8 = vadd.f32 %v12595_v51, %v2395_v5  ;;  %v2606_v14 = vadd.f32 %v12572_v45, %v2393_v28  ;;  %v3131_v48 = vshrl.u32 %v12683_v59, 16 }
 0x261   :  { %4322 = vmatmul.mubr.bf16.gmra.mxu1 %v3120_v32  ;;  %v3146_v52 = vor.u32 %v3145_v10, %v3142_v40  ;;  %v12719_v29 = vadd.f32 %v11688_v58, %v12563_v31  ;;  %v12722_v25 = vpack.c.bf16 %v2843_v13, %v2843_v13  ;;  %v2602_v51 = vadd.f32 %v12546_v19, %v2389_v53  ;;  %v2412_v32 = vpop.f32.mrf.mxu0 }
 0x262   :  { %v12725_v20 = vpack.c.bf16 %v2842_v15, %v2842_v15  ;;  %v2846_v45 = vmax.f32 %v12678_v9, %v2774_v24  ;;  %v2847_v10 = vmax.f32 %v12681_v17, %v2775_v39  ;;  %v2844_v28 = vmax.f32 %v12670_v16, %v2772_v57  ;;  %v2621_v39 = vpop.f32.mrf.mxu1 }
 0x263   :  { %17844 = vst [vmem:[#allocation40_spill] sm:$0xff] %v12719_v29  ;;  %v2845_v40 = vmax.f32 %v12686_v38, %v2773_v33  ;;  %v12733_v31 = vadd.f32 %v11634_v4, %v2600_v63  ;;  %v12736_v13 = vadd.f32 %v11638_v2, %v2608_v8  ;;  %v12739_v19 = vadd.f32 %v11634_v4, %v2606_v14  ;;  %v17845_v63 = vld [vmem:[#allocation51_spill] sm:$0xff] }
 0x264   :  { %v3147_v53 = vsel %vm422_vm1, %v12649_v0, %v3146_v52  ;;  %v3133_v24 = vrot.slane %v3131_v48, 1  ;;  %v3134_v15 = vshll.u32 %v12683_v59, 16  ;;  %v12745_v57 = vadd.f32 %v11638_v2, %v2602_v51 }
 0x265   :  { %4331 = vmatprep.mubr.bf16.mxu1 %v3147_v53  ;;  %v2397_v33 = vadd.f32 %v12591_v50, %v17845_v63  ;;  %v3158_v8 = vshrl.u32 %v12722_v25, 16  ;;  %v3161_v5 = vshll.u32 %v12722_v25, 16  ;;  %v2399_v11 = vadd.f32 %v12609_v30, %v17846_v1  ;;  %v2414_v63 = vpop.f32.mrf.mxu0  ;;  %v17849_v1 = vld [vmem:[#allocation53_spill] sm:$0xff] }
 0x266   :  { %v3136_v14 = vrot.slane %v3134_v15, 2  ;;  %v12753_v0 = vpack.c.bf16 %v2847_v10, %v2845_v40  ;;  %v12755_v48 = vpack.c.bf16 %v2846_v45, %v2844_v28  ;;  %v12759_v51 = vadd.f32 %v11685_v21, %v12670_v16  ;;  %v17848_v15 = vld [vmem:[#allocation52_spill] sm:$0xff]  ;;  %v2625_v10 = vpop.f32.mrf.mxu1 }
 0x267   :  { %v2779_v53 = vmul.f32 0.1, %v12736_v13  ;;  %v3160_v46 = vrot.slane %v3158_v8, 1  ;;  %v3163_v50 = vrot.slane %v3161_v5, 2  ;;  %v2778_v42 = vmul.f32 0.1, %v12739_v19 }
 0x268   :  { %17847 = vst [vmem:[#allocation103_spill] sm:$0xff] %v12759_v51  ;;  %v3137_v29 = vor.u32 %v3136_v14, %v3133_v24  ;;  %4158 = vmatprep.mubr.bf16.mxu0 %v12753_v0  ;;  %v2403_v30 = vadd.f32 %v12631_v3, %v17848_v15  ;;  %v2405_v45 = vadd.f32 %v12659_v55, %v17849_v1  ;;  %v2777_v28 = vmul.f32 0.1, %v12745_v57  ;;  %v2416_v15 = vpop.f32.mrf.mxu0 }
 0x269   :  { %v12770_v16 = vadd.f32 %v11685_v21, %v12678_v9  ;;  %v3164_v5 = vor.u32 %v3163_v50, %v3160_v46  ;;  %4159 = vmatmul.mubr.bf16.gmra.mxu0 %v12755_v48  ;;  %v3149_v40 = vshrl.u32 %v12725_v20, 16  ;;  %v2776_v24 = vmul.f32 0.1, %v12733_v31 }
 0x26a   :  { %v3138_v8 = vsel %vm422_vm1, %v3119_v49, %v3137_v29  ;;  %v2610_v3 = vadd.f32 %v12615_v41, %v2397_v33  ;;  %v2612_v55 = vadd.f32 %v12636_v22, %v2399_v11  ;;  %v12782_v9 = vadd.f32 %v11688_v58, %v12686_v38  ;;  %v2627_v11 = vpop.f32.mrf.mxu1 }
 0x26b   :  { %17850 = vst [vmem:[#allocation48_spill] sm:$0xff] %v12770_v16  ;;  %v2851_v46 = vmax.f32 %v12736_v13, %v2779_v53  ;;  %4332 = vmatmul.mubr.bf16.gmra.mxu1 %v3138_v8  ;;  %v3152_v50 = vshll.u32 %v12725_v20, 16  ;;  %v2850_v1 = vmax.f32 %v12739_v19, %v2778_v42  ;;  %v3165_v49 = vsel %vm422_vm1, %v3146_v52, %v3164_v5 }
 0x26c   :  { %17851 = vst [vmem:[#allocation49_spill] sm:$0xff] %v12782_v9  ;;  %v2616_v41 = vadd.f32 %v12667_v26, %v2403_v30  ;;  %v2618_v22 = vadd.f32 %v12699_v6, %v2405_v45  ;;  %v12793_v38 = vadd.f32 %v11688_v58, %v12681_v17  ;;  %v2849_v53 = vmax.f32 %v12745_v57, %v2777_v28  ;;  %v17854_v30 = vld [vmem:[#allocation54_spill] sm:$0xff]  ;;  %v17855_v45 = vld [vmem:[#allocation72_spill] sm:$0xff] }
 0x26d   :  { %4341 = vmatprep.mubr.bf16.mxu1 %v3165_v49  ;;  %v3151_v8 = vrot.slane %v3149_v40, 1  ;;  %v2848_v14 = vmax.f32 %v12733_v31, %v2776_v24  ;;  %v12799_v42 = vadd.f32 %v11685_v21, %v12733_v31  ;;  %v12802_v26 = vadd.f32 %v11634_v4, %v2610_v3  ;;  %v2418_v40 = vpop.f32.mrf.mxu0  ;;  %v17856_v3 = vld [vmem:[#allocation55_spill] sm:$0xff] }
 0x26e   :  { %17852 = vst [vmem:[#allocation50_spill] sm:$0xff] %v12793_v38  ;;  %v12805_v6 = vadd.f32 %v11638_v2, %v2612_v55  ;;  %v3154_v52 = vrot.slane %v3152_v50, 2  ;;  %v2407_v17 = vadd.f32 %v12690_v56, %v17854_v30  ;;  %v2409_v28 = vadd.f32 %v12710_v44, %v17855_v45  ;;  %v2629_v50 = vpop.f32.mrf.mxu1  ;;  %v17857_v44 = vld [vmem:[#allocation57_spill] sm:$0xff] }
 0x26f   :  { %17853 = vst [vmem:[#allocation68_spill] sm:$0xff] %v12799_v42  ;;  %v12811_v5 = vpack.c.bf16 %v2851_v46, %v2849_v53  ;;  %v12814_v24 = vadd.f32 %v11634_v4, %v2616_v41  ;;  %v12817_v31 = vadd.f32 %v11638_v2, %v2618_v22  ;;  %v2413_v49 = vadd.f32 %v2412_v32, %v17856_v3  ;;  %v17858_v22 = vld [vmem:[#allocation58_spill] sm:$0xff]  ;;  %v17859_v32 = vld [vmem:[#allocation73_spill] sm:$0xff] }
 0x270   :  { %v12820_v55 = vpack.c.bf16 %v2850_v1, %v2848_v14  ;;  %v3155_v33 = vor.u32 %v3154_v52, %v3151_v8  ;;  %v2620_v56 = vadd.f32 %v12715_v54, %v2407_v17  ;;  %v2622_v30 = vadd.f32 %v2621_v39, %v2409_v28  ;;  %v10379_v1 = vld [vmem:[#allocation10 + $0x370] ss:$8 sps:$4 sm:$0xff]   ;;  %v10381_v3 = vld [vmem:[#allocation10 + $0x374] ss:$8 sps:$4 sm:$0xff]   ;;  %v2631_v28 = vpop.f32.mrf.mxu1 }
 0x271   :  { %4168 = vmatprep.mubr.bf16.mxu0 %v12811_v5  ;;  %v2415_v46 = vadd.f32 %v2414_v63, %v17857_v44  ;;  %v12826_v53 = vmul.f32 0.1, %v12802_v26  ;;  %v2626_v41 = vadd.f32 %v2625_v10, %v2413_v49  ;;  %v2417_v45 = vadd.f32 %v2416_v15, %v17858_v22  ;;  %6447 = vmatprep.subr.bf16.mxu1 %v10381_v3 }
 0x272   :  { %4169 = vmatmul.mubr.bf16.gmra.mxu0 %v12820_v55  ;;  %v2419_v14 = vadd.f32 %v2418_v40, %v17859_v32  ;;  %v3156_v8 = vsel %vm422_vm1, %v3137_v29, %v3155_v33  ;;  %v12833_v54 = vadd.f32 %v11634_v4, %v2620_v56  ;;  %v12836_v39 = vadd.f32 %v11638_v2, %v2622_v30 }
 0x273   :  { %v2628_v63 = vadd.f32 %v2627_v11, %v2415_v46  ;;  %v2781_v52 = vmul.f32 0.1, %v12805_v6  ;;  %v2783_v10 = vmul.f32 0.1, %v12817_v31  ;;  %4342 = vmatmul.mubr.bf16.gmra.mxu1 %v3156_v8  ;;  %v12841_v15 = vadd.f32 %v11634_v4, %v2626_v41 }
 0x274   :  { %v2630_v17 = vadd.f32 %v2629_v50, %v2417_v45  ;;  %v12846_v33 = vadd.f32 %v11688_v58, %v12745_v57  ;;  %v12850_v11 = vadd.f32 %v11685_v21, %v12739_v19  ;;  %v2632_v40 = vadd.f32 %v2631_v28, %v2419_v14  ;;  %6448 = vmatpush1.bf16.msra.mxu1 %v10379_v1 }
 0x275   :  { %v2782_v49 = vmul.f32 0.1, %v12814_v24  ;;  %v12854_v56 = vadd.f32 %v11638_v2, %v2628_v63  ;;  %v3184_v30 = vshrl.u32 %v12753_v0, 16  ;;  %v12863_v57 = vadd.f32 %v11688_v58, %v12736_v13 }
 0x276   :  { %v12857_v50 = vadd.f32 %v11634_v4, %v2630_v17  ;;  %v2784_v19 = vmul.f32 0.1, %v12833_v54  ;;  %v2785_v46 = vmul.f32 0.1, %v12836_v39  ;;  %v2852_v41 = vmax.f32 %v12802_v26, %v12826_v53 }
 0x277   :  { %17860 = vst [vmem:[#allocation51_spill] sm:$0xff] %v12863_v57  ;;  %v2853_v22 = vmax.f32 %v12805_v6, %v2781_v52  ;;  %v2855_v4 = vmax.f32 %v12817_v31, %v2783_v10  ;;  %v2786_v45 = vmul.f32 0.1, %v12841_v15  ;;  %v2787_v32 = vmul.f32 0.1, %v12854_v56 }
 0x278   :  { %v2788_v14 = vmul.f32 0.1, %v12857_v50  ;;  %v12875_v13 = vadd.f32 %v11638_v2, %v2632_v40  ;;  %v3187_v1 = vshll.u32 %v12753_v0, 16  ;;  %v2854_v3 = vmax.f32 %v12814_v24, %v2782_v49  ;;  %v10382_v52 = vld [vmem:[#allocation10 + $0x360] ss:$8 sps:$4 sm:$0xff]  }
 0x279   :  { %v3186_v8 = vrot.slane %v3184_v30, 1  ;;  %v3192_v53 = vshrl.u32 %v12811_v5, 16  ;;  %v3195_v63 = vshll.u32 %v12811_v5, 16  ;;  %v2856_v10 = vmax.f32 %v12833_v54, %v2784_v19  ;;  %v10384_v2 = vld [vmem:[#allocation10 + $0x364] ss:$8 sps:$4 sm:$0xff]  }
 0x27a   :  { %v2857_v17 = vmax.f32 %v12836_v39, %v2785_v46  ;;  %v2860_v28 = vmax.f32 %v12857_v50, %v2788_v14  ;;  %v2789_v29 = vmul.f32 0.1, %v12875_v13  ;;  %v3189_v40 = vrot.slane %v3187_v1, 2  ;;  %6449 = vmatprep.subr.bf16.mxu1 %v10384_v2 }
 0x27b   :  { %v3194_v44 = vrot.slane %v3192_v53, 1  ;;  %v3197_v38 = vrot.slane %v3195_v63, 2  ;;  %v12885_v42 = vpack.c.bf16 %v2855_v4, %v2853_v22  ;;  %v2858_v49 = vmax.f32 %v12841_v15, %v2786_v45  ;;  %6450 = vmatpush1.bf16.msra.mxu1 %v10382_v52 }
 0x27c   :  { %v2859_v30 = vmax.f32 %v12854_v56, %v2787_v32  ;;  %v2861_v9 = vmax.f32 %v12875_v13, %v2789_v29  ;;  %v3167_v19 = vshrl.u32 %v12755_v48, 16  ;;  %v3190_v46 = vor.u32 %v3189_v40, %v3186_v8 }
 0x27d   :  { %v3198_v51 = vor.u32 %v3197_v38, %v3194_v44  ;;  %4178 = vmatprep.mubr.bf16.mxu0 %v12885_v42  ;;  %v3170_v14 = vshll.u32 %v12755_v48, 16  ;;  %v3175_v1 = vshrl.u32 %v12820_v55, 16  ;;  %v12894_v22 = vpack.c.bf16 %v2860_v28, %v2860_v28 }
 0x27e   :  { %v3169_v4 = vrot.slane %v3167_v19, 1  ;;  %v3178_v45 = vshll.u32 %v12820_v55, 16  ;;  %v12897_v32 = vpack.c.bf16 %v2854_v3, %v2852_v41  ;;  %v3210_v38 = vshrl.u32 %v12885_v42, 16  ;;  %v10385_v19 = vld [vmem:[#allocation10 + $0x350] ss:$8 sps:$4 sm:$0xff]  }
 0x27f   :  { %v3199_v29 = vsel %vm422_vm1, %v3190_v46, %v3198_v51  ;;  %v3172_v53 = vrot.slane %v3170_v14, 2  ;;  %v3177_v63 = vrot.slane %v3175_v1, 1  ;;  %v3213_v8 = vshll.u32 %v12885_v42, 16  ;;  %v10387_v46 = vld [vmem:[#allocation10 + $0x354] ss:$8 sps:$4 sm:$0xff]  }
 0x280   :  { %4351 = vmatprep.mubr.bf16.mxu1 %v3199_v29  ;;  %v3180_v44 = vrot.slane %v3178_v45, 2  ;;  %4179 = vmatmul.mubr.bf16.gmra.mxu0 %v12897_v32  ;;  %v12903_v52 = vpack.c.bf16 %v2859_v30, %v2857_v17  ;;  %v3201_v28 = vshrl.u32 %v12897_v32, 16  ;;  %v12906_v2 = vpack.c.bf16 %v2861_v9, %v2861_v9  ;;  %v17861_v17 = vld [vmem:[#allocation71_spill] sm:$0xff] }
 0x281   :  { %v3212_v41 = vrot.slane %v3210_v38, 1  ;;  %v3204_v3 = vshll.u32 %v12897_v32, 16  ;;  %v12909_v40 = vpack.c.bf16 %v2858_v49, %v2856_v10  ;;  %v3173_v14 = vor.u32 %v3172_v53, %v3169_v4  ;;  %6451 = vmatprep.subr.bf16.mxu1 %v10387_v46 }
 0x282   :  { %v3181_v1 = vor.u32 %v3180_v44, %v3177_v63  ;;  %v3215_v45 = vrot.slane %v3213_v8, 2  ;;  %4188 = vmatprep.mubr.bf16.mxu0 %v12903_v52  ;;  %v3203_v29 = vrot.slane %v3201_v28, 1  ;;  %v3228_v62 = vshrl.u32 %v12903_v52, 16  ;;  %6452 = vmatpush1.bf16.msra.mxu1 %v10385_v19  ;;  %v17862_v63 = vld [vmem:[#allocation62_spill] sm:$0xff] }
 0x283   :  { %v3206_v16 = vrot.slane %v3204_v3, 2  ;;  %v3231_v9 = vshll.u32 %v12903_v52, 16  ;;  %v3219_v49 = vshrl.u32 %v12909_v40, 16  ;;  %v3222_v4 = vshll.u32 %v12909_v40, 16 }
 0x284   :  { %v3182_v38 = vsel %vm422_vm1, %v3173_v14, %v3181_v1  ;;  %v3216_v10 = vor.u32 %v3215_v45, %v3212_v41  ;;  %v3329_v44 = vrot.slane %v17862_v63, 3  ;;  %v3230_v8 = vrot.slane %v3228_v62, 1 }
 0x285   :  { %4352 = vmatmul.mubr.bf16.gmra.mxu1 %v3182_v38  ;;  %v3207_v53 = vor.u32 %v3206_v16, %v3203_v29  ;;  %v3233_v28 = vrot.slane %v3231_v9, 2  ;;  %v3221_v27 = vrot.slane %v3219_v49, 1  ;;  %v3224_v46 = vrot.slane %v3222_v4, 2  ;;  %v10388_v38 = vld [vmem:[#allocation10 + $0x340] ss:$8 sps:$4 sm:$0xff]  }
 0x286   :  { %v3217_v30 = vsel %vm422_vm1, %v3198_v51, %v3216_v10  ;;  %v12923_v41 = vadd.f32 %v11685_v21, %v12802_v26  ;;  %v17863_v19 = vrot.slane %v17861_v17, 3  ;;  %v3246_v29 = vshrl.u32 %v12906_v2, 16  ;;  %v10390_v4 = vld [vmem:[#allocation10 + $0x344] ss:$8 sps:$4 sm:$0xff]  }
 0x287   :  { %4361 = vmatprep.mubr.bf16.mxu1 %v3217_v30  ;;  %v3208_v14 = vsel %vm422_vm1, %v3181_v1, %v3207_v53  ;;  %v3234_v45 = vor.u32 %v3233_v28, %v3230_v8  ;;  %v3225_v62 = vor.u32 %v3224_v46, %v3221_v27  ;;  %v3249_v51 = vshll.u32 %v12906_v2, 16  ;;  %v17865_v46 = vld [vmem:[#allocation82_spill] sm:$0xff]  ;;  %6453 = vmatprep.subr.bf16.mxu1 %v10390_v4 }
 0x288   :  { %v3331_v16 = vsel %vm613_vm5, %v3329_v44, %v17863_v19  ;;  %4189 = vmatmul.mubr.bf16.gmra.mxu0 %v12909_v40  ;;  %v3237_v9 = vshrl.u32 %v12894_v22, 16  ;;  %v3240_v49 = vshll.u32 %v12894_v22, 16  ;;  %v12939_v27 = vadd.f32 %v11688_v58, %v12805_v6  ;;  %v17864_v44 = vld [vmem:[#allocation67_spill] sm:$0xff]  ;;  %6454 = vmatpush1.bf16.msra.mxu1 %v10388_v38 }
 0x289   :  { %4424 = vmatprep.mubr.bf16.mxu0 %v3331_v16  ;;  %v3235_v1 = vsel %vm422_vm1, %v3216_v10, %v3234_v45  ;;  %v3226_v63 = vsel %vm422_vm1, %v3207_v53, %v3225_v62  ;;  %v3327_v8 = vrot.slane %v17864_v44, 3  ;;  %v3334_v19 = vrot.slane %v17865_v46, 3  ;;  %v10393_v16 = vld [vmem:[#allocation10 + $0x334] ss:$8 sps:$4 sm:$0xff]  }
 0x28a   :  { %v3239_v28 = vrot.slane %v3237_v9, 1  ;;  %v3248_v26 = vrot.slane %v3246_v29, 1  ;;  %v3251_v3 = vrot.slane %v3249_v51, 2  ;;  %v3242_v30 = vrot.slane %v3240_v49, 2  ;;  %v10391_v29 = vld [vmem:[#allocation10 + $0x330] ss:$8 sps:$4 sm:$0xff]   ;;  %6455 = vmatprep.subr.bf16.mxu1 %v10393_v16 }
 0x28b   :  { %v12947_v57 = vadd.f32 %v11685_v21, %v12814_v24  ;;  %v12951_v6 = vadd.f32 %v11688_v58, %v12817_v31  ;;  %v12955_v53 = vadd.f32 %v11685_v21, %v12833_v54  ;;  %v12959_v51 = vadd.f32 %v11688_v58, %v12836_v39  ;;  %v17866_v24 = vld [vmem:[#allocation61_spill] sm:$0xff] }
 0x28c   :  { %v12963_v9 = vadd.f32 %v11685_v21, %v12841_v15  ;;  %v3326_v49 = vrot.slane %v17866_v24, 3  ;;  %v3243_v4 = vor.u32 %v3242_v30, %v3239_v28  ;;  %v12969_v54 = vadd.f32 %v11688_v58, %v12854_v56  ;;  %v17868_v28 = vld [vmem:[#allocation83_spill] sm:$0xff]  ;;  %6456 = vmatpush1.bf16.msra.mxu1 %v10391_v29 }
 0x28d   :  { %4362 = vmatmul.mubr.bf16.gmra.mxu1 %v3208_v14  ;;  %v12973_v38 = vadd.f32 %v11685_v21, %v12857_v50  ;;  %v12977_v39 = vadd.f32 %v11688_v58, %v12875_v13  ;;  %v17867_v14 = vrot.slane %v17861_v17, 3  ;;  %v3252_v44 = vor.u32 %v3251_v3, %v3248_v26  ;;  %v17869_v50 = vld [vmem:[#allocation88_spill] sm:$0xff]  ;;  %v17870_v24 = vld [vmem:[#allocation91_spill] sm:$0xff] }
 0x28e   :  { %4371 = vmatprep.mubr.bf16.mxu1 %v3235_v1  ;;  %v3328_v15 = vsel %vm613_vm5, %v3326_v49, %v3327_v8  ;;  %v12984_v56 = vsel %vm422_vm1, %v3225_v62, %v3243_v4  ;;  %v3332_v21 = vrot.slane %v17868_v28, 3  ;;  %v3338_v46 = vrot.slane %v17869_v50, 3  ;;  %v17871_v13 = vld [vmem:[#allocation20_spill] sm:$0xff]  ;;  %v17877_v3 = vld [vmem:[#allocation99_spill] sm:$0xff] }
 0x28f   :  { %v3335_v30 = vsel %vm613_vm5, %v17867_v14, %v3334_v19  ;;  %v3336_v58 = vrot.slane %v17870_v24, 3  ;;  %v3342_v1 = vrot.slane %v17871_v13, 3  ;;  %v3253_v29 = vsel %vm422_vm1, %v3234_v45, %v3252_v44  ;;  %v17873_v50 = vld [vmem:[#allocation92_spill] sm:$0xff]  ;;  %v17874_v13 = vld [vmem:[#allocation95_spill] sm:$0xff] }
 0x290   :  { %4425 = vmatmul.mubr.bf16.vlgmr.msra.gmra.mxu0 %v3328_v15  ;;  %v17872_v15 = vld [vmem:[#allocation21_spill] sm:$0xff]  ;;  %v3347_v24 = vrot.slane %v17873_v50, 3  ;;  %v17454_v17 = vrot.slane %v17874_v13, 3  ;;  %v3333_v49 = vsel %vm613_vm5, %v3327_v8, %v3332_v21  ;;  %v17456_v28 = vrot.slane %v12683_v59, 3  ;;  %v17875_v8 = vld [vmem:[#allocation22_spill] sm:$0xff]  ;;  %v17876_v4 = vld [vmem:[#allocation96_spill] sm:$0xff] }
 0x291   :  { %4434 = vmatprep.mubr.bf16.mxu0 %v3335_v30  ;;  %v3340_v14 = vrot.slane %v17872_v15, 3  ;;  %v3339_v30 = vsel %vm613_vm5, %v3334_v19, %v3338_v46  ;;  %v3337_v62 = vsel %vm613_vm5, %v3332_v21, %v3336_v58  ;;  %v13006_v26 = vsel %vm613_vm5, %v3338_v46, %v3342_v1  ;;  %v17883_v19 = vld [vmem:[#allocation76_spill] sm:$0xff]  ;;  %v17884_v21 = vld [vmem:[#allocation74_spill] sm:$0xff] }
 0x292   :  { %v17455_v15 = vrot.slane %v12629_v37, 3  ;;  %v3378_v45 = vrot.slane %v12722_v25, 3  ;;  %v3376_v44 = vrot.slane %v12725_v20, 3  ;;  %v17885_v16 = vrot.slane %v17884_v21, 3 }
 0x293   :  { %v13013_v50 = vsel %vm613_vm5, %v3336_v58, %v3340_v14  ;;  %v3383_v58 = vrot.slane %v12753_v0, 3  ;;  %v3384_v14 = vrot.slane %v12811_v5, 3  ;;  %v3396_v0 = vrot.slane %v12906_v2, 3 }
 0x294   :  { %v13026_v25 = vsel %vm613_vm5, %v17455_v15, %v3378_v45  ;;  %v13031_v20 = vsel %vm613_vm5, %v17456_v28, %v3376_v44  ;;  %v10394_v45 = vld [vmem:[#allocation10 + $0x320] ss:$8 sps:$4 sm:$0xff]   ;;  %v3386_v15 = vrot.slane %v12897_v32, 3  ;;  %v3392_v44 = vrot.slane %v12903_v52, 3 }
 0x295   :  { %4372 = vmatmul.mubr.bf16.gmra.mxu1 %v3226_v63  ;;  %v13021_v63 = vsel %vm613_vm5, %v3347_v24, %v17454_v17  ;;  %v3381_v24 = vrot.slane %v12820_v55, 3  ;;  %v3388_v17 = vrot.slane %v12885_v42, 3  ;;  %v3390_v28 = vrot.slane %v12909_v40, 3 }
 0x296   :  { %4381 = vmatprep.mubr.bf16.mxu1 %v3253_v29  ;;  %v3380_v29 = vrot.slane %v12755_v48, 3  ;;  %v13047_v5 = vsel %vm613_vm5, %v3383_v58, %v3384_v14  ;;  %v3394_v55 = vrot.slane %v12894_v22, 3  ;;  %v13066_v40 = vsel %vm613_vm5, %v3392_v44, %v3396_v0  ;;  %v17878_v22 = vld [vmem:[#allocation70_spill] sm:$0xff] }
 0x297   :  { %v13053_v42 = vsel %vm613_vm5, %v3384_v14, %v3388_v17  ;;  %v13057_v32 = vsel %vm613_vm5, %v3381_v24, %v3386_v15  ;;  %v13060_v52 = vsel %vm613_vm5, %v3388_v17, %v3392_v44  ;;  %v13063_v2 = vsel %vm613_vm5, %v3386_v15, %v3390_v28 }
 0x298   :  { %4435 = vmatmul.mubr.bf16.gmra.mxu0 %v3333_v49  ;;  %v10396_v49 = vld [vmem:[#allocation10 + $0x324] ss:$8 sps:$4 sm:$0xff]   ;;  %v13050_v48 = vsel %vm613_vm5, %v3380_v29, %v3381_v24  ;;  %v13071_v58 = vsel %vm613_vm5, %v3390_v28, %v3394_v55  ;;  %v17879_v14 = vrot.slane %v17878_v22, 3  ;;  %v4746_v15 = vrot.slane %v17883_v19, 3 }
 0x299   :  { %4444 = vmatprep.mubr.bf16.mxu0 %v3339_v30  ;;  %6457 = vmatprep.subr.bf16.mxu1 %v10396_v49  ;;  %v17880_v29 = vld [vmem:[#allocation65_spill] sm:$0xff]  ;;  %v17890_v49 = vmov %v17885_v16 }
 0x29a   :  { %6458 = vmatpush1.bf16.msra.mxu1 %v10394_v45  ;;  %v17881_v24 = vrot.slane %v17880_v29, 3  ;;  %v17886_v44 = vmov %v17879_v14  ;;  %v17888_v28 = vld [vmem:[#allocation77_spill] sm:$0xff] }
 0x29b   :  { %v13086_v0 = vsel %vm613_vm5, %v17886_v44, %v17885_v16  ;;  %v17889_v45 = vrot.slane %v17888_v28, 3  ;;  %v17897_v16 = vld [vmem:[#allocation81_spill] sm:$0xff] }
 0x29c   :  { %v13078_v17 = vsel %vm613_vm5, %v17881_v24, %v17879_v14  ;;  %17887 = vst [vmem:[#allocation52_spill] sm:$0xff] %v13086_v0  ;;  %v17892_v14 = vld [vmem:[#allocation78_spill] sm:$0xff]  ;;  %v17893_v24 = vld [vmem:[#allocation79_spill] sm:$0xff]  ;;  %v17898_v44 = vrot.slane %v17897_v16, 3 }
 0x29d   :  { %17882 = vst [vmem:[#allocation69_spill] sm:$0xff] %v13078_v17  ;;  %4382 = vmatmul.mubr.bf16.gmra.mxu1 %v12984_v56  ;;  %v13094_v55 = vsel %vm613_vm5, %v17890_v49, %v17889_v45  ;;  %v4754_v29 = vrot.slane %v17892_v14, 3  ;;  %v17894_v19 = vrot.slane %v17893_v24, 3  ;;  %v17895_v31 = vmov %v17889_v45  ;;  %v17902_v45 = vld [vmem:[#allocation66_spill] sm:$0xff] }
 0x29e   :  { %17891 = vst [vmem:[#allocation53_spill] sm:$0xff] %v13094_v55  ;;  %v17903_v49 = vrot.slane %v17902_v45, 3  ;;  %v17905_v55 = vld [vmem:[#allocation75_spill] sm:$0xff]  ;;  %v17911_v24 = vmov %v17898_v44  ;;  %v17922_v16 = vld [vmem:[#allocation18_spill] sm:$0xff] }
 0x29f   :  { %v13102_v22 = vsel %vm613_vm5, %v17895_v31, %v17894_v19  ;;  %v17899_v56 = vmov %v17894_v19  ;;  %v17906_v0 = vrot.slane %v17905_v55, 3  ;;  %v17908_v31 = vld [vmem:[#allocation84_spill] sm:$0xff] }
 0x2a0   :  { %17896 = vst [vmem:[#allocation54_spill] sm:$0xff] %v13102_v22  ;;  %v13109_v10 = vsel %vm613_vm5, %v17899_v56, %v17898_v44  ;;  %v13116_v14 = vsel %vm613_vm5, %v17903_v49, %v4746_v15  ;;  %v4762_v19 = vrot.slane %v17908_v31, 3  ;;  %v17909_v22 = vld [vmem:[#allocation85_spill] sm:$0xff]  ;;  %v17915_v49 = vld [vmem:[#allocation80_spill] sm:$0xff]  ;;  %4445 = vmatmul.mubr.bf16.gmra.mxu0 %v3337_v62 }
 0x2a1   :  { %17900 = vst [vmem:[#allocation72_spill] sm:$0xff] %v13109_v10  ;;  %17904 = vst [vmem:[#allocation57_spill] sm:$0xff] %v13116_v14  ;;  %v13121_v28 = vsel %vm613_vm5, %v4746_v15, %v17906_v0  ;;  %v17910_v17 = vrot.slane %v17909_v22, 3  ;;  %v17913_v56 = vmov %v17906_v0  ;;  %v17916_v10 = vrot.slane %v17915_v49, 3  ;;  %v17918_v15 = vld [vmem:[#allocation87_spill] sm:$0xff]  ;;  %v17932_v62 = vld [vmem:[#allocation24_spill] sm:$0xff]  ;;  %4454 = vmatprep.mubr.bf16.mxu0 %v13006_v26 }
 0x2a2   :  { %v13034_v1 = vpop.f32.mrf.mxu0  ;;  %17907 = vst [vmem:[#allocation58_spill] sm:$0xff] %v13121_v28  ;;  %v13134_v45 = vsel %vm613_vm5, %v17913_v56, %v4754_v29  ;;  %v17919_v0 = vrot.slane %v17918_v15, 3  ;;  %v10397_v26 = vld [vmem:[#allocation10 + $0x310] ss:$8 sps:$4 sm:$0xff]  }
 0x2a3   :  { %v13129_v44 = vsel %vm613_vm5, %v17911_v24, %v17910_v17  ;;  %17914 = vst [vmem:[#allocation71_spill] sm:$0xff] %v13134_v45  ;;  %v13139_v14 = vsel %vm613_vm5, %v4754_v29, %v17916_v10  ;;  %v17920_v31 = vmov %v17910_v17  ;;  %v4770_v17 = vrot.slane %v17922_v16, 3 }
 0x2a4   :  { %v13044_v46 = vpop.f32.mrf.mxu0  ;;  %17912 = vst [vmem:[#allocation73_spill] sm:$0xff] %v13129_v44  ;;  %17917 = vst [vmem:[#allocation62_spill] sm:$0xff] %v13139_v14  ;;  %v13146_v28 = vsel %vm613_vm5, %v17920_v31, %v17919_v0  ;;  %v17924_v55 = vmov %v17916_v10  ;;  %v17926_v44 = vld [vmem:[#allocation86_spill] sm:$0xff]  ;;  %v17929_v14 = vld [vmem:[#allocation89_spill] sm:$0xff]  ;;  %v17933_v16 = vrot.slane %v17932_v62, 3 }
 0x2a5   :  { %17921 = vst [vmem:[#allocation67_spill] sm:$0xff] %v13146_v28  ;;  %v13154_v56 = vsel %vm613_vm5, %v17924_v55, %v4762_v19  ;;  %v17927_v10 = vrot.slane %v17926_v44, 3  ;;  %v17930_v22 = vrot.slane %v17929_v14, 3  ;;  %v17934_v28 = vld [vmem:[#allocation19_spill] sm:$0xff]  ;;  %v17939_v14 = vld [vmem:[#allocation90_spill] sm:$0xff] }
 0x2a6   :  { %v13068_v30 = vpop.f32.mrf.mxu0  ;;  %17925 = vst [vmem:[#allocation61_spill] sm:$0xff] %v13154_v56  ;;  %v17935_v45 = vrot.slane %v17934_v28, 3  ;;  %v17945_v28 = vmov %v17933_v16  ;;  %v17947_v44 = vld [vmem:[#allocation94_spill] sm:$0xff] }
 0x2a7   :  { %v13159_v29 = vsel %vm613_vm5, %v4762_v19, %v17927_v10  ;;  %v13166_v31 = vsel %vm613_vm5, %v17919_v0, %v17930_v22  ;;  %v17937_v55 = vmov %v17927_v10  ;;  %v17940_v10 = vrot.slane %v17939_v14, 3  ;;  %v17942_v22 = vld [vmem:[#allocation23_spill] sm:$0xff]  ;;  %v17956_v62 = vld [vmem:[#allocation26_spill] sm:$0xff] }
 0x2a8   :  { %v13111_v21 = vpop.f32.mrf.mxu0  ;;  %17928 = vst [vmem:[#allocation83_spill] sm:$0xff] %v13159_v29  ;;  %17931 = vst [vmem:[#allocation88_spill] sm:$0xff] %v13166_v31  ;;  %v13173_v49 = vsel %vm613_vm5, %v17935_v45, %v17933_v16  ;;  %v13179_v19 = vsel %vm613_vm5, %v17937_v55, %v4770_v17  ;;  %v4779_v0 = vrot.slane %v17942_v22, 3  ;;  %v17943_v31 = vld [vmem:[#allocation93_spill] sm:$0xff]  ;;  %v10399_v16 = vld [vmem:[#allocation10 + $0x314] ss:$8 sps:$4 sm:$0xff]   ;;  %4455 = vmatmul.mubr.bf16.gmra.mxu0 %v13013_v50 }
 0x2a9   :  { %17901 = vst [vmem:[#allocation55_spill] sm:$0xff] %v13111_v21  ;;  %17936 = vst [vmem:[#allocation91_spill] sm:$0xff] %v13173_v49  ;;  %v13184_v15 = vsel %vm613_vm5, %v4770_v17, %v17940_v10  ;;  %v17944_v29 = vrot.slane %v17943_v31, 3  ;;  %v17948_v49 = vrot.slane %v17947_v44, 3  ;;  %v17949_v55 = vld [vmem:[#allocation25_spill] sm:$0xff]  ;;  %v17952_v17 = vld [vmem:[#allocation27_spill] sm:$0xff]  ;;  %6459 = vmatprep.subr.bf16.mxu1 %v10399_v16  ;;  %4464 = vmatprep.mubr.bf16.mxu0 %v13021_v63 }
 0x2aa   :  { %v13149_v24 = vpop.f32.mrf.mxu0  ;;  %17938 = vst [vmem:[#allocation20_spill] sm:$0xff] %v13179_v19  ;;  %17941 = vst [vmem:[#allocation21_spill] sm:$0xff] %v13184_v15  ;;  %v17950_v19 = vrot.slane %v17949_v55, 3  ;;  %v17953_v10 = vrot.slane %v17952_v17, 3  ;;  %v17957_v56 = vrot.slane %v17956_v62, 3  ;;  %v17964_v31 = vrot.slane %v17949_v55, 3  ;;  %6460 = vmatpush1.bf16.msra.mxu1 %v10397_v26 }
 0x2ab   :  { %17923 = vst [vmem:[#allocation82_spill] sm:$0xff] %v13149_v24  ;;  %v13192_v45 = vsel %vm613_vm5, %v17945_v28, %v17944_v29  ;;  %v17954_v22 = vmov %v17944_v29  ;;  %v17958_v29 = vmov %v17948_v49  ;;  %v18044_v63 = vld [vmem:[#allocation48_spill] sm:$0xff] }
 0x2ac   :  { %17946 = vst [vmem:[#allocation92_spill] sm:$0xff] %v13192_v45  ;;  %v13199_v14 = vsel %vm613_vm5, %v17950_v19, %v17948_v49  ;;  %v13206_v15 = vsel %vm613_vm5, %v17954_v22, %v17953_v10  ;;  %v13213_v28 = vsel %vm613_vm5, %v17958_v29, %v17957_v56  ;;  %v17960_v45 = vld [vmem:[#allocation28_spill] sm:$0xff]  ;;  %v17962_v21 = vmov %v17953_v10  ;;  %v13222_v19 = vpop.f32.mrf.mxu0  ;;  %v17966_v22 = vld [vmem:[#allocation97_spill] sm:$0xff] }
 0x2ad   :  { %17951 = vst [vmem:[#allocation95_spill] sm:$0xff] %v13199_v14  ;;  %17955 = vst [vmem:[#allocation22_spill] sm:$0xff] %v13206_v15  ;;  %v17961_v24 = vrot.slane %v17960_v45, 3  ;;  %v13227_v10 = vsel %vm613_vm5, %v4779_v0, %v17964_v31  ;;  %v17967_v15 = vrot.slane %v17966_v22, 3  ;;  %v17968_v44 = vmov %v17957_v56  ;;  %v17970_v29 = vld [vmem:[#allocation29_spill] sm:$0xff]  ;;  %v17978_v31 = vld [vmem:[#allocation34_spill] sm:$0xff] }
 0x2ae   :  { %17959 = vst [vmem:[#allocation96_spill] sm:$0xff] %v13213_v28  ;;  %17965 = vst [vmem:[#allocation70_spill] sm:$0xff] %v13227_v10  ;;  %v17971_v28 = vrot.slane %v17970_v29, 3  ;;  %v17979_v62 = vrot.slane %v17978_v31, 3  ;;  %v17998_v31 = vrot.slane %v12419_v47, 3 }
 0x2af   :  { %v13220_v49 = vsel %vm613_vm5, %v17962_v21, %v17961_v24  ;;  %v13234_v56 = vsel %vm613_vm5, %v17968_v44, %v17967_v15  ;;  %v17972_v17 = vmov %v17961_v24  ;;  %v17974_v24 = vld [vmem:[#allocation98_spill] sm:$0xff]  ;;  %v17976_v55 = vmov %v17967_v15  ;;  %v10474_v10 = vld [vmem:[#allocation10 + $0x584] ss:$8 sps:$4 sm:$0xff]  }
 0x2b0   :  { %17963 = vst [vmem:[#allocation99_spill] sm:$0xff] %v13220_v49  ;;  %17969 = vst [vmem:[#allocation65_spill] sm:$0xff] %v13234_v56  ;;  %v13241_v21 = vsel %vm613_vm5, %v17972_v17, %v17971_v28  ;;  %v17975_v49 = vrot.slane %v17974_v24, 3  ;;  %v17980_v15 = vmov %v17971_v28  ;;  %v17982_v56 = vld [vmem:[#allocation100_spill] sm:$0xff]  ;;  %v10469_v14 = vld [vmem:[#allocation10 + $0x590] ss:$8 sps:$4 sm:$0xff]  }
 0x2b1   :  { %17973 = vst [vmem:[#allocation76_spill] sm:$0xff] %v13241_v21  ;;  %v13255_v44 = vsel %vm613_vm5, %v17980_v15, %v17979_v62  ;;  %v17983_v45 = vrot.slane %v17982_v56, 3  ;;  %v17986_v21 = vld [vmem:[#allocation33_spill] sm:$0xff]  ;;  %v17994_v15 = vld [vmem:[#allocation36_spill] sm:$0xff]  ;;  %v18001_v56 = vrot.slane %v12481_v36, 3  ;;  %v13322_v36 = vpop.f32.mrf.mxu0 }
 0x2b2   :  { %v13248_v0 = vsel %vm613_vm5, %v17976_v55, %v17975_v49  ;;  %17981 = vst [vmem:[#allocation77_spill] sm:$0xff] %v13255_v44  ;;  %v17984_v28 = vmov %v17975_v49  ;;  %v17987_v22 = vrot.slane %v17986_v21, 3  ;;  %v17988_v49 = vmov %v17979_v62  ;;  %v17990_v55 = vld [vmem:[#allocation63_spill] sm:$0xff]  ;;  %v10468_v44 = vld [vmem:[#allocation10 + $0x5a4] ss:$8 sps:$4 sm:$0xff]  }
 0x2b3   :  { %17977 = vst [vmem:[#allocation74_spill] sm:$0xff] %v13248_v0  ;;  %v13262_v17 = vsel %vm613_vm5, %v17984_v28, %v17983_v45  ;;  %v17991_v0 = vrot.slane %v17990_v55, 3  ;;  %v17992_v29 = vmov %v17983_v45  ;;  %v17995_v24 = vrot.slane %v17994_v15, 3 }
 0x2b4   :  { %17985 = vst [vmem:[#allocation78_spill] sm:$0xff] %v13262_v17  ;;  %v13269_v16 = vsel %vm613_vm5, %v17988_v49, %v17987_v22  ;;  %v17996_v45 = vmov %v17987_v22  ;;  %v18004_v21 = vrot.slane %v12488_v43, 3  ;;  %v18005_v15 = vmov %v18001_v56 }
 0x2b5   :  { %17989 = vst [vmem:[#allocation79_spill] sm:$0xff] %v13269_v16  ;;  %v13276_v62 = vsel %vm613_vm5, %v17992_v29, %v17991_v0  ;;  %v13283_v28 = vsel %vm613_vm5, %v17996_v45, %v17995_v24  ;;  %v17999_v22 = vmov %v17991_v0  ;;  %v18002_v0 = vrot.slane %v12456_v61, 3  ;;  %v10447_v16 = vld [vmem:[#allocation10 + $0x3b4] ss:$8 sps:$4 sm:$0xff]  }
 0x2b6   :  { %17993 = vst [vmem:[#allocation81_spill] sm:$0xff] %v13276_v62  ;;  %17997 = vst [vmem:[#allocation66_spill] sm:$0xff] %v13283_v28  ;;  %v13290_v49 = vsel %vm613_vm5, %v17999_v22, %v17998_v31  ;;  %v4814_v29 = vrot.slane %v12485_v18, 3  ;;  %v13305_v47 = vsel %vm613_vm5, %v18005_v15, %v18004_v21  ;;  %v18007_v55 = vrot.slane %v12520_v7, 3  ;;  %v10439_v28 = vld [vmem:[#allocation10 + $0x3c0] ss:$8 sps:$4 sm:$0xff]  }
 0x2b7   :  { %18000 = vst [vmem:[#allocation75_spill] sm:$0xff] %v13290_v49  ;;  %v13297_v26 = vsel %vm613_vm5, %v18002_v0, %v18001_v56  ;;  %18006 = vst [vmem:[#allocation85_spill] sm:$0xff] %v13305_v47  ;;  %v18008_v24 = vmov %v18004_v21  ;;  %v4822_v61 = vrot.slane %v12524_v12, 3  ;;  %v18010_v31 = vrot.slane %v12540_v34, 3  ;;  %v18017_v12 = vld [vmem:[#allocation39_spill] sm:$0xff] }
 0x2b8   :  { %18003 = vst [vmem:[#allocation84_spill] sm:$0xff] %v13297_v26  ;;  %v13312_v45 = vsel %vm613_vm5, %v18008_v24, %v18007_v55  ;;  %v18011_v18 = vmov %v18007_v55  ;;  %v18013_v56 = vrot.slane %v12460_v35, 3  ;;  %v18015_v43 = vrot.slane %v12494_v60, 3  ;;  %v10438_v49 = vld [vmem:[#allocation10 + $0x5f4] ss:$8 sps:$4 sm:$0xff]  }
 0x2b9   :  { %18009 = vst [vmem:[#allocation80_spill] sm:$0xff] %v13312_v45  ;;  %v13320_v22 = vsel %vm613_vm5, %v18011_v18, %v18010_v31  ;;  %v18018_v15 = vrot.slane %v18017_v12, 3  ;;  %v18019_v55 = vmov %v18010_v31  ;;  %v4830_v24 = vrot.slane %v12640_v23, 3  ;;  %v18023_v18 = vld [vmem:[#allocation41_spill] sm:$0xff]  ;;  %v18030_v23 = vld [vmem:[#allocation46_spill] sm:$0xff] }
 0x2ba   :  { %18012 = vst [vmem:[#allocation87_spill] sm:$0xff] %v13320_v22  ;;  %v13327_v0 = vsel %vm613_vm5, %v18013_v56, %v4814_v29  ;;  %v13332_v21 = vsel %vm613_vm5, %v4814_v29, %v18015_v43  ;;  %v18021_v35 = vmov %v18015_v43  ;;  %v18024_v56 = vrot.slane %v18023_v18, 3  ;;  %v18026_v43 = vld [vmem:[#allocation43_spill] sm:$0xff] }
 0x2bb   :  { %18014 = vst [vmem:[#allocation18_spill] sm:$0xff] %v13327_v0  ;;  %18016 = vst [vmem:[#allocation86_spill] sm:$0xff] %v13332_v21  ;;  %v13339_v7 = vsel %vm613_vm5, %v18019_v55, %v18018_v15  ;;  %v13346_v31 = vsel %vm613_vm5, %v18021_v35, %v4822_v61  ;;  %v18027_v22 = vrot.slane %v18026_v43, 3  ;;  %v18028_v34 = vmov %v18018_v15  ;;  %v18046_v18 = vld [vmem:[#allocation103_spill] sm:$0xff]  ;;  %v18118_v0 = vld [vmem:[#allocation44_spill] sm:$0xff] }
 0x2bc   :  { %18020 = vst [vmem:[#allocation89_spill] sm:$0xff] %v13339_v7  ;;  %18022 = vst [vmem:[#allocation24_spill] sm:$0xff] %v13346_v31  ;;  %v13351_v29 = vsel %vm613_vm5, %v4822_v61, %v18024_v56  ;;  %v18031_v55 = vrot.slane %v18030_v23, 3  ;;  %v18034_v35 = vmov %v18024_v56  ;;  %v18036_v56 = vld [vmem:[#allocation45_spill] sm:$0xff]  ;;  %v18054_v23 = vrot.slane %v12846_v33, 3 }
 0x2bd   :  { %18025 = vst [vmem:[#allocation19_spill] sm:$0xff] %v13351_v29  ;;  %v13358_v15 = vsel %vm613_vm5, %v18028_v34, %v18027_v22  ;;  %v18032_v50 = vmov %v18027_v22  ;;  %v13371_v61 = vsel %vm613_vm5, %v18034_v35, %v4830_v24  ;;  %v18037_v7 = vrot.slane %v18036_v56, 3  ;;  %v18039_v22 = vld [vmem:[#allocation40_spill] sm:$0xff]  ;;  %v10432_v21 = vld [vmem:[#allocation10 + $0x3d4] ss:$8 sps:$4 sm:$0xff]  }
 0x2be   :  { %18029 = vst [vmem:[#allocation90_spill] sm:$0xff] %v13358_v15  ;;  %v13365_v60 = vsel %vm613_vm5, %v18032_v50, %v18031_v55  ;;  %18035 = vst [vmem:[#allocation93_spill] sm:$0xff] %v13371_v61  ;;  %v4838_v34 = vrot.slane %v18039_v22, 3  ;;  %v18040_v15 = vld [vmem:[#allocation47_spill] sm:$0xff]  ;;  %v18042_v43 = vmov %v18031_v55  ;;  %v18045_v50 = vrot.slane %v18044_v63, 3  ;;  %v18049_v61 = vld [vmem:[#allocation49_spill] sm:$0xff] }
 0x2bf   :  { %18033 = vst [vmem:[#allocation23_spill] sm:$0xff] %v13365_v60  ;;  %v13376_v12 = vsel %vm613_vm5, %v4830_v24, %v18037_v7  ;;  %v18041_v29 = vrot.slane %v18040_v15, 3  ;;  %v18047_v60 = vrot.slane %v18046_v18, 3  ;;  %v4847_v31 = vrot.slane %v18049_v61, 3  ;;  %v18050_v7 = vld [vmem:[#allocation68_spill] sm:$0xff]  ;;  %v13408_v18 = vpop.f32.mrf.mxu0 }
 0x2c0   :  { %18038 = vst [vmem:[#allocation94_spill] sm:$0xff] %v13376_v12  ;;  %v18051_v24 = vrot.slane %v18050_v7, 3  ;;  %v18052_v22 = vmov %v18045_v50  ;;  %v18117_v12 = vld [vmem:[#allocation30_spill] sm:$0xff] }
 0x2c1   :  { %v13384_v55 = vsel %vm613_vm5, %v18042_v43, %v18041_v29  ;;  %v13391_v35 = vsel %vm613_vm5, %v18047_v60, %v18045_v50  ;;  %v18055_v29 = vld [vmem:[#allocation50_spill] sm:$0xff]  ;;  %v18058_v60 = vrot.slane %v18036_v56, 3  ;;  %v18060_v50 = vld [vmem:[#allocation37_spill] sm:$0xff]  ;;  %v3362_v45 = vrot.slane %v18117_v12, 3 }
 0x2c2   :  { %18043 = vst [vmem:[#allocation25_spill] sm:$0xff] %v13384_v55  ;;  %18048 = vst [vmem:[#allocation27_spill] sm:$0xff] %v13391_v35  ;;  %v13399_v15 = vsel %vm613_vm5, %v18052_v22, %v18051_v24  ;;  %v18056_v43 = vrot.slane %v18055_v29, 3  ;;  %v18061_v35 = vrot.slane %v18060_v50, 3  ;;  %v18063_v24 = vrot.slane %v12850_v11, 3 }
 0x2c3   :  { %18053 = vst [vmem:[#allocation26_spill] sm:$0xff] %v13399_v15  ;;  %v13413_v61 = vsel %vm613_vm5, %v18058_v60, %v4838_v34  ;;  %v18064_v22 = vrot.slane %v18050_v7, 3  ;;  %v18070_v60 = vrot.slane %v18055_v29, 3  ;;  %v18081_v11 = vrot.slane %v12951_v6, 3  ;;  %v10445_v62 = vld [vmem:[#allocation10 + $0x3b0] ss:$8 sps:$4 sm:$0xff]  }
 0x2c4   :  { %v13406_v55 = vsel %vm613_vm5, %v18056_v43, %v18054_v23  ;;  %18059 = vst [vmem:[#allocation97_spill] sm:$0xff] %v13413_v61  ;;  %v13418_v63 = vsel %vm613_vm5, %v4838_v34, %v18061_v35  ;;  %v18066_v23 = vld [vmem:[#allocation51_spill] sm:$0xff]  ;;  %v18072_v34 = vrot.slane %v12923_v41, 3  ;;  %v18073_v35 = vmov %v18063_v24 }
 0x2c5   :  { %18057 = vst [vmem:[#allocation28_spill] sm:$0xff] %v13406_v55  ;;  %18062 = vst [vmem:[#allocation29_spill] sm:$0xff] %v13418_v63  ;;  %v13425_v15 = vsel %vm613_vm5, %v18064_v22, %v18063_v24  ;;  %v18067_v43 = vrot.slane %v18066_v23, 3  ;;  %v18068_v55 = vrot.slane %v12846_v33, 3  ;;  %v13437_v50 = vsel %vm613_vm5, %v4847_v31, %v18070_v60  ;;  %v10402_v60 = vld [vmem:[#allocation10 + $0x574] ss:$8 sps:$4 sm:$0xff]  }
 0x2c6   :  { %18065 = vst [vmem:[#allocation98_spill] sm:$0xff] %v13425_v15  ;;  %18071 = vst [vmem:[#allocation100_spill] sm:$0xff] %v13437_v50  ;;  %v13444_v7 = vsel %vm613_vm5, %v18073_v35, %v18072_v34  ;;  %v18075_v24 = vrot.slane %v12939_v27, 3  ;;  %v18079_v29 = vmov %v18072_v34  ;;  %v18084_v23 = vrot.slane %v12955_v53, 3  ;;  %6793 = vmatprep.subr.bf16.mxu0 %v10402_v60  ;;  %v10426_v15 = vld [vmem:[#allocation10 + $0x524] ss:$8 sps:$4 sm:$0xff]  }
 0x2c7   :  { %v13432_v56 = vsel %vm613_vm5, %v18068_v55, %v18067_v43  ;;  %18074 = vst [vmem:[#allocation33_spill] sm:$0xff] %v13444_v7  ;;  %v18076_v22 = vmov %v18067_v43  ;;  %v18078_v55 = vrot.slane %v12947_v57, 3  ;;  %v10400_v43 = vld [vmem:[#allocation10 + $0x570] ss:$8 sps:$4 sm:$0xff]   ;;  %v18087_v41 = vrot.slane %v12959_v51, 3 }
 0x2c8   :  { %18069 = vst [vmem:[#allocation34_spill] sm:$0xff] %v13432_v56  ;;  %v13451_v33 = vsel %vm613_vm5, %v18076_v22, %v18075_v24  ;;  %v18082_v34 = vmov %v18075_v24  ;;  %v18091_v27 = vmov %v18084_v23  ;;  %v18093_v57 = vrot.slane %v12969_v54, 3  ;;  %6794 = vmatpush1.bf16.msra.mxu0 %v10400_v43  ;;  %v18113_v7 = vld [vmem:[#allocation31_spill] sm:$0xff] }
 0x2c9   :  { %18077 = vst [vmem:[#allocation63_spill] sm:$0xff] %v13451_v33  ;;  %v13458_v31 = vsel %vm613_vm5, %v18079_v29, %v18078_v55  ;;  %v13465_v35 = vsel %vm613_vm5, %v18082_v34, %v18081_v11  ;;  %v18085_v24 = vmov %v18078_v55  ;;  %v18088_v55 = vmov %v18081_v11  ;;  %v10403_v34 = vld [vmem:[#allocation10 + $0x300] ss:$8 sps:$4 sm:$0xff]  }
 0x2ca   :  { %18080 = vst [vmem:[#allocation36_spill] sm:$0xff] %v13458_v31  ;;  %18083 = vst [vmem:[#allocation39_spill] sm:$0xff] %v13465_v35  ;;  %v13472_v22 = vsel %vm613_vm5, %v18085_v24, %v18084_v23  ;;  %v13479_v29 = vsel %vm613_vm5, %v18088_v55, %v18087_v41  ;;  %v18090_v31 = vrot.slane %v12963_v9, 3  ;;  %v10405_v35 = vld [vmem:[#allocation10 + $0x304] ss:$8 sps:$4 sm:$0xff]   ;;  %v18094_v23 = vmov %v18087_v41 }
 0x2cb   :  { %18086 = vst [vmem:[#allocation41_spill] sm:$0xff] %v13472_v22  ;;  %18089 = vst [vmem:[#allocation43_spill] sm:$0xff] %v13479_v29  ;;  %v13493_v24 = vsel %vm613_vm5, %v18094_v23, %v18093_v57  ;;  %v18096_v6 = vrot.slane %v12973_v38, 3  ;;  %v18099_v53 = vrot.slane %v12977_v39, 3  ;;  %v18103_v51 = vrot.slane %v17875_v8, 3  ;;  %v13514_v23 = vpop.f32.mrf.mxu0  ;;  %6461 = vmatprep.subr.bf16.mxu1 %v10405_v35  ;;  %v18106_v8 = vld [vmem:[#allocation101_spill] sm:$0xff] }
 0x2cc   :  { %v13486_v11 = vsel %vm613_vm5, %v18091_v27, %v18090_v31  ;;  %18095 = vst [vmem:[#allocation45_spill] sm:$0xff] %v13493_v24  ;;  %v18097_v41 = vmov %v18090_v31  ;;  %v18100_v31 = vmov %v18093_v57  ;;  %v18104_v9 = vrot.slane %v17877_v3, 3  ;;  %6462 = vmatpush1.bf16.msra.mxu1 %v10403_v34  ;;  %v10409_v35 = vld [vmem:[#allocation10 + $0x550] ss:$8 sps:$4 sm:$0xff]   ;;  %v10414_v34 = vld [vmem:[#allocation10 + $0x3f4] ss:$8 sps:$4 sm:$0xff]  }
 0x2cd   :  { %18092 = vst [vmem:[#allocation46_spill] sm:$0xff] %v13486_v11  ;;  %v13500_v55 = vsel %vm613_vm5, %v18097_v41, %v18096_v6  ;;  %v13507_v27 = vsel %vm613_vm5, %v18100_v31, %v18099_v53  ;;  %v18102_v11 = vrot.slane %v17876_v4, 3  ;;  %v18105_v38 = vrot.slane %v17874_v13, 3  ;;  %v13521_v54 = vpop.f32.mrf.mxu0  ;;  %v10406_v6 = vld [vmem:[#allocation10 + $0x560] ss:$8 sps:$4 sm:$0xff]   ;;  %v18107_v53 = vld [vmem:[#allocation35_spill] sm:$0xff]  ;;  %v13525_v31 = vpop.f32.mrf.mxu1  ;;  %6463 = vmatprep.subr.bf16.mxu1 %v10414_v34 }
 0x2ce   :  { %18098 = vst [vmem:[#allocation40_spill] sm:$0xff] %v13500_v55  ;;  %18101 = vst [vmem:[#allocation47_spill] sm:$0xff] %v13507_v27  ;;  %v10408_v41 = vld [vmem:[#allocation10 + $0x564] ss:$8 sps:$4 sm:$0xff]   ;;  %v3356_v60 = vrot.slane %v18107_v53, 3  ;;  %v18108_v43 = vrot.slane %v17876_v4, 3 }
 0x2cf   :  { %v3346_v57 = vsel %vm613_vm5, %v18103_v51, %v18102_v11  ;;  %v3353_v39 = vsel %vm613_vm5, %v18105_v38, %v18104_v9  ;;  %v3350_v11 = vrot.slane %v18106_v8, 3  ;;  %6795 = vmatprep.subr.bf16.mxu0 %v10408_v41  ;;  %v13527_v51 = vpop.f32.mrf.mxu0  ;;  %v13529_v13 = vpop.f32.mrf.mxu1  ;;  %v10412_v9 = vld [vmem:[#allocation10 + $0x3f0] ss:$8 sps:$4 sm:$0xff]   ;;  %v10415_v4 = vld [vmem:[#allocation10 + $0x540] ss:$8 sps:$4 sm:$0xff]   ;;  %v3368_v12 = vrot.slane %v18118_v0, 3 }
 0x2d0   :  { %4465 = vmatmul.mubr.bf16.gmra.mxu0 %v3346_v57  ;;  %v10411_v57 = vld [vmem:[#allocation10 + $0x554] ss:$8 sps:$4 sm:$0xff]   ;;  %6464 = vmatpush2.bf16.msra.mxu1 %v10412_v9  ;;  %v10421_v24 = vld [vmem:[#allocation10 + $0x3e0] ss:$8 sps:$4 sm:$0xff]   ;;  %v18119_v0 = vrot.slane %v12629_v37, 3 }
 0x2d1   :  { %4474 = vmatprep.mubr.bf16.mxu0 %v3353_v39  ;;  %6796 = vmatpush1.bf16.msra.mxu0 %v10406_v6  ;;  %v3351_v38 = vsel %vm613_vm5, %v18108_v43, %v3350_v11  ;;  %v18109_v39 = vrot.slane %v17877_v3, 3  ;;  %v13537_v8 = vpop.f32.mrf.mxu1  ;;  %v13539_v53 = vpop.f32.mrf.mxu0  ;;  %v18110_v6 = vld [vmem:[#allocation38_spill] sm:$0xff]  ;;  %v10417_v43 = vld [vmem:[#allocation10 + $0x544] ss:$8 sps:$4 sm:$0xff]  }
 0x2d2   :  { %6797 = vmatprep.subr.bf16.mxu0 %v10411_v57  ;;  %v3354_v27 = vrot.slane %v18110_v6, 3  ;;  %v10423_v3 = vld [vmem:[#allocation10 + $0x3e4] ss:$8 sps:$4 sm:$0xff]   ;;  %v10450_v37 = vld [vmem:[#allocation10 + $0x5d4] ss:$8 sps:$4 sm:$0xff]  }
 0x2d3   :  { %v3357_v41 = vsel %vm613_vm5, %v18109_v39, %v3356_v60  ;;  %v13542_v55 = vpop.f32.mrf.mxu1  ;;  %v18111_v29 = vld [vmem:[#allocation64_spill] sm:$0xff]  ;;  %v13545_v22 = vpop.f32.mrf.mxu0  ;;  %6465 = vmatprep.subr.bf16.mxu1 %v10423_v3  ;;  %v18112_v3 = vld [vmem:[#allocation102_spill] sm:$0xff] }
 0x2d4   :  { %v3360_v39 = vrot.slane %v18111_v29, 3  ;;  %6466 = vmatpush2.bf16.msra.mxu1 %v10421_v24  ;;  %v3358_v33 = vrot.slane %v18112_v3, 3  ;;  %v18114_v24 = vld [vmem:[#allocation104_spill] sm:$0xff] }
 0x2d5   :  { %6798 = vmatpush1.bf16.msra.mxu0 %v10409_v35  ;;  %v13547_v57 = vpop.f32.mrf.mxu1  ;;  %v13549_v34 = vpop.f32.mrf.mxu0  ;;  %v3355_v35 = vsel %vm613_vm5, %v3350_v11, %v3354_v27  ;;  %v3365_v11 = vrot.slane %v18114_v24, 3  ;;  %v18116_v24 = vld [vmem:[#allocation42_spill] sm:$0xff]  ;;  %6467 = vmatprep.subr.bf16.mxu1 %v10432_v21 }
 0x2d6   :  { %6799 = vmatprep.subr.bf16.mxu0 %v10417_v43  ;;  %v3361_v9 = vsel %vm613_vm5, %v3356_v60, %v3360_v39  ;;  %v3359_v60 = vsel %vm613_vm5, %v3354_v27, %v3358_v33  ;;  %v3370_v63 = vrot.slane %v18116_v24, 3  ;;  %v10427_v27 = vld [vmem:[#allocation10 + $0x510] ss:$8 sps:$4 sm:$0xff]   ;;  %v10435_v24 = vld [vmem:[#allocation10 + $0x504] ss:$8 sps:$4 sm:$0xff]  }
 0x2d7   :  { %v13553_v6 = vpop.f32.mrf.mxu1  ;;  %v13557_v43 = vpop.f32.mrf.mxu0 }
 0x2d8   :  { %4475 = vmatmul.mubr.bf16.gmra.mxu0 %v3351_v38  ;;  %v10420_v38 = vld [vmem:[#allocation10 + $0x534] ss:$8 sps:$4 sm:$0xff]  }
 0x2d9   :  { %4484 = vmatprep.mubr.bf16.mxu0 %v3357_v41  ;;  %6800 = vmatpush1.bf16.msra.mxu0 %v10415_v4  ;;  %v10418_v41 = vld [vmem:[#allocation10 + $0x530] ss:$8 sps:$4 sm:$0xff]   ;;  %v13555_v29 = vpop.f32.mrf.mxu1  ;;  %v3366_v4 = vrot.slane %v18113_v7, 3  ;;  %v18115_v7 = vld [vmem:[#allocation32_spill] sm:$0xff] }
 0x2da   :  { %6801 = vmatprep.subr.bf16.mxu0 %v10420_v38  ;;  %v13564_v38 = vpop.f32.mrf.mxu0  ;;  %v3363_v50 = vrot.slane %v18115_v7, 3  ;;  %v10433_v7 = vld [vmem:[#allocation10 + $0x500] ss:$8 sps:$4 sm:$0xff]  }
 0x2db   :  { %v13561_v56 = vpop.f32.mrf.mxu1  ;;  %v3367_v39 = vsel %vm613_vm5, %v3365_v11, %v3366_v4  ;;  %v10429_v11 = vld [vmem:[#allocation10 + $0x514] ss:$8 sps:$4 sm:$0xff]  }
 0x2dd   :  { %6802 = vmatpush1.bf16.msra.mxu0 %v10418_v41  ;;  %v10424_v41 = vld [vmem:[#allocation10 + $0x520] ss:$8 sps:$4 sm:$0xff]  }
 0x2de   :  { %6803 = vmatprep.subr.bf16.mxu0 %v10426_v15 }
 0x2e0   :  { %4485 = vmatmul.mubr.bf16.gmra.mxu0 %v3355_v35  ;;  %v13568_v35 = vpop.f32.mrf.mxu1 }
 0x2e1   :  { %4494 = vmatprep.mubr.bf16.mxu0 %v3361_v9  ;;  %v13570_v9 = vpop.f32.mrf.mxu0  ;;  %6804 = vmatpush1.bf16.msra.mxu0 %v10424_v41  ;;  %v3371_v41 = vsel %vm613_vm5, %v3366_v4, %v3370_v63  ;;  %v3369_v4 = vsel %vm613_vm5, %v3363_v50, %v3368_v12 }
 0x2e2   :  { %v13576_v61 = vpop.f32.mrf.mxu1  ;;  %6805 = vmatprep.subr.bf16.mxu0 %v10429_v11 }
 0x2e3   :  { %v13572_v3 = vpop.f32.mrf.mxu0 }
 0x2e4   :  { %v13582_v47 = vpop.f32.mrf.mxu1 }
 0x2e5   :  { %v13578_v33 = vpop.f32.mrf.mxu0  ;;  %6806 = vmatpush1.bf16.msra.mxu0 %v10427_v27  ;;  %v10441_v27 = vld [vmem:[#allocation10 + $0x3c4] ss:$8 sps:$4 sm:$0xff]  }
 0x2e6   :  { %6807 = vmatprep.subr.bf16.mxu0 %v10435_v24  ;;  %v13588_v26 = vpop.f32.mrf.mxu1 }
 0x2e7   :  { %v13584_v15 = vpop.f32.mrf.mxu0 }
 0x2e8   :  { %4495 = vmatmul.mubr.bf16.gmra.mxu0 %v3359_v60  ;;  %v10430_v60 = vld [vmem:[#allocation10 + $0x3d0] ss:$8 sps:$4 sm:$0xff]  }
 0x2e9   :  { %4504 = vmatprep.mubr.bf16.mxu0 %v3367_v39  ;;  %v3364_v39 = vsel %vm613_vm5, %v3362_v45, %v3363_v50  ;;  %6468 = vmatpush2.bf16.msra.mxu1 %v10430_v60  ;;  %v13590_v11 = vpop.f32.mrf.mxu0  ;;  %v10436_v45 = vld [vmem:[#allocation10 + $0x5f0] ss:$8 sps:$4 sm:$0xff]   ;;  %v13595_v60 = vpop.f32.mrf.mxu1 }
 0x2ea   :  { %6808 = vmatpush1.bf16.msra.mxu0 %v10433_v7  ;;  %6469 = vmatprep.subr.bf16.mxu1 %v10441_v27  ;;  %v10444_v7 = vld [vmem:[#allocation10 + $0x5e4] ss:$8 sps:$4 sm:$0xff]  }
 0x2eb   :  { %v13592_v21 = vpop.f32.mrf.mxu0  ;;  %6809 = vmatprep.subr.bf16.mxu0 %v10438_v49  ;;  %v13602_v49 = vpop.f32.mrf.mxu1 }
 0x2ed   :  { %6470 = vmatpush2.bf16.msra.mxu1 %v10439_v28  ;;  %v13600_v24 = vpop.f32.mrf.mxu0  ;;  %v13609_v27 = vpop.f32.mrf.mxu1 }
 0x2ee   :  { %6810 = vmatpush2.bf16.msra.mxu0 %v10436_v45  ;;  %6471 = vmatprep.subr.bf16.mxu1 %v10447_v16  ;;  %v10448_v45 = vld [vmem:[#allocation10 + $0x5d0] ss:$8 sps:$4 sm:$0xff]  }
 0x2ef   :  { %6811 = vmatprep.subr.bf16.mxu0 %v10444_v7  ;;  %v13604_v50 = vpop.f32.mrf.mxu0  ;;  %v10459_v7 = vld [vmem:[#allocation10 + $0x394] ss:$8 sps:$4 sm:$0xff]  }
 0x2f0   :  { %4505 = vmatmul.mubr.bf16.gmra.mxu0 %v3364_v39  ;;  %v3375_v39 = vsel %vm613_vm5, %v3370_v63, %v18119_v0  ;;  %v18120_v63 = vrot.slane %v12683_v59, 3  ;;  %v10453_v0 = vld [vmem:[#allocation10 + $0x3a4] ss:$8 sps:$4 sm:$0xff]   ;;  %v13614_v59 = vpop.f32.mrf.mxu1 }
 0x2f1   :  { %4514 = vmatprep.mubr.bf16.mxu0 %v3371_v41  ;;  %v10442_v41 = vld [vmem:[#allocation10 + $0x5e0] ss:$8 sps:$4 sm:$0xff]   ;;  %6472 = vmatpush2.bf16.msra.mxu1 %v10445_v62  ;;  %v13612_v16 = vpop.f32.mrf.mxu0 }
 0x2f2   :  { %6812 = vmatpush2.bf16.msra.mxu0 %v10442_v41  ;;  %v3373_v28 = vsel %vm613_vm5, %v3368_v12, %v18120_v63  ;;  %6473 = vmatprep.subr.bf16.mxu1 %v10453_v0  ;;  %v10454_v62 = vld [vmem:[#allocation10 + $0x5c0] ss:$8 sps:$4 sm:$0xff]   ;;  %v10457_v41 = vld [vmem:[#allocation10 + $0x390] ss:$8 sps:$4 sm:$0xff]   ;;  %v10462_v63 = vld [vmem:[#allocation10 + $0x5b4] ss:$8 sps:$4 sm:$0xff]  }
 0x2f3   :  { %6813 = vmatprep.subr.bf16.mxu0 %v10450_v37  ;;  %v13616_v12 = vpop.f32.mrf.mxu0 }
 0x2f5   :  { %v13620_v37 = vpop.f32.mrf.mxu0 }
 0x2f6   :  { %6814 = vmatpush2.bf16.msra.mxu0 %v10448_v45  ;;  %v10463_v45 = vld [vmem:[#allocation10 + $0x380] ss:$8 sps:$4 sm:$0xff]  }
 0x2f7   :  { %v13625_v17 = vpop.f32.mrf.mxu0 }
 0x2f8   :  { %4515 = vmatmul.mubr.bf16.gmra.mxu0 %v3369_v4  ;;  %v10451_v4 = vld [vmem:[#allocation10 + $0x3a0] ss:$8 sps:$4 sm:$0xff]  }
 0x2f9   :  { %4524 = vmatprep.mubr.bf16.mxu0 %v3375_v39  ;;  %v10456_v39 = vld [vmem:[#allocation10 + $0x5c4] ss:$8 sps:$4 sm:$0xff]   ;;  %6474 = vmatpush2.bf16.msra.mxu1 %v10451_v4 }
 0x2fa   :  { %6815 = vmatprep.subr.bf16.mxu0 %v10456_v39  ;;  %6475 = vmatprep.subr.bf16.mxu1 %v10459_v7  ;;  %v10465_v4 = vld [vmem:[#allocation10 + $0x384] ss:$8 sps:$4 sm:$0xff]   ;;  %v13632_v7 = vpop.f32.mrf.mxu0 }
 0x2fb   :  { %6816 = vmatpush2.bf16.msra.mxu0 %v10454_v62  ;;  %v10466_v62 = vld [vmem:[#allocation10 + $0x5a0] ss:$8 sps:$4 sm:$0xff]   ;;  %18121 = vst [vmem:[#allocation48_spill] sm:$0xff] %v13632_v7 }
 0x2fc   :  { %6817 = vmatprep.subr.bf16.mxu0 %v10462_v63  ;;  %v10471_v63 = vld [vmem:[#allocation10 + $0x594] ss:$8 sps:$4 sm:$0xff]  }
 0x2fd   :  { %6476 = vmatpush2.bf16.msra.mxu1 %v10457_v41 }
 0x2fe   :  { %6477 = vmatprep.subr.bf16.mxu1 %v10465_v4 }
 0x300   :  { %4525 = vmatmul.mubr.bf16.gmra.mxu0 %v3373_v28  ;;  %v13618_v28 = vpop.f32.mrf.mxu1 }
 0x301   :  { %4534 = vmatprep.mubr.bf16.mxu0 %v13026_v25  ;;  %v10460_v25 = vld [vmem:[#allocation10 + $0x5b0] ss:$8 sps:$4 sm:$0xff]   ;;  %6478 = vmatpush2.bf16.msra.mxu1 %v10463_v45 }
 0x302   :  { %v13622_v0 = vpop.f32.mrf.mxu1  ;;  %6818 = vmatpush2.bf16.msra.mxu0 %v10460_v25 }
 0x303   :  { %6819 = vmatprep.subr.bf16.mxu0 %v10468_v44  ;;  %v10472_v44 = vld [vmem:[#allocation10 + $0x580] ss:$8 sps:$4 sm:$0xff]  }
 0x304   :  { %v13628_v39 = vpop.f32.mrf.mxu1 }
 0x306   :  { %v13630_v41 = vpop.f32.mrf.mxu1  ;;  %6820 = vmatpush2.bf16.msra.mxu0 %v10466_v62 }
 0x307   :  { %6821 = vmatprep.subr.bf16.mxu0 %v10471_v63 }
 0x308   :  { %4535 = vmatmul.mubr.bf16.gmra.mxu0 %v13031_v20  ;;  %v13634_v20 = vpop.f32.mrf.mxu0 }
 0x309   :  { %4544 = vmatprep.mubr.bf16.mxu0 %v13047_v5  ;;  %18122 = vst [vmem:[#allocation103_spill] sm:$0xff] %v13634_v20  ;;  %v13637_v5 = vpop.f32.mrf.mxu1 }
 0x30a   :  { %6822 = vmatpush2.bf16.msra.mxu0 %v10469_v14  ;;  %v13642_v45 = vpop.f32.mrf.mxu0 }
 0x30b   :  { %v13640_v25 = vpop.f32.mrf.mxu1  ;;  %18123 = vst [vmem:[#allocation49_spill] sm:$0xff] %v13642_v45  ;;  %6823 = vmatprep.subr.bf16.mxu0 %v10474_v10  ;;  %v10477_v45 = vld [vmem:[#allocation10 + $0x474] ss:$8 sps:$4 sm:$0xff]  }
 0x30c   :  { %v13648_v63 = vpop.f32.mrf.mxu0  ;;  %6620 = vmatprep.subr.bf16.mxu1 %v10477_v45 }
 0x30d   :  { %v13644_v4 = vpop.f32.mrf.mxu1  ;;  %18124 = vst [vmem:[#allocation68_spill] sm:$0xff] %v13648_v63 }
 0x30e   :  { %6824 = vmatpush2.bf16.msra.mxu0 %v10472_v44 }
 0x30f   :  { %v13646_v62 = vpop.f32.mrf.mxu1 }
 0x310   :  { %4545 = vmatmul.mubr.bf16.gmra.mxu0 %v13050_v48 }
 0x311   :  { %4554 = vmatprep.mubr.bf16.mxu0 %v13053_v42  ;;  %v13652_v48 = vpop.f32.mrf.mxu1  ;;  %v13654_v42 = vpop.f32.mrf.mxu0 }
 0x312   :  { %18125 = vst [vmem:[#allocation50_spill] sm:$0xff] %v13654_v42 }
 0x313   :  { %v13656_v14 = vpop.f32.mrf.mxu1  ;;  %v13658_v20 = vpop.f32.mrf.mxu0 }
 0x314   :  { %18126 = vst [vmem:[#allocation37_spill] sm:$0xff] %v13658_v20 }
 0x315   :  { %v13660_v10 = vpop.f32.mrf.mxu0  ;;  %v13662_v7 = vpop.f32.mrf.mxu1 }
 0x316   :  { %18127 = vst [vmem:[#allocation51_spill] sm:$0xff] %v13660_v10 }
 0x317   :  { %v13664_v44 = vpop.f32.mrf.mxu0 }
 0x318   :  { %4555 = vmatmul.mubr.bf16.gmra.mxu0 %v13057_v32  ;;  %18128 = vst [vmem:[#allocation101_spill] sm:$0xff] %v13664_v44 }
 0x319   :  { %4564 = vmatprep.mubr.bf16.mxu0 %v13060_v52  ;;  %v13668_v32 = vpop.f32.mrf.mxu0  ;;  %v13670_v52 = vpop.f32.mrf.mxu1 }
 0x31a   :  { %18129 = vst [vmem:[#allocation35_spill] sm:$0xff] %v13668_v32  ;;  %18130 = vst [vmem:[#allocation38_spill] sm:$0xff] %v13670_v52 }
 0x31b   :  { %v13672_v42 = vpop.f32.mrf.mxu0  ;;  %v13674_v63 = vpop.f32.mrf.mxu1 }
 0x31c   :  { %18131 = vst [vmem:[#allocation64_spill] sm:$0xff] %v13672_v42  ;;  %18132 = vst [vmem:[#allocation102_spill] sm:$0xff] %v13674_v63 }
 0x31d   :  { %v13677_v10 = vpop.f32.mrf.mxu0  ;;  %v13679_v20 = vpop.f32.mrf.mxu1 }
 0x31e   :  { %18133 = vst [vmem:[#allocation31_spill] sm:$0xff] %v13677_v10  ;;  %18134 = vst [vmem:[#allocation104_spill] sm:$0xff] %v13679_v20 }
 0x31f   :  { %v13681_v44 = vpop.f32.mrf.mxu0 }
 0x320   :  { %4565 = vmatmul.mubr.bf16.gmra.mxu0 %v13063_v2  ;;  %18135 = vst [vmem:[#allocation32_spill] sm:$0xff] %v13681_v44  ;;  %v13683_v2 = vpop.f32.mrf.mxu1 }
 0x321   :  { %4574 = vmatprep.mubr.bf16.mxu0 %v13066_v40  ;;  %18136 = vst [vmem:[#allocation42_spill] sm:$0xff] %v13683_v2  ;;  %v13685_v45 = vpop.f32.mrf.mxu0 }
 0x322   :  { %18137 = vst [vmem:[#allocation30_spill] sm:$0xff] %v13685_v45  ;;  %v13687_v40 = vpop.f32.mrf.mxu1 }
 0x323   :  { %18138 = vst [vmem:[#allocation44_spill] sm:$0xff] %v13687_v40  ;;  %v13689_v32 = vpop.f32.mrf.mxu0 }
 0x324   :  { %18139 = vst [vmem:[#allocation105_spill] sm:$0xff] %v13689_v32  ;;  %v13691_v52 = vpop.f32.mrf.mxu1 }
 0x325   :  { %18140 = vst [vmem:[#allocation106_spill] sm:$0xff] %v13691_v52  ;;  %v13693_v42 = vpop.f32.mrf.mxu0 }
 0x326   :  { %18141 = vst [vmem:[#allocation107_spill] sm:$0xff] %v13693_v42  ;;  %v13695_v63 = vpop.f32.mrf.mxu1 }
 0x327   :  { %18142 = vst [vmem:[#allocation108_spill] sm:$0xff] %v13695_v63 }
 0x328   :  { %4575 = vmatmul.mubr.bf16.gmra.mxu0 %v13071_v58  ;;  %v13697_v58 = vpop.f32.mrf.mxu0  ;;  %v13699_v10 = vpop.f32.mrf.mxu1 }
 0x329   :  { %18143 = vst [vmem:[#allocation109_spill] sm:$0xff] %v13697_v58  ;;  %18144 = vst [vmem:[#allocation110_spill] sm:$0xff] %v13699_v10 }
 0x32a   :  { %v13701_v20 = vpop.f32.mrf.mxu1  ;;  %v13703_v44 = vpop.f32.mrf.mxu0 }
 0x32b   :  { %18145 = vst [vmem:[#allocation111_spill] sm:$0xff] %v13701_v20  ;;  %18146 = vst [vmem:[#allocation112_spill] sm:$0xff] %v13703_v44 }
 0x32c   :  { %v13705_v2 = vpop.f32.mrf.mxu0  ;;  %v13707_v45 = vpop.f32.mrf.mxu1 }
 0x32d   :  { %18147 = vst [vmem:[#allocation113_spill] sm:$0xff] %v13705_v2  ;;  %18148 = vst [vmem:[#allocation114_spill] sm:$0xff] %v13707_v45 }
 0x32e   :  { %v13709_v40 = vpop.f32.mrf.mxu1  ;;  %v13711_v32 = vpop.f32.mrf.mxu0 }
 0x32f   :  { %18149 = vst [vmem:[#allocation115_spill] sm:$0xff] %v13709_v40  ;;  %18150 = vst [vmem:[#allocation116_spill] sm:$0xff] %v13711_v32 }
 0x330   :  { %v13713_v52 = vpop.f32.mrf.mxu1  ;;  %v13717_v63 = vpop.f32.mrf.mxu0 }
 0x331   :  { %18151 = vst [vmem:[#allocation117_spill] sm:$0xff] %v13713_v52  ;;  %18153 = vst [vmem:[#allocation119_spill] sm:$0xff] %v13717_v63 }
 0x332   :  { %v13715_v42 = vpop.f32.mrf.mxu1  ;;  %v13719_v58 = vpop.f32.mrf.mxu0 }
 0x333   :  { %18152 = vst [vmem:[#allocation118_spill] sm:$0xff] %v13715_v42  ;;  %18154 = vst [vmem:[#allocation120_spill] sm:$0xff] %v13719_v58 }
 0x334   :  { %v13721_v10 = vpop.f32.mrf.mxu1  ;;  %v13723_v20 = vpop.f32.mrf.mxu0 }
 0x335   :  { %18155 = vst [vmem:[#allocation121_spill] sm:$0xff] %v13721_v10  ;;  %18156 = vst [vmem:[#allocation122_spill] sm:$0xff] %v13723_v20 }
 0x336   :  { %v13725_v44 = vpop.f32.mrf.mxu1  ;;  %v13727_v2 = vpop.f32.mrf.mxu0 }
 0x337   :  { %18157 = vst [vmem:[#allocation123_spill] sm:$0xff] %v13725_v44  ;;  %18158 = vst [vmem:[#allocation124_spill] sm:$0xff] %v13727_v2 }
 0x338   :  { %v13729_v45 = vpop.f32.mrf.mxu0  ;;  %v13731_v40 = vpop.f32.mrf.mxu1 }
 0x339   :  { %18159 = vst [vmem:[#allocation125_spill] sm:$0xff] %v13729_v45  ;;  %18160 = vst [vmem:[#allocation126_spill] sm:$0xff] %v13731_v40 }
 0x33a   :  { %v13733_v32 = vpop.f32.mrf.mxu0  ;;  %v13735_v52 = vpop.f32.mrf.mxu1 }
 0x33b   :  { %18161 = vst [vmem:[#allocation127_spill] sm:$0xff] %v13733_v32  ;;  %18162 = vst [vmem:[#allocation128_spill] sm:$0xff] %v13735_v52 }
 0x33c   :  { %v13737_v42 = vpop.f32.mrf.mxu0  ;;  %v13739_v63 = vpop.f32.mrf.mxu1 }
 0x33d   :  { %18163 = vst [vmem:[#allocation129_spill] sm:$0xff] %v13737_v42  ;;  %18164 = vst [vmem:[#allocation130_spill] sm:$0xff] %v13739_v63 }
 0x33e   :  { %v13741_v58 = vpop.f32.mrf.mxu0  ;;  %v13743_v10 = vpop.f32.mrf.mxu1 }
 0x33f   :  { %18165 = vst [vmem:[#allocation131_spill] sm:$0xff] %v13741_v58  ;;  %18166 = vst [vmem:[#allocation132_spill] sm:$0xff] %v13743_v10 }
 0x340   :  { %v13745_v20 = vpop.f32.mrf.mxu0  ;;  %v13747_v44 = vpop.f32.mrf.mxu1 }
 0x341   :  { %18167 = vst [vmem:[#allocation133_spill] sm:$0xff] %v13745_v20 }
 0x342   :  { %v13749_v2 = vpop.f32.mrf.mxu0  ;;  %v13753_v40 = vpop.f32.mrf.mxu1 }
 0x343   :  { %18168 = vst [vmem:[#allocation134_spill] sm:$0xff] %v13749_v2  ;;  %18170 = vst [vmem:[#allocation136_spill] sm:$0xff] %v13753_v40  ;;  %v4234_v2 = vadd.f32 %v13525_v31, %v13034_v1  ;;  %v18179_v40 = vld [vmem:[#allocation82_spill] sm:$0xff]  ;;  %v13787_v1 = vadd.f32 %v13553_v6, %v13222_v19  ;;  %v13809_v19 = vadd.f32 %v13582_v47, %v13527_v51 }
 0x344   :  { %v13751_v45 = vpop.f32.mrf.mxu0 }
 0x345   :  { %18169 = vst [vmem:[#allocation135_spill] sm:$0xff] %v13751_v45  ;;  %v13757_v52 = vpop.f32.mrf.mxu1 }
 0x346   :  { %v13755_v32 = vpop.f32.mrf.mxu0  ;;  %18172 = vst [vmem:[#allocation138_spill] sm:$0xff] %v13757_v52  ;;  %v4238_v52 = vadd.f32 %v13537_v8, %v13068_v30  ;;  %v13795_v30 = vadd.f32 %v13561_v56, %v13408_v18  ;;  %v13817_v18 = vadd.f32 %v13595_v60, %v13545_v22  ;;  %v13839_v22 = vadd.f32 %v13614_v59, %v13564_v38 }
 0x347   :  { %18171 = vst [vmem:[#allocation137_spill] sm:$0xff] %v13755_v32  ;;  %v13761_v63 = vpop.f32.mrf.mxu1  ;;  %v4236_v32 = vadd.f32 %v13529_v13, %v13044_v46  ;;  %v13791_v46 = vadd.f32 %v13555_v29, %v13322_v36  ;;  %v13805_v13 = vadd.f32 %v13576_v61, %v13521_v54  ;;  %v13813_v36 = vadd.f32 %v13588_v26, %v13539_v53  ;;  %v18180_v54 = vld [vmem:[#allocation59_spill] sm:$0xff]  ;;  %v18181_v26 = vld [vmem:[#allocation60_spill] sm:$0xff] }
 0x348   :  { %v13759_v42 = vpop.f32.mrf.mxu0  ;;  %18174 = vst [vmem:[#allocation140_spill] sm:$0xff] %v13761_v63  ;;  %v13827_v61 = vadd.f32 %v13609_v27, %v13557_v43  ;;  %v13843_v53 = vadd.f32 %v13618_v28, %v13570_v9  ;;  %v13855_v29 = vadd.f32 %v13630_v41, %v13584_v15  ;;  %v13859_v43 = vadd.f32 %v13637_v5, %v13590_v11  ;;  %v18186_v41 = vld [vmem:[#allocation103_spill] sm:$0xff]  ;;  %v18188_v5 = vld [vmem:[#allocation49_spill] sm:$0xff] }
 0x349   :  { %18173 = vst [vmem:[#allocation139_spill] sm:$0xff] %v13759_v42  ;;  %v13765_v10 = vpop.f32.mrf.mxu1  ;;  %v18178_v42 = vld [vmem:[#allocation55_spill] sm:$0xff]  ;;  %v13863_v38 = vadd.f32 %v13640_v25, %v13592_v21  ;;  %v13877_v15 = vadd.f32 %v13652_v48, %v13612_v16  ;;  %v13881_v11 = vadd.f32 %v13656_v14, %v13616_v12  ;;  %v13885_v60 = vadd.f32 %v13662_v7, %v13620_v37  ;;  %v18185_v16 = vld [vmem:[#allocation102_spill] sm:$0xff]  ;;  %v18187_v12 = vld [vmem:[#allocation104_spill] sm:$0xff] }
 0x34a   :  { %v13763_v58 = vpop.f32.mrf.mxu0  ;;  %18176 = vst [vmem:[#allocation142_spill] sm:$0xff] %v13765_v10  ;;  %v4240_v63 = vadd.f32 %v13542_v55, %v18178_v42  ;;  %v13799_v55 = vadd.f32 %v13568_v35, %v13514_v23  ;;  %v13823_v23 = vadd.f32 %v13602_v49, %v13549_v34  ;;  %v13851_v34 = vadd.f32 %v13628_v39, %v13578_v33  ;;  %v18189_v25 = vld [vmem:[#allocation42_spill] sm:$0xff]  ;;  %v18190_v7 = vld [vmem:[#allocation68_spill] sm:$0xff] }
 0x34b   :  { %18175 = vst [vmem:[#allocation141_spill] sm:$0xff] %v13763_v58  ;;  %v13771_v45 = vpop.f32.mrf.mxu1  ;;  %v13781_v58 = vadd.f32 %v13547_v57, %v18179_v40  ;;  %v13847_v57 = vadd.f32 %v13622_v0, %v13572_v3  ;;  %v13869_v3 = vadd.f32 %v13644_v4, %v13600_v24  ;;  %v13873_v33 = vadd.f32 %v13646_v62, %v13604_v50  ;;  %v18182_v24 = vld [vmem:[#allocation38_spill] sm:$0xff]  ;;  %v18183_v50 = vld [vmem:[#allocation69_spill] sm:$0xff]  ;;  %v18184_v0 = vld [vmem:[#allocation48_spill] sm:$0xff] }
 0x34c   :  { %v13767_v20 = vpop.f32.mrf.mxu0  ;;  %v13889_v49 = vadd.f32 %v18182_v24, %v13625_v17  ;;  %v13894_v39 = vadd.f32 %v18185_v16, %v18184_v0  ;;  %v13902_v37 = vadd.f32 %v18189_v25, %v18188_v5  ;;  %v18191_v4 = vld [vmem:[#allocation44_spill] sm:$0xff]  ;;  %v18193_v48 = vld [vmem:[#allocation50_spill] sm:$0xff]  ;;  %v18206_v25 = vld [vmem:[#allocation35_spill] sm:$0xff] }
 0x34d   :  { %18177 = vst [vmem:[#allocation143_spill] sm:$0xff] %v13767_v20  ;;  %v6967_v20 = vld [vmem:[#allocation12 + $0x1] ss:$4 sm:$0x3]  ;;  %v13801_v31 = vpop.f32.mrf.mxu1  ;;  %v13906_v17 = vadd.f32 %v18191_v4, %v18190_v7  ;;  %v18194_v42 = vld [vmem:[#allocation106_spill] sm:$0xff] }
 0x34e   :  { %v13783_v10 = vpop.f32.mrf.mxu0  ;;  %v13832_v51 = vrot.slane %v6967_v20, %v18180_v54  ;;  %v13835_v8 = vrot.slane %v6967_v20, %v18181_v26  ;;  %v13898_v20 = vadd.f32 %v18187_v12, %v18186_v41  ;;  %v13910_v14 = vadd.f32 %v18194_v42, %v18193_v48  ;;  %v18201_v0 = vld [vmem:[#allocation110_spill] sm:$0xff]  ;;  %v18203_v41 = vld [vmem:[#allocation101_spill] sm:$0xff]  ;;  %v18204_v12 = vld [vmem:[#allocation111_spill] sm:$0xff] }
 0x34f   :  { %v13829_v47 = vpop.f32.mrf.mxu1  ;;  %18192 = vst [vmem:[#allocation55_spill] sm:$0xff] %v13906_v17  ;;  %v13923_v5 = vadd.f32 %v18204_v12, %v18203_v41  ;;  %v18207_v7 = vld [vmem:[#allocation114_spill] sm:$0xff]  ;;  %v18209_v48 = vld [vmem:[#allocation64_spill] sm:$0xff]  ;;  %v18210_v42 = vld [vmem:[#allocation115_spill] sm:$0xff] }
 0x350   :  { %v13819_v56 = vpop.f32.mrf.mxu0  ;;  %18195 = vst [vmem:[#allocation82_spill] sm:$0xff] %v13910_v14  ;;  %v13927_v4 = vadd.f32 %v18207_v7, %v18206_v25  ;;  %v18212_v26 = vld [vmem:[#allocation31_spill] sm:$0xff]  ;;  %v18219_v41 = vld [vmem:[#allocation121_spill] sm:$0xff]  ;;  %v18248_v14 = vld [vmem:[#allocation124_spill] sm:$0xff] }
 0x351   :  { %v13865_v35 = vpop.f32.mrf.mxu1  ;;  %18205 = vst [vmem:[#allocation48_spill] sm:$0xff] %v13923_v5  ;;  %v18221_v54 = vld [vmem:[#allocation105_spill] sm:$0xff]  ;;  %v18222_v25 = vld [vmem:[#allocation123_spill] sm:$0xff] }
 0x352   :  { %v4426_v6 = vpop.f32.mrf.mxu0  ;;  %18208 = vst [vmem:[#allocation102_spill] sm:$0xff] %v13927_v4  ;;  %v13947_v7 = vadd.f32 %v18222_v25, %v18221_v54  ;;  %v18234_v54 = vld [vmem:[#allocation113_spill] sm:$0xff]  ;;  %v18235_v25 = vld [vmem:[#allocation132_spill] sm:$0xff] }
 0x353   :  { %v4427_v9 = vadd.f32 %v4426_v6, %v4234_v2  ;;  %v4369_v27 = vpop.f32.mrf.mxu1  ;;  %v18197_v2 = vld [vmem:[#allocation108_spill] sm:$0xff]  ;;  %v18250_v17 = vld [vmem:[#allocation125_spill] sm:$0xff] }
 0x354   :  { %v4428_v21 = vpop.f32.mrf.mxu0  ;;  %18223 = vst [vmem:[#allocation68_spill] sm:$0xff] %v13947_v7  ;;  %v13964_v7 = vadd.f32 %v18235_v25, %v18234_v54  ;;  %v18245_v25 = vld [vmem:[#allocation53_spill] sm:$0xff] }
 0x355   :  { %v4942_v59 = vadd.f32 %v18183_v50, %v4427_v9  ;;  %v4429_v28 = vadd.f32 %v4428_v21, %v4236_v32  ;;  %v18196_v32 = vld [vmem:[#allocation37_spill] sm:$0xff]  ;;  %v4373_v6 = vpop.f32.mrf.mxu1  ;;  %v18200_v50 = vld [vmem:[#allocation51_spill] sm:$0xff] }
 0x356   :  { %v4430_v62 = vpop.f32.mrf.mxu0  ;;  %v13914_v40 = vadd.f32 %v18197_v2, %v18196_v32  ;;  %v18199_v9 = vld [vmem:[#allocation57_spill] sm:$0xff]  ;;  %v13919_v16 = vadd.f32 %v18201_v0, %v18200_v50  ;;  %v13931_v32 = vadd.f32 %v18210_v42, %v18209_v48  ;;  %v18218_v0 = vld [vmem:[#allocation30_spill] sm:$0xff]  ;;  %v18224_v48 = vld [vmem:[#allocation107_spill] sm:$0xff]  ;;  %18236 = vst [vmem:[#allocation37_spill] sm:$0xff] %v13964_v7 }
 0x357   :  { %v4943_v21 = vadd.f32 %v18199_v9, %v4429_v28  ;;  %v4431_v24 = vadd.f32 %v4430_v62, %v4238_v52  ;;  %v18213_v28 = vld [vmem:[#allocation117_spill] sm:$0xff]  ;;  %v18215_v62 = vld [vmem:[#allocation32_spill] sm:$0xff]  ;;  %v18216_v9 = vld [vmem:[#allocation118_spill] sm:$0xff]  ;;  %v13943_v12 = vadd.f32 %v18219_v41, %v18218_v0  ;;  %v4375_v4 = vpop.f32.mrf.mxu1  ;;  %v5006_v5 = vmul.f32 0.1, %v4942_v59 }
 0x358   :  { %18198 = vst [vmem:[#allocation38_spill] sm:$0xff] %v13914_v40  ;;  %18202 = vst [vmem:[#allocation69_spill] sm:$0xff] %v13919_v16  ;;  %v4432_v2 = vpop.f32.mrf.mxu0  ;;  %v13935_v52 = vadd.f32 %v18213_v28, %v18212_v26  ;;  %v13939_v50 = vadd.f32 %v18216_v9, %v18215_v62  ;;  %v18225_v42 = vld [vmem:[#allocation126_spill] sm:$0xff]  ;;  %v18227_v26 = vld [vmem:[#allocation52_spill] sm:$0xff] }
 0x359   :  { %18211 = vst [vmem:[#allocation103_spill] sm:$0xff] %v13931_v32  ;;  %18220 = vst [vmem:[#allocation42_spill] sm:$0xff] %v13943_v12  ;;  %v13951_v32 = vadd.f32 %v18225_v42, %v18224_v48  ;;  %v4944_v28 = vadd.f32 %v18227_v26, %v4431_v24  ;;  %v18228_v62 = vld [vmem:[#allocation109_spill] sm:$0xff]  ;;  %v18229_v9 = vld [vmem:[#allocation128_spill] sm:$0xff]  ;;  %v4377_v26 = vpop.f32.mrf.mxu1  ;;  %v5007_v54 = vmul.f32 0.1, %v4943_v21 }
 0x35a   :  { %18214 = vst [vmem:[#allocation104_spill] sm:$0xff] %v13935_v52  ;;  %18217 = vst [vmem:[#allocation49_spill] sm:$0xff] %v13939_v50  ;;  %v4433_v52 = vadd.f32 %v4432_v2, %v4240_v63  ;;  %v4436_v16 = vpop.f32.mrf.mxu0  ;;  %v13956_v50 = vadd.f32 %v18229_v9, %v18228_v62  ;;  %v18231_v0 = vld [vmem:[#allocation112_spill] sm:$0xff]  ;;  %v18232_v41 = vld [vmem:[#allocation130_spill] sm:$0xff] }
 0x35b   :  { %18226 = vst [vmem:[#allocation44_spill] sm:$0xff] %v13951_v32  ;;  %v13960_v12 = vadd.f32 %v18232_v41, %v18231_v0  ;;  %v4437_v48 = vadd.f32 %v4436_v16, %v13781_v58  ;;  %v18237_v42 = vld [vmem:[#allocation116_spill] sm:$0xff]  ;;  %v18239_v63 = vld [vmem:[#allocation119_spill] sm:$0xff]  ;;  %v5008_v62 = vmul.f32 0.1, %v4944_v28  ;;  %v18242_v9 = vld [vmem:[#allocation58_spill] sm:$0xff] }
 0x35c   :  { %18230 = vst [vmem:[#allocation50_spill] sm:$0xff] %v13956_v50  ;;  %v13969_v32 = vadd.f32 %v13747_v44, %v18237_v42  ;;  %v18240_v24 = vld [vmem:[#allocation136_spill] sm:$0xff]  ;;  %v4945_v50 = vadd.f32 %v18242_v9, %v4433_v52  ;;  %v4438_v0 = vpop.f32.mrf.mxu0  ;;  %v18246_v44 = vld [vmem:[#allocation122_spill] sm:$0xff] }
 0x35d   :  { %18233 = vst [vmem:[#allocation106_spill] sm:$0xff] %v13960_v12  ;;  %v13973_v2 = vadd.f32 %v18240_v24, %v18239_v63  ;;  %v18243_v41 = vld [vmem:[#allocation120_spill] sm:$0xff]  ;;  %v18244_v12 = vld [vmem:[#allocation138_spill] sm:$0xff]  ;;  %v4946_v58 = vadd.f32 %v18245_v25, %v4437_v48  ;;  %v4439_v16 = vadd.f32 %v4438_v0, %v13787_v1  ;;  %v5070_v63 = vmax.f32 %v4942_v59, %v5006_v5  ;;  %v18253_v1 = vld [vmem:[#allocation71_spill] sm:$0xff]  ;;  %v4379_v25 = vpop.f32.mrf.mxu1 }
 0x35e   :  { %18238 = vst [vmem:[#allocation108_spill] sm:$0xff] %v13969_v32  ;;  %v13978_v40 = vadd.f32 %v18244_v12, %v18243_v41  ;;  %v18247_v42 = vld [vmem:[#allocation140_spill] sm:$0xff]  ;;  %v5072_v24 = vmax.f32 %v4944_v28, %v5008_v62  ;;  %v4440_v7 = vpop.f32.mrf.mxu0  ;;  %v18249_v52 = vld [vmem:[#allocation142_spill] sm:$0xff]  ;;  %v13992_v12 = vadd.f32 %v13771_v45, %v18250_v17  ;;  %v18251_v41 = vld [vmem:[#allocation127_spill] sm:$0xff]  ;;  %v14002_v5 = vadd.f32 %v13832_v51, %v4942_v59 }
 0x35f   :  { %18241 = vst [vmem:[#allocation57_spill] sm:$0xff] %v13973_v2  ;;  %v13984_v32 = vadd.f32 %v18247_v42, %v18246_v44  ;;  %v5009_v2 = vmul.f32 0.1, %v4945_v50  ;;  %v13988_v9 = vadd.f32 %v18249_v52, %v18248_v14  ;;  %v13996_v48 = vadd.f32 %v13801_v31, %v18251_v41  ;;  %v18255_v52 = vld [vmem:[#allocation129_spill] sm:$0xff]  ;;  %v18257_v17 = vld [vmem:[#allocation131_spill] sm:$0xff] }
 0x360   :  { %v13999_v0 = vadd.f32 %v18253_v1, %v4439_v16  ;;  %18254 = vst [vmem:[#allocation110_spill] sm:$0xff] %v14002_v5  ;;  %v14004_v62 = vpack.c.bf16 %v5072_v24, %v5070_v63  ;;  %v4441_v14 = vadd.f32 %v4440_v7, %v13791_v46  ;;  %v4442_v42 = vpop.f32.mrf.mxu0  ;;  %v14009_v45 = vadd.f32 %v13829_v47, %v18255_v52  ;;  %v18259_v16 = vld [vmem:[#allocation133_spill] sm:$0xff] }
 0x361   :  { %18252 = vst [vmem:[#allocation51_spill] sm:$0xff] %v13996_v48  ;;  %v5073_v44 = vmax.f32 %v4945_v50, %v5009_v2  ;;  %v14013_v31 = vadd.f32 %v13865_v35, %v18257_v17  ;;  %v14016_v41 = vadd.f32 %v4369_v27, %v18259_v16  ;;  %v5071_v59 = vmax.f32 %v4943_v21, %v5007_v54  ;;  %v18262_v2 = vld [vmem:[#allocation54_spill] sm:$0xff] }
 0x362   :  { %18256 = vst [vmem:[#allocation101_spill] sm:$0xff] %v14009_v45  ;;  %v14019_v63 = vadd.f32 %v13835_v8, %v4943_v21  ;;  %v5010_v24 = vmul.f32 0.1, %v4946_v58  ;;  %v4948_v1 = vadd.f32 %v18262_v2, %v4441_v14  ;;  %v4443_v46 = vadd.f32 %v4442_v42, %v13795_v30  ;;  %v4446_v7 = vpop.f32.mrf.mxu0  ;;  %v18263_v48 = vld [vmem:[#allocation134_spill] sm:$0xff]  ;;  %v4383_v14 = vpop.f32.mrf.mxu1 }
 0x363   :  { %18258 = vst [vmem:[#allocation111_spill] sm:$0xff] %v14013_v31  ;;  %18260 = vst [vmem:[#allocation35_spill] sm:$0xff] %v14016_v41  ;;  %v14024_v47 = vadd.f32 %v4373_v6, %v18263_v48  ;;  %v14027_v52 = vadd.f32 %v13832_v51, %v4944_v28  ;;  %v4447_v35 = vadd.f32 %v4446_v7, %v13799_v55  ;;  %v10475_v54 = vld [vmem:[#allocation10 + $0x470] ss:$8 sps:$4 sm:$0xff]   ;;  %v10480_v48 = vld [vmem:[#allocation10 + $0x464] ss:$8 sps:$4 sm:$0xff]  }
 0x364   :  { %18261 = vst [vmem:[#allocation114_spill] sm:$0xff] %v14019_v63  ;;  %v14030_v27 = vpack.c.bf16 %v5073_v44, %v5071_v59  ;;  %v14034_v17 = vadd.f32 %v13835_v8, %v4945_v50  ;;  %v14037_v30 = vadd.f32 %v13832_v51, %v4946_v58  ;;  %v5012_v42 = vmul.f32 0.1, %v4948_v1  ;;  %v4448_v6 = vpop.f32.mrf.mxu0  ;;  %v18268_v16 = vld [vmem:[#allocation62_spill] sm:$0xff]  ;;  %v18269_v55 = vld [vmem:[#allocation72_spill] sm:$0xff]  ;;  %v18270_v50 = vld [vmem:[#allocation135_spill] sm:$0xff] }
 0x365   :  { %18264 = vst [vmem:[#allocation64_spill] sm:$0xff] %v14024_v47  ;;  %18265 = vst [vmem:[#allocation115_spill] sm:$0xff] %v14027_v52  ;;  %v5011_v28 = vmul.f32 0.1, %v13999_v0  ;;  %v4949_v2 = vadd.f32 %v18268_v16, %v4443_v46  ;;  %v14042_v44 = vadd.f32 %v18269_v55, %v4447_v35  ;;  %v4449_v59 = vadd.f32 %v4448_v6, %v13805_v13  ;;  %v18271_v31 = vld [vmem:[#allocation137_spill] sm:$0xff]  ;;  %v18272_v35 = vld [vmem:[#allocation139_spill] sm:$0xff] }
 0x366   :  { %18266 = vst [vmem:[#allocation31_spill] sm:$0xff] %v14034_v17  ;;  %18267 = vst [vmem:[#allocation117_spill] sm:$0xff] %v14037_v30  ;;  %6479 = vmatprep.mubr.bf16.mxu1 %v14030_v27  ;;  %v14047_v7 = vadd.f32 %v4375_v4, %v18270_v50  ;;  %v5074_v5 = vmax.f32 %v4946_v58, %v5010_v24  ;;  %v5076_v47 = vmax.f32 %v4948_v1, %v5012_v42  ;;  %v4450_v41 = vpop.f32.mrf.mxu0  ;;  %v10478_v13 = vld [vmem:[#allocation10 + $0x460] ss:$8 sps:$4 sm:$0xff]   ;;  %v4385_v50 = vpop.f32.mrf.mxu1 }
 0x367   :  { %6480 = vmatmul.mubr.bf16.vlgmr.msra.gmra.mxu1 %v14004_v62  ;;  %v14052_v45 = vadd.f32 %v4377_v26, %v18271_v31  ;;  %v14056_v16 = vadd.f32 %v4379_v25, %v18272_v35  ;;  %v5013_v55 = vmul.f32 0.1, %v4949_v2  ;;  %v18273_v4 = vld [vmem:[#allocation141_spill] sm:$0xff]  ;;  %v4451_v42 = vadd.f32 %v4450_v41, %v13809_v19  ;;  %v10483_v31 = vld [vmem:[#allocation10 + $0x454] ss:$8 sps:$4 sm:$0xff]  }
 0x368   :  { %6621 = vmatpush1.bf16.msra.mxu1 %v10475_v54  ;;  %v14059_v6 = vadd.f32 %v4383_v14, %v18273_v4  ;;  %v18274_v58 = vld [vmem:[#allocation61_spill] sm:$0xff]  ;;  %v4452_v21 = vpop.f32.mrf.mxu0  ;;  %v14065_v26 = vpack.c.bf16 %v5076_v47, %v5074_v5  ;;  %v5075_v54 = vmax.f32 %v13999_v0, %v5011_v28  ;;  %v14072_v14 = vadd.f32 %v13835_v8, %v13999_v0  ;;  %v18277_v47 = vld [vmem:[#allocation143_spill] sm:$0xff]  ;;  %v4387_v25 = vpop.f32.mrf.mxu1 }
 0x369   :  { %v14062_v24 = vadd.f32 %v18274_v58, %v4449_v59  ;;  %6622 = vmatprep.subr.bf16.mxu1 %v10480_v48  ;;  %v5077_v46 = vmax.f32 %v4949_v2, %v5013_v55  ;;  %v5014_v59 = vmul.f32 0.1, %v14042_v44  ;;  %v18276_v4 = vld [vmem:[#allocation73_spill] sm:$0xff]  ;;  %v4453_v5 = vadd.f32 %v4452_v21, %v13813_v36  ;;  %v10481_v0 = vld [vmem:[#allocation10 + $0x450] ss:$8 sps:$4 sm:$0xff]  }
 0x36a   :  { %18275 = vst [vmem:[#allocation32_spill] sm:$0xff] %v14072_v14  ;;  %v14076_v19 = vadd.f32 %v18276_v4, %v4451_v42  ;;  %v4456_v41 = vpop.f32.mrf.mxu0  ;;  %v14080_v48 = vadd.f32 %v4385_v50, %v18277_v47  ;;  %v5478_v28 = vrot.slane %v14004_v62, 3  ;;  %v10486_v55 = vld [vmem:[#allocation10 + $0x444] ss:$8 sps:$4 sm:$0xff]   ;;  %v14087_v30 = vadd.f32 %v13832_v51, %v4948_v1  ;;  %v10489_v14 = vld [vmem:[#allocation10 + $0x434] ss:$8 sps:$4 sm:$0xff]  }
 0x36b   :  { %v4457_v58 = vadd.f32 %v4456_v41, %v13817_v18  ;;  %v14083_v35 = vpack.c.bf16 %v5077_v46, %v5075_v54  ;;  %v5015_v42 = vmul.f32 0.1, %v14062_v24  ;;  %v18279_v18 = vld [vmem:[#allocation83_spill] sm:$0xff]  ;;  %v5078_v47 = vmax.f32 %v14042_v44, %v5014_v59  ;;  %v10484_v59 = vld [vmem:[#allocation10 + $0x440] ss:$8 sps:$4 sm:$0xff]  }
 0x36c   :  { %6623 = vmatpush1.bf16.msra.mxu1 %v10478_v13  ;;  %18278 = vst [vmem:[#allocation118_spill] sm:$0xff] %v14087_v30  ;;  %v5016_v36 = vmul.f32 0.1, %v14076_v19  ;;  %v4458_v21 = vpop.f32.mrf.mxu0  ;;  %v4953_v46 = vadd.f32 %v18279_v18, %v4453_v5  ;;  %v18280_v54 = vld [vmem:[#allocation67_spill] sm:$0xff]  ;;  %v14103_v5 = vadd.f32 %v4387_v25, %v13783_v10  ;;  %v4389_v18 = vpop.f32.mrf.mxu1  ;;  %v10522_v30 = vld [vmem:[#allocation10 + $0x484] ss:$8 sps:$4 sm:$0xff]  }
 0x36d   :  { %6624 = vmatprep.subr.bf16.mxu1 %v10483_v31  ;;  %v4954_v4 = vadd.f32 %v18280_v54, %v4457_v58  ;;  %6489 = vmatprep.mubr.bf16.mxu1 %v14083_v35  ;;  %v4459_v13 = vadd.f32 %v4458_v21, %v13823_v23  ;;  %v5482_v41 = vrot.slane %v14083_v35, 3  ;;  %v5481_v31 = vrot.slane %v14030_v27, 3 }
 0x36e   :  { %v5080_v63 = vmax.f32 %v14076_v19, %v5016_v36  ;;  %v4460_v50 = vpop.f32.mrf.mxu0  ;;  %v14106_v58 = vadd.f32 %v13835_v8, %v4949_v2  ;;  %v14110_v23 = vadd.f32 %v13832_v51, %v14042_v44  ;;  %v5017_v21 = vmul.f32 0.1, %v4953_v46  ;;  %v18283_v36 = vld [vmem:[#allocation20_spill] sm:$0xff] }
 0x36f   :  { %6490 = vmatmul.mubr.bf16.gmra.mxu1 %v14065_v26  ;;  %v14113_v54 = vadd.f32 %v18283_v36, %v4459_v13  ;;  %v4461_v1 = vadd.f32 %v4460_v50, %v13827_v61  ;;  %v5483_v10 = vsel %vm613_vm5, %v5481_v31, %v5482_v41  ;;  %v18284_v13 = vrot.slane %v14065_v26, 3  ;;  %v18286_v31 = vld [vmem:[#allocation88_spill] sm:$0xff] }
 0x370   :  { %18281 = vst [vmem:[#allocation30_spill] sm:$0xff] %v14106_v58  ;;  %18282 = vst [vmem:[#allocation121_spill] sm:$0xff] %v14110_v23  ;;  %6625 = vmatpush1.bf16.msra.mxu1 %v10481_v0  ;;  %v4462_v25 = vpop.f32.mrf.mxu0  ;;  %v14119_v2 = vpack.c.bf16 %v5080_v63, %v5078_v47  ;;  %v5079_v0 = vmax.f32 %v14062_v24, %v5015_v42  ;;  %v5081_v17 = vmax.f32 %v4953_v46, %v5017_v21  ;;  %v10495_v21 = vld [vmem:[#allocation10 + $0x414] ss:$8 sps:$4 sm:$0xff]   ;;  %v10493_v23 = vld [vmem:[#allocation10 + $0x410] ss:$8 sps:$4 sm:$0xff]  }
 0x371   :  { %6626 = vmatprep.subr.bf16.mxu1 %v10486_v55  ;;  %6825 = vmatprep.mubr.bf16.mxu0 %v5483_v10  ;;  %v5480_v36 = vsel %vm613_vm5, %v5478_v28, %v18284_v13  ;;  %v14128_v61 = vadd.f32 %v13835_v8, %v14062_v24  ;;  %v5018_v50 = vmul.f32 0.1, %v4954_v4  ;;  %v14131_v63 = vadd.f32 %v18286_v31, %v4461_v1  ;;  %v10487_v24 = vld [vmem:[#allocation10 + $0x430] ss:$8 sps:$4 sm:$0xff]   ;;  %v10492_v13 = vld [vmem:[#allocation10 + $0x424] ss:$8 sps:$4 sm:$0xff]  }
 0x372   :  { %6826 = vmatmul.mubr.bf16.vlgmr.msra.gmra.mxu0 %v5480_v36  ;;  %v4463_v55 = vadd.f32 %v4462_v25, %v13839_v22  ;;  %v14135_v42 = vadd.f32 %v4389_v18, %v13819_v56  ;;  %v14139_v28 = vpack.c.bf16 %v5081_v17, %v5079_v0  ;;  %v5019_v1 = vmul.f32 0.1, %v14113_v54  ;;  %v18287_v56 = vld [vmem:[#allocation21_spill] sm:$0xff]  ;;  %v18288_v31 = vld [vmem:[#allocation91_spill] sm:$0xff] }
 0x373   :  { %18285 = vst [vmem:[#allocation105_spill] sm:$0xff] %v14128_v61  ;;  %v5020_v36 = vmul.f32 0.1, %v14131_v63  ;;  %v14159_v44 = vmax.f32 %v4954_v4, %v5018_v50 }
 0x374   :  { %6627 = vmatpush1.bf16.msra.mxu1 %v10484_v59  ;;  %v14146_v18 = vadd.f32 %v18287_v56, %v4463_v55  ;;  %6499 = vmatprep.mubr.bf16.mxu1 %v14139_v28  ;;  %v17465_v59 = vrot.slane %v14139_v28, 3  ;;  %v14182_v25 = vmax.f32 %v14113_v54, %v5019_v1 }
 0x375   :  { %6628 = vmatprep.subr.bf16.mxu1 %v10489_v14  ;;  %v5084_v14 = vmax.f32 %v14131_v63, %v5020_v36 }
 0x377   :  { %6500 = vmatmul.mubr.bf16.gmra.mxu1 %v14119_v2  ;;  %v14172_v50 = vpack.c.bf16 %v5084_v14, %v14159_v44 }
 0x378   :  { %6629 = vmatpush1.bf16.msra.mxu1 %v10487_v24 }
 0x379   :  { %18292 = vst [vmem:[#allocation52_spill] sm:$0xff] %v14172_v50  ;;  %6630 = vmatprep.subr.bf16.mxu1 %v10492_v13  ;;  %v18296_v13 = vld [vmem:[#allocation92_spill] sm:$0xff]  ;;  %v17476_v58 = vrot.slane %v14172_v50, 3 }
 0x390   :  { %v4466_v47 = vpop.f32.mrf.mxu0 }
 0x391   :  { %v4467_v10 = vadd.f32 %v4466_v47, %v13843_v53  ;;  %v14157_v47 = vadd.f32 %v13832_v51, %v14076_v19  ;;  %v10490_v19 = vld [vmem:[#allocation10 + $0x420] ss:$8 sps:$4 sm:$0xff]  }
 0x392   :  { %v4468_v22 = vpop.f32.mrf.mxu0  ;;  %6631 = vmatpush1.bf16.msra.mxu1 %v10490_v19 }
 0x393   :  { %v14149_v53 = vadd.f32 %v18288_v31, %v4467_v10  ;;  %v4469_v17 = vadd.f32 %v4468_v22, %v13847_v57  ;;  %18289 = vst [vmem:[#allocation123_spill] sm:$0xff] %v14157_v47  ;;  %v14164_v10 = vadd.f32 %v13835_v8, %v4953_v46  ;;  %v14167_v57 = vadd.f32 %v13832_v51, %v4954_v4  ;;  %v18293_v31 = vld [vmem:[#allocation70_spill] sm:$0xff] }
 0x394   :  { %v4470_v55 = vpop.f32.mrf.mxu0  ;;  %v5021_v22 = vmul.f32 0.1, %v14146_v18  ;;  %v5487_v46 = vsel %vm613_vm5, %v5482_v41, %v17465_v59  ;;  %6632 = vmatprep.subr.bf16.mxu1 %v10495_v21  ;;  %v18302_v21 = vld [vmem:[#allocation96_spill] sm:$0xff] }
 0x395   :  { %18290 = vst [vmem:[#allocation107_spill] sm:$0xff] %v14164_v10  ;;  %18291 = vst [vmem:[#allocation126_spill] sm:$0xff] %v14167_v57  ;;  %v5022_v56 = vmul.f32 0.1, %v14149_v53  ;;  %v4959_v36 = vadd.f32 %v18293_v31, %v4469_v17  ;;  %v4471_v0 = vadd.f32 %v4470_v55, %v13851_v34  ;;  %6835 = vmatprep.mubr.bf16.mxu0 %v5487_v46  ;;  %v18294_v34 = vrot.slane %v14119_v2, 3 }
 0x396   :  { %v4472_v4 = vpop.f32.mrf.mxu0  ;;  %v5085_v24 = vmax.f32 %v14146_v18, %v5021_v22  ;;  %v18295_v17 = vrot.slane %v14065_v26, 3  ;;  %6633 = vmatpush1.bf16.msra.mxu1 %v10493_v23  ;;  %v14241_v23 = vadd.f32 %v13832_v51, %v14149_v53 }
 0x397   :  { %v14186_v14 = vmax.f32 %v14149_v53, %v5022_v56  ;;  %v5023_v31 = vmul.f32 0.1, %v4959_v36  ;;  %v4960_v59 = vadd.f32 %v18296_v13, %v4471_v0  ;;  %v4473_v1 = vadd.f32 %v4472_v4, %v13855_v29  ;;  %v18299_v4 = vld [vmem:[#allocation95_spill] sm:$0xff]  ;;  %v10498_v13 = vld [vmem:[#allocation10 + $0x404] ss:$8 sps:$4 sm:$0xff]  }
 0x398   :  { %v5485_v55 = vsel %vm613_vm5, %v18295_v17, %v18294_v34  ;;  %v4476_v61 = vpop.f32.mrf.mxu0  ;;  %v14197_v22 = vpack.c.bf16 %v5085_v24, %v14182_v25  ;;  %v5184_v34 = vshrl.u32 %v14030_v27, 16  ;;  %v14206_v0 = vadd.f32 %v13835_v8, %v14113_v54  ;;  %6634 = vmatprep.subr.bf16.mxu1 %v10498_v13  ;;  %18307 = vst [vmem:[#allocation116_spill] sm:$0xff] %v14241_v23  ;;  %v10513_v23 = vld [vmem:[#allocation10 + $0x4b4] ss:$8 sps:$4 sm:$0xff]  }
 0x399   :  { %6836 = vmatmul.mubr.bf16.gmra.mxu0 %v5485_v55  ;;  %v4477_v56 = vadd.f32 %v4476_v61, %v13859_v43  ;;  %v9987_v46 = vpack.c.bf16 %v14186_v14, %v14159_v44  ;;  %v5024_v29 = vmul.f32 0.1, %v4960_v59  ;;  %v4961_v55 = vadd.f32 %v18299_v4, %v4473_v1  ;;  %v18300_v61 = vld [vmem:[#allocation22_spill] sm:$0xff] }
 0x39a   :  { %18297 = vst [vmem:[#allocation109_spill] sm:$0xff] %v14197_v22  ;;  %18298 = vst [vmem:[#allocation128_spill] sm:$0xff] %v14206_v0  ;;  %v4478_v24 = vpop.f32.mrf.mxu0  ;;  %v17477_v41 = vrot.slane %v14197_v22, 3  ;;  %v5087_v54 = vmax.f32 %v4959_v36, %v5023_v31  ;;  %v14218_v1 = vadd.f32 %v13832_v51, %v14131_v63  ;;  %v18305_v63 = vrot.slane %v14139_v28, 3 }
 0x39b   :  { %v14211_v44 = vadd.f32 %v18300_v61, %v4477_v56  ;;  %v4479_v19 = vadd.f32 %v4478_v24, %v13863_v38  ;;  %v5088_v17 = vmax.f32 %v4960_v59, %v5024_v29  ;;  %v5025_v10 = vmul.f32 0.1, %v4961_v55  ;;  %v10496_v61 = vld [vmem:[#allocation10 + $0x400] ss:$8 sps:$4 sm:$0xff]  }
 0x39c   :  { %v4480_v47 = vpop.f32.mrf.mxu0  ;;  %18301 = vst [vmem:[#allocation112_spill] sm:$0xff] %v14218_v1  ;;  %v14224_v38 = vrot.slane %v5184_v34, 1  ;;  %v5491_v43 = vsel %vm613_vm5, %v18305_v63, %v17477_v41  ;;  %v9988_v13 = vpack.c.bf16 %v5087_v54, %v14182_v25  ;;  %6635 = vmatpush1.bf16.msra.mxu1 %v10496_v61  ;;  %v14263_v25 = vadd.f32 %v13835_v8, %v4961_v55  ;;  %v10502_v1 = vld [vmem:[#allocation10 + $0x4e0] ss:$8 sps:$4 sm:$0xff]  }
 0x39d   :  { %v14221_v4 = vadd.f32 %v18302_v21, %v4479_v19  ;;  %v4481_v56 = vadd.f32 %v4480_v47, %v13869_v3  ;;  %v14228_v24 = vpack.c.bf16 %v5088_v17, %v14186_v14  ;;  %v5089_v31 = vmax.f32 %v4961_v55, %v5025_v10  ;;  %v10501_v21 = vld [vmem:[#allocation10 + $0x4f4] ss:$8 sps:$4 sm:$0xff]   ;;  %6845 = vmatprep.mubr.bf16.mxu0 %v5491_v43  ;;  %v18317_v55 = vld [vmem:[#allocation76_spill] sm:$0xff] }
 0x39e   :  { %18303 = vst [vmem:[#allocation130_spill] sm:$0xff] %v14224_v38  ;;  %v4482_v19 = vpop.f32.mrf.mxu0  ;;  %v14237_v3 = vadd.f32 %v13835_v8, %v14146_v18  ;;  %v14244_v47 = vadd.f32 %v13835_v8, %v4959_v36  ;;  %v5026_v10 = vmul.f32 0.1, %v14211_v44  ;;  %v18309_v14 = vld [vmem:[#allocation99_spill] sm:$0xff]  ;;  %v18311_v18 = vrot.slane %v14119_v2, 3  ;;  %18313 = vst [vmem:[#allocation120_spill] sm:$0xff] %v14263_v25  ;;  %6509 = vmatprep.mubr.bf16.mxu1 %v9988_v13 }
 0x39f   :  { %18304 = vst [vmem:[#allocation113_spill] sm:$0xff] %v14228_v24  ;;  %v4964_v34 = vadd.f32 %v18309_v14, %v4481_v56  ;;  %v14248_v17 = vpack.c.bf16 %v5089_v31, %v5087_v54  ;;  %v14258_v36 = vadd.f32 %v13832_v51, %v4960_v59  ;;  %v4483_v43 = vadd.f32 %v4482_v19, %v13873_v33  ;;  %v10499_v31 = vld [vmem:[#allocation10 + $0x4f0] ss:$8 sps:$4 sm:$0xff]  }
 0x3a0   :  { %18306 = vst [vmem:[#allocation132_spill] sm:$0xff] %v14237_v3  ;;  %18308 = vst [vmem:[#allocation119_spill] sm:$0xff] %v14244_v47  ;;  %v5489_v63 = vsel %vm613_vm5, %v18311_v18, %v17476_v58  ;;  %v4486_v53 = vpop.f32.mrf.mxu0  ;;  %v14267_v54 = vadd.f32 %v13832_v51, %v14211_v44  ;;  %v5027_v14 = vmul.f32 0.1, %v14221_v4  ;;  %6636 = vmatprep.subr.bf16.mxu1 %v10501_v21  ;;  %6510 = vmatmul.mubr.bf16.gmra.mxu1 %v9987_v46 }
 0x3a1   :  { %18310 = vst [vmem:[#allocation136_spill] sm:$0xff] %v14248_v17  ;;  %18312 = vst [vmem:[#allocation58_spill] sm:$0xff] %v14258_v36  ;;  %6846 = vmatmul.mubr.bf16.gmra.mxu0 %v5489_v63  ;;  %v4487_v56 = vadd.f32 %v4486_v53, %v13877_v15  ;;  %v5028_v18 = vmul.f32 0.1, %v4964_v34  ;;  %v10504_v63 = vld [vmem:[#allocation10 + $0x4e4] ss:$8 sps:$4 sm:$0xff]   ;;  %v14272_v33 = vadd.f32 %v13835_v8, %v14221_v4  ;;  %6637 = vmatpush2.bf16.msra.mxu1 %v10499_v31 }
 0x3a2   :  { %18314 = vst [vmem:[#allocation138_spill] sm:$0xff] %v14267_v54  ;;  %v4488_v59 = vpop.f32.mrf.mxu0  ;;  %v18316_v15 = vld [vmem:[#allocation65_spill] sm:$0xff]  ;;  %v5090_v58 = vmax.f32 %v14211_v44, %v5026_v10  ;;  %v5187_v21 = vshll.u32 %v14030_v27, 16  ;;  %6638 = vmatprep.subr.bf16.mxu1 %v10504_v63  ;;  %v10507_v27 = vld [vmem:[#allocation10 + $0x4d4] ss:$8 sps:$4 sm:$0xff]   ;;  %v14294_v31 = vadd.f32 %v13832_v51, %v4964_v34 }
 0x3a3   :  { %18315 = vst [vmem:[#allocation53_spill] sm:$0xff] %v14272_v33  ;;  %v4965_v61 = vadd.f32 %v18316_v15, %v4483_v43  ;;  %v4966_v19 = vadd.f32 %v18317_v55, %v4487_v56  ;;  %v4489_v53 = vadd.f32 %v4488_v59, %v13881_v11  ;;  %v5092_v41 = vmax.f32 %v4964_v34, %v5028_v18  ;;  %v18319_v59 = vld [vmem:[#allocation74_spill] sm:$0xff] }
 0x3a4   :  { %v4490_v13 = vpop.f32.mrf.mxu0  ;;  %v5091_v55 = vmax.f32 %v14221_v4, %v5027_v14  ;;  %18320 = vst [vmem:[#allocation140_spill] sm:$0xff] %v14294_v31  ;;  %v5582_v4 = vunpack.c.h.b16 %v14228_v24  ;;  %v10505_v14 = vld [vmem:[#allocation10 + $0x4d0] ss:$8 sps:$4 sm:$0xff]   ;;  %v14319_v54 = vrot.slane %v5187_v21, 2  ;;  %v10508_v21 = vld [vmem:[#allocation10 + $0x4c0] ss:$8 sps:$4 sm:$0xff]  }
 0x3a5   :  { %v5029_v46 = vmul.f32 0.1, %v4965_v61  ;;  %v14284_v11 = vpack.c.bf16 %v5092_v41, %v5090_v58  ;;  %v14287_v15 = vadd.f32 %v18319_v59, %v4489_v53  ;;  %v4491_v44 = vadd.f32 %v4490_v13, %v13885_v60  ;;  %v18321_v41 = vld [vmem:[#allocation77_spill] sm:$0xff]  ;;  %6639 = vmatpush2.bf16.msra.mxu1 %v10502_v1 }
 0x3a6   :  { %v4492_v10 = vpop.f32.mrf.mxu0  ;;  %v5030_v58 = vmul.f32 0.1, %v4966_v19  ;;  %v5583_v59 = vunpack.c.h.b16 %v14248_v17  ;;  %6640 = vmatprep.subr.bf16.mxu1 %v10507_v27  ;;  %v14316_v18 = vadd.f32 %v13835_v8, %v4965_v61  ;;  %18326 = vst [vmem:[#allocation125_spill] sm:$0xff] %v14319_v54  ;;  %v14322_v27 = vadd.f32 %v13832_v51, %v4966_v19 }
 0x3a7   :  { %18318 = vst [vmem:[#allocation122_spill] sm:$0xff] %v14284_v11  ;;  %v5093_v0 = vmax.f32 %v4965_v61, %v5029_v46  ;;  %v14297_v56 = vadd.f32 %v18321_v41, %v4491_v44  ;;  %v4493_v53 = vadd.f32 %v4492_v10, %v13889_v49  ;;  %v10510_v46 = vld [vmem:[#allocation10 + $0x4c4] ss:$8 sps:$4 sm:$0xff]   ;;  %v5031_v34 = vmul.f32 0.1, %v14287_v15 }
 0x3a8   :  { %v4496_v60 = vpop.f32.mrf.mxu0  ;;  %v5588_v41 = vunpack.c.l.b16 %v14284_v11  ;;  %v5495_v49 = vrot.slane %v14248_v17, 3  ;;  %18325 = vst [vmem:[#allocation142_spill] sm:$0xff] %v14316_v18  ;;  %v5094_v43 = vmax.f32 %v4966_v19, %v5030_v58  ;;  %18327 = vst [vmem:[#allocation127_spill] sm:$0xff] %v14322_v27 }
 0x3a9   :  { %v14300_v13 = vpack.c.bf16 %v5093_v0, %v5091_v55  ;;  %v4497_v63 = vadd.f32 %v4496_v60, %v13894_v39  ;;  %v5032_v57 = vmul.f32 0.1, %v14297_v56  ;;  %v18323_v0 = vld [vmem:[#allocation78_spill] sm:$0xff]  ;;  %v18324_v39 = vld [vmem:[#allocation79_spill] sm:$0xff]  ;;  %6641 = vmatpush2.bf16.msra.mxu1 %v10505_v14  ;;  %v5095_v19 = vmax.f32 %v14287_v15, %v5031_v34 }
 0x3aa   :  { %v4498_v44 = vpop.f32.mrf.mxu0  ;;  %v4969_v10 = vadd.f32 %v18323_v0, %v4493_v53  ;;  %v17491_v0 = vrot.slane %v14284_v11, 3  ;;  %6642 = vmatprep.subr.bf16.mxu1 %v10510_v46  ;;  %v5823_v25 = vpack.c.b16 %v5588_v41, %v5582_v4  ;;  %v18334_v41 = vld [vmem:[#allocation82_spill] sm:$0xff] }
 0x3ab   :  { %18322 = vst [vmem:[#allocation124_spill] sm:$0xff] %v14300_v13  ;;  %v14311_v55 = vadd.f32 %v18324_v39, %v4497_v63  ;;  %v4499_v60 = vadd.f32 %v4498_v44, %v13898_v20  ;;  %v5589_v1 = vunpack.c.l.b16 %v14300_v13  ;;  %v5096_v29 = vmax.f32 %v14297_v56, %v5032_v57  ;;  %v18329_v44 = vld [vmem:[#allocation81_spill] sm:$0xff] }
 0x3ac   :  { %v4500_v33 = vpop.f32.mrf.mxu0  ;;  %v5033_v53 = vmul.f32 0.1, %v4969_v10  ;;  %v5492_v63 = vrot.slane %v14228_v24, 3  ;;  %v18333_v46 = vrot.slane %v14300_v13, 3 }
 0x3ad   :  { %v14326_v20 = vpack.c.bf16 %v5096_v29, %v5094_v43  ;;  %v14329_v61 = vadd.f32 %v18329_v44, %v4499_v60  ;;  %v4501_v58 = vadd.f32 %v4500_v33, %v13902_v37  ;;  %v5824_v57 = vpack.c.b16 %v5589_v1, %v5583_v59  ;;  %v18330_v43 = vld [vmem:[#allocation66_spill] sm:$0xff]  ;;  %v18331_v44 = vld [vmem:[#allocation55_spill] sm:$0xff]  ;;  %6643 = vmatpush2.bf16.msra.mxu1 %v10508_v21 }
 0x3ae   :  { %v4502_v39 = vpop.f32.mrf.mxu0  ;;  %v5097_v47 = vmax.f32 %v4969_v10, %v5033_v53  ;;  %v5034_v29 = vmul.f32 0.1, %v14311_v55  ;;  %v14343_v4 = vsel %vm613_vm5, %v5495_v49, %v18333_v46  ;;  %v14348_v34 = vsel %vm613_vm5, %v5492_v63, %v17491_v0  ;;  %6644 = vmatprep.subr.bf16.mxu1 %v10513_v23 }
 0x3af   :  { %18328 = vst [vmem:[#allocation71_spill] sm:$0xff] %v14326_v20  ;;  %v4972_v60 = vadd.f32 %v18330_v43, %v4501_v58  ;;  %6519 = vmatprep.mubr.bf16.mxu1 %v5824_v57  ;;  %v4503_v37 = vadd.f32 %v4502_v39, %v18331_v44  ;;  %v5035_v49 = vmul.f32 0.1, %v14329_v61  ;;  %v18336_v63 = vrot.slane %v14197_v22, 3  ;;  %v18339_v39 = vld [vmem:[#allocation38_spill] sm:$0xff]  ;;  %v18370_v22 = vld [vmem:[#allocation44_spill] sm:$0xff] }
 0x3b0   :  { %v4506_v33 = vpop.f32.mrf.mxu0  ;;  %v14338_v59 = vpack.c.bf16 %v5097_v47, %v5095_v19  ;;  %6520 = vmatmul.mubr.bf16.gmra.mxu1 %v5823_v25  ;;  %v10511_v25 = vld [vmem:[#allocation10 + $0x4b0] ss:$8 sps:$4 sm:$0xff]   ;;  %v5098_v58 = vmax.f32 %v14311_v55, %v5034_v29  ;;  %v18338_v53 = vrot.slane %v14172_v50, 3  ;;  %v14377_v23 = vadd.f32 %v13835_v8, %v4969_v10 }
 0x3b1   :  { %v4507_v1 = vadd.f32 %v4506_v33, %v18334_v41  ;;  %v5036_v57 = vmul.f32 0.1, %v4972_v60  ;;  %v18335_v19 = vld [vmem:[#allocation75_spill] sm:$0xff]  ;;  %v9788_v44 = vcombine.low %v18336_v63, %v14343_v4  ;;  %v18337_v33 = vld [vmem:[#allocation84_spill] sm:$0xff]  ;;  %6645 = vmatpush2.bf16.msra.mxu1 %v10511_v25  ;;  %v5099_v10 = vmax.f32 %v14329_v61, %v5035_v49 }
 0x3b2   :  { %18332 = vst [vmem:[#allocation129_spill] sm:$0xff] %v14338_v59  ;;  %v4508_v47 = vpop.f32.mrf.mxu0  ;;  %v4973_v43 = vadd.f32 %v18335_v19, %v4503_v37  ;;  %v10516_v41 = vld [vmem:[#allocation10 + $0x4a4] ss:$8 sps:$4 sm:$0xff]   ;;  %v9787_v14 = vcombine.low %v18338_v53, %v14348_v34  ;;  %v14370_v37 = vadd.f32 %v13835_v8, %v14287_v15  ;;  %18342 = vst [vmem:[#allocation54_spill] sm:$0xff] %v14377_v23  ;;  %v18344_v53 = vld [vmem:[#allocation18_spill] sm:$0xff]  ;;  %v5601_v15 = vunpack.c.l.b16 %v14338_v59 }
 0x3b3   :  { %v14361_v46 = vadd.f32 %v18337_v33, %v4507_v1  ;;  %v5100_v21 = vmax.f32 %v4972_v60, %v5036_v57  ;;  %v4509_v0 = vadd.f32 %v4508_v47, %v18339_v39  ;;  %v14374_v1 = vadd.f32 %v13832_v51, %v14297_v56  ;;  %6855 = vmatprep.mubr.bf16.mxu0 %v9788_v44  ;;  %v18345_v47 = vld [vmem:[#allocation69_spill] sm:$0xff] }
 0x3b4   :  { %v4510_v27 = vpop.f32.mrf.mxu0  ;;  %18340 = vst [vmem:[#allocation131_spill] sm:$0xff] %v14370_v37  ;;  %v5037_v29 = vmul.f32 0.1, %v4973_v43  ;;  %6856 = vmatmul.mubr.bf16.gmra.mxu0 %v9787_v14  ;;  %v10514_v33 = vld [vmem:[#allocation10 + $0x4a0] ss:$8 sps:$4 sm:$0xff]   ;;  %v14388_v56 = vadd.f32 %v13832_v51, %v14311_v55  ;;  %6646 = vmatprep.subr.bf16.mxu1 %v10516_v41  ;;  %v14400_v25 = vadd.f32 %v13835_v8, %v4973_v43  ;;  %v5600_v31 = vunpack.c.l.b16 %v14326_v20 }
 0x3b5   :  { %18341 = vst [vmem:[#allocation133_spill] sm:$0xff] %v14374_v1  ;;  %v14379_v57 = vpack.c.bf16 %v5100_v21, %v5098_v58  ;;  %v14382_v19 = vadd.f32 %v18344_v53, %v4509_v0  ;;  %v4511_v39 = vadd.f32 %v4510_v27, %v18345_v47  ;;  %v5595_v58 = vunpack.c.h.b16 %v14300_v13  ;;  %v10519_v14 = vld [vmem:[#allocation10 + $0x494] ss:$8 sps:$4 sm:$0xff]   ;;  %v18352_v47 = vld [vmem:[#allocation48_spill] sm:$0xff]  ;;  %6647 = vmatpush2.bf16.msra.mxu1 %v10514_v33 }
 0x3b6   :  { %v4512_v63 = vpop.f32.mrf.mxu0  ;;  %18346 = vst [vmem:[#allocation62_spill] sm:$0xff] %v14388_v56  ;;  %v5101_v44 = vmax.f32 %v4973_v43, %v5037_v29  ;;  %v14394_v0 = vadd.f32 %v13835_v8, %v14329_v61  ;;  %v14397_v27 = vadd.f32 %v13832_v51, %v4972_v60  ;;  %18349 = vst [vmem:[#allocation137_spill] sm:$0xff] %v14400_v25  ;;  %v14403_v55 = vmul.f32 0.1, %v14361_v46  ;;  %v18351_v29 = vld [vmem:[#allocation85_spill] sm:$0xff]  ;;  %v18360_v25 = vld [vmem:[#allocation104_spill] sm:$0xff] }
 0x3b7   :  { %18343 = vst [vmem:[#allocation134_spill] sm:$0xff] %v14379_v57  ;;  %v14408_v53 = vadd.f32 %v18351_v29, %v4511_v39  ;;  %v5830_v41 = vpack.c.b16 %v5601_v15, %v5595_v58  ;;  %v4513_v18 = vadd.f32 %v4512_v63, %v18352_v47  ;;  %v14414_v60 = vadd.f32 %v13832_v51, %v14361_v46  ;;  %v18354_v63 = vld [vmem:[#allocation102_spill] sm:$0xff]  ;;  %v18361_v1 = vld [vmem:[#allocation24_spill] sm:$0xff] }
 0x3b8   :  { %18347 = vst [vmem:[#allocation72_spill] sm:$0xff] %v14394_v0  ;;  %18348 = vst [vmem:[#allocation135_spill] sm:$0xff] %v14397_v27  ;;  %v4516_v21 = vpop.f32.mrf.mxu0  ;;  %v14405_v49 = vpack.c.bf16 %v5101_v44, %v5099_v10  ;;  %v5594_v43 = vunpack.c.h.b16 %v14284_v11  ;;  %v10517_v58 = vld [vmem:[#allocation10 + $0x490] ss:$8 sps:$4 sm:$0xff]   ;;  %6648 = vmatprep.subr.bf16.mxu1 %v10519_v14  ;;  %v5500_v37 = vrot.slane %v14338_v59, 3  ;;  %v17508_v3 = vrot.slane %v14326_v20, 3 }
 0x3b9   :  { %18353 = vst [vmem:[#allocation141_spill] sm:$0xff] %v14414_v60  ;;  %6529 = vmatprep.mubr.bf16.mxu1 %v5830_v41  ;;  %v4517_v44 = vadd.f32 %v4516_v21, %v18354_v63  ;;  %v18355_v29 = vld [vmem:[#allocation86_spill] sm:$0xff]  ;;  %v5039_v10 = vmul.f32 0.1, %v14382_v19  ;;  %v5587_v14 = vunpack.c.h.b16 %v14343_v4  ;;  %6649 = vmatpush2.bf16.msra.mxu1 %v10517_v58  ;;  %v18359_v21 = vld [vmem:[#allocation103_spill] sm:$0xff]  ;;  %v5607_v4 = vunpack.c.h.b16 %v14338_v59 }
 0x3ba   :  { %18350 = vst [vmem:[#allocation139_spill] sm:$0xff] %v14405_v49  ;;  %v4518_v36 = vpop.f32.mrf.mxu0  ;;  %v14423_v47 = vadd.f32 %v18355_v29, %v4513_v18  ;;  %v5829_v61 = vpack.c.b16 %v5600_v31, %v5594_v43  ;;  %v18356_v18 = vld [vmem:[#allocation80_spill] sm:$0xff]  ;;  %v18357_v43 = vrot.slane %v14300_v13, 3  ;;  %v18358_v29 = vrot.slane %v14284_v11, 3  ;;  %6650 = vmatprep.subr.bf16.mxu1 %v10522_v30  ;;  %v18362_v11 = vld [vmem:[#allocation87_spill] sm:$0xff] }
 0x3bb   :  { %v14434_v31 = vadd.f32 %v18356_v18, %v4517_v44  ;;  %v10520_v18 = vld [vmem:[#allocation10 + $0x480] ss:$8 sps:$4 sm:$0xff]   ;;  %v4519_v60 = vadd.f32 %v4518_v36, %v18359_v21  ;;  %v5613_v56 = vunpack.c.l.b16 %v14405_v49  ;;  %v5040_v58 = vmul.f32 0.1, %v14408_v53 }
 0x3bc   :  { %v4520_v33 = vpop.f32.mrf.mxu0  ;;  %6530 = vmatmul.mubr.bf16.gmra.mxu1 %v5829_v61  ;;  %v5501_v63 = vsel %vm613_vm5, %v18357_v43, %v5500_v37  ;;  %v14444_v39 = vsel %vm613_vm5, %v18358_v29, %v17508_v3  ;;  %v5041_v15 = vmul.f32 0.1, %v14423_v47  ;;  %v5586_v43 = vunpack.c.h.b16 %v14348_v34 }
 0x3bd   :  { %v5593_v61 = vunpack.c.l.b16 %v5501_v63  ;;  %v5592_v44 = vunpack.c.l.b16 %v14444_v39  ;;  %v4521_v27 = vadd.f32 %v4520_v33, %v18360_v25  ;;  %v4979_v52 = vadd.f32 %v18361_v1, %v4519_v60  ;;  %v18363_v33 = vld [vmem:[#allocation49_spill] sm:$0xff]  ;;  %6651 = vmatpush2.bf16.msra.mxu1 %v10520_v18 }
 0x3be   :  { %v4522_v41 = vpop.f32.mrf.mxu0  ;;  %v5836_v25 = vpack.c.b16 %v5613_v56, %v5607_v4  ;;  %v5606_v21 = vunpack.c.h.b16 %v14326_v20  ;;  %v5103_v3 = vmax.f32 %v14382_v19, %v5039_v10  ;;  %v14468_v1 = vadd.f32 %v13835_v8, %v14382_v19  ;;  %v18364_v56 = vld [vmem:[#allocation19_spill] sm:$0xff] }
 0x3bf   :  { %v5828_v0 = vpack.c.b16 %v5593_v61, %v5587_v14  ;;  %v5827_v23 = vpack.c.b16 %v5592_v44, %v5586_v43  ;;  %v14459_v34 = vadd.f32 %v18362_v11, %v4521_v27  ;;  %v4523_v30 = vadd.f32 %v4522_v41, %v18363_v33  ;;  %v18365_v41 = vld [vmem:[#allocation42_spill] sm:$0xff] }
 0x3c0   :  { %v4526_v29 = vpop.f32.mrf.mxu0  ;;  %v5612_v14 = vunpack.c.l.b16 %v14379_v57  ;;  %v5105_v11 = vmax.f32 %v14423_v47, %v5041_v15  ;;  %6539 = vmatprep.mubr.bf16.mxu1 %v5836_v25  ;;  %v5504_v18 = vrot.slane %v14405_v49, 3  ;;  %v5104_v43 = vmax.f32 %v14408_v53, %v5040_v58 }
 0x3c1   :  { %6865 = vmatprep.mubr.bf16.mxu0 %v5828_v0  ;;  %v14472_v27 = vadd.f32 %v18364_v56, %v4523_v30  ;;  %v4527_v44 = vadd.f32 %v4526_v29, %v18365_v41  ;;  %v14479_v10 = vadd.f32 %v13832_v51, %v14408_v53  ;;  %v14483_v19 = vadd.f32 %v13835_v8, %v14423_v47  ;;  %v18366_v29 = vld [vmem:[#allocation89_spill] sm:$0xff] }
 0x3c2   :  { %v4528_v36 = vpop.f32.mrf.mxu0  ;;  %6866 = vmatmul.mubr.bf16.gmra.mxu0 %v5827_v23  ;;  %v5835_v60 = vpack.c.b16 %v5612_v14, %v5606_v21  ;;  %v14486_v23 = vmul.f32 0.1, %v14434_v31  ;;  %v5043_v4 = vmul.f32 0.1, %v4979_v52  ;;  %v5505_v58 = vsel %vm613_vm5, %v5500_v37, %v5504_v18 }
 0x3c3   :  { %v5045_v25 = vmul.f32 0.1, %v14472_v27  ;;  %v14490_v33 = vadd.f32 %v18366_v29, %v4527_v44  ;;  %v5599_v30 = vunpack.c.h.b16 %v5501_v63  ;;  %v5605_v53 = vunpack.c.l.b16 %v5505_v58  ;;  %v18368_v29 = vld [vmem:[#allocation68_spill] sm:$0xff] }
 0x3c4   :  { %v4530_v0 = vpop.f32.mrf.mxu0  ;;  %6540 = vmatmul.mubr.bf16.gmra.mxu1 %v5835_v60  ;;  %v14493_v21 = vpack.c.bf16 %v5105_v11, %v5103_v3  ;;  %v5502_v47 = vrot.slane %v14379_v57, 3  ;;  %v14498_v56 = vadd.f32 %v13832_v51, %v14434_v31  ;;  %v14501_v41 = vadd.f32 %v13835_v8, %v4979_v52 }
 0x3c5   :  { %v5044_v60 = vmul.f32 0.1, %v14459_v34  ;;  %v5109_v44 = vmax.f32 %v14472_v27, %v5045_v25  ;;  %v14507_v37 = vadd.f32 %v13832_v51, %v14459_v34  ;;  %v5834_v3 = vpack.c.b16 %v5605_v53, %v5599_v30  ;;  %v18369_v25 = vld [vmem:[#allocation93_spill] sm:$0xff]  ;;  %v18371_v53 = vld [vmem:[#allocation50_spill] sm:$0xff] }
 0x3c6   :  { %v4532_v15 = vpop.f32.mrf.mxu0  ;;  %6549 = vmatprep.mubr.bf16.mxu1 %v14493_v21  ;;  %v18367_v63 = vrot.slane %v14326_v20, 3  ;;  %v4529_v61 = vadd.f32 %v4528_v36, %v18368_v29  ;;  %v5107_v49 = vmax.f32 %v4979_v52, %v5043_v4  ;;  %v5598_v59 = vunpack.c.h.b16 %v14444_v39  ;;  %v18373_v52 = vld [vmem:[#allocation106_spill] sm:$0xff] }
 0x3c7   :  { %v5611_v17 = vunpack.c.h.b16 %v5505_v58  ;;  %6875 = vmatprep.mubr.bf16.mxu0 %v5834_v3  ;;  %v5617_v50 = vunpack.c.l.b16 %v5504_v18  ;;  %v4531_v30 = vadd.f32 %v4530_v0, %v18370_v22  ;;  %v4533_v38 = vadd.f32 %v4532_v15, %v18371_v53  ;;  %v18374_v18 = vld [vmem:[#allocation90_spill] sm:$0xff]  ;;  %v18384_v15 = vld [vmem:[#allocation29_spill] sm:$0xff] }
 0x3c8   :  { %v4536_v14 = vpop.f32.mrf.mxu0  ;;  %v5503_v11 = vsel %vm613_vm5, %v18367_v63, %v5502_v47  ;;  %v4983_v13 = vadd.f32 %v18369_v25, %v4529_v61  ;;  %v18372_v63 = vmax.f32 %v14361_v46, %v14403_v55  ;;  %v14524_v39 = vpack.c.bf16 %v5109_v44, %v5107_v49  ;;  %v18375_v0 = vld [vmem:[#allocation94_spill] sm:$0xff] }
 0x3c9   :  { %v5604_v24 = vunpack.c.l.b16 %v5503_v11  ;;  %v4537_v4 = vadd.f32 %v4536_v14, %v18373_v52  ;;  %v5840_v61 = vpack.c.b16 %v5617_v50, %v5611_v17  ;;  %v14528_v29 = vadd.f32 %v18374_v18, %v4531_v30  ;;  %v18381_v18 = vld [vmem:[#allocation108_spill] sm:$0xff] }
 0x3ca   :  { %v4538_v57 = vpop.f32.mrf.mxu0  ;;  %v14521_v36 = vpack.c.bf16 %v5104_v43, %v18372_v63  ;;  %v5047_v3 = vmul.f32 0.1, %v4983_v13  ;;  %v5610_v55 = vunpack.c.h.b16 %v5503_v11  ;;  %v5616_v43 = vunpack.c.l.b16 %v5502_v47 }
 0x3cb   :  { %v5833_v20 = vpack.c.b16 %v5604_v24, %v5598_v59  ;;  %v4985_v24 = vadd.f32 %v18375_v0, %v4533_v38  ;;  %v18376_v59 = vld [vmem:[#allocation23_spill] sm:$0xff]  ;;  %v5106_v50 = vmax.f32 %v14434_v31, %v14486_v23  ;;  %v5108_v14 = vmax.f32 %v14459_v34, %v5044_v60  ;;  %v18379_v23 = vld [vmem:[#allocation37_spill] sm:$0xff] }
 0x3cc   :  { %v4540_v54 = vpop.f32.mrf.mxu0  ;;  %6550 = vmatmul.mubr.bf16.gmra.mxu1 %v14521_v36  ;;  %v4986_v46 = vadd.f32 %v18376_v59, %v4537_v4  ;;  %v14544_v11 = vadd.f32 %v13835_v8, %v14472_v27  ;;  %v5046_v25 = vmul.f32 0.1, %v14490_v33  ;;  %v14549_v31 = vadd.f32 %v13832_v51, %v14490_v33  ;;  %v18380_v4 = vld [vmem:[#allocation97_spill] sm:$0xff] }
 0x3cd   :  { %6876 = vmatmul.mubr.bf16.gmra.mxu0 %v5833_v20  ;;  %6559 = vmatprep.mubr.bf16.mxu1 %v14524_v39  ;;  %v5049_v47 = vmul.f32 0.1, %v4985_v24  ;;  %v4539_v30 = vadd.f32 %v4538_v57, %v18379_v23  ;;  %v5111_v63 = vmax.f32 %v4983_v13, %v5047_v3  ;;  %v5048_v52 = vmul.f32 0.1, %v14528_v29  ;;  %v18382_v38 = vld [vmem:[#allocation57_spill] sm:$0xff] }
 0x3ce   :  { %v4542_v22 = vpop.f32.mrf.mxu0  ;;  %6885 = vmatprep.mubr.bf16.mxu0 %v5840_v61  ;;  %18377 = vst [vmem:[#allocation61_spill] sm:$0xff] %v14544_v11  ;;  %18378 = vst [vmem:[#allocation73_spill] sm:$0xff] %v14549_v31  ;;  %v5839_v60 = vpack.c.b16 %v5616_v43, %v5610_v55  ;;  %v4541_v0 = vadd.f32 %v4540_v54, %v18381_v18  ;;  %v5509_v27 = vrot.slane %v14493_v21, 3  ;;  %v5510_v59 = vrot.slane %v14524_v39, 3  ;;  %v18383_v43 = vld [vmem:[#allocation25_spill] sm:$0xff]  ;;  %v18394_v31 = vld [vmem:[#allocation28_spill] sm:$0xff] }
 0x3cf   :  { %v5113_v34 = vmax.f32 %v4985_v24, %v5049_v47  ;;  %v4987_v61 = vadd.f32 %v18380_v4, %v4539_v30  ;;  %v4543_v17 = vadd.f32 %v4542_v22, %v18382_v38  ;;  %v14558_v58 = vpack.c.bf16 %v5108_v14, %v5106_v50  ;;  %v18385_v50 = vld [vmem:[#allocation27_spill] sm:$0xff] }
 0x3d0   :  { %v4546_v20 = vpop.f32.mrf.mxu0  ;;  %v5050_v55 = vmul.f32 0.1, %v4986_v46  ;;  %v4988_v23 = vadd.f32 %v18383_v43, %v4541_v0  ;;  %v5511_v54 = vsel %vm613_vm5, %v5509_v27, %v5510_v59  ;;  %v5110_v4 = vmax.f32 %v14490_v33, %v5046_v25 }
 0x3d1   :  { %v4547_v57 = vadd.f32 %v4546_v20, %v13978_v40  ;;  %v14561_v3 = vpack.c.bf16 %v5113_v34, %v5111_v63  ;;  %v5051_v18 = vmul.f32 0.1, %v4987_v61  ;;  %v4989_v22 = vadd.f32 %v18384_v15, %v4543_v17 }
 0x3d2   :  { %v4548_v53 = vpop.f32.mrf.mxu0  ;;  %v14572_v38 = vadd.f32 %v13835_v8, %v4983_v13  ;;  %v14576_v14 = vadd.f32 %v13832_v51, %v14528_v29  ;;  %v5052_v63 = vmul.f32 0.1, %v4988_v23  ;;  %v5112_v15 = vmax.f32 %v14528_v29, %v5048_v52  ;;  %v18390_v52 = vld [vmem:[#allocation100_spill] sm:$0xff] }
 0x3d3   :  { %v4990_v40 = vadd.f32 %v18385_v50, %v4547_v57  ;;  %v14581_v17 = vadd.f32 %v13835_v8, %v4985_v24  ;;  %v14584_v25 = vadd.f32 %v13832_v51, %v4986_v46  ;;  %v5053_v34 = vmul.f32 0.1, %v4989_v22 }
 0x3d4   :  { %v4550_v44 = vpop.f32.mrf.mxu0  ;;  %6560 = vmatmul.mubr.bf16.gmra.mxu1 %v14558_v58  ;;  %18386 = vst [vmem:[#allocation143_spill] sm:$0xff] %v14572_v38  ;;  %18387 = vst [vmem:[#allocation83_spill] sm:$0xff] %v14576_v14  ;;  %v14586_v13 = vmax.f32 %v4986_v46, %v5050_v55  ;;  %v5507_v0 = vrot.slane %v14558_v58, 3  ;;  %v4549_v27 = vadd.f32 %v4548_v53, %v13984_v32  ;;  %v5506_v29 = vrot.slane %v14521_v36, 3 }
 0x3d5   :  { %6886 = vmatmul.mubr.bf16.gmra.mxu0 %v5839_v60  ;;  %6569 = vmatprep.mubr.bf16.mxu1 %v14561_v3  ;;  %18388 = vst [vmem:[#allocation67_spill] sm:$0xff] %v14581_v17  ;;  %18389 = vst [vmem:[#allocation20_spill] sm:$0xff] %v14584_v25  ;;  %v5116_v60 = vmax.f32 %v4988_v23, %v5052_v63  ;;  %v14590_v43 = vmax.f32 %v4987_v61, %v5051_v18  ;;  %v5054_v50 = vmul.f32 0.1, %v4990_v40  ;;  %v18402_v17 = vld [vmem:[#allocation33_spill] sm:$0xff]  ;;  %v18404_v25 = vld [vmem:[#allocation63_spill] sm:$0xff] }
 0x3d6   :  { %v4552_v30 = vpop.f32.mrf.mxu0  ;;  %6895 = vmatprep.mubr.bf16.mxu0 %v5511_v54  ;;  %v5117_v54 = vmax.f32 %v4989_v22, %v5053_v34  ;;  %v14597_v20 = vadd.f32 %v18390_v52, %v4549_v27  ;;  %v4551_v46 = vadd.f32 %v4550_v44, %v13988_v9  ;;  %v5514_v55 = vrot.slane %v14561_v3, 3  ;;  %v18391_v34 = vld [vmem:[#allocation51_spill] sm:$0xff]  ;;  %v18393_v52 = vld [vmem:[#allocation26_spill] sm:$0xff] }
 0x3d7   :  { %v14594_v24 = vpack.c.bf16 %v5116_v60, %v14586_v13  ;;  %v4553_v53 = vadd.f32 %v4552_v30, %v13992_v12  ;;  %v14605_v18 = vpack.c.bf16 %v5112_v15, %v5110_v4  ;;  %v14609_v60 = vadd.f32 %v13835_v8, %v4987_v61  ;;  %v18395_v30 = vld [vmem:[#allocation98_spill] sm:$0xff]  ;;  %v18396_v61 = vld [vmem:[#allocation101_spill] sm:$0xff] }
 0x3d8   :  { %v4556_v33 = vpop.f32.mrf.mxu0  ;;  %v14602_v32 = vpack.c.bf16 %v5117_v54, %v14590_v43  ;;  %v5508_v27 = vsel %vm613_vm5, %v5506_v29, %v5507_v0  ;;  %v14613_v49 = vadd.f32 %v18393_v52, %v4551_v46  ;;  %v5515_v9 = vsel %vm613_vm5, %v5510_v59, %v5514_v55  ;;  %v18398_v46 = vld [vmem:[#allocation111_spill] sm:$0xff] }
 0x3d9   :  { %v4557_v47 = vadd.f32 %v4556_v33, %v18391_v34  ;;  %18392 = vst [vmem:[#allocation88_spill] sm:$0xff] %v14609_v60  ;;  %v14618_v12 = vadd.f32 %v18394_v31, %v4553_v53  ;;  %v14627_v29 = vadd.f32 %v13832_v51, %v4988_v23  ;;  %v5118_v53 = vmax.f32 %v4990_v40, %v5054_v50 }
 0x3da   :  { %v4558_v57 = vpop.f32.mrf.mxu0  ;;  %v5056_v59 = vmul.f32 0.1, %v14613_v49  ;;  %v5055_v52 = vmul.f32 0.1, %v14597_v20  ;;  %v5512_v23 = vrot.slane %v14605_v18, 3  ;;  %v14643_v50 = vadd.f32 %v13832_v51, %v4990_v40 }
 0x3db   :  { %v14622_v4 = vadd.f32 %v18395_v30, %v4557_v47  ;;  %v4559_v33 = vadd.f32 %v4558_v57, %v18396_v61  ;;  %18397 = vst [vmem:[#allocation21_spill] sm:$0xff] %v14627_v29  ;;  %v5057_v47 = vmul.f32 0.1, %v14618_v12  ;;  %v14635_v57 = vadd.f32 %v13835_v8, %v4989_v22  ;;  %v18400_v61 = vld [vmem:[#allocation34_spill] sm:$0xff] }
 0x3dc   :  { %v4560_v63 = vpop.f32.mrf.mxu0  ;;  %6570 = vmatmul.mubr.bf16.gmra.mxu1 %v14605_v18  ;;  %v5120_v30 = vmax.f32 %v14613_v49, %v5056_v59  ;;  %18401 = vst [vmem:[#allocation70_spill] sm:$0xff] %v14643_v50  ;;  %v9989_v40 = vpack.c.bf16 %v5118_v53, %v14586_v13 }
 0x3dd   :  { %6896 = vmatmul.mubr.bf16.gmra.mxu0 %v5508_v27  ;;  %v4561_v34 = vadd.f32 %v4560_v63, %v18398_v46  ;;  %18399 = vst [vmem:[#allocation91_spill] sm:$0xff] %v14635_v57  ;;  %v4995_v15 = vadd.f32 %v18400_v61, %v4559_v33  ;;  %v5121_v31 = vmax.f32 %v14618_v12, %v5057_v47  ;;  %v5058_v59 = vmul.f32 0.1, %v14622_v4  ;;  %v18403_v63 = vld [vmem:[#allocation35_spill] sm:$0xff] }
 0x3de   :  { %v4562_v44 = vpop.f32.mrf.mxu0  ;;  %6905 = vmatprep.mubr.bf16.mxu0 %v5515_v9  ;;  %v14647_v22 = vpack.c.bf16 %v5120_v30, %v5118_v53  ;;  %v17555_v33 = vrot.slane %v14602_v32, 3  ;;  %v5119_v61 = vmax.f32 %v14597_v20, %v5055_v52  ;;  %v5513_v47 = vsel %vm613_vm5, %v5507_v0, %v5512_v23  ;;  %v18405_v0 = vld [vmem:[#allocation64_spill] sm:$0xff] }
 0x3df   :  { %v4996_v14 = vadd.f32 %v18402_v17, %v4561_v34  ;;  %v4563_v46 = vadd.f32 %v4562_v44, %v18403_v63  ;;  %v5059_v54 = vmul.f32 0.1, %v4995_v15  ;;  %v5122_v53 = vmax.f32 %v14622_v4, %v5058_v59 }
 0x3e0   :  { %v4566_v27 = vpop.f32.mrf.mxu0  ;;  %v5519_v17 = vsel %vm613_vm5, %v5514_v55, %v17555_v33  ;;  %v14660_v34 = vpack.c.bf16 %v5121_v31, %v5119_v61  ;;  %v9990_v52 = vpack.c.bf16 %v5119_v61, %v14590_v43  ;;  %v5516_v61 = vrot.slane %v14594_v24, 3 }
 0x3e1   :  { %v5060_v30 = vmul.f32 0.1, %v4996_v14  ;;  %v4997_v44 = vadd.f32 %v18404_v25, %v4563_v46  ;;  %v4567_v60 = vadd.f32 %v4566_v27, %v18405_v0  ;;  %v18407_v46 = vld [vmem:[#allocation36_spill] sm:$0xff] }
 0x3e2   :  { %v4568_v9 = vpop.f32.mrf.mxu0  ;;  %6579 = vmatprep.mubr.bf16.mxu1 %v9990_v52  ;;  %v18409_v52 = vld [vmem:[#allocation41_spill] sm:$0xff] }
 0x3e3   :  { %v5124_v63 = vmax.f32 %v4996_v14, %v5060_v30  ;;  %v5061_v55 = vmul.f32 0.1, %v4997_v44  ;;  %v4569_v31 = vadd.f32 %v4568_v9, %v14047_v7  ;;  %v4998_v59 = vadd.f32 %v18407_v46, %v4567_v60 }
 0x3e4   :  { %v4570_v38 = vpop.f32.mrf.mxu0  ;;  %6580 = vmatmul.mubr.bf16.gmra.mxu1 %v9989_v40 }
 0x3e5   :  { %6906 = vmatmul.mubr.bf16.gmra.mxu0 %v5513_v47  ;;  %v14669_v47 = vadd.f32 %v13835_v8, %v14597_v20  ;;  %v4571_v43 = vadd.f32 %v4570_v38, %v14052_v45  ;;  %v14673_v25 = vpack.c.bf16 %v5124_v63, %v5122_v53  ;;  %v5125_v0 = vmax.f32 %v4997_v44, %v5061_v55  ;;  %v18408_v20 = vld [vmem:[#allocation39_spill] sm:$0xff] }
 0x3e6   :  { %v4572_v29 = vpop.f32.mrf.mxu0  ;;  %6915 = vmatprep.mubr.bf16.mxu0 %v5519_v17  ;;  %v5123_v17 = vmax.f32 %v4995_v15, %v5059_v54  ;;  %v4999_v13 = vadd.f32 %v18408_v20, %v4569_v31  ;;  %v14684_v45 = vadd.f32 %v13832_v51, %v14613_v49  ;;  %v5062_v7 = vmul.f32 0.1, %v4998_v59  ;;  %v18411_v38 = vld [vmem:[#allocation43_spill] sm:$0xff] }
 0x3e7   :  { %18406 = vst [vmem:[#allocation92_spill] sm:$0xff] %v14669_v47  ;;  %v4573_v27 = vadd.f32 %v4572_v29, %v14056_v16  ;;  %v14680_v33 = vadd.f32 %v18409_v52, %v4571_v43  ;;  %v14692_v16 = vadd.f32 %v13835_v8, %v14618_v12  ;;  %v14700_v49 = vadd.f32 %v13832_v51, %v14622_v4 }
 0x3e8   :  { %v4576_v57 = vpop.f32.mrf.mxu0  ;;  %18410 = vst [vmem:[#allocation95_spill] sm:$0xff] %v14684_v45  ;;  %v14694_v54 = vpack.c.bf16 %v5125_v0, %v5123_v17  ;;  %v5063_v29 = vmul.f32 0.1, %v4999_v13  ;;  %v14707_v12 = vadd.f32 %v13835_v8, %v4995_v15  ;;  %v14710_v55 = vadd.f32 %v13832_v51, %v4996_v14 }
 0x3e9   :  { %v14687_v9 = vadd.f32 %v18411_v38, %v4573_v27  ;;  %v4577_v60 = vadd.f32 %v4576_v57, %v14059_v6  ;;  %18412 = vst [vmem:[#allocation22_spill] sm:$0xff] %v14692_v16  ;;  %v5064_v53 = vmul.f32 0.1, %v14680_v33  ;;  %18413 = vst [vmem:[#allocation96_spill] sm:$0xff] %v14700_v49  ;;  %v5517_v6 = vsel %vm613_vm5, %v5512_v23, %v5516_v61  ;;  %v18416_v27 = vld [vmem:[#allocation46_spill] sm:$0xff] }
 0x3ea   :  { %v4578_v30 = vpop.f32.mrf.mxu0  ;;  %18414 = vst [vmem:[#allocation99_spill] sm:$0xff] %v14707_v12  ;;  %18415 = vst [vmem:[#allocation65_spill] sm:$0xff] %v14710_v55  ;;  %v5126_v31 = vmax.f32 %v4998_v59, %v5062_v7  ;;  %v5127_v46 = vmax.f32 %v4999_v13, %v5063_v29  ;;  %v14724_v7 = vadd.f32 %v13835_v8, %v4997_v44  ;;  %v18418_v29 = vld [vmem:[#allocation45_spill] sm:$0xff]  ;;  %v5195_v12 = vshll.u32 %v14083_v35, 16 }
 0x3eb   :  { %v5065_v57 = vmul.f32 0.1, %v14687_v9  ;;  %v5128_v43 = vmax.f32 %v14680_v33, %v5064_v53  ;;  %v14715_v17 = vadd.f32 %v18416_v27, %v4577_v60  ;;  %v4579_v23 = vadd.f32 %v4578_v30, %v14080_v48  ;;  %v18419_v30 = vld [vmem:[#allocation40_spill] sm:$0xff] }
 0x3ec   :  { %v4580_v40 = vpop.f32.mrf.mxu0  ;;  %18417 = vst [vmem:[#allocation76_spill] sm:$0xff] %v14724_v7  ;;  %v5667_v60 = vunpack.c.h.b16 %v14660_v34  ;;  %v14773_v15 = vadd.f32 %v13832_v51, %v14680_v33 }
 0x3ed   :  { %6916 = vmatmul.mubr.bf16.gmra.mxu0 %v5517_v6  ;;  %v5129_v4 = vmax.f32 %v14687_v9, %v5065_v57  ;;  %v14720_v52 = vpack.c.bf16 %v5128_v43, %v5126_v31  ;;  %v4581_v14 = vadd.f32 %v4580_v40, %v14103_v5  ;;  %v14729_v53 = vadd.f32 %v18418_v29, %v4579_v23  ;;  %v18421_v23 = vld [vmem:[#allocation47_spill] sm:$0xff] }
 0x3ee   :  { %v4582_v0 = vpop.f32.mrf.mxu0  ;;  %v5066_v48 = vmul.f32 0.1, %v14715_v17  ;;  %v5673_v57 = vunpack.c.l.b16 %v14694_v54  ;;  %v14742_v43 = vadd.f32 %v13832_v51, %v4998_v59  ;;  %18423 = vst [vmem:[#allocation78_spill] sm:$0xff] %v14773_v15  ;;  %v18439_v15 = vld [vmem:[#allocation139_spill] sm:$0xff] }
 0x3ef   :  { %v14726_v38 = vpack.c.bf16 %v5129_v4, %v5127_v46  ;;  %v14734_v6 = vadd.f32 %v18419_v30, %v4581_v14  ;;  %v4583_v31 = vadd.f32 %v4582_v0, %v14135_v42  ;;  %v5067_v46 = vmul.f32 0.1, %v14729_v53 }
 0x3f0   :  { %18420 = vst [vmem:[#allocation74_spill] sm:$0xff] %v14742_v43  ;;  %v5866_v27 = vpack.c.b16 %v5673_v57, %v5667_v60  ;;  %v14751_v42 = vadd.f32 %v13835_v8, %v4999_v13  ;;  %v5666_v0 = vunpack.c.h.b16 %v14647_v22  ;;  %v5672_v30 = vunpack.c.l.b16 %v14673_v25 }
 0x3f1   :  { %v5068_v4 = vmul.f32 0.1, %v14734_v6  ;;  %v14747_v14 = vadd.f32 %v18421_v23, %v4583_v31  ;;  %v5130_v59 = vmax.f32 %v14715_v17, %v5066_v48  ;;  %v5523_v60 = vrot.slane %v14660_v34, 3 }
 0x3f2   :  { %18422 = vst [vmem:[#allocation77_spill] sm:$0xff] %v14751_v42  ;;  %6589 = vmatprep.mubr.bf16.mxu1 %v5866_v27  ;;  %v5865_v57 = vpack.c.b16 %v5672_v30, %v5666_v0  ;;  %v5524_v31 = vrot.slane %v14694_v54, 3  ;;  %v5520_v23 = vrot.slane %v14647_v22, 3  ;;  %v5521_v13 = vrot.slane %v14673_v25, 3  ;;  %v18440_v42 = vld [vmem:[#allocation134_spill] sm:$0xff] }
 0x3f3   :  { %v5132_v40 = vmax.f32 %v14734_v6, %v5068_v4  ;;  %v5069_v44 = vmul.f32 0.1, %v14747_v14  ;;  %v5131_v5 = vmax.f32 %v14729_v53, %v5067_v46  ;;  %v5679_v0 = vunpack.c.h.b16 %v14694_v54 }
 0x3f4   :  { %6590 = vmatmul.mubr.bf16.gmra.mxu1 %v5865_v57  ;;  %v5525_v4 = vsel %vm613_vm5, %v5523_v60, %v5524_v31  ;;  %v5522_v27 = vsel %vm613_vm5, %v5520_v23, %v5521_v13  ;;  %v5685_v30 = vunpack.c.l.b16 %v14726_v38  ;;  %v5684_v57 = vunpack.c.l.b16 %v14720_v52 }
 0x3f5   :  { %v14764_v63 = vpack.c.bf16 %v5132_v40, %v5130_v59  ;;  %v5133_v48 = vmax.f32 %v14747_v14, %v5069_v44  ;;  %v18424_v40 = vrot.slane %v14602_v32, 3  ;;  %v5678_v44 = vunpack.c.h.b16 %v14673_v25 }
 0x3f6   :  { %v9793_v59 = vcombine.low %v5516_v61, %v5522_v27  ;;  %v5872_v60 = vpack.c.b16 %v5685_v30, %v5679_v0  ;;  %v5528_v23 = vrot.slane %v14726_v38, 3  ;;  %v5671_v20 = vunpack.c.h.b16 %v5525_v4 }
 0x3f7   :  { %v14775_v29 = vpack.c.bf16 %v5133_v48, %v5131_v5  ;;  %v9794_v46 = vcombine.low %v18424_v40, %v5525_v4  ;;  %v5526_v33 = vrot.slane %v14720_v52, 3  ;;  %v5670_v43 = vunpack.c.h.b16 %v5522_v27 }
 0x3f8   :  { %v5691_v5 = vunpack.c.h.b16 %v14726_v38  ;;  %6599 = vmatprep.mubr.bf16.mxu1 %v5872_v60  ;;  %v5871_v48 = vpack.c.b16 %v5684_v57, %v5678_v44  ;;  %v5529_v40 = vsel %vm613_vm5, %v5524_v31, %v5528_v23  ;;  %v5690_v61 = vunpack.c.h.b16 %v14720_v52 }
 0x3f9   :  { %6925 = vmatprep.mubr.bf16.mxu0 %v9794_v46  ;;  %v5697_v7 = vunpack.c.l.b16 %v14775_v29  ;;  %v5677_v0 = vunpack.c.l.b16 %v5529_v40  ;;  %v5527_v30 = vsel %vm613_vm5, %v5521_v13, %v5526_v33  ;;  %v5696_v46 = vunpack.c.l.b16 %v14764_v63 }
 0x3fa   :  { %6926 = vmatmul.mubr.bf16.gmra.mxu0 %v9793_v59  ;;  %v5192_v4 = vshrl.u32 %v14083_v35, 16  ;;  %v5676_v55 = vunpack.c.l.b16 %v5527_v30  ;;  %v5532_v59 = vrot.slane %v14775_v29, 3  ;;  %v14796_v31 = vadd.f32 %v13835_v8, %v14687_v9 }
 0x3fb   :  { %v5878_v27 = vpack.c.b16 %v5697_v7, %v5691_v5  ;;  %v5870_v44 = vpack.c.b16 %v5677_v0, %v5671_v20  ;;  %v5877_v60 = vpack.c.b16 %v5696_v46, %v5690_v61  ;;  %v5197_v13 = vrot.slane %v5195_v12, 2 }
 0x3fc   :  { %18425 = vst [vmem:[#allocation79_spill] sm:$0xff] %v14796_v31  ;;  %v5194_v57 = vrot.slane %v5192_v4, 1  ;;  %6600 = vmatmul.mubr.bf16.gmra.mxu1 %v5871_v48  ;;  %v5869_v49 = vpack.c.b16 %v5676_v55, %v5670_v43  ;;  %v5533_v47 = vsel %vm613_vm5, %v5528_v23, %v5532_v59  ;;  %v5530_v16 = vrot.slane %v14764_v63, 3  ;;  %v10525_v48 = vld [vmem:[#allocation10 + $0x674] ss:$8 sps:$4 sm:$0xff]  }
 0x3fd   :  { %6935 = vmatprep.mubr.bf16.mxu0 %v5870_v44  ;;  %6609 = vmatprep.mubr.bf16.mxu1 %v5878_v27  ;;  %v5683_v7 = vunpack.c.h.b16 %v5529_v40  ;;  %v5689_v35 = vunpack.c.l.b16 %v5533_v47  ;;  %v5695_v5 = vunpack.c.h.b16 %v5533_v47  ;;  %v5701_v50 = vunpack.c.l.b16 %v5532_v59 }
 0x3fe   :  { %v5531_v45 = vsel %vm613_vm5, %v5526_v33, %v5530_v16  ;;  %v5682_v9 = vunpack.c.h.b16 %v5527_v30  ;;  %v5167_v20 = vshrl.u32 %v14004_v62, 16  ;;  %v5170_v61 = vshll.u32 %v14004_v62, 16  ;;  %8476 = vmatprep.subr.bf16.mxu1 %v10525_v48 }
 0x3ff   :  { %v5876_v55 = vpack.c.b16 %v5689_v35, %v5683_v7  ;;  %v5688_v12 = vunpack.c.l.b16 %v5531_v45  ;;  %v5882_v43 = vpack.c.b16 %v5701_v50, %v5695_v5  ;;  %v5175_v23 = vshrl.u32 %v14065_v26, 16  ;;  %v18428_v35 = vld [vmem:[#allocation125_spill] sm:$0xff] }
 0x400   :  { %v5198_v0 = vor.u32 %v5197_v13, %v5194_v57  ;;  %v5169_v46 = vrot.slane %v5167_v20, 1  ;;  %v5172_v40 = vrot.slane %v5170_v61, 2  ;;  %v5178_v47 = vshll.u32 %v14065_v26, 16  ;;  %v18431_v61 = vld [vmem:[#allocation109_spill] sm:$0xff] }
 0x401   :  { %v5875_v33 = vpack.c.b16 %v5688_v12, %v5682_v9  ;;  %v5177_v30 = vrot.slane %v5175_v23, 1  ;;  %v5210_v4 = vshrl.u32 %v14139_v28, 16  ;;  %v5213_v62 = vshll.u32 %v14139_v28, 16  ;;  %v18429_v28 = vld [vmem:[#allocation130_spill] sm:$0xff]  ;;  %v18432_v12 = vld [vmem:[#allocation52_spill] sm:$0xff] }
 0x402   :  { %6936 = vmatmul.mubr.bf16.gmra.mxu0 %v5869_v49  ;;  %v14809_v27 = vadd.f32 %v13832_v51, %v14715_v17  ;;  %v5180_v50 = vrot.slane %v5178_v47, 2  ;;  %v5694_v59 = vunpack.c.h.b16 %v5531_v45  ;;  %v5700_v49 = vunpack.c.l.b16 %v5530_v16 }
 0x403   :  { %6945 = vmatprep.mubr.bf16.mxu0 %v5876_v55  ;;  %v5212_v44 = vrot.slane %v5210_v4, 1  ;;  %v5215_v57 = vrot.slane %v5213_v62, 2  ;;  %v5201_v13 = vshrl.u32 %v14119_v2, 16  ;;  %v5204_v26 = vshll.u32 %v14119_v2, 16 }
 0x404   :  { %18426 = vst [vmem:[#allocation81_spill] sm:$0xff] %v14809_v27  ;;  %v14815_v7 = vadd.f32 %v13835_v8, %v14729_v53  ;;  %6610 = vmatmul.mubr.bf16.gmra.mxu1 %v5877_v60  ;;  %v18430_v5 = vor.u32 %v18428_v35, %v18429_v28  ;;  %v14821_v9 = vor.u32 %v5180_v50, %v5177_v30  ;;  %v5228_v48 = vshrl.u32 %v18431_v61, 16  ;;  %v10523_v28 = vld [vmem:[#allocation10 + $0x670] ss:$8 sps:$4 sm:$0xff]   ;;  %v18437_v30 = vld [vmem:[#allocation129_spill] sm:$0xff] }
 0x405   :  { %v5881_v45 = vpack.c.b16 %v5700_v49, %v5694_v59  ;;  %v5173_v20 = vor.u32 %v5172_v40, %v5169_v46  ;;  %v5231_v2 = vshll.u32 %v18431_v61, 16  ;;  %v14826_v55 = vor.u32 %v5215_v57, %v5212_v44  ;;  %v18433_v59 = vld [vmem:[#allocation124_spill] sm:$0xff]  ;;  %v18435_v61 = vld [vmem:[#allocation113_spill] sm:$0xff] }
 0x406   :  { %18427 = vst [vmem:[#allocation66_spill] sm:$0xff] %v14815_v7  ;;  %v5199_v17 = vsel %vm422_vm1, %v18430_v5, %v5198_v0  ;;  %v5203_v53 = vrot.slane %v5201_v13, 1  ;;  %v5206_v60 = vrot.slane %v5204_v26, 2  ;;  %v5219_v23 = vshrl.u32 %v18432_v12, 16  ;;  %v18434_v57 = vld [vmem:[#allocation136_spill] sm:$0xff]  ;;  %v18438_v7 = vld [vmem:[#allocation71_spill] sm:$0xff] }
 0x407   :  { %6652 = vmatprep.mubr.bf16.mxu1 %v5199_v17  ;;  %v5222_v62 = vshll.u32 %v18432_v12, 16  ;;  %v14836_v40 = vadd.f32 %v13832_v51, %v14734_v6  ;;  %v5182_v50 = vsel %vm422_vm1, %v5173_v20, %v14821_v9  ;;  %v5262_v49 = vshrl.u32 %v18433_v59, 16  ;;  %v10528_v17 = vld [vmem:[#allocation10 + $0x664] ss:$8 sps:$4 sm:$0xff]  }
 0x408   :  { %v5230_v44 = vrot.slane %v5228_v48, 1  ;;  %v5254_v13 = vshrl.u32 %v18434_v57, 16  ;;  %v5257_v26 = vshll.u32 %v18434_v57, 16  ;;  %v5265_v35 = vshll.u32 %v18433_v59, 16  ;;  %v18436_v48 = vld [vmem:[#allocation122_spill] sm:$0xff] }
 0x409   :  { %v5217_v5 = vsel %vm422_vm1, %v5198_v0, %v14826_v55  ;;  %v14846_v51 = vor.u32 %v5206_v60, %v5203_v53  ;;  %v5233_v6 = vrot.slane %v5231_v2, 2  ;;  %v5224_v20 = vrot.slane %v5222_v62, 2  ;;  %v10526_v0 = vld [vmem:[#allocation10 + $0x660] ss:$8 sps:$4 sm:$0xff]   ;;  %v10529_v62 = vld [vmem:[#allocation10 + $0x770] ss:$8 sps:$4 sm:$0xff]  }
 0x40a   :  { %6946 = vmatmul.mubr.bf16.gmra.mxu0 %v5875_v33  ;;  %v5221_v33 = vrot.slane %v5219_v23, 1  ;;  %v5237_v12 = vshrl.u32 %v18435_v61, 16  ;;  %v5245_v46 = vshrl.u32 %v18436_v48, 16  ;;  %v5264_v57 = vrot.slane %v5262_v49, 1  ;;  %v10531_v49 = vld [vmem:[#allocation10 + $0x774] ss:$8 sps:$4 sm:$0xff]  }
 0x40b   :  { %6955 = vmatprep.mubr.bf16.mxu0 %v5882_v43  ;;  %v5240_v43 = vshll.u32 %v18435_v61, 16  ;;  %v5267_v4 = vrot.slane %v5265_v35, 2  ;;  %v5248_v59 = vshll.u32 %v18436_v48, 16  ;;  %v5280_v47 = vshrl.u32 %v18437_v30, 16  ;;  %8629 = vmatprep.subr.bf16.mxu0 %v10531_v49 }
 0x40c   :  { %6653 = vmatmul.mubr.bf16.vlgmr.msra.gmra.mxu1 %v5182_v50  ;;  %v5256_v53 = vrot.slane %v5254_v13, 1  ;;  %v5259_v2 = vrot.slane %v5257_v26, 2  ;;  %v5247_v60 = vrot.slane %v5245_v46, 1  ;;  %v5283_v23 = vshll.u32 %v18437_v30, 16  ;;  %v10534_v13 = vld [vmem:[#allocation10 + $0x654] ss:$8 sps:$4 sm:$0xff]   ;;  %8630 = vmatpush1.bf16.msra.mxu0 %v10529_v62 }
 0x40d   :  { %6662 = vmatprep.mubr.bf16.mxu1 %v5217_v5  ;;  %8477 = vmatpush1.bf16.msra.mxu1 %v10523_v28  ;;  %v5250_v16 = vrot.slane %v5248_v59, 2  ;;  %v5282_v61 = vrot.slane %v5280_v47, 1  ;;  %v5271_v27 = vshrl.u32 %v18438_v7, 16  ;;  %v5274_v50 = vshll.u32 %v18438_v7, 16 }
 0x40e   :  { %8478 = vmatprep.subr.bf16.mxu1 %v10528_v17  ;;  %v5239_v35 = vrot.slane %v5237_v12, 1  ;;  %v5242_v48 = vrot.slane %v5240_v43, 2  ;;  %v5285_v31 = vrot.slane %v5283_v23, 2  ;;  %v5298_v5 = vshrl.u32 %v18439_v15, 16  ;;  %v10532_v43 = vld [vmem:[#allocation10 + $0x650] ss:$8 sps:$4 sm:$0xff]  }
 0x40f   :  { %v14859_v46 = vadd.f32 %v13835_v8, %v14747_v14  ;;  %v14861_v30 = vor.u32 %v5233_v6, %v5230_v44  ;;  %v5268_v47 = vor.u32 %v5267_v4, %v5264_v57  ;;  %v5273_v26 = vrot.slane %v5271_v27, 1  ;;  %v10535_v44 = vld [vmem:[#allocation10 + $0x760] ss:$8 sps:$4 sm:$0xff]   ;;  %v10537_v6 = vld [vmem:[#allocation10 + $0x764] ss:$8 sps:$4 sm:$0xff]  }
 0x410   :  { %v5260_v28 = vor.u32 %v5259_v2, %v5256_v53  ;;  %v5251_v7 = vor.u32 %v5250_v16, %v5247_v60  ;;  %v5276_v17 = vrot.slane %v5274_v50, 2  ;;  %v5301_v12 = vshll.u32 %v18439_v15, 16  ;;  %8631 = vmatprep.subr.bf16.mxu0 %v10537_v6 }
 0x411   :  { %8479 = vmatpush1.bf16.msra.mxu1 %v10526_v0  ;;  %v5286_v59 = vor.u32 %v5285_v31, %v5282_v61  ;;  %v5300_v23 = vrot.slane %v5298_v5, 1  ;;  %v18441_v11 = vshrl.u32 %v18440_v42, 16  ;;  %v18442_v14 = vshll.u32 %v18440_v42, 16  ;;  %v10540_v61 = vld [vmem:[#allocation10 + $0x644] ss:$8 sps:$4 sm:$0xff]   ;;  %8632 = vmatpush1.bf16.msra.mxu0 %v10535_v44  ;;  %v18510_v0 = vld [vmem:[#allocation127_spill] sm:$0xff] }
 0x412   :  { %6956 = vmatmul.mubr.bf16.gmra.mxu0 %v5881_v45  ;;  %8480 = vmatprep.subr.bf16.mxu1 %v10534_v13  ;;  %v5208_v27 = vsel %vm422_vm1, %v14821_v9, %v14846_v51  ;;  %v14871_v16 = vor.u32 %v5224_v20, %v5221_v33  ;;  %v5243_v4 = vor.u32 %v5242_v48, %v5239_v35  ;;  %v5303_v42 = vrot.slane %v5301_v12, 2  ;;  %v10538_v20 = vld [vmem:[#allocation10 + $0x640] ss:$8 sps:$4 sm:$0xff]  }
 0x413   :  { %v5291_v8 = vrot.slane %v18441_v11, 1  ;;  %v5294_v45 = vrot.slane %v18442_v14, 2  ;;  %v5277_v15 = vor.u32 %v5276_v17, %v5273_v26  ;;  %v5235_v31 = vsel %vm422_vm1, %v14826_v55, %v14861_v30 }
 0x414   :  { %6663 = vmatmul.mubr.bf16.gmra.mxu1 %v5208_v27  ;;  %v5269_v11 = vsel %vm422_vm1, %v5260_v28, %v5268_v47  ;;  %v14880_v9 = vsel %vm422_vm1, %v5243_v4, %v5251_v7  ;;  %v5324_v33 = vshrl.u32 %v14493_v21, 16  ;;  %v5429_v2 = vshrl.u32 %v14764_v63, 16  ;;  %v10541_v27 = vld [vmem:[#allocation10 + $0x750] ss:$8 sps:$4 sm:$0xff]  }
 0x415   :  { %v5295_v57 = vor.u32 %v5294_v45, %v5291_v8  ;;  %6672 = vmatprep.mubr.bf16.mxu1 %v5235_v31  ;;  %8481 = vmatpush1.bf16.msra.mxu1 %v10532_v43  ;;  %v5287_v55 = vsel %vm422_vm1, %v5268_v47, %v5286_v59  ;;  %v5278_v60 = vsel %vm422_vm1, %v5251_v7, %v5277_v15  ;;  %v5432_v50 = vshll.u32 %v14764_v63, 16 }
 0x416   :  { %v5304_v62 = vor.u32 %v5303_v42, %v5300_v23  ;;  %v5226_v49 = vsel %vm422_vm1, %v14846_v51, %v14871_v16  ;;  %v9786_v35 = vcombine.low %v14861_v30, %v5269_v11  ;;  %v9785_v5 = vcombine.low %v14871_v16, %v14880_v9  ;;  %8482 = vmatprep.subr.bf16.mxu1 %v10540_v61  ;;  %v10543_v16 = vld [vmem:[#allocation10 + $0x754] ss:$8 sps:$4 sm:$0xff]   ;;  %v10544_v42 = vld [vmem:[#allocation10 + $0x630] ss:$8 sps:$4 sm:$0xff]  }
 0x417   :  { %v5296_v48 = vsel %vm422_vm1, %v5277_v15, %v5295_v57  ;;  %v5585_v13 = vunpack.c.h.b16 %v5269_v11  ;;  %v5327_v47 = vshll.u32 %v14493_v21, 16  ;;  %v5332_v26 = vshrl.u32 %v14524_v39, 16  ;;  %8633 = vmatprep.subr.bf16.mxu0 %v10543_v16 }
 0x418   :  { %v5591_v28 = vunpack.c.l.b16 %v5287_v55  ;;  %v5584_v7 = vunpack.c.h.b16 %v14880_v9  ;;  %v5590_v17 = vunpack.c.l.b16 %v5278_v60  ;;  %v5326_v12 = vrot.slane %v5324_v33, 1  ;;  %8634 = vmatpush1.bf16.msra.mxu0 %v10541_v27 }
 0x419   :  { %8483 = vmatpush1.bf16.msra.mxu1 %v10538_v20  ;;  %v5305_v51 = vsel %vm422_vm1, %v5286_v59, %v5304_v62  ;;  %v5596_v30 = vunpack.c.h.b16 %v5278_v60  ;;  %v5602_v43 = vunpack.c.l.b16 %v5296_v48  ;;  %v5335_v23 = vshll.u32 %v14524_v39, 16  ;;  %v10546_v20 = vld [vmem:[#allocation10 + $0x634] ss:$8 sps:$4 sm:$0xff]  }
 0x41a   :  { %v5608_v8 = vunpack.c.h.b16 %v5296_v48  ;;  %v5614_v14 = vunpack.c.l.b16 %v5295_v57  ;;  %v5307_v45 = vshrl.u32 %v14521_v36, 16  ;;  %v5310_v21 = vshll.u32 %v14521_v36, 16  ;;  %8484 = vmatprep.subr.bf16.mxu1 %v10546_v20 }
 0x41b   :  { %v5615_v4 = vunpack.c.l.b16 %v5304_v62  ;;  %v5329_v15 = vrot.slane %v5327_v47, 2  ;;  %v5334_v44 = vrot.slane %v5332_v26, 1  ;;  %v5337_v6 = vrot.slane %v5335_v23, 2 }
 0x41c   :  { %6673 = vmatmul.mubr.bf16.gmra.mxu1 %v5226_v49  ;;  %v5603_v31 = vunpack.c.l.b16 %v5305_v51  ;;  %v5609_v59 = vunpack.c.h.b16 %v5305_v51  ;;  %v5315_v11 = vshrl.u32 %v14558_v58, 16  ;;  %v5318_v39 = vshll.u32 %v14558_v58, 16 }
 0x41d   :  { %6682 = vmatprep.mubr.bf16.mxu1 %v9786_v35  ;;  %v5826_v57 = vpack.c.b16 %v5591_v28, %v5585_v13  ;;  %v14903_v9 = vpack.c.b16 %v5590_v17, %v5584_v7  ;;  %v5597_v36 = vunpack.c.h.b16 %v5287_v55  ;;  %v5350_v33 = vshrl.u32 %v14561_v3, 16  ;;  %8485 = vmatpush1.bf16.msra.mxu1 %v10544_v42  ;;  %v10547_v7 = vld [vmem:[#allocation10 + $0x740] ss:$8 sps:$4 sm:$0xff]  }
 0x41e   :  { %v14906_v60 = vpack.c.b16 %v5602_v43, %v5596_v30  ;;  %v14908_v62 = vrot.slane %v5307_v45, 1  ;;  %v14910_v61 = vrot.slane %v5310_v21, 2  ;;  %v5353_v49 = vshll.u32 %v14561_v3, 16  ;;  %v10549_v30 = vld [vmem:[#allocation10 + $0x744] ss:$8 sps:$4 sm:$0xff]  }
 0x41f   :  { %v14913_v35 = vpack.c.b16 %v5614_v14, %v5608_v8  ;;  %v5330_v58 = vor.u32 %v5329_v15, %v5326_v12  ;;  %v14915_v48 = vor.u32 %v5337_v6, %v5334_v44  ;;  %v5341_v13 = vshrl.u32 %v14605_v18, 16  ;;  %v10550_v45 = vld [vmem:[#allocation10 + $0x620] ss:$8 sps:$4 sm:$0xff]   ;;  %8635 = vmatprep.subr.bf16.mxu0 %v10549_v30  ;;  %v10552_v15 = vld [vmem:[#allocation10 + $0x624] ss:$8 sps:$4 sm:$0xff]  }
 0x420   :  { %v14918_v55 = vpack.c.b16 %v5603_v31, %v5597_v36  ;;  %v14920_v47 = vpack.c.b16 %v5615_v4, %v5609_v59  ;;  %v5317_v26 = vrot.slane %v5315_v11, 1  ;;  %v5320_v28 = vrot.slane %v5318_v39, 2  ;;  %8636 = vmatpush1.bf16.msra.mxu0 %v10547_v7  ;;  %8486 = vmatprep.subr.bf16.mxu1 %v10552_v15 }
 0x421   :  { %v5352_v17 = vrot.slane %v5350_v33, 1  ;;  %v5359_v3 = vshrl.u32 %v14594_v24, 16  ;;  %v5394_v12 = vshrl.u32 %v14660_v34, 16  ;;  %v5355_v23 = vrot.slane %v5353_v49, 2  ;;  %8487 = vmatpush1.bf16.msra.mxu1 %v10550_v45 }
 0x422   :  { %v5362_v8 = vshll.u32 %v14594_v24, 16  ;;  %v5397_v14 = vshll.u32 %v14660_v34, 16  ;;  %v14931_v21 = vsel %vm422_vm1, %v5330_v58, %v14915_v48  ;;  %v14933_v27 = vrot.slane %v5341_v13, 1 }
 0x423   :  { %v5396_v16 = vrot.slane %v5394_v12, 1  ;;  %v5402_v4 = vshrl.u32 %v14694_v54, 16  ;;  %v14936_v44 = vor.u32 %v5320_v28, %v5317_v26  ;;  %v5405_v24 = vshll.u32 %v14694_v54, 16  ;;  %v10553_v28 = vld [vmem:[#allocation10 + $0x730] ss:$8 sps:$4 sm:$0xff]  }
 0x424   :  { %6683 = vmatmul.mubr.bf16.gmra.mxu1 %v9785_v5  ;;  %v5399_v6 = vrot.slane %v5397_v14, 2  ;;  %v5377_v34 = vshrl.u32 %v14647_v22, 16  ;;  %v5361_v5 = vrot.slane %v5359_v3, 1  ;;  %v5380_v59 = vshll.u32 %v14647_v22, 16 }
 0x425   :  { %6692 = vmatprep.mubr.bf16.mxu1 %v5826_v57  ;;  %v5404_v31 = vrot.slane %v5402_v4, 1  ;;  %v5385_v11 = vshrl.u32 %v14673_v25, 16  ;;  %v5364_v39 = vrot.slane %v5362_v8, 2  ;;  %v5407_v36 = vrot.slane %v5405_v24, 2  ;;  %v10555_v8 = vld [vmem:[#allocation10 + $0x734] ss:$8 sps:$4 sm:$0xff]  }
 0x426   :  { %v5400_v42 = vor.u32 %v5399_v6, %v5396_v16  ;;  %v5379_v33 = vrot.slane %v5377_v34, 1  ;;  %v5382_v57 = vrot.slane %v5380_v59, 2  ;;  %v5388_v49 = vshll.u32 %v14673_v25, 16  ;;  %v10556_v4 = vld [vmem:[#allocation10 + $0x610] ss:$8 sps:$4 sm:$0xff]   ;;  %8637 = vmatprep.subr.bf16.mxu0 %v10555_v8 }
 0x427   :  { %v5387_v20 = vrot.slane %v5385_v11, 1  ;;  %v5420_v54 = vshrl.u32 %v14726_v38, 16  ;;  %v5408_v58 = vor.u32 %v5407_v36, %v5404_v31  ;;  %v5423_v13 = vshll.u32 %v14726_v38, 16  ;;  %8638 = vmatpush1.bf16.msra.mxu0 %v10553_v28  ;;  %v18447_v36 = vld [vmem:[#allocation31_spill] sm:$0xff] }
 0x428   :  { %v5411_v26 = vshrl.u32 %v14720_v52, 16  ;;  %v5414_v22 = vshll.u32 %v14720_v52, 16  ;;  %v14947_v7 = vor.u32 %v5355_v23, %v5352_v17  ;;  %v5390_v3 = vrot.slane %v5388_v49, 2  ;;  %v10558_v23 = vld [vmem:[#allocation10 + $0x614] ss:$8 sps:$4 sm:$0xff]  }
 0x429   :  { %v5422_v12 = vrot.slane %v5420_v54, 1  ;;  %v5438_v30 = vshrl.u32 %v14775_v29, 16  ;;  %v14951_v14 = vsel %vm422_vm1, %v5400_v42, %v5408_v58  ;;  %v5425_v25 = vrot.slane %v5423_v13, 2  ;;  %8488 = vmatprep.subr.bf16.mxu1 %v10558_v23  ;;  %v10559_v54 = vld [vmem:[#allocation10 + $0x720] ss:$8 sps:$4 sm:$0xff]  }
 0x42a   :  { %v5413_v45 = vrot.slane %v5411_v26, 1  ;;  %v5416_v16 = vrot.slane %v5414_v22, 2  ;;  %v14954_v38 = vor.u32 %v5364_v39, %v5361_v5  ;;  %v5383_v52 = vor.u32 %v5382_v57, %v5379_v33  ;;  %v18443_v5 = vld [vmem:[#allocation115_spill] sm:$0xff]  ;;  %v18445_v39 = vld [vmem:[#allocation110_spill] sm:$0xff]  ;;  %8489 = vmatpush1.bf16.msra.mxu1 %v10556_v4  ;;  %v10561_v13 = vld [vmem:[#allocation10 + $0x724] ss:$8 sps:$4 sm:$0xff]  }
 0x42b   :  { %v5391_v15 = vor.u32 %v5390_v3, %v5387_v20  ;;  %v5440_v17 = vrot.slane %v5438_v30, 1  ;;  %v5426_v6 = vor.u32 %v5425_v25, %v5422_v12  ;;  %v5441_v34 = vshll.u32 %v14775_v29, 16  ;;  %v18449_v33 = vld [vmem:[#allocation114_spill] sm:$0xff]  ;;  %v10562_v26 = vld [vmem:[#allocation10 + $0x600] ss:$8 sps:$4 sm:$0xff]   ;;  %8639 = vmatprep.subr.bf16.mxu0 %v10561_v13 }
 0x42c   :  { %6693 = vmatmul.mubr.bf16.gmra.mxu1 %v14903_v9  ;;  %v5417_v24 = vor.u32 %v5416_v16, %v5413_v45  ;;  %v5431_v31 = vrot.slane %v5429_v2, 1  ;;  %v5434_v9 = vrot.slane %v5432_v50, 2  ;;  %v18444_v11 = vrot.slane %v18443_v5, 3  ;;  %v10564_v30 = vld [vmem:[#allocation10 + $0x604] ss:$8 sps:$4 sm:$0xff]   ;;  %8640 = vmatpush1.bf16.msra.mxu0 %v10559_v54 }
 0x42d   :  { %6702 = vmatprep.mubr.bf16.mxu1 %v14918_v55  ;;  %v14961_v59 = vsel %vm422_vm1, %v5383_v52, %v5391_v15  ;;  %v18446_v42 = vrot.slane %v18445_v39, 3  ;;  %v18448_v29 = vrot.slane %v18447_v36, 3  ;;  %v18450_v57 = vrot.slane %v18449_v33, 3  ;;  %v18451_v45 = vld [vmem:[#allocation117_spill] sm:$0xff]  ;;  %v18454_v4 = vld [vmem:[#allocation32_spill] sm:$0xff]  ;;  %8490 = vmatprep.subr.bf16.mxu1 %v10564_v30 }
 0x42e   :  { %v5427_v63 = vsel %vm422_vm1, %v5408_v58, %v5426_v6  ;;  %v5669_v50 = vunpack.c.h.b16 %v14951_v14  ;;  %v5418_v49 = vsel %vm422_vm1, %v5391_v15, %v5417_v24  ;;  %v5668_v28 = vunpack.c.h.b16 %v14961_v59  ;;  %8491 = vmatpush1.bf16.msra.mxu1 %v10562_v26 }
 0x42f   :  { %v14970_v55 = vsel %vm613_vm5, %v18446_v42, %v18444_v11  ;;  %v14977_v2 = vsel %vm613_vm5, %v18450_v57, %v18448_v29  ;;  %v5675_v22 = vunpack.c.l.b16 %v5427_v63  ;;  %v5674_v3 = vunpack.c.l.b16 %v5418_v49 }
 0x430   :  { %v5443_v12 = vrot.slane %v5441_v34, 2  ;;  %v5681_v8 = vunpack.c.h.b16 %v5427_v63  ;;  %v5435_v25 = vor.u32 %v5434_v9, %v5431_v31  ;;  %v18452_v16 = vrot.slane %v18451_v45, 3  ;;  %v18460_v63 = vld [vmem:[#allocation30_spill] sm:$0xff]  ;;  %v18466_v45 = vld [vmem:[#allocation105_spill] sm:$0xff] }
 0x431   :  { %v18453_v58 = vmov %v18444_v11  ;;  %v18455_v15 = vrot.slane %v18454_v4, 3  ;;  %v18456_v23 = vmov %v18448_v29  ;;  %v14999_v39 = vpack.c.b16 %v5675_v22, %v5669_v50  ;;  %v18457_v29 = vld [vmem:[#allocation118_spill] sm:$0xff] }
 0x432   :  { %v14990_v52 = vsel %vm613_vm5, %v18453_v58, %v18452_v16  ;;  %v15001_v34 = vpack.c.b16 %v5674_v3, %v5668_v28  ;;  %v5444_v31 = vor.u32 %v5443_v12, %v5440_v17  ;;  %v5680_v9 = vunpack.c.h.b16 %v5418_v49  ;;  %v18463_v3 = vld [vmem:[#allocation121_spill] sm:$0xff] }
 0x433   :  { %v14997_v11 = vsel %vm613_vm5, %v18456_v23, %v18455_v15  ;;  %v5436_v5 = vsel %vm422_vm1, %v5417_v24, %v5435_v25  ;;  %v5698_v42 = vunpack.c.l.b16 %v5435_v25  ;;  %v18458_v33 = vrot.slane %v18457_v29, 3 }
 0x434   :  { %v18459_v57 = vmov %v18452_v16  ;;  %v18461_v50 = vrot.slane %v18460_v63, 3  ;;  %v18462_v13 = vmov %v18455_v15  ;;  %6703 = vmatmul.mubr.bf16.gmra.mxu1 %v14906_v60  ;;  %v5445_v24 = vsel %vm422_vm1, %v5426_v6, %v5444_v31 }
 0x435   :  { %v15009_v36 = vsel %vm613_vm5, %v18459_v57, %v18458_v33  ;;  %v5686_v49 = vunpack.c.l.b16 %v5436_v5  ;;  %v5699_v54 = vunpack.c.l.b16 %v5444_v31  ;;  %v5692_v26 = vunpack.c.h.b16 %v5436_v5  ;;  %6712 = vmatprep.mubr.bf16.mxu1 %v14920_v47  ;;  %v18469_v47 = vld [vmem:[#allocation123_spill] sm:$0xff] }
 0x436   :  { %v15016_v17 = vsel %vm613_vm5, %v18462_v13, %v18461_v50  ;;  %v5687_v22 = vunpack.c.l.b16 %v5445_v24  ;;  %v5693_v28 = vunpack.c.h.b16 %v5445_v24  ;;  %v18464_v12 = vrot.slane %v18463_v3, 3  ;;  %v18472_v5 = vld [vmem:[#allocation107_spill] sm:$0xff] }
 0x437   :  { %v18465_v30 = vmov %v18458_v33  ;;  %v18467_v16 = vrot.slane %v18466_v45, 3  ;;  %v18468_v60 = vmov %v18461_v50  ;;  %v15035_v58 = vpack.c.b16 %v5686_v49, %v5680_v9  ;;  %v18478_v49 = vld [vmem:[#allocation128_spill] sm:$0xff]  ;;  %v10567_v45 = vld [vmem:[#allocation10 + $0x714] ss:$8 sps:$4 sm:$0xff]  }
 0x438   :  { %v15026_v25 = vsel %vm613_vm5, %v18465_v30, %v18464_v12  ;;  %v15037_v4 = vpack.c.b16 %v5698_v42, %v5692_v26  ;;  %v18470_v15 = vrot.slane %v18469_v47, 3  ;;  %v18471_v23 = vmov %v18464_v12  ;;  %v18475_v42 = vld [vmem:[#allocation126_spill] sm:$0xff]  ;;  %8641 = vmatprep.subr.bf16.mxu0 %v10567_v45 }
 0x439   :  { %v15033_v6 = vsel %vm613_vm5, %v18468_v60, %v18467_v16  ;;  %v18473_v29 = vrot.slane %v18472_v5, 3  ;;  %v18474_v33 = vmov %v18467_v16  ;;  %v15053_v63 = vpack.c.b16 %v5687_v22, %v5681_v8  ;;  %v10565_v30 = vld [vmem:[#allocation10 + $0x710] ss:$8 sps:$4 sm:$0xff]   ;;  %v18481_v8 = vld [vmem:[#allocation112_spill] sm:$0xff] }
 0x43a   :  { %v15044_v31 = vsel %vm613_vm5, %v18471_v23, %v18470_v15  ;;  %v15055_v9 = vpack.c.b16 %v5699_v54, %v5693_v28  ;;  %v18476_v50 = vrot.slane %v18475_v42, 3  ;;  %v18477_v13 = vmov %v18470_v15  ;;  %v18484_v16 = vld [vmem:[#allocation132_spill] sm:$0xff]  ;;  %v18487_v23 = vld [vmem:[#allocation58_spill] sm:$0xff]  ;;  %v18493_v42 = vld [vmem:[#allocation119_spill] sm:$0xff]  ;;  %8642 = vmatpush1.bf16.msra.mxu0 %v10565_v30 }
 0x43b   :  { %v15051_v57 = vsel %vm613_vm5, %v18474_v33, %v18473_v29  ;;  %v18479_v26 = vrot.slane %v18478_v49, 3  ;;  %v18480_v3 = vmov %v18473_v29  ;;  %v18482_v22 = vrot.slane %v18481_v8, 3  ;;  %v18489_v29 = vld [vmem:[#allocation116_spill] sm:$0xff] }
 0x43c   :  { %v15062_v24 = vsel %vm613_vm5, %v18477_v13, %v18476_v50  ;;  %v18483_v54 = vmov %v18476_v50  ;;  %v18485_v60 = vrot.slane %v18484_v16, 3  ;;  %v18488_v5 = vrot.slane %v18487_v23, 3  ;;  %v18491_v13 = vld [vmem:[#allocation120_spill] sm:$0xff]  ;;  %6713 = vmatmul.mubr.bf16.gmra.mxu1 %v14913_v35 }
 0x43d   :  { %v15069_v12 = vsel %vm613_vm5, %v18480_v3, %v18479_v26  ;;  %v15076_v28 = vsel %vm613_vm5, %v18483_v54, %v18482_v22  ;;  %v18486_v47 = vmov %v18479_v26  ;;  %v18490_v33 = vrot.slane %v18489_v29, 3  ;;  %v18495_v22 = vld [vmem:[#allocation138_spill] sm:$0xff]  ;;  %6722 = vmatprep.mubr.bf16.mxu1 %v14931_v21 }
 0x43e   :  { %v15083_v15 = vsel %vm613_vm5, %v18486_v47, %v18485_v60  ;;  %v18492_v26 = vrot.slane %v18491_v13, 3  ;;  %v18494_v3 = vrot.slane %v18493_v42, 3  ;;  %v18496_v54 = vrot.slane %v18495_v22, 3  ;;  %v18498_v60 = vld [vmem:[#allocation53_spill] sm:$0xff]  ;;  %v10570_v13 = vld [vmem:[#allocation10 + $0x6f4] ss:$8 sps:$4 sm:$0xff]  }
 0x43f   :  { %v15090_v50 = vsel %vm613_vm5, %v18490_v33, %v18488_v5  ;;  %v18497_v49 = vmov %v18488_v5  ;;  %v18499_v47 = vrot.slane %v18498_v60, 3  ;;  %v18502_v33 = vld [vmem:[#allocation140_spill] sm:$0xff]  ;;  %v18514_v22 = vld [vmem:[#allocation131_spill] sm:$0xff]  ;;  %v18518_v60 = vld [vmem:[#allocation133_spill] sm:$0xff]  ;;  %8492 = vmatprep.subr.bf16.mxu1 %v10570_v13 }
 0x440   :  { %v15097_v8 = vsel %vm613_vm5, %v18494_v3, %v18492_v26  ;;  %v15104_v16 = vsel %vm613_vm5, %v18497_v49, %v18496_v54  ;;  %v18500_v29 = vmov %v18492_v26  ;;  %v18503_v20 = vrot.slane %v18502_v33, 3  ;;  %v18506_v3 = vld [vmem:[#allocation142_spill] sm:$0xff] }
 0x441   :  { %v15111_v5 = vsel %vm613_vm5, %v18500_v29, %v18499_v47  ;;  %v18504_v42 = vmov %v18496_v54  ;;  %v18507_v53 = vrot.slane %v18506_v3, 3  ;;  %v18508_v23 = vmov %v18499_v47  ;;  %v10568_v49 = vld [vmem:[#allocation10 + $0x6f0] ss:$8 sps:$4 sm:$0xff]  }
 0x442   :  { %18501 = vst [vmem:[#allocation55_spill] sm:$0xff] %v15111_v5  ;;  %v15118_v26 = vsel %vm613_vm5, %v18504_v42, %v18503_v20  ;;  %v18511_v47 = vrot.slane %v18510_v0, 3  ;;  %v18512_v29 = vmov %v18503_v20  ;;  %v18515_v20 = vrot.slane %v18514_v22, 3  ;;  %8493 = vmatpush2.bf16.msra.mxu1 %v10568_v49  ;;  %v15229_v49 = vpop.f32.mrf.mxu1 }
 0x443   :  { %18505 = vst [vmem:[#allocation82_spill] sm:$0xff] %v15118_v26  ;;  %v15125_v54 = vsel %vm613_vm5, %v18508_v23, %v18507_v53  ;;  %v18516_v42 = vmov %v18507_v53  ;;  %v18519_v53 = vrot.slane %v18518_v60, 3 }
 0x444   :  { %18509 = vst [vmem:[#allocation75_spill] sm:$0xff] %v15125_v54  ;;  %v15132_v43 = vsel %vm613_vm5, %v18512_v29, %v18511_v47  ;;  %v15139_v51 = vsel %vm613_vm5, %v18516_v42, %v18515_v20  ;;  %v18520_v45 = vmov %v18511_v47  ;;  %v18522_v54 = vld [vmem:[#allocation54_spill] sm:$0xff]  ;;  %v18524_v33 = vmov %v18515_v20 }
 0x445   :  { %18513 = vst [vmem:[#allocation84_spill] sm:$0xff] %v15132_v43  ;;  %18517 = vst [vmem:[#allocation38_spill] sm:$0xff] %v15139_v51  ;;  %v15146_v23 = vsel %vm613_vm5, %v18520_v45, %v18519_v53  ;;  %v18523_v26 = vrot.slane %v18522_v54, 3  ;;  %v18526_v29 = vld [vmem:[#allocation62_spill] sm:$0xff]  ;;  %v18528_v20 = vmov %v18519_v53  ;;  %v18530_v51 = vld [vmem:[#allocation72_spill] sm:$0xff]  ;;  %v5368_v54 = vshrl.u32 %v14602_v32, 16 }
 0x446   :  { %18521 = vst [vmem:[#allocation18_spill] sm:$0xff] %v15146_v23  ;;  %v18527_v3 = vrot.slane %v18526_v29, 3  ;;  %v18531_v0 = vrot.slane %v18530_v51, 3  ;;  %v18534_v23 = vld [vmem:[#allocation135_spill] sm:$0xff] }
 0x447   :  { %v15153_v47 = vsel %vm613_vm5, %v18524_v33, %v18523_v26  ;;  %v18532_v53 = vmov %v18523_v26  ;;  %v18535_v22 = vrot.slane %v18534_v23, 3  ;;  %v18538_v33 = vld [vmem:[#allocation137_spill] sm:$0xff] }
 0x448   :  { %18525 = vst [vmem:[#allocation69_spill] sm:$0xff] %v15153_v47  ;;  %v15160_v42 = vsel %vm613_vm5, %v18528_v20, %v18527_v3  ;;  %v15167_v45 = vsel %vm613_vm5, %v18532_v53, %v18531_v0  ;;  %v18536_v26 = vmov %v18527_v3  ;;  %v18539_v47 = vrot.slane %v18538_v33, 3  ;;  %v18543_v23 = vld [vmem:[#allocation141_spill] sm:$0xff] }
 0x449   :  { %18529 = vst [vmem:[#allocation85_spill] sm:$0xff] %v15160_v42  ;;  %18533 = vst [vmem:[#allocation48_spill] sm:$0xff] %v15167_v45  ;;  %v15174_v30 = vsel %vm613_vm5, %v18536_v26, %v18535_v22  ;;  %v18540_v60 = vmov %v18531_v0  ;;  %v18542_v20 = vrot.slane %v14479_v10, 3  ;;  %v18544_v0 = vrot.slane %v18543_v23, 3 }
 0x44a   :  { %18537 = vst [vmem:[#allocation102_spill] sm:$0xff] %v15174_v30  ;;  %v15181_v3 = vsel %vm613_vm5, %v18540_v60, %v18539_v47  ;;  %v18546_v53 = vrot.slane %v14483_v19, 3  ;;  %v18547_v22 = vrot.slane %v14468_v1, 3  ;;  %v18549_v47 = vrot.slane %v14498_v56, 3  ;;  %v10571_v19 = vld [vmem:[#allocation10 + $0x700] ss:$8 sps:$4 sm:$0xff]  }
 0x44b   :  { %18541 = vst [vmem:[#allocation86_spill] sm:$0xff] %v15181_v3  ;;  %v15190_v29 = vsel %vm613_vm5, %v18544_v0, %v18542_v20  ;;  %v18550_v35 = vmov %v18542_v20  ;;  %v5371_v26 = vshll.u32 %v14602_v32, 16  ;;  %v18552_v33 = vrot.slane %v14501_v41, 3  ;;  %v18558_v0 = vld [vmem:[#allocation61_spill] sm:$0xff] }
 0x44c   :  { %18545 = vst [vmem:[#allocation80_spill] sm:$0xff] %v15190_v29  ;;  %v15197_v51 = vsel %vm613_vm5, %v18547_v22, %v18546_v53  ;;  %v15204_v13 = vsel %vm613_vm5, %v18550_v35, %v18549_v47  ;;  %v18553_v60 = vmov %v18546_v53  ;;  %v18555_v20 = vrot.slane %v14507_v37, 3  ;;  %v10573_v22 = vld [vmem:[#allocation10 + $0x704] ss:$8 sps:$4 sm:$0xff]  }
 0x44d   :  { %18548 = vst [vmem:[#allocation103_spill] sm:$0xff] %v15197_v51  ;;  %18551 = vst [vmem:[#allocation104_spill] sm:$0xff] %v15204_v13  ;;  %v15213_v1 = vsel %vm613_vm5, %v18553_v60, %v18552_v33  ;;  %v18556_v23 = vmov %v18549_v47  ;;  %v18559_v53 = vrot.slane %v18558_v0, 3  ;;  %v18560_v21 = vmov %v18552_v33  ;;  %v10574_v47 = vld [vmem:[#allocation10 + $0x6e0] ss:$8 sps:$4 sm:$0xff]   ;;  %v18574_v13 = vld [vmem:[#allocation67_spill] sm:$0xff]  ;;  %8643 = vmatprep.subr.bf16.mxu0 %v10573_v22 }
 0x44e   :  { %18554 = vst [vmem:[#allocation24_spill] sm:$0xff] %v15213_v1  ;;  %v15220_v10 = vsel %vm613_vm5, %v18556_v23, %v18555_v20  ;;  %v18562_v35 = vld [vmem:[#allocation73_spill] sm:$0xff]  ;;  %v18564_v60 = vmov %v18555_v20  ;;  %v18566_v20 = vld [vmem:[#allocation143_spill] sm:$0xff]  ;;  %v18575_v51 = vrot.slane %v18574_v13, 3  ;;  %8644 = vmatpush1.bf16.msra.mxu0 %v10571_v19 }
 0x44f   :  { %18557 = vst [vmem:[#allocation87_spill] sm:$0xff] %v15220_v10  ;;  %v15227_v32 = vsel %vm613_vm5, %v18560_v21, %v18559_v53  ;;  %v18563_v33 = vrot.slane %v18562_v35, 3  ;;  %v18567_v23 = vrot.slane %v18566_v20, 3  ;;  %v18568_v10 = vmov %v18559_v53  ;;  %v18570_v53 = vld [vmem:[#allocation83_spill] sm:$0xff] }
 0x450   :  { %18561 = vst [vmem:[#allocation49_spill] sm:$0xff] %v15227_v32  ;;  %v18571_v21 = vrot.slane %v18570_v53, 3  ;;  %v18594_v13 = vld [vmem:[#allocation95_spill] sm:$0xff] }
 0x451   :  { %v15236_v56 = vsel %vm613_vm5, %v18564_v60, %v18563_v33  ;;  %v15243_v41 = vsel %vm613_vm5, %v18568_v10, %v18567_v23  ;;  %v18572_v32 = vmov %v18563_v33  ;;  %v18576_v37 = vmov %v18567_v23  ;;  %v10576_v60 = vld [vmem:[#allocation10 + $0x6e4] ss:$8 sps:$4 sm:$0xff]  }
 0x452   :  { %18565 = vst [vmem:[#allocation19_spill] sm:$0xff] %v15236_v56  ;;  %18569 = vst [vmem:[#allocation42_spill] sm:$0xff] %v15243_v41  ;;  %v15250_v1 = vsel %vm613_vm5, %v18572_v32, %v18571_v21  ;;  %v15257_v33 = vsel %vm613_vm5, %v18576_v37, %v18575_v51  ;;  %v18578_v56 = vld [vmem:[#allocation20_spill] sm:$0xff]  ;;  %v18580_v10 = vmov %v18571_v21  ;;  %v18584_v32 = vmov %v18575_v51  ;;  %8494 = vmatprep.subr.bf16.mxu1 %v10576_v60 }
 0x453   :  { %18573 = vst [vmem:[#allocation89_spill] sm:$0xff] %v15250_v1  ;;  %18577 = vst [vmem:[#allocation68_spill] sm:$0xff] %v15257_v33  ;;  %v18579_v0 = vrot.slane %v18578_v56, 3  ;;  %v18582_v41 = vld [vmem:[#allocation88_spill] sm:$0xff]  ;;  %v18586_v1 = vld [vmem:[#allocation21_spill] sm:$0xff]  ;;  %8495 = vmatpush2.bf16.msra.mxu1 %v10574_v47 }
 0x454   :  { %v18583_v35 = vrot.slane %v18582_v41, 3  ;;  %v18587_v20 = vrot.slane %v18586_v1, 3  ;;  %v18590_v33 = vld [vmem:[#allocation91_spill] sm:$0xff]  ;;  %v18599_v56 = vld [vmem:[#allocation22_spill] sm:$0xff]  ;;  %v18604_v41 = vld [vmem:[#allocation96_spill] sm:$0xff] }
 0x455   :  { %v15264_v23 = vsel %vm613_vm5, %v18580_v10, %v18579_v0  ;;  %v18588_v51 = vmov %v18579_v0  ;;  %v18591_v29 = vrot.slane %v18590_v33, 3  ;;  %v15287_v10 = vpop.f32.mrf.mxu1 }
 0x456   :  { %18581 = vst [vmem:[#allocation93_spill] sm:$0xff] %v15264_v23  ;;  %v15271_v21 = vsel %vm613_vm5, %v18584_v32, %v18583_v35  ;;  %v15278_v37 = vsel %vm613_vm5, %v18588_v51, %v18587_v20  ;;  %v18592_v53 = vmov %v18583_v35  ;;  %v18595_v35 = vrot.slane %v18594_v13, 3  ;;  %v18596_v32 = vld [vmem:[#allocation70_spill] sm:$0xff]  ;;  %v18601_v51 = vld [vmem:[#allocation92_spill] sm:$0xff] }
 0x457   :  { %18585 = vst [vmem:[#allocation44_spill] sm:$0xff] %v15271_v21  ;;  %18589 = vst [vmem:[#allocation50_spill] sm:$0xff] %v15278_v37  ;;  %v15285_v0 = vsel %vm613_vm5, %v18592_v53, %v18591_v29  ;;  %v18597_v21 = vrot.slane %v18596_v32, 3  ;;  %v18600_v20 = vrot.slane %v18599_v56, 3  ;;  %v18602_v37 = vrot.slane %v18601_v51, 3  ;;  %v15340_v60 = vpop.f32.mrf.mxu1 }
 0x458   :  { %18593 = vst [vmem:[#allocation106_spill] sm:$0xff] %v15285_v0  ;;  %v18605_v29 = vrot.slane %v18604_v41, 3  ;;  %v18606_v53 = vmov %v18595_v35  ;;  %v18608_v0 = vld [vmem:[#allocation99_spill] sm:$0xff]  ;;  %v18625_v41 = vld [vmem:[#allocation77_spill] sm:$0xff] }
 0x459   :  { %v15294_v1 = vsel %vm613_vm5, %v18597_v21, %v18595_v35  ;;  %v15301_v33 = vsel %vm613_vm5, %v18602_v37, %v18600_v20  ;;  %v18609_v23 = vrot.slane %v18608_v0, 3  ;;  %v18610_v32 = vmov %v18600_v20  ;;  %v18613_v37 = vld [vmem:[#allocation65_spill] sm:$0xff]  ;;  %v18629_v0 = vld [vmem:[#allocation78_spill] sm:$0xff] }
 0x45a   :  { %18598 = vst [vmem:[#allocation90_spill] sm:$0xff] %v15294_v1  ;;  %18603 = vst [vmem:[#allocation94_spill] sm:$0xff] %v15301_v33  ;;  %v15308_v22 = vsel %vm613_vm5, %v18606_v53, %v18605_v29  ;;  %v18612_v35 = vshll.u32 %v14605_v18, 16  ;;  %v18614_v20 = vrot.slane %v18613_v37, 3  ;;  %v18615_v33 = vmov %v18605_v29  ;;  %v18617_v29 = vld [vmem:[#allocation76_spill] sm:$0xff]  ;;  %v18633_v37 = vld [vmem:[#allocation79_spill] sm:$0xff] }
 0x45b   :  { %18607 = vst [vmem:[#allocation23_spill] sm:$0xff] %v15308_v22  ;;  %v15315_v21 = vsel %vm613_vm5, %v18610_v32, %v18609_v23  ;;  %v18618_v53 = vrot.slane %v18617_v29, 3  ;;  %v18619_v22 = vmov %v18609_v23  ;;  %v18621_v23 = vld [vmem:[#allocation74_spill] sm:$0xff] }
 0x45c   :  { %18611 = vst [vmem:[#allocation37_spill] sm:$0xff] %v15315_v21  ;;  %v5346_v51 = vrot.slane %v18612_v35, 2  ;;  %v15324_v13 = vsel %vm613_vm5, %v18615_v33, %v18614_v20  ;;  %v18622_v32 = vrot.slane %v18621_v23, 3  ;;  %v18623_v18 = vmov %v18614_v20 }
 0x45d   :  { %18616 = vst [vmem:[#allocation97_spill] sm:$0xff] %v15324_v13  ;;  %v15331_v56 = vsel %vm613_vm5, %v18619_v22, %v18618_v53  ;;  %v18626_v33 = vrot.slane %v18625_v41, 3  ;;  %v18627_v35 = vmov %v18618_v53  ;;  %v18630_v22 = vrot.slane %v18629_v0, 3 }
 0x45e   :  { %18620 = vst [vmem:[#allocation108_spill] sm:$0xff] %v15331_v56  ;;  %v15338_v19 = vsel %vm613_vm5, %v18623_v18, %v18622_v32  ;;  %v18631_v53 = vmov %v18622_v32  ;;  %v18634_v32 = vrot.slane %v18633_v37, 3  ;;  %v18641_v23 = vor.u32 %v14910_v61, %v14908_v62 }
 0x45f   :  { %18624 = vst [vmem:[#allocation57_spill] sm:$0xff] %v15338_v19  ;;  %v15347_v20 = vsel %vm613_vm5, %v18627_v35, %v18626_v33  ;;  %v15354_v56 = vsel %vm613_vm5, %v18631_v53, %v18630_v22  ;;  %v18635_v18 = vmov %v18626_v33  ;;  %v18637_v19 = vld [vmem:[#allocation81_spill] sm:$0xff]  ;;  %v18639_v29 = vmov %v18630_v22  ;;  %v18642_v22 = vld [vmem:[#allocation66_spill] sm:$0xff] }
 0x460   :  { %18628 = vst [vmem:[#allocation25_spill] sm:$0xff] %v15347_v20  ;;  %18632 = vst [vmem:[#allocation29_spill] sm:$0xff] %v15354_v56  ;;  %v15361_v47 = vsel %vm613_vm5, %v18635_v18, %v18634_v32  ;;  %v18638_v13 = vrot.slane %v18637_v19, 3  ;;  %v5322_v35 = vsel %vm422_vm1, %v18641_v23, %v14936_v44  ;;  %v18643_v53 = vrot.slane %v18642_v22, 3  ;;  %v10577_v19 = vld [vmem:[#allocation10 + $0x7f0] ss:$8 sps:$4 sm:$0xff]  }
 0x461   :  { %18636 = vst [vmem:[#allocation27_spill] sm:$0xff] %v15361_v47  ;;  %v18644_v41 = vmov %v18634_v32  ;;  %v18646_v18 = vrot.slane %v14836_v40, 3  ;;  %6723 = vmatmul.mubr.bf16.gmra.mxu1 %v5322_v35  ;;  %v5357_v37 = vsel %vm422_vm1, %v14915_v48, %v14947_v7  ;;  %v5370_v23 = vrot.slane %v5368_v54, 1  ;;  %v15399_v40 = vpop.f32.mrf.mxu1  ;;  %v10582_v22 = vld [vmem:[#allocation10 + $0x6d4] ss:$8 sps:$4 sm:$0xff]  }
 0x462   :  { %v15368_v33 = vsel %vm613_vm5, %v18639_v29, %v18638_v13  ;;  %v15380_v32 = vsel %vm613_vm5, %v18644_v41, %v18643_v53  ;;  %v18647_v0 = vmov %v18638_v13  ;;  %v18649_v29 = vrot.slane %v14859_v46, 3  ;;  %v10579_v41 = vld [vmem:[#allocation10 + $0x7f4] ss:$8 sps:$4 sm:$0xff]   ;;  %6732 = vmatprep.mubr.bf16.mxu1 %v5357_v37  ;;  %v10580_v46 = vld [vmem:[#allocation10 + $0x6d0] ss:$8 sps:$4 sm:$0xff]   ;;  %8496 = vmatprep.subr.bf16.mxu1 %v10582_v22 }
 0x463   :  { %18640 = vst [vmem:[#allocation100_spill] sm:$0xff] %v15368_v33  ;;  %18645 = vst [vmem:[#allocation51_spill] sm:$0xff] %v15380_v32  ;;  %v15387_v13 = vsel %vm613_vm5, %v18647_v0, %v18646_v18  ;;  %v18650_v62 = vmov %v18643_v53  ;;  %v5373_v53 = vrot.slane %v5371_v26, 2  ;;  %v15401_v18 = vpop.f32.mrf.mxu1  ;;  %8645 = vmatprep.subr.bf16.mxu0 %v10579_v41  ;;  %v5347_v0 = vor.u32 %v5346_v51, %v14933_v27  ;;  %v10583_v54 = vld [vmem:[#allocation10 + $0x7e0] ss:$8 sps:$4 sm:$0xff]  }
 0x464   :  { %18648 = vst [vmem:[#allocation26_spill] sm:$0xff] %v15387_v13  ;;  %v15394_v61 = vsel %vm613_vm5, %v18650_v62, %v18649_v29  ;;  %8646 = vmatpush2.bf16.msra.mxu0 %v10577_v19  ;;  %8497 = vmatpush2.bf16.msra.mxu1 %v10580_v46  ;;  %v10585_v26 = vld [vmem:[#allocation10 + $0x7e4] ss:$8 sps:$4 sm:$0xff]   ;;  %v10589_v22 = vld [vmem:[#allocation10 + $0x6b0] ss:$8 sps:$4 sm:$0xff]  }
 0x465   :  { %18651 = vst [vmem:[#allocation28_spill] sm:$0xff] %v15394_v61  ;;  %v5374_v35 = vor.u32 %v5373_v53, %v5370_v23  ;;  %v15404_v29 = vpop.f32.mrf.mxu1  ;;  %v5348_v62 = vsel %vm422_vm1, %v14936_v44, %v5347_v0  ;;  %8647 = vmatprep.subr.bf16.mxu0 %v10585_v26  ;;  %v5366_v51 = vsel %vm422_vm1, %v5347_v0, %v14954_v38  ;;  %v10586_v44 = vld [vmem:[#allocation10 + $0x6c0] ss:$8 sps:$4 sm:$0xff]   ;;  %v10588_v19 = vld [vmem:[#allocation10 + $0x6c4] ss:$8 sps:$4 sm:$0xff]  }
 0x466   :  { %8498 = vmatprep.subr.bf16.mxu1 %v10588_v19  ;;  %v10592_v26 = vld [vmem:[#allocation10 + $0x7d0] ss:$8 sps:$4 sm:$0xff]   ;;  %v18652_v0 = vcombine.low %v14954_v38, %v14961_v59  ;;  %v10603_v38 = vld [vmem:[#allocation10 + $0x7c4] ss:$8 sps:$4 sm:$0xff]  }
 0x467   :  { %v15406_v48 = vpop.f32.mrf.mxu1  ;;  %v5375_v37 = vsel %vm422_vm1, %v14947_v7, %v5374_v35  ;;  %v9792_v23 = vcombine.low %v5374_v35, %v14951_v14  ;;  %v10594_v14 = vld [vmem:[#allocation10 + $0x7d4] ss:$8 sps:$4 sm:$0xff]   ;;  %v10598_v19 = vld [vmem:[#allocation10 + $0x690] ss:$8 sps:$4 sm:$0xff]  }
 0x468   :  { %8648 = vmatpush2.bf16.msra.mxu0 %v10583_v54  ;;  %8499 = vmatpush2.bf16.msra.mxu1 %v10586_v44  ;;  %v10591_v54 = vld [vmem:[#allocation10 + $0x6b4] ss:$8 sps:$4 sm:$0xff]   ;;  %v10601_v44 = vld [vmem:[#allocation10 + $0x7c0] ss:$8 sps:$4 sm:$0xff]  }
 0x469   :  { %6733 = vmatmul.mubr.bf16.gmra.mxu1 %v5348_v62  ;;  %v15412_v41 = vpop.f32.mrf.mxu1  ;;  %8500 = vmatprep.subr.bf16.mxu1 %v10591_v54  ;;  %v10595_v62 = vld [vmem:[#allocation10 + $0x6a0] ss:$8 sps:$4 sm:$0xff]   ;;  %v10607_v54 = vld [vmem:[#allocation10 + $0x7b0] ss:$8 sps:$4 sm:$0xff]  }
 0x46a   :  { %6742 = vmatprep.mubr.bf16.mxu1 %v5375_v37  ;;  %8649 = vmatprep.subr.bf16.mxu0 %v10594_v14  ;;  %v10597_v37 = vld [vmem:[#allocation10 + $0x6a4] ss:$8 sps:$4 sm:$0xff]  }
 0x46b   :  { %v15414_v27 = vpop.f32.mrf.mxu1  ;;  %v10612_v14 = vld [vmem:[#allocation10 + $0x7a4] ss:$8 sps:$4 sm:$0xff]  }
 0x46c   :  { %8501 = vmatpush2.bf16.msra.mxu1 %v10589_v22  ;;  %8650 = vmatpush2.bf16.msra.mxu0 %v10592_v26  ;;  %v10604_v22 = vld [vmem:[#allocation10 + $0x680] ss:$8 sps:$4 sm:$0xff]   ;;  %v10609_v26 = vld [vmem:[#allocation10 + $0x7b4] ss:$8 sps:$4 sm:$0xff]  }
 0x46d   :  { %v15419_v53 = vpop.f32.mrf.mxu1  ;;  %8502 = vmatprep.subr.bf16.mxu1 %v10597_v37  ;;  %8651 = vmatprep.subr.bf16.mxu0 %v10603_v38  ;;  %v10615_v38 = vld [vmem:[#allocation10 + $0x794] ss:$8 sps:$4 sm:$0xff]  }
 0x46f   :  { %v15421_v46 = vpop.f32.mrf.mxu1 }
 0x470   :  { %8503 = vmatpush2.bf16.msra.mxu1 %v10595_v62  ;;  %8652 = vmatpush2.bf16.msra.mxu0 %v10601_v44 }
 0x471   :  { %6743 = vmatmul.mubr.bf16.gmra.mxu1 %v5366_v51  ;;  %v15423_v7 = vpop.f32.mrf.mxu1  ;;  %8653 = vmatprep.subr.bf16.mxu0 %v10609_v26  ;;  %v10621_v26 = vld [vmem:[#allocation10 + $0x874] ss:$8 sps:$4 sm:$0xff]  }
 0x472   :  { %6752 = vmatprep.mubr.bf16.mxu1 %v9792_v23  ;;  %v10600_v23 = vld [vmem:[#allocation10 + $0x694] ss:$8 sps:$4 sm:$0xff]  }
 0x473   :  { %v15429_v35 = vpop.f32.mrf.mxu1  ;;  %8504 = vmatprep.subr.bf16.mxu1 %v10600_v23 }
 0x474   :  { %8505 = vmatpush2.bf16.msra.mxu1 %v10598_v19  ;;  %8654 = vmatpush2.bf16.msra.mxu0 %v10607_v54  ;;  %v10613_v19 = vld [vmem:[#allocation10 + $0x790] ss:$8 sps:$4 sm:$0xff]  }
 0x475   :  { %v15431_v51 = vpop.f32.mrf.mxu1  ;;  %8655 = vmatprep.subr.bf16.mxu0 %v10612_v14 }
 0x477   :  { %v15435_v59 = vpop.f32.mrf.mxu1 }
 0x479   :  { %6753 = vmatmul.mubr.bf16.gmra.mxu1 %v18652_v0  ;;  %v15437_v0 = vpop.f32.mrf.mxu1 }
 0x47a   :  { %6762 = vmatprep.mubr.bf16.mxu1 %v14999_v39  ;;  %v10606_v39 = vld [vmem:[#allocation10 + $0x684] ss:$8 sps:$4 sm:$0xff]  }
 0x47b   :  { %8506 = vmatprep.subr.bf16.mxu1 %v10606_v39  ;;  %v15439_v62 = vpop.f32.mrf.mxu1  ;;  %v10618_v39 = vld [vmem:[#allocation10 + $0x784] ss:$8 sps:$4 sm:$0xff]  }
 0x47c   :  { %8507 = vmatpush2.bf16.msra.mxu1 %v10604_v22 }
 0x47d   :  { %v15445_v37 = vpop.f32.mrf.mxu1  ;;  %9991 = vmatprep.subr.bf16.mxu1 %v10621_v26 }
 0x47f   :  { %v15447_v23 = vpop.f32.mrf.mxu1 }
 0x480   :  { %18653 = vst [vmem:[#allocation98_spill] sm:$0xff] %v15447_v23 }
 0x481   :  { %6763 = vmatmul.mubr.bf16.gmra.mxu1 %v15001_v34  ;;  %v10610_v34 = vld [vmem:[#allocation10 + $0x7a0] ss:$8 sps:$4 sm:$0xff]   ;;  %v15452_v22 = vpop.f32.mrf.mxu1 }
 0x482   :  { %6772 = vmatprep.mubr.bf16.mxu1 %v15053_v63  ;;  %v15442_v63 = vpop.f32.mrf.mxu0  ;;  %8656 = vmatpush2.bf16.msra.mxu0 %v10610_v34  ;;  %18654 = vst [vmem:[#allocation101_spill] sm:$0xff] %v15452_v22 }
 0x483   :  { %8657 = vmatprep.subr.bf16.mxu0 %v10615_v38 }
 0x484   :  { %v15449_v44 = vpop.f32.mrf.mxu0 }
 0x486   :  { %8658 = vmatpush2.bf16.msra.mxu0 %v10613_v19  ;;  %v15454_v54 = vpop.f32.mrf.mxu0 }
 0x487   :  { %8659 = vmatprep.subr.bf16.mxu0 %v10618_v39 }
 0x488   :  { %v15458_v14 = vpop.f32.mrf.mxu0 }
 0x489   :  { %6773 = vmatmul.mubr.bf16.gmra.mxu1 %v15035_v58  ;;  %v10616_v58 = vld [vmem:[#allocation10 + $0x780] ss:$8 sps:$4 sm:$0xff]  }
 0x48a   :  { %6782 = vmatprep.mubr.bf16.mxu1 %v15055_v9  ;;  %v15456_v9 = vpop.f32.mrf.mxu1  ;;  %8660 = vmatpush2.bf16.msra.mxu0 %v10616_v58 }
 0x48b   :  { %18655 = vst [vmem:[#allocation111_spill] sm:$0xff] %v15456_v9  ;;  %8782 = vmatprep.subr.bf16.mxu0 %v10621_v26 }
 0x48c   :  { %v15460_v34 = vpop.f32.mrf.mxu1 }
 0x48d   :  { %18656 = vst [vmem:[#allocation34_spill] sm:$0xff] %v15460_v34 }
 0x48e   :  { %v15462_v38 = vpop.f32.mrf.mxu1 }
 0x48f   :  { %18657 = vst [vmem:[#allocation33_spill] sm:$0xff] %v15462_v38 }
 0x490   :  { %v15466_v61 = vpop.f32.mrf.mxu1 }
 0x491   :  { %6783 = vmatmul.mubr.bf16.gmra.mxu1 %v15037_v4  ;;  %v15464_v4 = vpop.f32.mrf.mxu0  ;;  %18658 = vst [vmem:[#allocation35_spill] sm:$0xff] %v15466_v61 }
 0x492   :  { %v15470_v13 = vpop.f32.mrf.mxu1 }
 0x493   :  { %v15468_v19 = vpop.f32.mrf.mxu0  ;;  %18659 = vst [vmem:[#allocation63_spill] sm:$0xff] %v15470_v13 }
 0x494   :  { %v15472_v39 = vpop.f32.mrf.mxu1 }
 0x495   :  { %18660 = vst [vmem:[#allocation64_spill] sm:$0xff] %v15472_v39  ;;  %v15474_v58 = vpop.f32.mrf.mxu0 }
 0x496   :  { %v15476_v32 = vpop.f32.mrf.mxu1 }
 0x497   :  { %18661 = vst [vmem:[#allocation36_spill] sm:$0xff] %v15476_v32  ;;  %v15480_v47 = vpop.f32.mrf.mxu0 }
 0x498   :  { %v15478_v33 = vpop.f32.mrf.mxu1 }
 0x499   :  { %18662 = vst [vmem:[#allocation39_spill] sm:$0xff] %v15478_v33  ;;  %v15486_v20 = vpop.f32.mrf.mxu0 }
 0x49a   :  { %v15482_v26 = vpop.f32.mrf.mxu1 }
 0x49b   :  { %18663 = vst [vmem:[#allocation41_spill] sm:$0xff] %v15482_v26  ;;  %v15492_v3 = vpop.f32.mrf.mxu0 }
 0x49c   :  { %v15484_v56 = vpop.f32.mrf.mxu1 }
 0x49d   :  { %18664 = vst [vmem:[#allocation43_spill] sm:$0xff] %v15484_v56  ;;  %v15498_v32 = vpop.f32.mrf.mxu0 }
 0x49e   :  { %v15488_v21 = vpop.f32.mrf.mxu1 }
 0x49f   :  { %18665 = vst [vmem:[#allocation46_spill] sm:$0xff] %v15488_v21  ;;  %v15504_v26 = vpop.f32.mrf.mxu0 }
 0x4a0   :  { %v15490_v1 = vpop.f32.mrf.mxu1 }
 0x4a1   :  { %18666 = vst [vmem:[#allocation45_spill] sm:$0xff] %v15490_v1  ;;  %v15508_v39 = vpop.f32.mrf.mxu0 }
 0x4a2   :  { %v15494_v30 = vpop.f32.mrf.mxu1 }
 0x4a3   :  { %18667 = vst [vmem:[#allocation40_spill] sm:$0xff] %v15494_v30  ;;  %v15514_v13 = vpop.f32.mrf.mxu0 }
 0x4a4   :  { %v15496_v45 = vpop.f32.mrf.mxu1 }
 0x4a5   :  { %18668 = vst [vmem:[#allocation47_spill] sm:$0xff] %v15496_v45  ;;  %v15518_v45 = vpop.f32.mrf.mxu0 }
 0x4a6   :  { %v15500_v33 = vpop.f32.mrf.mxu1 }
 0x4a7   :  { %18669 = vst [vmem:[#allocation125_spill] sm:$0xff] %v15500_v33  ;;  %v15522_v33 = vpop.f32.mrf.mxu0 }
 0x4a8   :  { %v15502_v42 = vpop.f32.mrf.mxu1 }
 0x4a9   :  { %18670 = vst [vmem:[#allocation130_spill] sm:$0xff] %v15502_v42  ;;  %v15524_v42 = vpop.f32.mrf.mxu0 }
 0x4aa   :  { %v15506_v56 = vpop.f32.mrf.mxu1 }
 0x4ab   :  { %18671 = vst [vmem:[#allocation109_spill] sm:$0xff] %v15506_v56  ;;  %v15528_v56 = vpop.f32.mrf.mxu0 }
 0x4ac   :  { %v15510_v21 = vpop.f32.mrf.mxu1  ;;  %18677 = vst [vmem:[#allocation129_spill] sm:$0xff] %v15528_v56 }
 0x4ad   :  { %18672 = vst [vmem:[#allocation52_spill] sm:$0xff] %v15510_v21  ;;  %v15532_v21 = vpop.f32.mrf.mxu0 }
 0x4ae   :  { %v15512_v1 = vpop.f32.mrf.mxu1  ;;  %18679 = vst [vmem:[#allocation139_spill] sm:$0xff] %v15532_v21 }
 0x4af   :  { %18673 = vst [vmem:[#allocation124_spill] sm:$0xff] %v15512_v1 }
 0x4b0   :  { %v15516_v30 = vpop.f32.mrf.mxu1 }
 0x4b1   :  { %18674 = vst [vmem:[#allocation136_spill] sm:$0xff] %v15516_v30  ;;  %v15538_v30 = vpop.f32.mrf.mxu0 }
 0x4b2   :  { %v15520_v61 = vpop.f32.mrf.mxu1  ;;  %18682 = vst [vmem:[#allocation110_spill] sm:$0xff] %v15538_v30 }
 0x4b3   :  { %18675 = vst [vmem:[#allocation113_spill] sm:$0xff] %v15520_v61  ;;  %v15544_v5 = vpop.f32.mrf.mxu0 }
 0x4b4   :  { %v15526_v38 = vpop.f32.mrf.mxu1  ;;  %18685 = vst [vmem:[#allocation117_spill] sm:$0xff] %v15544_v5 }
 0x4b5   :  { %18676 = vst [vmem:[#allocation122_spill] sm:$0xff] %v15526_v38  ;;  %v15550_v56 = vpop.f32.mrf.mxu0 }
 0x4b6   :  { %v15530_v43 = vpop.f32.mrf.mxu1  ;;  %18688 = vst [vmem:[#allocation30_spill] sm:$0xff] %v15550_v56 }
 0x4b7   :  { %18678 = vst [vmem:[#allocation71_spill] sm:$0xff] %v15530_v43 }
 0x4b8   :  { %v15534_v1 = vpop.f32.mrf.mxu1 }
 0x4b9   :  { %18680 = vst [vmem:[#allocation134_spill] sm:$0xff] %v15534_v1  ;;  %v15556_v1 = vpop.f32.mrf.mxu0 }
 0x4ba   :  { %v15536_v34 = vpop.f32.mrf.mxu1  ;;  %18691 = vst [vmem:[#allocation123_spill] sm:$0xff] %v15556_v1 }
 0x4bb   :  { %18681 = vst [vmem:[#allocation115_spill] sm:$0xff] %v15536_v34 }
 0x4bc   :  { %v15540_v9 = vpop.f32.mrf.mxu1 }
 0x4bd   :  { %18683 = vst [vmem:[#allocation31_spill] sm:$0xff] %v15540_v9  ;;  %v15562_v9 = vpop.f32.mrf.mxu0 }
 0x4be   :  { %v15542_v61 = vpop.f32.mrf.mxu1  ;;  %18694 = vst [vmem:[#allocation128_spill] sm:$0xff] %v15562_v9 }
 0x4bf   :  { %18684 = vst [vmem:[#allocation114_spill] sm:$0xff] %v15542_v61 }
 0x4c0   :  { %v15546_v22 = vpop.f32.mrf.mxu1 }
 0x4c1   :  { %18686 = vst [vmem:[#allocation32_spill] sm:$0xff] %v15546_v22  ;;  %v15568_v22 = vpop.f32.mrf.mxu0 }
 0x4c2   :  { %v15548_v38 = vpop.f32.mrf.mxu1  ;;  %18697 = vst [vmem:[#allocation58_spill] sm:$0xff] %v15568_v22 }
 0x4c3   :  { %18687 = vst [vmem:[#allocation118_spill] sm:$0xff] %v15548_v38 }
 0x4c4   :  { %v15552_v43 = vpop.f32.mrf.mxu1 }
 0x4c5   :  { %18689 = vst [vmem:[#allocation121_spill] sm:$0xff] %v15552_v43  ;;  %v15572_v43 = vpop.f32.mrf.mxu0 }
 0x4c6   :  { %v15554_v21 = vpop.f32.mrf.mxu1  ;;  %18699 = vst [vmem:[#allocation120_spill] sm:$0xff] %v15572_v43 }
 0x4c7   :  { %18690 = vst [vmem:[#allocation105_spill] sm:$0xff] %v15554_v21  ;;  %v15577_v9 = vpop.f32.mrf.mxu0 }
 0x4c8   :  { %v15558_v34 = vpop.f32.mrf.mxu1 }
 0x4c9   :  { %18692 = vst [vmem:[#allocation107_spill] sm:$0xff] %v15558_v34 }
 0x4ca   :  { %v15560_v30 = vpop.f32.mrf.mxu1 }
 0x4cb   :  { %18693 = vst [vmem:[#allocation126_spill] sm:$0xff] %v15560_v30 }
 0x4cc   :  { %v15564_v61 = vpop.f32.mrf.mxu1 }
 0x4cd   :  { %18695 = vst [vmem:[#allocation112_spill] sm:$0xff] %v15564_v61 }
 0x4ce   :  { %v15566_v5 = vpop.f32.mrf.mxu1 }
 0x4cf   :  { %18696 = vst [vmem:[#allocation132_spill] sm:$0xff] %v15566_v5 }
 0x4d0   :  { %v15570_v38 = vpop.f32.mrf.mxu1 }
 0x4d1   :  { %18698 = vst [vmem:[#allocation116_spill] sm:$0xff] %v15570_v38 }
 0x4d2   :  { %v6654_v56 = vpop.f32.mrf.mxu1 }
 0x4d3   :  { %v6655_v21 = vadd.f32 %v6654_v56, %v15229_v49 }
 0x4d4   :  { %v6656_v1 = vpop.f32.mrf.mxu1 }
 0x4d5   :  { %v6828_v34 = vadd.f32 %v15442_v63, %v6655_v21  ;;  %v6657_v30 = vadd.f32 %v6656_v1, %v15287_v10  ;;  %v15590_v1 = vpop.f32.mrf.mxu0 }
 0x4d6   :  { %v6658_v23 = vpop.f32.mrf.mxu1 }
 0x4d7   :  { %v15580_v61 = vadd.f32 %v14970_v55, %v6828_v34  ;;  %v6830_v5 = vadd.f32 %v15449_v44, %v6657_v30  ;;  %v6659_v38 = vadd.f32 %v6658_v23, %v15340_v60 }
 0x4d8   :  { %v6660_v22 = vpop.f32.mrf.mxu1 }
 0x4d9   :  { %18700 = vst [vmem:[#allocation119_spill] sm:$0xff] %v15580_v61  ;;  %v6832_v43 = vadd.f32 %v15454_v54, %v6659_v38  ;;  %v6661_v49 = vadd.f32 %v6660_v22, %v15399_v40  ;;  %v7339_v56 = vmul.f32 0.1, %v15580_v61  ;;  %v15588_v21 = vadd.f32 %v14977_v2, %v6830_v5 }
 0x4da   :  { %v6664_v10 = vpop.f32.mrf.mxu1 }
 0x4db   :  { %18701 = vst [vmem:[#allocation138_spill] sm:$0xff] %v15588_v21  ;;  %v15593_v55 = vadd.f32 %v14990_v52, %v6832_v43  ;;  %v6834_v30 = vadd.f32 %v15458_v14, %v6661_v49  ;;  %v6665_v60 = vadd.f32 %v6664_v10, %v15401_v18  ;;  %v7395_v2 = vmax.f32 %v15580_v61, %v7339_v56  ;;  %v15605_v52 = vpop.f32.mrf.mxu0 }
 0x4dc   :  { %v6666_v63 = vpop.f32.mrf.mxu1  ;;  %v7340_v5 = vmul.f32 0.1, %v15588_v21 }
 0x4dd   :  { %18702 = vst [vmem:[#allocation53_spill] sm:$0xff] %v15593_v55  ;;  %v7341_v23 = vmul.f32 0.1, %v15593_v55  ;;  %v15599_v40 = vadd.f32 %v14997_v11, %v6834_v30  ;;  %v6667_v44 = vadd.f32 %v6666_v63, %v15404_v29  ;;  %v6838_v22 = vadd.f32 %v15464_v4, %v6665_v60  ;;  %v15624_v60 = vpop.f32.mrf.mxu0 }
 0x4de   :  { %v6668_v43 = vpop.f32.mrf.mxu1  ;;  %v7396_v10 = vmax.f32 %v15588_v21, %v7340_v5 }
 0x4df   :  { %18703 = vst [vmem:[#allocation140_spill] sm:$0xff] %v15599_v40  ;;  %v7397_v54 = vmax.f32 %v15593_v55, %v7341_v23  ;;  %v7342_v18 = vmul.f32 0.1, %v15599_v40  ;;  %v6840_v14 = vadd.f32 %v15468_v19, %v6667_v44  ;;  %v6669_v11 = vadd.f32 %v6668_v43, %v15406_v48  ;;  %v18770_v55 = vld [vmem:[#allocation40_spill] sm:$0xff] }
 0x4e0   :  { %v15612_v34 = vadd.f32 %v15009_v36, %v6838_v22  ;;  %v6670_v29 = vpop.f32.mrf.mxu1  ;;  %v15637_v22 = vld [vmem:[#allocation10 + $0x870] ss:$8 sps:$4 sm:$0xff]  }
 0x4e1   :  { %v15614_v38 = vpack.c.bf16 %v7397_v54, %v7395_v2  ;;  %v15617_v49 = vadd.f32 %v15016_v17, %v6840_v14  ;;  %v6842_v4 = vadd.f32 %v15474_v58, %v6669_v11  ;;  %v6671_v56 = vadd.f32 %v6670_v29, %v15412_v41 }
 0x4e2   :  { %18704 = vst [vmem:[#allocation142_spill] sm:$0xff] %v15612_v34  ;;  %v7343_v30 = vmul.f32 0.1, %v15612_v34  ;;  %v6674_v19 = vpop.f32.mrf.mxu1  ;;  %v7398_v48 = vmax.f32 %v15599_v40, %v7342_v18  ;;  %v15977_v40 = vld [vmem:[#allocation10 + $0x8d0] ss:$8 sps:$4 sm:$0xff]  }
 0x4e3   :  { %18705 = vst [vmem:[#allocation127_spill] sm:$0xff] %v15617_v49  ;;  %v7344_v36 = vmul.f32 0.1, %v15617_v49  ;;  %v15628_v63 = vadd.f32 %v15026_v25, %v6842_v4  ;;  %v6844_v17 = vadd.f32 %v15480_v47, %v6671_v56  ;;  %v6675_v58 = vadd.f32 %v6674_v19, %v15414_v27  ;;  %v15645_v27 = vld [vmem:[#allocation10 + $0x864] ss:$8 sps:$4 sm:$0xff]   ;;  %v15653_v56 = vpop.f32.mrf.mxu0 }
 0x4e4   :  { %v7399_v41 = vmax.f32 %v15612_v34, %v7343_v30  ;;  %v6676_v23 = vpop.f32.mrf.mxu1  ;;  %v15633_v44 = vpack.c.bf16 %v7398_v48, %v7396_v10  ;;  %v7484_v2 = vshrl.u32 %v15614_v38, 16  ;;  %v7487_v5 = vshll.u32 %v15614_v38, 16 }
 0x4e5   :  { %18706 = vst [vmem:[#allocation131_spill] sm:$0xff] %v15628_v63  ;;  %v7400_v43 = vmax.f32 %v15617_v49, %v7344_v36  ;;  %v7345_v25 = vmul.f32 0.1, %v15628_v63  ;;  %v15642_v54 = vadd.f32 %v15033_v6, %v6844_v17  ;;  %v6848_v47 = vadd.f32 %v15486_v20, %v6675_v58  ;;  %v15670_v58 = vld [vmem:[#allocation10 + $0x860] ss:$8 sps:$4 sm:$0xff]  }
 0x4e6   :  { %v6677_v18 = vadd.f32 %v6676_v23, %v15419_v53  ;;  %8508 = vmatprep.mubr.bf16.mxu1 %v15633_v44  ;;  %v6678_v14 = vpop.f32.mrf.mxu1  ;;  %v7501_v11 = vshrl.u32 %v15633_v44, 16  ;;  %v7504_v29 = vshll.u32 %v15633_v44, 16  ;;  %v15651_v4 = vrot.slane %v7484_v2, 1 }
 0x4e7   :  { %18707 = vst [vmem:[#allocation133_spill] sm:$0xff] %v15642_v54  ;;  %v7401_v6 = vmax.f32 %v15628_v63, %v7345_v25  ;;  %v7346_v10 = vmul.f32 0.1, %v15642_v54  ;;  %v15658_v20 = vadd.f32 %v15044_v31, %v6848_v47  ;;  %v6679_v53 = vadd.f32 %v6678_v14, %v15421_v46  ;;  %8509 = vmatmul.mubr.bf16.vlgmr.msra.gmra.mxu1 %v15614_v38  ;;  %v15688_v14 = vpop.f32.mrf.mxu0 }
 0x4e8   :  { %v6850_v30 = vadd.f32 %v15492_v3, %v6677_v18  ;;  %v6680_v19 = vpop.f32.mrf.mxu1  ;;  %v15663_v48 = vrot.slane %v7501_v11, 1  ;;  %v15665_v36 = vrot.slane %v7504_v29, 2  ;;  %v15667_v17 = vrot.slane %v7487_v5, 2  ;;  %10007 = vmatpush1.bf16.msra.mxu1 %v15637_v22  ;;  %v15677_v3 = vld [vmem:[#allocation10 + $0x854] ss:$8 sps:$4 sm:$0xff]  }
 0x4e9   :  { %18708 = vst [vmem:[#allocation54_spill] sm:$0xff] %v15658_v20  ;;  %v7347_v31 = vmul.f32 0.1, %v15658_v20  ;;  %v6852_v23 = vadd.f32 %v15498_v32, %v6679_v53  ;;  %v6681_v46 = vadd.f32 %v6680_v19, %v15423_v7  ;;  %v7402_v2 = vmax.f32 %v15642_v54, %v7346_v10  ;;  %9992 = vmatprep.subr.bf16.mxu1 %v15645_v27 }
 0x4ea   :  { %v15680_v25 = vadd.f32 %v15051_v57, %v6850_v30  ;;  %v6684_v5 = vpop.f32.mrf.mxu1  ;;  %v15682_v47 = vpack.c.bf16 %v7401_v6, %v7399_v41  ;;  %v7507_v18 = vor.u32 %v15665_v36, %v15663_v48  ;;  %v7490_v32 = vor.u32 %v15667_v17, %v15651_v4  ;;  %v15702_v30 = vld [vmem:[#allocation10 + $0x850] ss:$8 sps:$4 sm:$0xff]  }
 0x4eb   :  { %v7403_v7 = vmax.f32 %v15658_v20, %v7347_v31  ;;  %v15692_v11 = vadd.f32 %v15062_v24, %v6852_v23  ;;  %v6854_v29 = vadd.f32 %v15504_v26, %v6681_v46  ;;  %v6685_v57 = vadd.f32 %v6684_v5, %v15429_v35 }
 0x4ec   :  { %18709 = vst [vmem:[#allocation62_spill] sm:$0xff] %v15680_v25  ;;  %v7348_v41 = vmul.f32 0.1, %v15680_v25  ;;  %v6686_v6 = vpop.f32.mrf.mxu1  ;;  %v15697_v10 = vpack.c.bf16 %v7402_v2, %v7400_v43  ;;  %v7492_v53 = vshrl.u32 %v15682_v47, 16  ;;  %v7495_v4 = vshll.u32 %v15682_v47, 16  ;;  %10008 = vmatpush1.bf16.msra.mxu1 %v15670_v58 }
 0x4ed   :  { %18710 = vst [vmem:[#allocation72_spill] sm:$0xff] %v15692_v11  ;;  %v7349_v24 = vmul.f32 0.1, %v15692_v11  ;;  %v15706_v19 = vadd.f32 %v15069_v12, %v6854_v29  ;;  %v6858_v35 = vadd.f32 %v15508_v39, %v6685_v57  ;;  %v6687_v26 = vadd.f32 %v6686_v6, %v15431_v51  ;;  %9993 = vmatprep.subr.bf16.mxu1 %v15677_v3  ;;  %v15711_v43 = vld [vmem:[#allocation10 + $0x844] ss:$8 sps:$4 sm:$0xff]   ;;  %v15717_v12 = vpop.f32.mrf.mxu0 }
 0x4ee   :  { %v7404_v48 = vmax.f32 %v15680_v25, %v7348_v41  ;;  %8518 = vmatprep.mubr.bf16.mxu1 %v15697_v10  ;;  %v6688_v36 = vpop.f32.mrf.mxu1  ;;  %v7509_v17 = vshrl.u32 %v15697_v10, 16  ;;  %v7512_v31 = vshll.u32 %v15697_v10, 16  ;;  %v7494_v23 = vrot.slane %v7492_v53, 1  ;;  %v15728_v53 = vld [vmem:[#allocation10 + $0x840] ss:$8 sps:$4 sm:$0xff]  }
 0x4ef   :  { %18711 = vst [vmem:[#allocation135_spill] sm:$0xff] %v15706_v19  ;;  %v7405_v39 = vmax.f32 %v15692_v11, %v7349_v24  ;;  %v7350_v51 = vmul.f32 0.1, %v15706_v19  ;;  %v15722_v46 = vadd.f32 %v15076_v28, %v6858_v35  ;;  %v6860_v2 = vadd.f32 %v15514_v13, %v6687_v26  ;;  %8519 = vmatmul.mubr.bf16.gmra.mxu1 %v15682_v47 }
 0x4f0   :  { %v6689_v5 = vadd.f32 %v6688_v36, %v15435_v59  ;;  %v6690_v29 = vpop.f32.mrf.mxu1  ;;  %v7511_v57 = vrot.slane %v7509_v17, 1  ;;  %v7514_v41 = vrot.slane %v7512_v31, 2  ;;  %v7497_v6 = vrot.slane %v7495_v4, 2  ;;  %10009 = vmatpush1.bf16.msra.mxu1 %v15702_v30  ;;  %v15744_v17 = vpop.f32.mrf.mxu0 }
 0x4f1   :  { %18712 = vst [vmem:[#allocation137_spill] sm:$0xff] %v15722_v46  ;;  %v7351_v24 = vmul.f32 0.1, %v15722_v46  ;;  %v15732_v11 = vadd.f32 %v15083_v15, %v6860_v2  ;;  %v6691_v28 = vadd.f32 %v6690_v29, %v15437_v0  ;;  %v7406_v13 = vmax.f32 %v15706_v19, %v7350_v51  ;;  %9994 = vmatprep.subr.bf16.mxu1 %v15711_v43 }
 0x4f2   :  { %v6862_v59 = vadd.f32 %v15518_v45, %v6689_v5  ;;  %v6694_v35 = vpop.f32.mrf.mxu1  ;;  %v15738_v26 = vor.u32 %v7514_v41, %v7511_v57  ;;  %v15740_v4 = vor.u32 %v7497_v6, %v7494_v23  ;;  %v15742_v36 = vpack.c.bf16 %v7405_v39, %v7403_v7  ;;  %v15760_v39 = vld [vmem:[#allocation10 + $0x834] ss:$8 sps:$4 sm:$0xff]  }
 0x4f3   :  { %18713 = vst [vmem:[#allocation141_spill] sm:$0xff] %v15732_v11  ;;  %v7407_v15 = vmax.f32 %v15722_v46, %v7351_v24  ;;  %v7352_v31 = vmul.f32 0.1, %v15732_v11  ;;  %v6864_v0 = vadd.f32 %v15522_v33, %v6691_v28  ;;  %v6695_v51 = vadd.f32 %v6694_v35, %v15439_v62  ;;  %v15780_v24 = vpop.f32.mrf.mxu0 }
 0x4f4   :  { %v15751_v2 = vadd.f32 %v15090_v50, %v6862_v59  ;;  %v6696_v45 = vpop.f32.mrf.mxu1  ;;  %v7516_v23 = vsel %vm422_vm1, %v7507_v18, %v15738_v26  ;;  %v15755_v5 = vpack.c.bf16 %v7406_v13, %v7404_v48  ;;  %v7499_v7 = vsel %vm422_vm1, %v7490_v32, %v15740_v4  ;;  %10010 = vmatpush1.bf16.msra.mxu1 %v15728_v53  ;;  %v15769_v18 = vld [vmem:[#allocation10 + $0x830] ss:$8 sps:$4 sm:$0xff]  }
 0x4f5   :  { %v15762_v29 = vpack.c.bf16 %v7407_v15, %v7407_v15  ;;  %v7408_v33 = vmax.f32 %v15732_v11, %v7352_v31  ;;  %v15766_v50 = vadd.f32 %v15097_v8, %v6864_v0  ;;  %v6868_v62 = vadd.f32 %v15524_v42, %v6695_v51  ;;  %8661 = vmatprep.mubr.bf16.mxu0 %v7516_v23  ;;  %v15778_v8 = vld [vmem:[#allocation10 + $0x824] ss:$8 sps:$4 sm:$0xff]   ;;  %v18719_v23 = vld [vmem:[#allocation139_spill] sm:$0xff] }
 0x4f6   :  { %18714 = vst [vmem:[#allocation61_spill] sm:$0xff] %v15751_v2  ;;  %v15772_v48 = vmul.f32 0.1, %v15751_v2  ;;  %v6697_v32 = vadd.f32 %v6696_v45, %v15445_v37  ;;  %8528 = vmatprep.mubr.bf16.mxu1 %v15755_v5  ;;  %8662 = vmatmul.mubr.bf16.vlgmr.msra.gmra.mxu0 %v7499_v7  ;;  %v6698_v57 = vpop.f32.mrf.mxu1  ;;  %v7527_v41 = vshrl.u32 %v15755_v5, 16  ;;  %v7530_v6 = vshll.u32 %v15755_v5, 16  ;;  %v18717_v37 = vld [vmem:[#allocation98_spill] sm:$0xff] }
 0x4f7   :  { %18715 = vst [vmem:[#allocation73_spill] sm:$0xff] %v15766_v50  ;;  %v15782_v42 = vpack.c.bf16 %v7408_v33, %v7408_v33  ;;  %v15785_v28 = vmul.f32 0.1, %v15766_v50  ;;  %v15788_v13 = vadd.f32 %v15104_v16, %v6868_v62  ;;  %v6699_v59 = vadd.f32 %v6698_v57, %v18717_v37  ;;  %8529 = vmatmul.mubr.bf16.gmra.mxu1 %v15742_v36  ;;  %v18718_v15 = vld [vmem:[#allocation129_spill] sm:$0xff] }
 0x4f8   :  { %8783 = vmatpush1.bf16.msra.mxu0 %v15637_v22  ;;  %v7409_v35 = vmax.f32 %v15751_v2, %v15772_v48  ;;  %v6870_v31 = vadd.f32 %v18718_v15, %v6697_v32  ;;  %v6700_v0 = vpop.f32.mrf.mxu1  ;;  %v7529_v51 = vrot.slane %v7527_v41, 1  ;;  %v7532_v45 = vrot.slane %v7530_v6, 2  ;;  %9995 = vmatprep.subr.bf16.mxu1 %v15760_v39  ;;  %v18720_v33 = vld [vmem:[#allocation101_spill] sm:$0xff]  ;;  %v18721_v32 = vld [vmem:[#allocation55_spill] sm:$0xff]  ;;  %v15815_v15 = vpop.f32.mrf.mxu0 }
 0x4f9   :  { %18716 = vst [vmem:[#allocation143_spill] sm:$0xff] %v15788_v13  ;;  %8784 = vmatprep.subr.bf16.mxu0 %v15645_v27  ;;  %v7355_v16 = vmul.f32 0.1, %v15788_v13  ;;  %v6872_v7 = vadd.f32 %v18719_v23, %v6699_v59  ;;  %v6701_v62 = vadd.f32 %v6700_v0, %v18720_v33  ;;  %v7518_v22 = vshrl.u32 %v15742_v36, 16  ;;  %10011 = vmatpush1.bf16.msra.mxu1 %v15769_v18  ;;  %v15803_v48 = vld [vmem:[#allocation10 + $0x820] ss:$8 sps:$4 sm:$0xff]  }
 0x4fa   :  { %v15806_v57 = vadd.f32 %v18721_v32, %v6870_v31  ;;  %v6704_v41 = vpop.f32.mrf.mxu1  ;;  %v15808_v6 = vor.u32 %v7532_v45, %v7529_v51  ;;  %v7521_v27 = vshll.u32 %v15742_v36, 16  ;;  %v7545_v37 = vshrl.u32 %v15782_v42, 16  ;;  %9996 = vmatprep.subr.bf16.mxu1 %v15778_v8  ;;  %v15813_v59 = vld [vmem:[#allocation10 + $0x814] ss:$8 sps:$4 sm:$0xff]  }
 0x4fb   :  { %v7411_v0 = vmax.f32 %v15788_v13, %v7355_v16  ;;  %v18723_v23 = vld [vmem:[#allocation82_spill] sm:$0xff]  ;;  %v18726_v2 = vld [vmem:[#allocation111_spill] sm:$0xff]  ;;  %v7520_v19 = vrot.slane %v7518_v22, 1  ;;  %v7548_v13 = vshll.u32 %v15782_v42, 16 }
 0x4fc   :  { %18722 = vst [vmem:[#allocation83_spill] sm:$0xff] %v15806_v57  ;;  %v15819_v33 = vadd.f32 %v18723_v23, %v6872_v7  ;;  %v18725_v31 = vld [vmem:[#allocation110_spill] sm:$0xff]  ;;  %v6705_v51 = vadd.f32 %v6704_v41, %v18726_v2  ;;  %8785 = vmatpush1.bf16.msra.mxu0 %v15670_v58  ;;  %v7356_v45 = vmul.f32 0.1, %v15806_v57  ;;  %v6706_v11 = vpop.f32.mrf.mxu1  ;;  %v7534_v46 = vsel %vm422_vm1, %v15738_v26, %v15808_v6  ;;  %v18727_v7 = vld [vmem:[#allocation75_spill] sm:$0xff]  ;;  %v18729_v2 = vld [vmem:[#allocation117_spill] sm:$0xff] }
 0x4fd   :  { %v6874_v32 = vadd.f32 %v18725_v31, %v6701_v62  ;;  %v7523_v25 = vrot.slane %v7521_v27, 2  ;;  %8786 = vmatprep.subr.bf16.mxu0 %v15677_v3  ;;  %v18730_v58 = vld [vmem:[#allocation34_spill] sm:$0xff]  ;;  %8671 = vmatprep.mubr.bf16.mxu0 %v7534_v46  ;;  %v7547_v27 = vrot.slane %v7545_v37, 1  ;;  %v7550_v20 = vrot.slane %v7548_v13, 2 }
 0x4fe   :  { %18724 = vst [vmem:[#allocation67_spill] sm:$0xff] %v15819_v33  ;;  %v15830_v16 = vmul.f32 0.1, %v15819_v33  ;;  %v6878_v41 = vadd.f32 %v18729_v2, %v6705_v51  ;;  %v6707_v23 = vadd.f32 %v6706_v11, %v18730_v58  ;;  %10012 = vmatpush1.bf16.msra.mxu1 %v15803_v48  ;;  %v15838_v31 = vld [vmem:[#allocation10 + $0x810] ss:$8 sps:$4 sm:$0xff]   ;;  %v7412_v26 = vmax.f32 %v15806_v57, %v7356_v45  ;;  %v6708_v3 = vpop.f32.mrf.mxu1  ;;  %v15847_v51 = vpop.f32.mrf.mxu0  ;;  %v18734_v45 = vld [vmem:[#allocation33_spill] sm:$0xff] }
 0x4ff   :  { %v15833_v62 = vadd.f32 %v18727_v7, %v6874_v32  ;;  %v15841_v22 = vor.u32 %v7523_v25, %v7520_v19  ;;  %9997 = vmatprep.subr.bf16.mxu1 %v15813_v59  ;;  %v15845_v32 = vld [vmem:[#allocation10 + $0x804] ss:$8 sps:$4 sm:$0xff]   ;;  %v18733_v25 = vld [vmem:[#allocation30_spill] sm:$0xff]  ;;  %v6709_v58 = vadd.f32 %v6708_v3, %v18734_v45  ;;  %v7551_v13 = vor.u32 %v7550_v20, %v7547_v27 }
 0x500   :  { %v7413_v11 = vmax.f32 %v15819_v33, %v15830_v16  ;;  %v18731_v7 = vld [vmem:[#allocation84_spill] sm:$0xff]  ;;  %v6880_v19 = vadd.f32 %v18733_v25, %v6707_v23  ;;  %8787 = vmatpush1.bf16.msra.mxu0 %v15702_v30  ;;  %v6710_v57 = vpop.f32.mrf.mxu1  ;;  %v7410_v16 = vmax.f32 %v15766_v50, %v15785_v28  ;;  %v18737_v30 = vld [vmem:[#allocation35_spill] sm:$0xff]  ;;  %v15869_v25 = vpack.c.bf16 %v7411_v0, %v7409_v35 }
 0x501   :  { %18728 = vst [vmem:[#allocation20_spill] sm:$0xff] %v15833_v62  ;;  %v7358_v46 = vmul.f32 0.1, %v15833_v62  ;;  %v15853_v2 = vadd.f32 %v18731_v7, %v6878_v41  ;;  %v7525_v37 = vsel %vm422_vm1, %v15740_v4, %v15841_v22  ;;  %8788 = vmatprep.subr.bf16.mxu0 %v15711_v43  ;;  %v18735_v7 = vld [vmem:[#allocation38_spill] sm:$0xff]  ;;  %v6711_v23 = vadd.f32 %v6710_v57, %v18737_v30  ;;  %v18739_v4 = vld [vmem:[#allocation123_spill] sm:$0xff]  ;;  %v18741_v0 = vld [vmem:[#allocation128_spill] sm:$0xff] }
 0x502   :  { %v15866_v33 = vadd.f32 %v18735_v7, %v6880_v19  ;;  %8672 = vmatmul.mubr.bf16.gmra.mxu0 %v7525_v37  ;;  %18738 = vst [vmem:[#allocation91_spill] sm:$0xff] %v15869_v25  ;;  %10013 = vmatpush1.bf16.msra.mxu1 %v15838_v31  ;;  %v6882_v3 = vadd.f32 %v18739_v4, %v6709_v58  ;;  %v6714_v28 = vpop.f32.mrf.mxu1  ;;  %v7536_v43 = vshrl.u32 %v15762_v29, 16  ;;  %v15876_v50 = vld [vmem:[#allocation10 + $0x800] ss:$8 sps:$4 sm:$0xff]   ;;  %v15879_v19 = vpop.f32.mrf.mxu0  ;;  %v18742_v7 = vld [vmem:[#allocation63_spill] sm:$0xff]  ;;  %v7539_v4 = vshll.u32 %v15762_v29, 16 }
 0x503   :  { %18732 = vst [vmem:[#allocation88_spill] sm:$0xff] %v15853_v2  ;;  %v7359_v41 = vmul.f32 0.1, %v15853_v2  ;;  %v15873_v45 = vpack.c.bf16 %v7412_v26, %v7410_v16  ;;  %9998 = vmatprep.subr.bf16.mxu1 %v15845_v32  ;;  %v6884_v37 = vadd.f32 %v18741_v0, %v6711_v23  ;;  %v6715_v58 = vadd.f32 %v6714_v28, %v18742_v7  ;;  %v15886_v20 = vld [vmem:[#allocation10 + $0x8f4] ss:$8 sps:$4 sm:$0xff]   ;;  %v18745_v28 = vld [vmem:[#allocation69_spill] sm:$0xff] }
 0x504   :  { %18736 = vst [vmem:[#allocation21_spill] sm:$0xff] %v15866_v33  ;;  %v7360_v35 = vmul.f32 0.1, %v15866_v33  ;;  %8789 = vmatpush1.bf16.msra.mxu0 %v15728_v53  ;;  %v18743_v26 = vld [vmem:[#allocation18_spill] sm:$0xff]  ;;  %v7552_v16 = vsel %vm422_vm1, %v15808_v6, %v7551_v13  ;;  %v6716_v30 = vpop.f32.mrf.mxu1 }
 0x505   :  { %18740 = vst [vmem:[#allocation95_spill] sm:$0xff] %v15873_v45  ;;  %v7415_v57 = vmax.f32 %v15853_v2, %v7359_v41  ;;  %v15889_v27 = vadd.f32 %v18743_v26, %v6882_v3  ;;  %8538 = vmatprep.mubr.bf16.mxu1 %v15873_v45  ;;  %v7538_v41 = vrot.slane %v7536_v43, 1  ;;  %8790 = vmatprep.subr.bf16.mxu0 %v15760_v39  ;;  %v18747_v0 = vld [vmem:[#allocation58_spill] sm:$0xff]  ;;  %v7571_v6 = vshrl.u32 %v15873_v45, 16  ;;  %v18748_v43 = vld [vmem:[#allocation64_spill] sm:$0xff] }
 0x506   :  { %v7416_v23 = vmax.f32 %v15866_v33, %v7360_v35  ;;  %v15898_v53 = vadd.f32 %v18745_v28, %v6884_v37  ;;  %8681 = vmatprep.mubr.bf16.mxu0 %v7552_v16  ;;  %v6888_v3 = vadd.f32 %v18747_v0, %v6715_v58  ;;  %8539 = vmatmul.mubr.bf16.gmra.mxu1 %v15869_v25  ;;  %v7541_v26 = vrot.slane %v7539_v4, 2  ;;  %v6718_v2 = vpop.f32.mrf.mxu1  ;;  %v15909_v35 = vld [vmem:[#allocation10 + $0x8f0] ss:$8 sps:$4 sm:$0xff]   ;;  %v15911_v37 = vpop.f32.mrf.mxu0  ;;  %v18749_v16 = vld [vmem:[#allocation85_spill] sm:$0xff]  ;;  %v18751_v0 = vld [vmem:[#allocation36_spill] sm:$0xff] }
 0x507   :  { %18744 = vst [vmem:[#allocation70_spill] sm:$0xff] %v15889_v27  ;;  %v15904_v13 = vmul.f32 0.1, %v15889_v27  ;;  %v6717_v7 = vadd.f32 %v6716_v30, %v18748_v43  ;;  %v7414_v39 = vmax.f32 %v15833_v62, %v7358_v46  ;;  %10014 = vmatpush1.bf16.msra.mxu1 %v15876_v50  ;;  %v6719_v33 = vadd.f32 %v6718_v2, %v18751_v0  ;;  %v18753_v30 = vld [vmem:[#allocation120_spill] sm:$0xff] }
 0x508   :  { %18746 = vst [vmem:[#allocation22_spill] sm:$0xff] %v15898_v53  ;;  %v15914_v58 = vmul.f32 0.1, %v15898_v53  ;;  %v15917_v28 = vadd.f32 %v18749_v16, %v6888_v3  ;;  %v15920_v54 = vpack.c.bf16 %v7415_v57, %v7413_v11  ;;  %8791 = vmatpush1.bf16.msra.mxu0 %v15769_v18  ;;  %9999 = vmatprep.subr.bf16.mxu1 %v15886_v20  ;;  %v6720_v62 = vpop.f32.mrf.mxu1  ;;  %v15930_v3 = vld [vmem:[#allocation10 + $0x8e4] ss:$8 sps:$4 sm:$0xff]   ;;  %v18754_v57 = vld [vmem:[#allocation39_spill] sm:$0xff] }
 0x509   :  { %v6890_v4 = vadd.f32 %v18753_v30, %v6717_v7  ;;  %v7542_v43 = vor.u32 %v7541_v26, %v7538_v41  ;;  %v15927_v63 = vpack.c.bf16 %v7416_v23, %v7414_v39  ;;  %8792 = vmatprep.subr.bf16.mxu0 %v15778_v8  ;;  %v6892_v2 = vadd.f32 %v15577_v9, %v6719_v33  ;;  %v18755_v0 = vld [vmem:[#allocation48_spill] sm:$0xff]  ;;  %v18757_v33 = vld [vmem:[#allocation102_spill] sm:$0xff]  ;;  %v18759_v30 = vld [vmem:[#allocation41_spill] sm:$0xff] }
 0x50a   :  { %18750 = vst [vmem:[#allocation92_spill] sm:$0xff] %v15917_v28  ;;  %18752 = vst [vmem:[#allocation96_spill] sm:$0xff] %v15920_v54  ;;  %v7418_v11 = vmax.f32 %v15898_v53, %v15914_v58  ;;  %v15935_v18 = vmul.f32 0.1, %v15917_v28  ;;  %v6721_v16 = vadd.f32 %v6720_v62, %v18754_v57  ;;  %v7573_v23 = vrot.slane %v7571_v6, 1  ;;  %v15949_v58 = vpop.f32.mrf.mxu0 }
 0x50b   :  { %v15940_v7 = vadd.f32 %v18755_v0, %v6890_v4  ;;  %v7543_v41 = vsel %vm422_vm1, %v15841_v22, %v7542_v43  ;;  %8548 = vmatprep.mubr.bf16.mxu1 %v15927_v63  ;;  %v7574_v26 = vshll.u32 %v15873_v45, 16  ;;  %10015 = vmatpush2.bf16.msra.mxu1 %v15909_v35  ;;  %v15947_v39 = vld [vmem:[#allocation10 + $0x8e0] ss:$8 sps:$4 sm:$0xff]   ;;  %v15954_v62 = vadd.f32 %v18757_v33, %v6892_v2  ;;  %v15958_v6 = vld [vmem:[#allocation10 + $0x8d4] ss:$8 sps:$4 sm:$0xff]  }
 0x50c   :  { %8682 = vmatmul.mubr.bf16.gmra.mxu0 %v7543_v41  ;;  %v6894_v22 = vadd.f32 %v15590_v1, %v6721_v16  ;;  %v7579_v46 = vshrl.u32 %v15927_v63, 16  ;;  %v7582_v49 = vshll.u32 %v15927_v63, 16  ;;  %10000 = vmatprep.subr.bf16.mxu1 %v15930_v3  ;;  %v15965_v2 = vpop.f32.mrf.mxu0  ;;  %v18760_v16 = vld [vmem:[#allocation86_spill] sm:$0xff] }
 0x50d   :  { %18756 = vst [vmem:[#allocation99_spill] sm:$0xff] %v15940_v7  ;;  %18758 = vst [vmem:[#allocation65_spill] sm:$0xff] %v15954_v62  ;;  %v7364_v43 = vmul.f32 0.1, %v15940_v7  ;;  %v7576_v0 = vrot.slane %v7574_v26, 2  ;;  %8793 = vmatpush1.bf16.msra.mxu0 %v15803_v48  ;;  %v18762_v26 = vld [vmem:[#allocation43_spill] sm:$0xff] }
 0x50e   :  { %v7365_v1 = vmul.f32 0.1, %v15954_v62  ;;  %v15969_v41 = vadd.f32 %v18760_v16, %v6894_v22  ;;  %8549 = vmatmul.mubr.bf16.gmra.mxu1 %v15920_v54  ;;  %8794 = vmatprep.subr.bf16.mxu0 %v15813_v59  ;;  %v7581_v21 = vrot.slane %v7579_v46, 1  ;;  %v7584_v34 = vrot.slane %v7582_v49, 2  ;;  %v15986_v59 = vld [vmem:[#allocation10 + $0x8c4] ss:$8 sps:$4 sm:$0xff]  }
 0x50f   :  { %v7577_v9 = vor.u32 %v7576_v0, %v7573_v23  ;;  %10016 = vmatpush2.bf16.msra.mxu1 %v15947_v39  ;;  %v18765_v23 = vld [vmem:[#allocation46_spill] sm:$0xff] }
 0x510   :  { %18761 = vst [vmem:[#allocation76_spill] sm:$0xff] %v15969_v41  ;;  %v7421_v22 = vmax.f32 %v15954_v62, %v7365_v1  ;;  %10001 = vmatprep.subr.bf16.mxu1 %v15958_v6  ;;  %v7554_v1 = vshrl.u32 %v15869_v25, 16 }
 0x511   :  { %8795 = vmatpush1.bf16.msra.mxu0 %v15838_v31 }
 0x512   :  { %8796 = vmatprep.subr.bf16.mxu0 %v15845_v32 }
 0x513   :  { %10017 = vmatpush2.bf16.msra.mxu1 %v15977_v40 }
 0x514   :  { %10002 = vmatprep.subr.bf16.mxu1 %v15986_v59 }
 0x515   :  { %8797 = vmatpush1.bf16.msra.mxu0 %v15876_v50 }
 0x516   :  { %8798 = vmatprep.subr.bf16.mxu0 %v15886_v20 }
 0x519   :  { %8799 = vmatpush2.bf16.msra.mxu0 %v15909_v35 }
 0x51a   :  { %8800 = vmatprep.subr.bf16.mxu0 %v15930_v3  ;;  %v18779_v3 = vld [vmem:[#allocation49_spill] sm:$0xff] }
 0x51d   :  { %8801 = vmatpush2.bf16.msra.mxu0 %v15947_v39 }
 0x51e   :  { %8802 = vmatprep.subr.bf16.mxu0 %v15958_v6 }
 0x521   :  { %v6724_v8 = vpop.f32.mrf.mxu1  ;;  %8803 = vmatpush2.bf16.msra.mxu0 %v15977_v40 }
 0x522   :  { %v6725_v4 = vadd.f32 %v6724_v8, %v18759_v30  ;;  %v7420_v30 = vmax.f32 %v15940_v7, %v7364_v43  ;;  %v15989_v43 = vor.u32 %v7584_v34, %v7581_v21  ;;  %v18768_v34 = vld [vmem:[#allocation45_spill] sm:$0xff]  ;;  %8804 = vmatprep.subr.bf16.mxu0 %v15986_v59 }
 0x523   :  { %v6726_v57 = vpop.f32.mrf.mxu1 }
 0x524   :  { %v6898_v8 = vadd.f32 %v15605_v52, %v6725_v4  ;;  %v6727_v33 = vadd.f32 %v6726_v57, %v18762_v26  ;;  %v7366_v52 = vmul.f32 0.1, %v15969_v41  ;;  %v18763_v4 = vld [vmem:[#allocation80_spill] sm:$0xff]  ;;  %v15991_v0 = vpack.c.bf16 %v7420_v30, %v7418_v11  ;;  %v15995_v26 = vpop.f32.mrf.mxu0 }
 0x525   :  { %v6728_v48 = vpop.f32.mrf.mxu1  ;;  %v7586_v31 = vsel %vm422_vm1, %v7577_v9, %v15989_v43  ;;  %v7556_v30 = vrot.slane %v7554_v1, 1  ;;  %v18769_v9 = vld [vmem:[#allocation104_spill] sm:$0xff]  ;;  %v7562_v1 = vshrl.u32 %v15920_v54, 16 }
 0x526   :  { %v15982_v16 = vadd.f32 %v18763_v4, %v6898_v8  ;;  %v6900_v57 = vadd.f32 %v15624_v60, %v6727_v33  ;;  %v6729_v46 = vadd.f32 %v6728_v48, %v18765_v23  ;;  %v15997_v8 = vpack.c.bf16 %v7421_v22, %v7421_v22  ;;  %v18766_v4 = vld [vmem:[#allocation103_spill] sm:$0xff]  ;;  %8558 = vmatprep.mubr.bf16.mxu1 %v15991_v0  ;;  %v16033_v32 = vpop.f32.mrf.mxu0 }
 0x527   :  { %v6730_v49 = vpop.f32.mrf.mxu1  ;;  %v7422_v60 = vmax.f32 %v15969_v41, %v7366_v52  ;;  %v16013_v52 = vld [vmem:[#allocation10 + $0x8c0] ss:$8 sps:$4 sm:$0xff]   ;;  %8691 = vmatprep.mubr.bf16.mxu0 %v7586_v31  ;;  %v7564_v31 = vrot.slane %v7562_v1, 1 }
 0x528   :  { %18764 = vst [vmem:[#allocation74_spill] sm:$0xff] %v15982_v16  ;;  %v16001_v33 = vmul.f32 0.1, %v15982_v16  ;;  %v16004_v48 = vadd.f32 %v18766_v4, %v6900_v57  ;;  %v6902_v21 = vadd.f32 %v15653_v56, %v6729_v46  ;;  %v6731_v11 = vadd.f32 %v6730_v49, %v18768_v34  ;;  %v16031_v34 = vld [vmem:[#allocation10 + $0x8b4] ss:$8 sps:$4 sm:$0xff]   ;;  %v18773_v41 = vld [vmem:[#allocation24_spill] sm:$0xff]  ;;  %10018 = vmatpush2.bf16.msra.mxu1 %v16013_v52 }
 0x529   :  { %v6734_v22 = vpop.f32.mrf.mxu1  ;;  %v16015_v23 = vpack.c.bf16 %v7422_v60, %v7422_v60  ;;  %v7557_v57 = vshll.u32 %v15869_v25, 16  ;;  %v7565_v60 = vshll.u32 %v15920_v54, 16  ;;  %10003 = vmatprep.subr.bf16.mxu1 %v16031_v34  ;;  %8805 = vmatpush2.bf16.msra.mxu0 %v16013_v52  ;;  %v18799_v52 = vld [vmem:[#allocation122_spill] sm:$0xff] }
 0x52a   :  { %18767 = vst [vmem:[#allocation77_spill] sm:$0xff] %v16004_v48  ;;  %v16020_v56 = vmul.f32 0.1, %v16004_v48  ;;  %v16025_v46 = vadd.f32 %v18769_v9, %v6902_v21  ;;  %v6904_v49 = vadd.f32 %v15688_v14, %v6731_v11  ;;  %v6735_v21 = vadd.f32 %v6734_v22, %v18770_v55  ;;  %v16054_v55 = vld [vmem:[#allocation10 + $0x8b0] ss:$8 sps:$4 sm:$0xff]   ;;  %8806 = vmatprep.subr.bf16.mxu0 %v16031_v34 }
 0x52b   :  { %v6736_v4 = vpop.f32.mrf.mxu1  ;;  %v7559_v61 = vrot.slane %v7557_v57, 2  ;;  %v18771_v14 = vmax.f32 %v15889_v27, %v15904_v13  ;;  %v18772_v11 = vmax.f32 %v15917_v28, %v15935_v18  ;;  %v7567_v57 = vrot.slane %v7565_v60, 2  ;;  %v18775_v22 = vld [vmem:[#allocation47_spill] sm:$0xff]  ;;  %v16060_v27 = vld [vmem:[#allocation10 + $0x8a4] ss:$8 sps:$4 sm:$0xff]  }
 0x52c   :  { %v16048_v50 = vmul.f32 0.1, %v16025_v46  ;;  %v16051_v53 = vadd.f32 %v18773_v41, %v6904_v49  ;;  %v6908_v18 = vadd.f32 %v15717_v12, %v6735_v21  ;;  %v6737_v20 = vadd.f32 %v6736_v4, %v18775_v22  ;;  %v16072_v12 = vpop.f32.mrf.mxu0  ;;  %v18778_v22 = vld [vmem:[#allocation130_spill] sm:$0xff]  ;;  %10019 = vmatpush2.bf16.msra.mxu1 %v16054_v55 }
 0x52d   :  { %v16044_v9 = vpack.c.bf16 %v18772_v11, %v18771_v14  ;;  %v6738_v62 = vpop.f32.mrf.mxu1  ;;  %v7560_v13 = vor.u32 %v7559_v61, %v7556_v30  ;;  %v18776_v14 = vld [vmem:[#allocation125_spill] sm:$0xff]  ;;  %v16067_v1 = vor.u32 %v7567_v57, %v7564_v31  ;;  %v7597_v61 = vshrl.u32 %v15991_v0, 16  ;;  %10004 = vmatprep.subr.bf16.mxu1 %v16060_v27  ;;  %8807 = vmatpush2.bf16.msra.mxu0 %v16054_v55 }
 0x52e   :  { %18774 = vst [vmem:[#allocation78_spill] sm:$0xff] %v16051_v53  ;;  %v6739_v11 = vadd.f32 %v6738_v62, %v18776_v14  ;;  %v16065_v49 = vmul.f32 0.1, %v16051_v53  ;;  %v18777_v62 = vld [vmem:[#allocation87_spill] sm:$0xff]  ;;  %v6910_v4 = vadd.f32 %v15744_v17, %v6737_v20  ;;  %v7600_v41 = vshll.u32 %v15991_v0, 16  ;;  %v16089_v17 = vpop.f32.mrf.mxu0  ;;  %8808 = vmatprep.subr.bf16.mxu0 %v16060_v27 }
 0x52f   :  { %8559 = vmatmul.mubr.bf16.gmra.mxu1 %v16044_v9  ;;  %v6740_v60 = vpop.f32.mrf.mxu1  ;;  %v16075_v30 = vadd.f32 %v18777_v62, %v6908_v18  ;;  %v7569_v35 = vsel %vm422_vm1, %v7560_v13, %v16067_v1  ;;  %v7599_v57 = vrot.slane %v7597_v61, 1  ;;  %v16087_v18 = vld [vmem:[#allocation10 + $0x8a0] ss:$8 sps:$4 sm:$0xff]   ;;  %v7588_v62 = vshrl.u32 %v16044_v9, 16 }
 0x530   :  { %v6912_v21 = vadd.f32 %v15780_v24, %v6739_v11  ;;  %v6741_v14 = vadd.f32 %v6740_v60, %v18778_v22  ;;  %v7426_v31 = vmax.f32 %v16051_v53, %v16065_v49  ;;  %8692 = vmatmul.mubr.bf16.gmra.mxu0 %v7569_v35  ;;  %v16095_v20 = vadd.f32 %v18779_v3, %v6910_v4  ;;  %v18781_v11 = vld [vmem:[#allocation19_spill] sm:$0xff]  ;;  %v18783_v35 = vld [vmem:[#allocation109_spill] sm:$0xff]  ;;  %v16124_v25 = vpop.f32.mrf.mxu0 }
 0x531   :  { %v6744_v7 = vpop.f32.mrf.mxu1  ;;  %v16092_v24 = vmul.f32 0.1, %v16075_v30  ;;  %v16102_v60 = vld [vmem:[#allocation10 + $0x894] ss:$8 sps:$4 sm:$0xff]   ;;  %v7602_v61 = vrot.slane %v7600_v41, 2  ;;  %v7591_v22 = vshll.u32 %v16044_v9, 16  ;;  %10020 = vmatpush2.bf16.msra.mxu1 %v16087_v18  ;;  %8809 = vmatpush2.bf16.msra.mxu0 %v16087_v18 }
 0x532   :  { %18780 = vst [vmem:[#allocation79_spill] sm:$0xff] %v16095_v20  ;;  %v16098_v49 = vadd.f32 %v18781_v11, %v6912_v21  ;;  %v6914_v13 = vadd.f32 %v15815_v15, %v6741_v14  ;;  %v6745_v53 = vadd.f32 %v6744_v7, %v18783_v35  ;;  %v16111_v21 = vmul.f32 0.1, %v16095_v20  ;;  %v18784_v14 = vld [vmem:[#allocation42_spill] sm:$0xff]  ;;  %10005 = vmatprep.subr.bf16.mxu1 %v16102_v60 }
 0x533   :  { %v6746_v28 = vpop.f32.mrf.mxu1  ;;  %v7603_v3 = vor.u32 %v7602_v61, %v7599_v57  ;;  %v7590_v11 = vrot.slane %v7588_v62, 1  ;;  %v7593_v7 = vrot.slane %v7591_v22, 2  ;;  %v16122_v4 = vld [vmem:[#allocation10 + $0x890] ss:$8 sps:$4 sm:$0xff]   ;;  %v18786_v57 = vld [vmem:[#allocation52_spill] sm:$0xff]  ;;  %v18787_v62 = vld [vmem:[#allocation89_spill] sm:$0xff]  ;;  %v18807_v55 = vmax.f32 %v16075_v30, %v16092_v24  ;;  %8810 = vmatprep.subr.bf16.mxu0 %v16102_v60 }
 0x534   :  { %18782 = vst [vmem:[#allocation81_spill] sm:$0xff] %v16098_v49  ;;  %v16114_v15 = vmul.f32 0.1, %v16098_v49  ;;  %v16117_v41 = vadd.f32 %v18784_v14, %v6914_v13  ;;  %v6918_v35 = vadd.f32 %v15847_v51, %v6745_v53  ;;  %v7428_v54 = vmax.f32 %v16095_v20, %v16111_v21  ;;  %v16140_v21 = vld [vmem:[#allocation10 + $0x884] ss:$8 sps:$4 sm:$0xff]  }
 0x535   :  { %v6748_v39 = vpop.f32.mrf.mxu1  ;;  %v6747_v61 = vadd.f32 %v6746_v28, %v18786_v57  ;;  %v7604_v51 = vsel %vm422_vm1, %v15989_v43, %v7603_v3  ;;  %v7594_v53 = vor.u32 %v7593_v7, %v7590_v11  ;;  %v7615_v14 = vshrl.u32 %v16015_v23, 16  ;;  %10021 = vmatpush2.bf16.msra.mxu1 %v16122_v4  ;;  %8811 = vmatpush2.bf16.msra.mxu0 %v16122_v4 }
 0x536   :  { %18785 = vst [vmem:[#allocation66_spill] sm:$0xff] %v16117_v41  ;;  %v7374_v6 = vmul.f32 0.1, %v16117_v41  ;;  %v16136_v22 = vadd.f32 %v18787_v62, %v6918_v35  ;;  %8701 = vmatprep.mubr.bf16.mxu0 %v7604_v51  ;;  %v7618_v57 = vshll.u32 %v16015_v23, 16  ;;  %v18789_v43 = vmax.f32 %v16004_v48, %v16020_v56  ;;  %v18791_v56 = vld [vmem:[#allocation68_spill] sm:$0xff]  ;;  %10006 = vmatprep.subr.bf16.mxu1 %v16140_v21 }
 0x537   :  { %v6750_v45 = vpop.f32.mrf.mxu1  ;;  %v6920_v28 = vadd.f32 %v15879_v19, %v6747_v61  ;;  %v7595_v7 = vsel %vm422_vm1, %v16067_v1, %v7594_v53  ;;  %v7617_v35 = vrot.slane %v7615_v14, 1  ;;  %v16158_v19 = vld [vmem:[#allocation10 + $0x880] ss:$8 sps:$4 sm:$0xff]   ;;  %v16160_v61 = vpop.f32.mrf.mxu0  ;;  %v18793_v1 = vmax.f32 %v15982_v16, %v16001_v33  ;;  %8812 = vmatprep.subr.bf16.mxu0 %v16140_v21 }
 0x538   :  { %18788 = vst [vmem:[#allocation98_spill] sm:$0xff] %v16136_v22  ;;  %v7430_v13 = vmax.f32 %v16117_v41, %v7374_v6  ;;  %v16148_v11 = vpack.c.bf16 %v7426_v31, %v18789_v43  ;;  %v16154_v40 = vmul.f32 0.1, %v16136_v22  ;;  %v18790_v6 = vld [vmem:[#allocation124_spill] sm:$0xff]  ;;  %8702 = vmatmul.mubr.bf16.gmra.mxu0 %v7595_v7  ;;  %v7620_v59 = vrot.slane %v7618_v57, 2 }
 0x539   :  { %v6749_v51 = vadd.f32 %v6748_v39, %v18790_v6  ;;  %v6754_v62 = vpop.f32.mrf.mxu1  ;;  %v16163_v31 = vadd.f32 %v18791_v56, %v6920_v28  ;;  %v18794_v39 = vmax.f32 %v16025_v46, %v16048_v50  ;;  %v18795_v43 = vld [vmem:[#allocation136_spill] sm:$0xff]  ;;  %v7606_v28 = vshrl.u32 %v15997_v8, 16  ;;  %10022 = vmatpush2.bf16.msra.mxu1 %v16158_v19  ;;  %v16194_v16 = vpop.f32.mrf.mxu0  ;;  %8813 = vmatpush2.bf16.msra.mxu0 %v16158_v19 }
 0x53a   :  { %8568 = vmatprep.mubr.bf16.mxu1 %v16148_v11  ;;  %v6751_v6 = vadd.f32 %v6750_v45, %v18795_v43  ;;  %v7609_v57 = vshll.u32 %v15997_v8, 16  ;;  %v7621_v50 = vor.u32 %v7620_v59, %v7617_v35 }
 0x53b   :  { %18792 = vst [vmem:[#allocation129_spill] sm:$0xff] %v16163_v31  ;;  %v16172_v14 = vpack.c.bf16 %v18794_v39, %v18793_v1  ;;  %v6922_v7 = vadd.f32 %v15911_v37, %v6749_v51  ;;  %v6756_v56 = vpop.f32.mrf.mxu1  ;;  %v16183_v33 = vmul.f32 0.1, %v16163_v31  ;;  %v18796_v1 = vld [vmem:[#allocation113_spill] sm:$0xff]  ;;  %v7608_v43 = vrot.slane %v7606_v28, 1 }
 0x53c   :  { %v6924_v45 = vadd.f32 %v15949_v58, %v6751_v6  ;;  %v6755_v39 = vadd.f32 %v6754_v62, %v18796_v1  ;;  %v18797_v37 = vld [vmem:[#allocation93_spill] sm:$0xff]  ;;  %v7611_v41 = vrot.slane %v7609_v57, 2  ;;  %v6757_v20 = vadd.f32 %v6756_v56, %v18799_v52  ;;  %v18800_v62 = vld [vmem:[#allocation44_spill] sm:$0xff]  ;;  %v18810_v52 = vld [vmem:[#allocation115_spill] sm:$0xff] }
 0x53d   :  { %8569 = vmatmul.mubr.bf16.gmra.mxu1 %v16172_v14  ;;  %v16190_v51 = vadd.f32 %v18797_v37, %v6922_v7  ;;  %v6758_v48 = vpop.f32.mrf.mxu1  ;;  %v7432_v35 = vmax.f32 %v16163_v31, %v16183_v33  ;;  %v7622_v58 = vsel %vm422_vm1, %v7603_v3, %v7621_v50  ;;  %v16204_v28 = vpack.c.bf16 %v7430_v13, %v7428_v54  ;;  %v18802_v3 = vld [vmem:[#allocation50_spill] sm:$0xff]  ;;  %v16230_v37 = vpop.f32.mrf.mxu0 }
 0x53e   :  { %v16200_v59 = vadd.f32 %v18800_v62, %v6924_v45  ;;  %v6928_v34 = vadd.f32 %v15965_v2, %v6755_v39  ;;  %8711 = vmatprep.mubr.bf16.mxu0 %v7622_v58  ;;  %v7612_v6 = vor.u32 %v7611_v41, %v7608_v43  ;;  %v6930_v7 = vadd.f32 %v15995_v26, %v6757_v20  ;;  %v18804_v45 = vld [vmem:[#allocation71_spill] sm:$0xff]  ;;  %v18805_v26 = vld [vmem:[#allocation106_spill] sm:$0xff] }
 0x53f   :  { %18798 = vst [vmem:[#allocation139_spill] sm:$0xff] %v16190_v51  ;;  %v6760_v57 = vpop.f32.mrf.mxu1  ;;  %v16208_v56 = vmul.f32 0.1, %v16190_v51  ;;  %v6759_v1 = vadd.f32 %v6758_v48, %v18804_v45  ;;  %8578 = vmatprep.mubr.bf16.mxu1 %v16204_v28  ;;  %v18808_v20 = vmax.f32 %v16098_v49, %v16114_v15  ;;  %v18809_v13 = vld [vmem:[#allocation134_spill] sm:$0xff]  ;;  %v6949_v18 = vpop.f32.mrf.mxu0  ;;  %v7649_v60 = vshrl.u32 %v16204_v28, 16 }
 0x540   :  { %18801 = vst [vmem:[#allocation101_spill] sm:$0xff] %v16200_v59  ;;  %v7378_v33 = vmul.f32 0.1, %v16200_v59  ;;  %v16212_v50 = vadd.f32 %v18802_v3, %v6928_v34  ;;  %v7613_v2 = vsel %vm422_vm1, %v7594_v53, %v7612_v6  ;;  %v16218_v54 = vadd.f32 %v18805_v26, %v6930_v7  ;;  %v18812_v3 = vld [vmem:[#allocation31_spill] sm:$0xff] }
 0x541   :  { %v16227_v41 = vpack.c.bf16 %v18808_v20, %v18807_v55  ;;  %v6761_v39 = vadd.f32 %v6760_v57, %v18809_v13  ;;  %v6764_v48 = vpop.f32.mrf.mxu1  ;;  %8712 = vmatmul.mubr.bf16.gmra.mxu0 %v7613_v2  ;;  %v6932_v43 = vadd.f32 %v16033_v32, %v6759_v1  ;;  %v7641_v34 = vshrl.u32 %v16148_v11, 16  ;;  %v18811_v57 = vld [vmem:[#allocation90_spill] sm:$0xff] }
 0x542   :  { %18803 = vst [vmem:[#allocation55_spill] sm:$0xff] %v16212_v50  ;;  %18806 = vst [vmem:[#allocation82_spill] sm:$0xff] %v16218_v54  ;;  %v7434_v27 = vmax.f32 %v16200_v59, %v7378_v33  ;;  %v7379_v53 = vmul.f32 0.1, %v16212_v50  ;;  %v6765_v58 = vadd.f32 %v6764_v48, %v18810_v52  ;;  %v7380_v24 = vmul.f32 0.1, %v16218_v54 }
 0x543   :  { %v6934_v15 = vadd.f32 %v16072_v12, %v6761_v39  ;;  %v6766_v62 = vpop.f32.mrf.mxu1  ;;  %v7644_v6 = vshll.u32 %v16148_v11, 16  ;;  %v16243_v33 = vadd.f32 %v18811_v57, %v6932_v43  ;;  %v18813_v1 = vld [vmem:[#allocation94_spill] sm:$0xff]  ;;  %v7643_v26 = vrot.slane %v7641_v34, 1 }
 0x544   :  { %v7435_v7 = vmax.f32 %v16212_v50, %v7379_v53  ;;  %v6938_v32 = vadd.f32 %v16089_v17, %v6765_v58  ;;  %v6767_v45 = vadd.f32 %v6766_v62, %v18812_v3  ;;  %v7436_v12 = vmax.f32 %v16218_v54, %v7380_v24  ;;  %v18814_v17 = vld [vmem:[#allocation23_spill] sm:$0xff]  ;;  %v6951_v3 = vpop.f32.mrf.mxu0  ;;  %v18819_v50 = vld [vmem:[#allocation32_spill] sm:$0xff] }
 0x545   :  { %8579 = vmatmul.mubr.bf16.gmra.mxu1 %v16227_v41  ;;  %v16250_v2 = vadd.f32 %v18813_v1, %v6934_v15  ;;  %v7646_v55 = vrot.slane %v7644_v6, 2  ;;  %v6768_v20 = vpop.f32.mrf.mxu1  ;;  %v7433_v13 = vmax.f32 %v16190_v51, %v16208_v56  ;;  %v16256_v39 = vmul.f32 0.1, %v16243_v33  ;;  %v18815_v15 = vld [vmem:[#allocation37_spill] sm:$0xff] }
 0x546   :  { %v16259_v48 = vadd.f32 %v18814_v17, %v6938_v32  ;;  %v6940_v53 = vadd.f32 %v16124_v25, %v6767_v45  ;;  %v16262_v43 = vpack.c.bf16 %v7435_v7, %v7435_v7  ;;  %v16264_v52 = vpack.c.bf16 %v7436_v12, %v7436_v12 }
 0x547   :  { %v16267_v58 = vmul.f32 0.1, %v16250_v2  ;;  %v6770_v24 = vpop.f32.mrf.mxu1  ;;  %v7647_v34 = vor.u32 %v7646_v55, %v7643_v26  ;;  %v7652_v25 = vshll.u32 %v16204_v28, 16  ;;  %v7651_v7 = vrot.slane %v7649_v60, 1 }
 0x548   :  { %v16272_v56 = vmul.f32 0.1, %v16259_v48  ;;  %v16275_v62 = vadd.f32 %v18815_v15, %v6940_v53  ;;  %v16281_v57 = vpack.c.bf16 %v7434_v27, %v7432_v35  ;;  %v7624_v32 = vshrl.u32 %v16172_v14, 16  ;;  %v18817_v27 = vld [vmem:[#allocation114_spill] sm:$0xff] }
 0x549   :  { %v6774_v4 = vpop.f32.mrf.mxu1  ;;  %v7654_v1 = vrot.slane %v7652_v25, 2  ;;  %v7627_v26 = vshll.u32 %v16172_v14, 16  ;;  %v7632_v55 = vshrl.u32 %v16227_v41, 16  ;;  %v7635_v35 = vshll.u32 %v16227_v41, 16 }
 0x54a   :  { %18816 = vst [vmem:[#allocation110_spill] sm:$0xff] %v16275_v62  ;;  %8588 = vmatprep.mubr.bf16.mxu1 %v16281_v57  ;;  %v7626_v21 = vrot.slane %v7624_v32, 1  ;;  %v6769_v17 = vadd.f32 %v6768_v20, %v18817_v27  ;;  %v16295_v60 = vmul.f32 0.1, %v16275_v62  ;;  %v18818_v25 = vmax.f32 %v16136_v22, %v16154_v40  ;;  %v6953_v27 = vpop.f32.mrf.mxu0 }
 0x54b   :  { %v6776_v53 = vpop.f32.mrf.mxu1  ;;  %v7655_v15 = vor.u32 %v7654_v1, %v7651_v7  ;;  %v7629_v12 = vrot.slane %v7627_v26, 2  ;;  %v7634_v32 = vrot.slane %v7632_v55, 1  ;;  %v7637_v45 = vrot.slane %v7635_v35, 2  ;;  %v18820_v7 = vld [vmem:[#allocation118_spill] sm:$0xff]  ;;  %v18821_v26 = vld [vmem:[#allocation121_spill] sm:$0xff] }
 0x54c   :  { %v16300_v6 = vpack.c.bf16 %v7433_v13, %v18818_v25  ;;  %v6942_v54 = vadd.f32 %v16160_v61, %v6769_v17  ;;  %v6771_v59 = vadd.f32 %v6770_v24, %v18819_v50  ;;  %v6775_v1 = vadd.f32 %v6774_v4, %v18820_v7  ;;  %v18822_v13 = vld [vmem:[#allocation97_spill] sm:$0xff] }
 0x54d   :  { %v6778_v20 = vpop.f32.mrf.mxu1  ;;  %v7656_v19 = vsel %vm422_vm1, %v7647_v34, %v7655_v15  ;;  %v7630_v51 = vor.u32 %v7629_v12, %v7626_v21  ;;  %v6777_v31 = vadd.f32 %v6776_v53, %v18821_v26  ;;  %v7638_v40 = vor.u32 %v7637_v45, %v7634_v32  ;;  %v18823_v45 = vld [vmem:[#allocation108_spill] sm:$0xff]  ;;  %v18828_v26 = vld [vmem:[#allocation105_spill] sm:$0xff] }
 0x54e   :  { %8589 = vmatmul.mubr.bf16.gmra.mxu1 %v16300_v6  ;;  %8721 = vmatprep.mubr.bf16.mxu0 %v7656_v19  ;;  %v16309_v55 = vadd.f32 %v18822_v13, %v6942_v54  ;;  %v6944_v61 = vadd.f32 %v16194_v16, %v6771_v59  ;;  %v7667_v50 = vshrl.u32 %v16281_v57, 16  ;;  %v6948_v35 = vadd.f32 %v16230_v37, %v6775_v1  ;;  %v6957_v59 = vpop.f32.mrf.mxu0 }
 0x54f   :  { %v6780_v24 = vpop.f32.mrf.mxu1  ;;  %v6950_v34 = vadd.f32 %v6949_v18, %v6777_v31  ;;  %v7670_v12 = vshll.u32 %v16281_v57, 16  ;;  %v7658_v21 = vshrl.u32 %v16300_v6, 16  ;;  %v7639_v4 = vsel %vm422_vm1, %v7630_v51, %v7638_v40  ;;  %v18824_v31 = vld [vmem:[#allocation57_spill] sm:$0xff] }
 0x550   :  { %v16318_v17 = vmul.f32 0.1, %v16309_v55  ;;  %v16321_v54 = vadd.f32 %v18823_v45, %v6944_v61  ;;  %v7669_v53 = vrot.slane %v7667_v50, 1  ;;  %v7440_v25 = vmax.f32 %v16275_v62, %v16295_v60  ;;  %8722 = vmatmul.mubr.bf16.gmra.mxu0 %v7639_v4  ;;  %v18826_v18 = vld [vmem:[#allocation25_spill] sm:$0xff]  ;;  %v18829_v45 = vld [vmem:[#allocation107_spill] sm:$0xff] }
 0x551   :  { %v6784_v16 = vpop.f32.mrf.mxu1  ;;  %v16326_v37 = vadd.f32 %v18824_v31, %v6948_v35  ;;  %v16329_v32 = vadd.f32 %v18826_v18, %v6950_v34  ;;  %v7672_v51 = vrot.slane %v7670_v12, 2  ;;  %v7660_v7 = vrot.slane %v7658_v21, 1  ;;  %v6959_v21 = vpop.f32.mrf.mxu0 }
 0x552   :  { %v7386_v19 = vmul.f32 0.1, %v16321_v54  ;;  %v7661_v1 = vshll.u32 %v16300_v6, 16  ;;  %v6779_v13 = vadd.f32 %v6778_v20, %v18828_v26  ;;  %v6781_v35 = vadd.f32 %v6780_v24, %v18829_v45 }
 0x553   :  { %18825 = vst [vmem:[#allocation111_spill] sm:$0xff] %v16326_v37  ;;  %18827 = vst [vmem:[#allocation75_spill] sm:$0xff] %v16329_v32  ;;  %v6786_v61 = vpop.f32.mrf.mxu1  ;;  %v7387_v50 = vmul.f32 0.1, %v16326_v37  ;;  %v7388_v60 = vmul.f32 0.1, %v16329_v32  ;;  %v7673_v4 = vor.u32 %v7672_v51, %v7669_v53  ;;  %v7441_v34 = vmax.f32 %v16309_v55, %v16318_v17 }
 0x554   :  { %v7663_v31 = vrot.slane %v7661_v1, 2  ;;  %v6952_v12 = vadd.f32 %v6951_v3, %v6779_v13  ;;  %v7685_v18 = vshrl.u32 %v16264_v52, 16  ;;  %v7442_v62 = vmax.f32 %v16321_v54, %v7386_v19  ;;  %v18830_v51 = vld [vmem:[#allocation29_spill] sm:$0xff]  ;;  %v18831_v1 = vld [vmem:[#allocation27_spill] sm:$0xff] }
 0x555   :  { %v7443_v20 = vmax.f32 %v16326_v37, %v7387_v50  ;;  %v7674_v26 = vsel %vm422_vm1, %v7655_v15, %v7673_v4  ;;  %v6954_v22 = vadd.f32 %v6953_v27, %v6781_v35  ;;  %v6788_v49 = vpop.f32.mrf.mxu1  ;;  %v7688_v17 = vshll.u32 %v16264_v52, 16  ;;  %v18833_v15 = vld [vmem:[#allocation126_spill] sm:$0xff]  ;;  %v18840_v37 = vld [vmem:[#allocation116_spill] sm:$0xff] }
 0x556   :  { %8731 = vmatprep.mubr.bf16.mxu0 %v7674_v26  ;;  %v7664_v53 = vor.u32 %v7663_v31, %v7660_v7  ;;  %v16344_v24 = vadd.f32 %v18830_v51, %v6952_v12  ;;  %v7687_v45 = vrot.slane %v7685_v18, 1  ;;  %v7444_v3 = vmax.f32 %v16329_v32, %v7388_v60  ;;  %v6961_v26 = vpop.f32.mrf.mxu0 }
 0x557   :  { %v16349_v13 = vadd.f32 %v18831_v1, %v6954_v22  ;;  %v18832_v19 = vmax.f32 %v16250_v2, %v16267_v58  ;;  %v6785_v27 = vadd.f32 %v6784_v16, %v18833_v15  ;;  %v7690_v35 = vrot.slane %v7688_v17, 2  ;;  %v18836_v22 = vld [vmem:[#allocation112_spill] sm:$0xff]  ;;  %v6790_v51 = vpop.f32.mrf.mxu1 }
 0x558   :  { %v7665_v7 = vsel %vm422_vm1, %v7638_v40, %v7664_v53  ;;  %v18834_v31 = vmax.f32 %v16243_v33, %v16256_v39  ;;  %v18835_v12 = vmax.f32 %v16259_v48, %v16272_v56  ;;  %v6787_v18 = vadd.f32 %v6786_v61, %v18836_v22  ;;  %v18837_v1 = vld [vmem:[#allocation132_spill] sm:$0xff] }
 0x559   :  { %v16354_v50 = vpack.c.bf16 %v7440_v25, %v18832_v19  ;;  %8732 = vmatmul.mubr.bf16.gmra.mxu0 %v7665_v7  ;;  %v7390_v58 = vmul.f32 0.1, %v16349_v13  ;;  %v6958_v16 = vadd.f32 %v6957_v59, %v6785_v27  ;;  %v7676_v40 = vshrl.u32 %v16262_v43, 16  ;;  %v18838_v15 = vld [vmem:[#allocation100_spill] sm:$0xff] }
 0x55a   :  { %v16364_v60 = vpack.c.bf16 %v18835_v12, %v18834_v31  ;;  %v7679_v25 = vshll.u32 %v16262_v43, 16  ;;  %v7389_v39 = vmul.f32 0.1, %v16344_v24  ;;  %v7691_v17 = vor.u32 %v7690_v35, %v7687_v45  ;;  %v18839_v12 = vld [vmem:[#allocation51_spill] sm:$0xff]  ;;  %v6963_v35 = vpop.f32.mrf.mxu0 }
 0x55b   :  { %8598 = vmatprep.mubr.bf16.mxu1 %v16354_v50  ;;  %v6960_v56 = vadd.f32 %v6959_v21, %v6787_v18  ;;  %v6789_v61 = vadd.f32 %v6788_v49, %v18837_v1  ;;  %v7446_v19 = vmax.f32 %v16349_v13, %v7390_v58  ;;  %v16376_v7 = vadd.f32 %v18838_v15, %v6958_v16 }
 0x55c   :  { %8599 = vmatmul.mubr.bf16.gmra.mxu1 %v16364_v60  ;;  %v7678_v31 = vrot.slane %v7676_v40, 1  ;;  %v7681_v59 = vrot.slane %v7679_v25, 2  ;;  %v7692_v27 = vsel %vm422_vm1, %v7673_v4, %v7691_v17  ;;  %v6791_v45 = vadd.f32 %v6790_v51, %v18840_v37  ;;  %v18841_v40 = vld [vmem:[#allocation26_spill] sm:$0xff] }
 0x55d   :  { %v16380_v22 = vadd.f32 %v18839_v12, %v6960_v56  ;;  %v6962_v32 = vadd.f32 %v6961_v26, %v6789_v61  ;;  %8741 = vmatprep.mubr.bf16.mxu0 %v7692_v27  ;;  %v7391_v21 = vmul.f32 0.1, %v16376_v7  ;;  %v16384_v18 = vpack.c.bf16 %v7444_v3, %v7442_v62  ;;  %v18842_v3 = vld [vmem:[#allocation28_spill] sm:$0xff] }
 0x55e   :  { %v7682_v49 = vor.u32 %v7681_v59, %v7678_v31  ;;  %v16386_v58 = vpack.c.bf16 %v7443_v20, %v7441_v34  ;;  %v6964_v4 = vadd.f32 %v6963_v35, %v6791_v45  ;;  %v7711_v17 = vshrl.u32 %v16354_v50, 16 }
 0x55f   :  { %v7392_v16 = vmul.f32 0.1, %v16380_v22  ;;  %v16390_v25 = vadd.f32 %v18841_v40, %v6962_v32  ;;  %v7447_v26 = vmax.f32 %v16376_v7, %v7391_v21  ;;  %8608 = vmatprep.mubr.bf16.mxu1 %v16384_v18  ;;  %v7714_v51 = vshll.u32 %v16354_v50, 16 }
 0x560   :  { %v7683_v37 = vsel %vm422_vm1, %v7664_v53, %v7682_v49  ;;  %v7719_v62 = vshrl.u32 %v16384_v18, 16  ;;  %v16401_v32 = vadd.f32 %v18842_v3, %v6964_v4  ;;  %v7713_v56 = vrot.slane %v7711_v17, 1 }
 0x561   :  { %v7448_v34 = vmax.f32 %v16380_v22, %v7392_v16  ;;  %v7393_v20 = vmul.f32 0.1, %v16390_v25  ;;  %8742 = vmatmul.mubr.bf16.gmra.mxu0 %v7683_v37  ;;  %v7716_v1 = vrot.slane %v7714_v51, 2  ;;  %v7722_v15 = vshll.u32 %v16384_v18, 16 }
 0x562   :  { %v7721_v61 = vrot.slane %v7719_v62, 1  ;;  %v7694_v53 = vshrl.u32 %v16364_v60, 16  ;;  %v7394_v31 = vmul.f32 0.1, %v16401_v32  ;;  %v7697_v27 = vshll.u32 %v16364_v60, 16 }
 0x563   :  { %v16407_v59 = vpack.c.bf16 %v7448_v34, %v7446_v19  ;;  %v7445_v12 = vmax.f32 %v16344_v24, %v7389_v39  ;;  %v7449_v45 = vmax.f32 %v16390_v25, %v7393_v20  ;;  %v7724_v35 = vrot.slane %v7722_v15, 2 }
 0x564   :  { %8609 = vmatmul.mubr.bf16.gmra.mxu1 %v16386_v58  ;;  %v7702_v21 = vshrl.u32 %v16386_v58, 16  ;;  %v7450_v49 = vmax.f32 %v16401_v32, %v7394_v31  ;;  %v7696_v16 = vrot.slane %v7694_v53, 1  ;;  %v7699_v40 = vrot.slane %v7697_v27, 2 }
 0x565   :  { %8618 = vmatprep.mubr.bf16.mxu1 %v16407_v59  ;;  %v7705_v4 = vshll.u32 %v16386_v58, 16  ;;  %v7717_v17 = vor.u32 %v7716_v1, %v7713_v56  ;;  %v7725_v19 = vor.u32 %v7724_v35, %v7721_v61  ;;  %v16416_v51 = vpack.c.bf16 %v7447_v26, %v7445_v12 }
 0x566   :  { %v7704_v37 = vrot.slane %v7702_v21, 1  ;;  %v16418_v62 = vpack.c.bf16 %v7450_v49, %v7450_v49  ;;  %v7845_v34 = vrot.slane %v16015_v23, 3  ;;  %v7737_v3 = vshrl.u32 %v16407_v59, 16 }
 0x567   :  { %v7707_v39 = vrot.slane %v7705_v4, 2  ;;  %v7726_v20 = vsel %vm422_vm1, %v7717_v17, %v7725_v19  ;;  %v7740_v15 = vshll.u32 %v16407_v59, 16  ;;  %v7728_v53 = vshrl.u32 %v16416_v51, 16 }
 0x568   :  { %8751 = vmatprep.mubr.bf16.mxu0 %v7726_v20  ;;  %v7700_v31 = vor.u32 %v7699_v40, %v7696_v16  ;;  %v7841_v1 = vrot.slane %v15991_v0, 3  ;;  %v7731_v26 = vshll.u32 %v16416_v51, 16  ;;  %v16427_v61 = vpack.c.bf16 %v7449_v45, %v7449_v45 }
 0x569   :  { %v7708_v56 = vor.u32 %v7707_v39, %v7704_v37  ;;  %v7739_v27 = vrot.slane %v7737_v3, 1  ;;  %v7742_v12 = vrot.slane %v7740_v15, 2  ;;  %v7730_v21 = vrot.slane %v7728_v53, 1 }
 0x56a   :  { %v7846_v35 = vsel %vm613_vm5, %v7841_v1, %v7845_v34  ;;  %v7733_v49 = vrot.slane %v7731_v26, 2  ;;  %v7755_v40 = vshrl.u32 %v16418_v62, 16  ;;  %v7758_v45 = vshll.u32 %v16418_v62, 16 }
 0x56b   :  { %v7709_v23 = vsel %vm422_vm1, %v7700_v31, %v7708_v56  ;;  %v7743_v16 = vor.u32 %v7742_v12, %v7739_v27  ;;  %v7843_v17 = vrot.slane %v15997_v8, 3  ;;  %v7851_v3 = vrot.slane %v16204_v28, 3 }
 0x56c   :  { %8619 = vmatmul.mubr.bf16.gmra.mxu1 %v16416_v51  ;;  %8752 = vmatmul.mubr.bf16.gmra.mxu0 %v7709_v23  ;;  %v7757_v37 = vrot.slane %v7755_v40, 1  ;;  %v7760_v39 = vrot.slane %v7758_v45, 2  ;;  %v7734_v20 = vor.u32 %v7733_v49, %v7730_v21  ;;  %v7746_v34 = vshrl.u32 %v16427_v61, 16 }
 0x56d   :  { %8864 = vmatprep.mubr.bf16.mxu1 %v7846_v35  ;;  %v7744_v4 = vsel %vm422_vm1, %v7725_v19, %v7743_v16  ;;  %v7749_v15 = vshll.u32 %v16427_v61, 16  ;;  %v7839_v53 = vrot.slane %v16044_v9, 3  ;;  %v7850_v26 = vrot.slane %v16148_v11, 3 }
 0x56e   :  { %8761 = vmatprep.mubr.bf16.mxu0 %v7744_v4  ;;  %v7761_v31 = vor.u32 %v7760_v39, %v7757_v37  ;;  %v7735_v27 = vsel %vm422_vm1, %v7708_v56, %v7734_v20  ;;  %v7748_v12 = vrot.slane %v7746_v34, 1  ;;  %v7848_v35 = vrot.slane %v16227_v41, 3 }
 0x56f   :  { %v7844_v19 = vsel %vm613_vm5, %v7839_v53, %v7843_v17  ;;  %v7852_v28 = vsel %vm613_vm5, %v7850_v26, %v7851_v3  ;;  %v7751_v23 = vrot.slane %v7749_v15, 2  ;;  %v7855_v11 = vrot.slane %v16281_v57, 3 }
 0x570   :  { %v7762_v8 = vsel %vm422_vm1, %v7743_v16, %v7761_v31  ;;  %v7823_v49 = vrot.slane %v15697_v10, 3  ;;  %v7847_v40 = vrot.slane %v16172_v14, 3  ;;  %v7822_v16 = vrot.slane %v15633_v44, 3 }
 0x571   :  { %v7752_v21 = vor.u32 %v7751_v23, %v7748_v12  ;;  %v7856_v4 = vsel %vm613_vm5, %v7851_v3, %v7855_v11  ;;  %v7853_v41 = vrot.slane %v16300_v6, 3  ;;  %v7820_v10 = vrot.slane %v15682_v47, 3  ;;  %v18845_v23 = vld [vmem:[#allocation91_spill] sm:$0xff] }
 0x572   :  { %v7849_v56 = vsel %vm613_vm5, %v7847_v40, %v7848_v35  ;;  %v7824_v17 = vsel %vm613_vm5, %v7822_v16, %v7823_v49  ;;  %v7859_v14 = vrot.slane %v16264_v52, 3  ;;  %v7827_v44 = vrot.slane %v15755_v5, 3 }
 0x573   :  { %v7753_v45 = vsel %vm422_vm1, %v7734_v20, %v7752_v21  ;;  %v7819_v57 = vrot.slane %v15614_v38, 3  ;;  %v7854_v37 = vsel %vm613_vm5, %v7848_v35, %v7853_v41  ;;  %v7857_v47 = vrot.slane %v16262_v43, 3 }
 0x574   :  { %8865 = vmatmul.mubr.bf16.vlgmr.msra.gmra.mxu1 %v7844_v19  ;;  %8762 = vmatmul.mubr.bf16.gmra.mxu0 %v7735_v27  ;;  %v7860_v20 = vsel %vm613_vm5, %v7855_v11, %v7859_v14  ;;  %v7828_v3 = vsel %vm613_vm5, %v7823_v49, %v7827_v44  ;;  %v7825_v52 = vrot.slane %v15742_v36, 3  ;;  %v7865_v5 = vrot.slane %v16384_v18, 3  ;;  %v18843_v19 = vld [vmem:[#allocation95_spill] sm:$0xff] }
 0x575   :  { %8874 = vmatprep.mubr.bf16.mxu1 %v7852_v28  ;;  %8771 = vmatprep.mubr.bf16.mxu0 %v7762_v8  ;;  %v7821_v39 = vsel %vm613_vm5, %v7819_v57, %v7820_v10  ;;  %v7831_v38 = vrot.slane %v15782_v42, 3  ;;  %v7864_v6 = vrot.slane %v16354_v50, 3  ;;  %v7858_v34 = vsel %vm613_vm5, %v7853_v41, %v7857_v47 }
 0x576   :  { %v7826_v15 = vsel %vm613_vm5, %v7820_v10, %v7825_v52  ;;  %v7862_v36 = vrot.slane %v16386_v58, 3  ;;  %v7829_v43 = vrot.slane %v15762_v29, 3  ;;  %v7869_v42 = vrot.slane %v16407_v59, 3  ;;  %v18844_v59 = vld [vmem:[#allocation96_spill] sm:$0xff] }
 0x577   :  { %v7866_v31 = vsel %vm613_vm5, %v7864_v6, %v7865_v5  ;;  %v7832_v26 = vsel %vm613_vm5, %v7827_v44, %v7831_v38  ;;  %v7837_v50 = vrot.slane %v15927_v63, 3  ;;  %v7861_v18 = vrot.slane %v16364_v60, 3 }
 0x578   :  { %v7836_v8 = vrot.slane %v18843_v19, 3  ;;  %v7830_v28 = vsel %vm613_vm5, %v7825_v52, %v7829_v43  ;;  %v7870_v12 = vsel %vm613_vm5, %v7865_v5, %v7869_v42  ;;  %v7867_v29 = vrot.slane %v16416_v51, 3 }
 0x579   :  { %v7863_v27 = vsel %vm613_vm5, %v7861_v18, %v7862_v36  ;;  %v7834_v63 = vrot.slane %v18844_v59, 3  ;;  %v7873_v60 = vrot.slane %v16418_v62, 3  ;;  %v7833_v35 = vrot.slane %v18845_v23, 3 }
 0x57a   :  { %v7838_v58 = vsel %vm613_vm5, %v7836_v8, %v7837_v50  ;;  %v7868_v21 = vsel %vm613_vm5, %v7862_v36, %v7867_v29  ;;  %v7842_v40 = vsel %vm613_vm5, %v7837_v50, %v7841_v1  ;;  %v7871_v51 = vrot.slane %v16427_v61, 3 }
 0x57b   :  { %v7835_v11 = vsel %vm613_vm5, %v7833_v35, %v7834_v63  ;;  %v7874_v49 = vsel %vm613_vm5, %v7869_v42, %v7873_v60  ;;  %v7840_v16 = vsel %vm613_vm5, %v7834_v63, %v7839_v53 }
 0x57c   :  { %8875 = vmatmul.mubr.bf16.gmra.mxu1 %v7849_v56  ;;  %8772 = vmatmul.mubr.bf16.gmra.mxu0 %v7753_v45  ;;  %v7872_v62 = vsel %vm613_vm5, %v7867_v29, %v7871_v51 }
 0x57d   :  { %8884 = vmatprep.mubr.bf16.mxu1 %v7856_v4  ;;  %8814 = vmatprep.mubr.bf16.mxu0 %v7824_v17 }
 0x584   :  { %8885 = vmatmul.mubr.bf16.gmra.mxu1 %v7854_v37  ;;  %8815 = vmatmul.mubr.bf16.vlgmr.msra.gmra.mxu0 %v7821_v39 }
 0x585   :  { %8894 = vmatprep.mubr.bf16.mxu1 %v7860_v20  ;;  %8824 = vmatprep.mubr.bf16.mxu0 %v7828_v3 }
 0x58c   :  { %8895 = vmatmul.mubr.bf16.gmra.mxu1 %v7858_v34  ;;  %8825 = vmatmul.mubr.bf16.gmra.mxu0 %v7826_v15 }
 0x58d   :  { %8904 = vmatprep.mubr.bf16.mxu1 %v7866_v31  ;;  %8834 = vmatprep.mubr.bf16.mxu0 %v7832_v26 }
 0x594   :  { %8905 = vmatmul.mubr.bf16.gmra.mxu1 %v7863_v27  ;;  %8835 = vmatmul.mubr.bf16.gmra.mxu0 %v7830_v28 }
 0x595   :  { %8914 = vmatprep.mubr.bf16.mxu1 %v7870_v12  ;;  %8844 = vmatprep.mubr.bf16.mxu0 %v7838_v58 }
 0x59c   :  { %8915 = vmatmul.mubr.bf16.gmra.mxu1 %v7868_v21  ;;  %8845 = vmatmul.mubr.bf16.gmra.mxu0 %v7835_v11 }
 0x59d   :  { %8924 = vmatprep.mubr.bf16.mxu1 %v7874_v49  ;;  %8854 = vmatprep.mubr.bf16.mxu0 %v7842_v40 }
 0x5a4   :  { %8925 = vmatmul.mubr.bf16.gmra.mxu1 %v7872_v62  ;;  %8855 = vmatmul.mubr.bf16.gmra.mxu0 %v7840_v16 }
 0x5a7   :  { %v8510_v56 = vpop.f32.mrf.mxu1 }
 0x5a9   :  { %v8512_v45 = vpop.f32.mrf.mxu1 }
 0x5ab   :  { %v8514_v4 = vpop.f32.mrf.mxu1 }
 0x5ad   :  { %v8516_v17 = vpop.f32.mrf.mxu1 }
 0x5af   :  { %v8520_v41 = vpop.f32.mrf.mxu1 }
 0x5b1   :  { %v8522_v0 = vpop.f32.mrf.mxu1 }
 0x5b3   :  { %v8524_v10 = vpop.f32.mrf.mxu1 }
 0x5b5   :  { %v8526_v1 = vpop.f32.mrf.mxu1 }
 0x5b6   :  { %v8663_v14 = vpop.f32.mrf.mxu0 }
 0x5b7   :  { %v16501_v44 = vadd.f32 %v8663_v14, %v8510_v56  ;;  %v8530_v61 = vpop.f32.mrf.mxu1 }
 0x5b8   :  { %v8665_v57 = vpop.f32.mrf.mxu0 }
 0x5b9   :  { %18846 = vst [vmem:[#allocation117_spill] sm:$0xff] %v16501_v44  ;;  %v16503_v37 = vadd.f32 %v8665_v57, %v8512_v45  ;;  %v8532_v39 = vpop.f32.mrf.mxu1  ;;  %v18900_v44 = vld [vmem:[#allocation139_spill] sm:$0xff] }
 0x5ba   :  { %v8667_v9 = vpop.f32.mrf.mxu0 }
 0x5bb   :  { %18847 = vst [vmem:[#allocation34_spill] sm:$0xff] %v16503_v37  ;;  %v16505_v53 = vadd.f32 %v8667_v9, %v8514_v4  ;;  %v8534_v47 = vpop.f32.mrf.mxu1 }
 0x5bc   :  { %v8669_v20 = vpop.f32.mrf.mxu0 }
 0x5bd   :  { %18848 = vst [vmem:[#allocation84_spill] sm:$0xff] %v16505_v53  ;;  %v16507_v3 = vadd.f32 %v8669_v20, %v8516_v17  ;;  %v8536_v38 = vpop.f32.mrf.mxu1 }
 0x5bf   :  { %18849 = vst [vmem:[#allocation30_spill] sm:$0xff] %v16507_v3 }
 0x5c2   :  { %v8673_v52 = vpop.f32.mrf.mxu0 }
 0x5c3   :  { %v16509_v5 = vadd.f32 %v8673_v52, %v8520_v41 }
 0x5c4   :  { %v8675_v6 = vpop.f32.mrf.mxu0 }
 0x5c5   :  { %18850 = vst [vmem:[#allocation33_spill] sm:$0xff] %v16509_v5  ;;  %v16511_v34 = vadd.f32 %v8675_v6, %v8522_v0 }
 0x5c6   :  { %v8677_v15 = vpop.f32.mrf.mxu0  ;;  %v8540_v31 = vpop.f32.mrf.mxu1 }
 0x5c7   :  { %18851 = vst [vmem:[#allocation38_spill] sm:$0xff] %v16511_v34  ;;  %v16513_v26 = vadd.f32 %v8677_v15, %v8524_v10 }
 0x5c8   :  { %v8679_v36 = vpop.f32.mrf.mxu0  ;;  %v8542_v43 = vpop.f32.mrf.mxu1 }
 0x5c9   :  { %18852 = vst [vmem:[#allocation35_spill] sm:$0xff] %v16513_v26  ;;  %v16515_v42 = vadd.f32 %v8679_v36, %v8526_v1 }
 0x5ca   :  { %v8544_v50 = vpop.f32.mrf.mxu1 }
 0x5cb   :  { %18853 = vst [vmem:[#allocation123_spill] sm:$0xff] %v16515_v42 }
 0x5cc   :  { %v8683_v18 = vpop.f32.mrf.mxu0  ;;  %v8546_v19 = vpop.f32.mrf.mxu1 }
 0x5cd   :  { %v16517_v8 = vadd.f32 %v8683_v18, %v8530_v61 }
 0x5ce   :  { %v8685_v27 = vpop.f32.mrf.mxu0  ;;  %v8550_v28 = vpop.f32.mrf.mxu1 }
 0x5cf   :  { %18854 = vst [vmem:[#allocation128_spill] sm:$0xff] %v16517_v8  ;;  %v16519_v12 = vadd.f32 %v8685_v27, %v8532_v39  ;;  %v18892_v8 = vld [vmem:[#allocation98_spill] sm:$0xff] }
 0x5d0   :  { %v8687_v58 = vpop.f32.mrf.mxu0  ;;  %v8552_v29 = vpop.f32.mrf.mxu1 }
 0x5d1   :  { %18855 = vst [vmem:[#allocation63_spill] sm:$0xff] %v16519_v12  ;;  %v16521_v59 = vadd.f32 %v8687_v58, %v8534_v47  ;;  %v18888_v12 = vld [vmem:[#allocation140_spill] sm:$0xff] }
 0x5d2   :  { %v8689_v63 = vpop.f32.mrf.mxu0  ;;  %v8554_v60 = vpop.f32.mrf.mxu1 }
 0x5d3   :  { %18856 = vst [vmem:[#allocation18_spill] sm:$0xff] %v16521_v59  ;;  %v16523_v23 = vadd.f32 %v8689_v63, %v8536_v38  ;;  %v18887_v59 = vld [vmem:[#allocation119_spill] sm:$0xff] }
 0x5d4   :  { %v8556_v35 = vpop.f32.mrf.mxu1 }
 0x5d5   :  { %18857 = vst [vmem:[#allocation69_spill] sm:$0xff] %v16523_v23  ;;  %v18886_v23 = vld [vmem:[#allocation81_spill] sm:$0xff] }
 0x5ef   :  { %v8560_v21 = vpop.f32.mrf.mxu1 }
 0x5f0   :  { %v8693_v11 = vpop.f32.mrf.mxu0 }
 0x5f1   :  { %v8562_v49 = vpop.f32.mrf.mxu1  ;;  %v16525_v40 = vadd.f32 %v8693_v11, %v8540_v31 }
 0x5f2   :  { %v8695_v51 = vpop.f32.mrf.mxu0 }
 0x5f3   :  { %18858 = vst [vmem:[#allocation58_spill] sm:$0xff] %v16525_v40  ;;  %v16527_v62 = vadd.f32 %v8695_v51, %v8542_v43  ;;  %v8564_v56 = vpop.f32.mrf.mxu1  ;;  %v18869_v51 = vld [vmem:[#allocation92_spill] sm:$0xff] }
 0x5f4   :  { %v8697_v16 = vpop.f32.mrf.mxu0 }
 0x5f5   :  { %18859 = vst [vmem:[#allocation64_spill] sm:$0xff] %v16527_v62  ;;  %v16529_v45 = vadd.f32 %v8697_v16, %v8544_v50  ;;  %v8566_v41 = vpop.f32.mrf.mxu1 }
 0x5f6   :  { %v8699_v4 = vpop.f32.mrf.mxu0 }
 0x5f7   :  { %18860 = vst [vmem:[#allocation85_spill] sm:$0xff] %v16529_v45  ;;  %v16531_v17 = vadd.f32 %v8699_v4, %v8546_v19  ;;  %v18882_v45 = vld [vmem:[#allocation53_spill] sm:$0xff] }
 0x5f8   :  { %v8703_v0 = vpop.f32.mrf.mxu0 }
 0x5f9   :  { %18861 = vst [vmem:[#allocation36_spill] sm:$0xff] %v16531_v17  ;;  %v16533_v10 = vadd.f32 %v8703_v0, %v8550_v28  ;;  %v18881_v17 = vld [vmem:[#allocation79_spill] sm:$0xff] }
 0x5fa   :  { %v8705_v1 = vpop.f32.mrf.mxu0 }
 0x5fb   :  { %18862 = vst [vmem:[#allocation120_spill] sm:$0xff] %v16533_v10  ;;  %v16537_v61 = vadd.f32 %v8705_v1, %v8552_v29  ;;  %v8936_v29 = vld [vmem:[#allocation12 + $0x2] ss:$4 sm:$0x3]  ;;  %v18873_v1 = vld [vmem:[#allocation70_spill] sm:$0xff]  ;;  %v18879_v10 = vld [vmem:[#allocation77_spill] sm:$0xff] }
 0x5fc   :  { %v8707_v57 = vpop.f32.mrf.mxu0 }
 0x5fd   :  { %v16535_v14 = vpop.f32.mrf.mxu1  ;;  %18863 = vst [vmem:[#allocation39_spill] sm:$0xff] %v16537_v61  ;;  %v16541_v39 = vadd.f32 %v8707_v57, %v8554_v60  ;;  %v18867_v60 = vld [vmem:[#allocation59_spill] sm:$0xff] }
 0x5fe   :  { %v8709_v20 = vpop.f32.mrf.mxu0 }
 0x5ff   :  { %v16539_v9 = vpop.f32.mrf.mxu1  ;;  %18864 = vst [vmem:[#allocation48_spill] sm:$0xff] %v16541_v39  ;;  %v16545_v52 = vadd.f32 %v8709_v20, %v8556_v35  ;;  %v16566_v35 = vrot.slane %v8936_v29, %v18867_v60 }
 0x601   :  { %v16543_v47 = vpop.f32.mrf.mxu1  ;;  %18865 = vst [vmem:[#allocation102_spill] sm:$0xff] %v16545_v52  ;;  %v8713_v38 = vpop.f32.mrf.mxu0  ;;  %v8972_v16 = vadd.f32 %v16566_v35, %v18869_v51  ;;  %v16583_v57 = vadd.f32 %v16566_v35, %v18873_v1  ;;  %v8978_v20 = vadd.f32 %v16566_v35, %v16025_v46  ;;  %v18876_v51 = vld [vmem:[#allocation76_spill] sm:$0xff]  ;;  %v18878_v46 = vld [vmem:[#allocation78_spill] sm:$0xff]  ;;  %v8950_v62 = vadd.f32 %v16566_v35, %v18882_v45 }
 0x602   :  { %v16549_v15 = vadd.f32 %v8713_v38, %v8560_v21  ;;  %v18868_v21 = vld [vmem:[#allocation60_spill] sm:$0xff] }
 0x603   :  { %v16547_v6 = vpop.f32.mrf.mxu1  ;;  %v8715_v31 = vpop.f32.mrf.mxu0  ;;  %v16569_v11 = vrot.slane %v8936_v29, %v18868_v21  ;;  %v9104_v21 = vrot.slane %v8972_v16, 3  ;;  %v9113_v39 = vrot.slane %v8978_v20, 3  ;;  %v8982_v20 = vadd.f32 %v16566_v35, %v18886_v23 }
 0x604   :  { %v16553_v43 = vadd.f32 %v8715_v31, %v8562_v49  ;;  %v18874_v31 = vld [vmem:[#allocation22_spill] sm:$0xff]  ;;  %v9061_v26 = vrot.slane %v8950_v62, 3 }
 0x605   :  { %v16551_v36 = vpop.f32.mrf.mxu1  ;;  %v8717_v50 = vpop.f32.mrf.mxu0  ;;  %v8979_v52 = vadd.f32 %v16569_v11, %v18878_v46  ;;  %v9122_v3 = vrot.slane %v8982_v20, 3 }
 0x606   :  { %v16557_v19 = vadd.f32 %v8717_v50, %v8564_v56  ;;  %v18870_v56 = vld [vmem:[#allocation99_spill] sm:$0xff]  ;;  %v16591_v50 = vadd.f32 %v16569_v11, %v18874_v31  ;;  %v17630_v31 = vrot.slane %v16583_v57, 3 }
 0x607   :  { %v16555_v18 = vpop.f32.mrf.mxu1  ;;  %v8719_v27 = vpop.f32.mrf.mxu0  ;;  %v16577_v4 = vadd.f32 %v16569_v11, %v18870_v56  ;;  %v16599_v56 = vadd.f32 %v16569_v11, %v18876_v51 }
 0x608   :  { %v16561_v58 = vadd.f32 %v8719_v27, %v8566_v41  ;;  %v18872_v41 = vld [vmem:[#allocation65_spill] sm:$0xff]  ;;  %v18875_v27 = vld [vmem:[#allocation74_spill] sm:$0xff]  ;;  %v17633_v16 = vrot.slane %v16591_v50, 3  ;;  %v16619_v46 = vsel %vm613_vm5, %v17630_v31, %v9104_v21  ;;  %v9116_v31 = vrot.slane %v8979_v52, 3 }
 0x609   :  { %v16559_v28 = vpop.f32.mrf.mxu1  ;;  %18871 = vst [vmem:[#allocation86_spill] sm:$0xff] %v16577_v4  ;;  %v8974_v0 = vadd.f32 %v16566_v35, %v18872_v41  ;;  %v8976_v29 = vadd.f32 %v16566_v35, %v18875_v27  ;;  %18877 = vst [vmem:[#allocation43_spill] sm:$0xff] %v16599_v56  ;;  %v8980_v27 = vadd.f32 %v16566_v35, %v16075_v30 }
 0x60a   :  { %18866 = vst [vmem:[#allocation41_spill] sm:$0xff] %v16561_v58  ;;  %v8977_v41 = vadd.f32 %v16569_v11, %v18879_v10  ;;  %18880 = vst [vmem:[#allocation80_spill] sm:$0xff] %v16619_v46  ;;  %v8981_v30 = vadd.f32 %v16569_v11, %v18881_v17 }
 0x60b   :  { %v16563_v63 = vpop.f32.mrf.mxu1  ;;  %v9108_v1 = vrot.slane %v8974_v0, 3  ;;  %v9112_v51 = vrot.slane %v8976_v29, 3  ;;  %v18883_v29 = vrot.slane %v16577_v4, 3  ;;  %v9118_v45 = vrot.slane %v8980_v27, 3 }
 0x60c   :  { %v8948_v4 = vadd.f32 %v16566_v35, %v18887_v59  ;;  %v9120_v27 = vrot.slane %v8981_v30, 3  ;;  %v18893_v59 = vld [vmem:[#allocation138_spill] sm:$0xff] }
 0x60d   :  { %v16631_v10 = vsel %vm613_vm5, %v17633_v16, %v18883_v29  ;;  %v16634_v40 = vsel %vm613_vm5, %v9104_v21, %v9108_v1  ;;  %v16641_v17 = vsel %vm613_vm5, %v9112_v51, %v9113_v39  ;;  %v8951_v29 = vadd.f32 %v16569_v11, %v18888_v12  ;;  %v18890_v1 = vld [vmem:[#allocation66_spill] sm:$0xff]  ;;  %v18894_v12 = vld [vmem:[#allocation127_spill] sm:$0xff] }
 0x60e   :  { %v16571_v49 = vpop.f32.mrf.mxu1  ;;  %18884 = vst [vmem:[#allocation46_spill] sm:$0xff] %v16631_v10  ;;  %18885 = vst [vmem:[#allocation103_spill] sm:$0xff] %v16634_v40  ;;  %v9115_v21 = vrot.slane %v8977_v41, 3  ;;  %v8983_v52 = vadd.f32 %v16569_v11, %v18890_v1  ;;  %v18891_v10 = vld [vmem:[#allocation142_spill] sm:$0xff]  ;;  %v8984_v51 = vadd.f32 %v16566_v35, %v18892_v8  ;;  %v8949_v34 = vadd.f32 %v16569_v11, %v18893_v59  ;;  %v18898_v8 = vld [vmem:[#allocation131_spill] sm:$0xff] }
 0x60f   :  { %v8952_v23 = vadd.f32 %v16566_v35, %v18891_v10  ;;  %v8953_v5 = vadd.f32 %v16569_v11, %v18894_v12  ;;  %v18897_v10 = vld [vmem:[#allocation129_spill] sm:$0xff]  ;;  %v16670_v37 = vadd.f32 %v16566_v35, %v18898_v8  ;;  %v16675_v30 = vsel %vm613_vm5, %v9113_v39, %v9118_v45 }
 0x610   :  { %v16587_v38 = vpop.f32.mrf.mxu1  ;;  %v16595_v60 = vpop.f32.mrf.mxu0  ;;  %v16664_v1 = vsel %vm613_vm5, %v9115_v21, %v9116_v31  ;;  %v8985_v53 = vadd.f32 %v16569_v11, %v18897_v10  ;;  %18899 = vst [vmem:[#allocation24_spill] sm:$0xff] %v16675_v30  ;;  %v9060_v59 = vrot.slane %v8948_v4, 3  ;;  %v9064_v12 = vrot.slane %v8951_v29, 3  ;;  %v18902_v10 = vld [vmem:[#allocation133_spill] sm:$0xff] }
 0x611   :  { %18896 = vst [vmem:[#allocation40_spill] sm:$0xff] %v16664_v1  ;;  %v8986_v40 = vadd.f32 %v16566_v35, %v18900_v44  ;;  %v9124_v20 = vrot.slane %v8983_v52, 3  ;;  %v9066_v1 = vrot.slane %v8952_v23, 3  ;;  %v9126_v46 = vrot.slane %v8984_v51, 3 }
 0x612   :  { %v16604_v58 = vpop.f32.mrf.mxu0  ;;  %v16609_v61 = vpop.f32.mrf.mxu1  ;;  %v16691_v39 = vsel %vm613_vm5, %v9060_v59, %v9061_v26  ;;  %v9063_v4 = vrot.slane %v8949_v34, 3  ;;  %v9068_v29 = vrot.slane %v8953_v5, 3  ;;  %v16696_v52 = vsel %vm613_vm5, %v9118_v45, %v9122_v3  ;;  %v18910_v34 = vld [vmem:[#allocation55_spill] sm:$0xff] }
 0x613   :  { %18904 = vst [vmem:[#allocation87_spill] sm:$0xff] %v16691_v39  ;;  %18906 = vst [vmem:[#allocation49_spill] sm:$0xff] %v16696_v52  ;;  %v9128_v23 = vrot.slane %v8985_v53, 3  ;;  %v9070_v51 = vrot.slane %v16670_v37, 3  ;;  %v9130_v59 = vrot.slane %v8986_v40, 3  ;;  %v18909_v39 = vld [vmem:[#allocation54_spill] sm:$0xff]  ;;  %v16713_v53 = vsel %vm613_vm5, %v9120_v27, %v9124_v20 }
 0x614   :  { %v16614_v0 = vpop.f32.mrf.mxu0  ;;  %v16647_v16 = vpop.f32.mrf.mxu1  ;;  %v8956_v5 = vadd.f32 %v16566_v35, %v18909_v39  ;;  %18912 = vst [vmem:[#allocation42_spill] sm:$0xff] %v16713_v53  ;;  %v16716_v37 = vsel %vm613_vm5, %v9061_v26, %v9066_v1  ;;  %v16725_v39 = vsel %vm613_vm5, %v9064_v12, %v9068_v29  ;;  %v18917_v52 = vld [vmem:[#allocation82_spill] sm:$0xff]  ;;  %v18918_v53 = vld [vmem:[#allocation72_spill] sm:$0xff] }
 0x615   :  { %18889 = vst [vmem:[#allocation45_spill] sm:$0xff] %v16647_v16  ;;  %v16688_v16 = vsel %vm613_vm5, %v9116_v31, %v9120_v27  ;;  %v16704_v31 = vsel %vm613_vm5, %v9063_v4, %v9064_v12  ;;  %18913 = vst [vmem:[#allocation52_spill] sm:$0xff] %v16716_v37  ;;  %v8989_v27 = vadd.f32 %v16569_v11, %v18917_v52 }
 0x616   :  { %v16638_v56 = vpop.f32.mrf.mxu0  ;;  %18903 = vst [vmem:[#allocation125_spill] sm:$0xff] %v16688_v16  ;;  %18908 = vst [vmem:[#allocation19_spill] sm:$0xff] %v16704_v31  ;;  %v8988_v16 = vadd.f32 %v16566_v35, %v18910_v34  ;;  %v18916_v31 = vld [vmem:[#allocation62_spill] sm:$0xff]  ;;  %v8958_v26 = vadd.f32 %v16566_v35, %v18918_v53  ;;  %v8992_v12 = vadd.f32 %v16566_v35, %v16259_v48  ;;  %v9074_v52 = vrot.slane %v8956_v5, 3  ;;  %v18923_v53 = vld [vmem:[#allocation135_spill] sm:$0xff] }
 0x617   :  { %18915 = vst [vmem:[#allocation124_spill] sm:$0xff] %v16725_v39  ;;  %v8957_v34 = vadd.f32 %v16569_v11, %v18916_v31  ;;  %v16746_v31 = vsel %vm613_vm5, %v9126_v46, %v9130_v59  ;;  %v9136_v5 = vrot.slane %v8989_v27, 3 }
 0x618   :  { %18922 = vst [vmem:[#allocation93_spill] sm:$0xff] %v16746_v31 }
 0x619   :  { %v16655_v42 = vpop.f32.mrf.mxu0 }
 0x61b   :  { %v16672_v62 = vpop.f32.mrf.mxu0 }
 0x61c   :  { %v16661_v41 = vpop.f32.mrf.mxu1 }
 0x61d   :  { %18895 = vst [vmem:[#allocation104_spill] sm:$0xff] %v16661_v41  ;;  %v16683_v41 = vadd.f32 %v16569_v11, %v18902_v10  ;;  %v16685_v8 = vpop.f32.mrf.mxu0  ;;  %v18907_v10 = vld [vmem:[#allocation101_spill] sm:$0xff] }
 0x61e   :  { %v16679_v21 = vpop.f32.mrf.mxu1  ;;  %v8987_v30 = vadd.f32 %v16569_v11, %v18907_v10  ;;  %v16719_v10 = vsel %vm613_vm5, %v9122_v3, %v9126_v46  ;;  %v16736_v3 = vsel %vm613_vm5, %v9124_v20, %v9128_v23 }
 0x61f   :  { %18901 = vst [vmem:[#allocation47_spill] sm:$0xff] %v16679_v21  ;;  %v16701_v21 = vpop.f32.mrf.mxu0  ;;  %18914 = vst [vmem:[#allocation89_spill] sm:$0xff] %v16719_v10  ;;  %v9072_v4 = vrot.slane %v16683_v41, 3  ;;  %v16739_v41 = vsel %vm613_vm5, %v9066_v1, %v9070_v51  ;;  %v8990_v1 = vadd.f32 %v16566_v35, %v16243_v33  ;;  %v9139_v33 = vrot.slane %v8992_v12, 3 }
 0x620   :  { %v16693_v44 = vpop.f32.mrf.mxu1  ;;  %18920 = vst [vmem:[#allocation136_spill] sm:$0xff] %v16736_v3  ;;  %18921 = vst [vmem:[#allocation113_spill] sm:$0xff] %v16739_v41  ;;  %v9132_v10 = vrot.slane %v8987_v30, 3  ;;  %v18926_v30 = vld [vmem:[#allocation110_spill] sm:$0xff]  ;;  %v18927_v41 = vld [vmem:[#allocation137_spill] sm:$0xff]  ;;  %v9078_v3 = vrot.slane %v8958_v26, 3  ;;  %v16784_v26 = vadd.f32 %v16569_v11, %v16321_v54 }
 0x621   :  { %18905 = vst [vmem:[#allocation130_spill] sm:$0xff] %v16693_v44  ;;  %v16722_v40 = vpop.f32.mrf.mxu0  ;;  %v16753_v20 = vsel %vm613_vm5, %v9068_v29, %v9072_v4  ;;  %v8993_v48 = vadd.f32 %v16569_v11, %v18926_v30  ;;  %v8960_v46 = vadd.f32 %v16566_v35, %v18927_v41  ;;  %v8991_v30 = vadd.f32 %v16569_v11, %v16250_v2  ;;  %v18934_v2 = vld [vmem:[#allocation143_spill] sm:$0xff] }
 0x622   :  { %v16710_v45 = vpop.f32.mrf.mxu1  ;;  %18925 = vst [vmem:[#allocation44_spill] sm:$0xff] %v16753_v20  ;;  %v16770_v20 = vsel %vm613_vm5, %v9128_v23, %v9132_v10  ;;  %v9138_v12 = vrot.slane %v8990_v1, 3  ;;  %v16801_v54 = vsel %vm613_vm5, %v9074_v52, %v9078_v3 }
 0x623   :  { %18911 = vst [vmem:[#allocation109_spill] sm:$0xff] %v16710_v45  ;;  %v16743_v39 = vpop.f32.mrf.mxu0  ;;  %v9134_v45 = vrot.slane %v8988_v16, 3  ;;  %v9076_v16 = vrot.slane %v8957_v34, 3  ;;  %18930 = vst [vmem:[#allocation106_spill] sm:$0xff] %v16770_v20  ;;  %v16777_v34 = vsel %vm613_vm5, %v9070_v51, %v9074_v52  ;;  %v9142_v20 = vrot.slane %v8993_v48, 3 }
 0x624   :  { %v16733_v37 = vpop.f32.mrf.mxu1  ;;  %18932 = vst [vmem:[#allocation134_spill] sm:$0xff] %v16777_v34  ;;  %18937 = vst [vmem:[#allocation94_spill] sm:$0xff] %v16801_v54  ;;  %v16807_v1 = vsel %vm613_vm5, %v9138_v12, %v9139_v33  ;;  %v9141_v48 = vrot.slane %v8991_v30, 3  ;;  %v9146_v52 = vrot.slane %v16784_v26, 3  ;;  %v18943_v54 = vld [vmem:[#allocation83_spill] sm:$0xff] }
 0x625   :  { %18919 = vst [vmem:[#allocation68_spill] sm:$0xff] %v16733_v37  ;;  %v8959_v37 = vadd.f32 %v16569_v11, %v18923_v53  ;;  %v16761_v31 = vpop.f32.mrf.mxu0  ;;  %v16765_v53 = vadd.f32 %v16566_v35, %v16309_v55  ;;  %v16780_v27 = vsel %vm613_vm5, %v9130_v59, %v9134_v45  ;;  %v16795_v51 = vsel %vm613_vm5, %v9072_v4, %v9076_v16 }
 0x626   :  { %v16750_v44 = vpop.f32.mrf.mxu1  ;;  %18928 = vst [vmem:[#allocation50_spill] sm:$0xff] %v16761_v31  ;;  %18933 = vst [vmem:[#allocation115_spill] sm:$0xff] %v16780_v27  ;;  %v16790_v31 = vadd.f32 %v16566_v35, %v18934_v2  ;;  %v16798_v59 = vsel %vm613_vm5, %v9132_v10, %v9136_v5  ;;  %v18940_v2 = vld [vmem:[#allocation61_spill] sm:$0xff]  ;;  %v18942_v5 = vld [vmem:[#allocation111_spill] sm:$0xff]  ;;  %v16824_v30 = vsel %vm613_vm5, %v9141_v48, %v9142_v20 }
 0x627   :  { %18924 = vst [vmem:[#allocation122_spill] sm:$0xff] %v16750_v44  ;;  %v18931_v44 = vld [vmem:[#allocation141_spill] sm:$0xff]  ;;  %v9080_v55 = vrot.slane %v8959_v37, 3  ;;  %18935 = vst [vmem:[#allocation90_spill] sm:$0xff] %v16795_v51  ;;  %v9144_v45 = vrot.slane %v16765_v53, 3  ;;  %v8962_v34 = vadd.f32 %v16566_v35, %v18940_v2  ;;  %v8996_v53 = vadd.f32 %v16566_v35, %v18942_v5 }
 0x628   :  { %v16767_v29 = vpop.f32.mrf.mxu1  ;;  %v8961_v41 = vadd.f32 %v16569_v11, %v18931_v44  ;;  %v16792_v44 = vpop.f32.mrf.mxu0  ;;  %18936 = vst [vmem:[#allocation31_spill] sm:$0xff] %v16798_v59  ;;  %18939 = vst [vmem:[#allocation37_spill] sm:$0xff] %v16807_v1  ;;  %v8965_v51 = vadd.f32 %v16569_v11, %v18943_v54  ;;  %v9087_v2 = vrot.slane %v16790_v31, 3  ;;  %v18949_v1 = vld [vmem:[#allocation73_spill] sm:$0xff]  ;;  %v18950_v59 = vld [vmem:[#allocation67_spill] sm:$0xff] }
 0x629   :  { %18929 = vst [vmem:[#allocation71_spill] sm:$0xff] %v16767_v29  ;;  %v9082_v29 = vrot.slane %v8960_v46, 3  ;;  %v16814_v10 = vsel %vm613_vm5, %v9076_v16, %v9080_v55  ;;  %18945 = vst [vmem:[#allocation118_spill] sm:$0xff] %v16824_v30  ;;  %v18947_v16 = vld [vmem:[#allocation75_spill] sm:$0xff]  ;;  %v16835_v5 = vsel %vm613_vm5, %v9139_v33, %v9144_v45  ;;  %v8963_v54 = vadd.f32 %v16569_v11, %v18949_v1 }
 0x62a   :  { %v16786_v23 = vpop.f32.mrf.mxu1  ;;  %v9084_v46 = vrot.slane %v8961_v41, 3  ;;  %18941 = vst [vmem:[#allocation114_spill] sm:$0xff] %v16814_v10  ;;  %v8997_v10 = vadd.f32 %v16569_v11, %v18947_v16  ;;  %18948 = vst [vmem:[#allocation97_spill] sm:$0xff] %v16835_v5  ;;  %v8966_v48 = vadd.f32 %v16566_v35, %v18950_v59  ;;  %v9086_v16 = vrot.slane %v8962_v34, 3 }
 0x62b   :  { %v16827_v41 = vsel %vm613_vm5, %v9078_v3, %v9082_v29  ;;  %v8998_v3 = vadd.f32 %v16566_v35, %v16344_v24  ;;  %v8999_v33 = vadd.f32 %v16569_v11, %v16349_v13  ;;  %v16855_v1 = vsel %vm613_vm5, %v9142_v20, %v9146_v52  ;;  %v18955_v24 = vld [vmem:[#allocation88_spill] sm:$0xff]  ;;  %v18958_v13 = vld [vmem:[#allocation21_spill] sm:$0xff] }
 0x62c   :  { %v16804_v37 = vpop.f32.mrf.mxu1  ;;  %v16811_v4 = vpop.f32.mrf.mxu0  ;;  %18946 = vst [vmem:[#allocation121_spill] sm:$0xff] %v16827_v41  ;;  %v16846_v31 = vsel %vm613_vm5, %v9080_v55, %v9084_v46  ;;  %v18953_v41 = vld [vmem:[#allocation20_spill] sm:$0xff]  ;;  %18954 = vst [vmem:[#allocation25_spill] sm:$0xff] %v16855_v1  ;;  %v9148_v59 = vrot.slane %v8996_v53, 3  ;;  %v9090_v27 = vrot.slane %v8965_v51, 3  ;;  %v16862_v34 = vsel %vm613_vm5, %v9086_v16, %v9087_v2 }
 0x62d   :  { %18938 = vst [vmem:[#allocation23_spill] sm:$0xff] %v16804_v37  ;;  %18952 = vst [vmem:[#allocation57_spill] sm:$0xff] %v16846_v31  ;;  %v8967_v30 = vadd.f32 %v16569_v11, %v18953_v41  ;;  %v9150_v55 = vrot.slane %v8997_v10, 3  ;;  %v9000_v46 = vadd.f32 %v16566_v35, %v16376_v7  ;;  %v8969_v41 = vadd.f32 %v16569_v11, %v18958_v13 }
 0x62e   :  { %v16821_v12 = vpop.f32.mrf.mxu1  ;;  %v16832_v26 = vpop.f32.mrf.mxu0  ;;  %18957 = vst [vmem:[#allocation107_spill] sm:$0xff] %v16862_v34  ;;  %v9089_v20 = vrot.slane %v8963_v54, 3  ;;  %v9092_v53 = vrot.slane %v8966_v48, 3  ;;  %v9152_v51 = vrot.slane %v8998_v3, 3  ;;  %v9002_v10 = vadd.f32 %v16566_v35, %v16390_v25 }
 0x62f   :  { %18944 = vst [vmem:[#allocation32_spill] sm:$0xff] %v16821_v12  ;;  %v9094_v37 = vrot.slane %v8967_v30, 3  ;;  %v16882_v13 = vsel %vm613_vm5, %v9144_v45, %v9148_v59  ;;  %v10815_v3 = vmov 1966171168   ;;  %v9156_v34 = vrot.slane %v9000_v46, 3 }
 0x630   :  { %v16843_v29 = vpop.f32.mrf.mxu1  ;;  %v16852_v5 = vpop.f32.mrf.mxu0  ;;  %v16885_v54 = vsel %vm613_vm5, %v9089_v20, %v9090_v27  ;;  %v9098_v25 = vrot.slane %v8969_v41, 3  ;;  %v16899_v45 = vsel %vm613_vm5, %v9087_v2, %v9092_v53  ;;  %v9160_v20 = vrot.slane %v9002_v10, 3 }
 0x631   :  { %18951 = vst [vmem:[#allocation108_spill] sm:$0xff] %v16843_v29  ;;  %v8968_v29 = vadd.f32 %v16566_v35, %v18955_v24  ;;  %v9154_v24 = vrot.slane %v8999_v33, 3  ;;  %v9444_v33 = vunpack.c.l.s4 %v10815_v3  ;;  %v16909_v46 = vsel %vm613_vm5, %v9090_v27, %v9094_v37 }
 0x632   :  { %v16859_v12 = vpop.f32.mrf.mxu1  ;;  %v16868_v31 = vpop.f32.mrf.mxu0  ;;  %v16931_v10 = vsel %vm613_vm5, %v9152_v51, %v9156_v34 }
 0x633   :  { %18956 = vst [vmem:[#allocation105_spill] sm:$0xff] %v16859_v12  ;;  %v16872_v12 = vadd.f32 %v16569_v11, %v16380_v22  ;;  %v9096_v30 = vrot.slane %v8968_v29, 3  ;;  %v16888_v22 = vsel %vm613_vm5, %v9146_v52, %v9150_v55  ;;  %v16902_v29 = vsel %vm613_vm5, %v9148_v59, %v9152_v51  ;;  %v18961_v59 = vld [vmem:[#allocation56_spill] sm:$0xff] }
 0x634   :  { %v8866_v1 = vpop.f32.mrf.mxu1  ;;  %v16876_v16 = vpop.f32.mrf.mxu0  ;;  %v16906_v52 = vadd.f32 %v16569_v11, %v16401_v32  ;;  %v9263_v3 = vadd.s32 8, %v18961_v59  ;;  %v18963_v32 = vrot.slane %v16583_v57, 3  ;;  %v9445_v41 = vunpack.c.0.s8 %v9444_v33 }
 0x635   :  { %18959 = vst [vmem:[#allocation29_spill] sm:$0xff] %v16872_v12  ;;  %v16879_v7 = vadd.f32 %v8866_v1, %v16549_v15  ;;  %v18965_v57 = vrot.slane %v16591_v50, 3  ;;  %v9266_v33 = vadd.s32 32, %v18961_v59  ;;  %v16948_v51 = vstv %s17302_s0  ;;  %s10816_s0 = smov [#allocation13]  }
 0x636   :  { %v8868_v48 = vpop.f32.mrf.mxu1  ;;  %v16890_v35 = vpop.f32.mrf.mxu0  ;;  %v16925_v11 = vsel %vm613_vm5, %v9096_v30, %v18963_v32  ;;  %v16956_v50 = vsel %vm613_vm5, %v9156_v34, %v9160_v20  ;;  %vm16963_vm6 = vcmp.lt.s32.totalorder %v18961_v59, %v16948_v51  ;;  %vm16968_vm7 = vcmp.lt.s32.totalorder %v9263_v3, %v16948_v51  ;;  %s9519_s26 = sshll.u32 %s10816_s0, 4  ;;  %s9520_s26 = int_to_ptr.vmem [resolvable:$true] %s9519_s26 }
 0x637   :  { %v16893_v15 = vadd.f32 %v8868_v48, %v16553_v43  ;;  %v16912_v43 = vsel %vm613_vm5, %v9150_v55, %v9154_v24  ;;  %v9264_v55 = vadd.s32 16, %v18961_v59  ;;  %v8726_v34 = vadd.f32 %v16604_v58, %v16539_v9  ;;  %s10777_s27 = scalar_lea.vmem %s9520_s26, 128  ;;  %p10782_p12 = scmp.lt.s32.totalorder %s9520_s26, %s9520_s26 }
 0x638   :  { %v8870_v1 = vpop.f32.mrf.mxu1  ;;  %v8767_v48 = vpop.f32.mrf.mxu0  ;;  %v8728_v3 = vadd.f32 %v16614_v0, %v16543_v47  ;;  %v8734_v9 = vadd.f32 %v16655_v42, %v16551_v36  ;;  %v8736_v58 = vadd.f32 %v16672_v62, %v16555_v18  ;;  %v17002_v42 = vadd.f32 %v16743_v39, %v16587_v38  ;;  %v18974_v36 = vld [vmem:[#allocation50_spill] sm:$0xff]  ;;  %v18975_v62 = vld [vmem:[#allocation45_spill] sm:$0xff]  ;;  %p10778_p11 = scmp.ne.s32.totalorder %s9520_s26, %s10777_s27  ;;  %p10783_p13 = scmp.lt.s32.totalorder %s10777_s27, %s10777_s27 }
 0x639   :  { %18960 = vst [vmem:[#allocation27_spill] sm:$0xff] %v16893_v15  ;;  %v16916_v2 = vadd.f32 %v8870_v1, %v16557_v19  ;;  %v16920_v15 = vsel %vm613_vm5, %v9092_v53, %v9096_v30  ;;  %v16934_v19 = vsel %vm613_vm5, %v9094_v37, %v9098_v25  ;;  %v8724_v53 = vadd.f32 %v16595_v60, %v16535_v14  ;;  %v18978_v38 = vld [vmem:[#allocation130_spill] sm:$0xff] }
 0x63a   :  { %18962 = vst [vmem:[#allocation126_spill] sm:$0xff] %v16920_v15  ;;  %v16927_v27 = vpop.f32.mrf.mxu1  ;;  %v8769_v1 = vpop.f32.mrf.mxu0  ;;  %v9424_v15 = vstv %s9423_s23  ;;  %v16941_v30 = vsel %vm613_vm5, %v9098_v25, %v18965_v57  ;;  %v16959_v60 = vadd.s32 40, %v18961_v59  ;;  %vm16975_vm8 = vcmp.lt.s32.totalorder %v9264_v55, %v16948_v51  ;;  %p10784_p0 = por %p10783_p13, %p10782_p12 }
 0x63b   :  { %18964 = vst [vmem:[#allocation112_spill] sm:$0xff] %v16927_v27  ;;  %18966 = vst [vmem:[#allocation132_spill] sm:$0xff] %v16941_v30  ;;  %v18967_v27 = vrot.slane %v16872_v12, 3  ;;  %10667 = vrcp.f32 %v9424_v15  ;;  %v8738_v12 = vadd.f32 %v16685_v8, %v16559_v28  ;;  %v8740_v15 = vadd.f32 %v16701_v21, %v16563_v63 }
 0x63c   :  { %v8876_v37 = vpop.f32.mrf.mxu1  ;;  %v8773_v25 = vpop.f32.mrf.mxu0  ;;  %v17006_v18 = vadd.f32 %v18974_v36, %v16609_v61  ;;  %v17010_v63 = vadd.f32 %v16792_v44, %v18975_v62  ;;  %v18981_v44 = vld [vmem:[#allocation109_spill] sm:$0xff]  ;;  %v18986_v62 = vld [vmem:[#allocation71_spill] sm:$0xff]  ;;  %vm17070_vm10 = vcmp.lt.s32.totalorder %v9266_v33, %v16948_v51  ;;  %vm17101_vm11 = vcmp.lt.s32.totalorder %v16959_v60, %v16948_v51  ;;  %p10785_p1 = pnand %p10784_p0, %p10778_p11 }
 0x63d   :  { %v16953_v14 = vsel %vm613_vm5, %v9154_v24, %v18967_v27  ;;  %v8877_v57 = vadd.f32 %v8876_v37, %v8724_v53  ;;  %v9265_v27 = vadd.s32 24, %v18961_v59  ;;  %v16981_v53 = vsub.s32 %v9445_v41, %v18961_v59 }
 0x63e   :  { %v8878_v24 = vpop.f32.mrf.mxu1  ;;  %v8730_v37 = vadd.f32 %v16638_v56, %v16547_v6  ;;  %v8775_v55 = vpop.f32.mrf.mxu0  ;;  %v16997_v41 = vadd.f32 %v16722_v40, %v16571_v49  ;;  %v18976_v49 = vld [vmem:[#allocation104_spill] sm:$0xff]  ;;  %v17022_v40 = vadd.f32 %v16852_v5, %v18978_v38  ;;  %v17031_v59 = vadd.f32 %v16868_v31, %v18981_v44 }
 0x63f   :  { %v9236_v47 = vadd.f32 %v16641_v17, %v8877_v57  ;;  %v8879_v56 = vadd.f32 %v8878_v24, %v8726_v34  ;;  %v17014_v21 = vadd.f32 %v16811_v4, %v18976_v49  ;;  %v18977_v17 = vld [vmem:[#allocation47_spill] sm:$0xff]  ;;  %vm17025_vm9 = vcmp.lt.s32.totalorder %v9265_v27, %v16948_v51  ;;  %v18982_v4 = vld [vmem:[#allocation68_spill] sm:$0xff]  ;;  %v18985_v27 = vld [vmem:[#allocation122_spill] sm:$0xff] }
 0x640   :  { %v8880_v6 = vpop.f32.mrf.mxu1  ;;  %v8777_v28 = vpop.f32.mrf.mxu0  ;;  %v17018_v8 = vadd.f32 %v16832_v26, %v18977_v17  ;;  %v17035_v57 = vadd.f32 %v16876_v16, %v18982_v4  ;;  %v18983_v26 = vld [vmem:[#allocation24_spill] sm:$0xff]  ;;  %v17044_v36 = vadd.f32 %v16890_v35, %v18985_v27  ;;  %v17047_v49 = vadd.f32 %v8767_v48, %v18986_v62  ;;  %v18989_v4 = vld [vmem:[#allocation103_spill] sm:$0xff] }
 0x641   :  { %v8881_v0 = vadd.f32 %v8880_v6, %v8728_v3  ;;  %v18984_v5 = vld [vmem:[#allocation80_spill] sm:$0xff]  ;;  %v9311_v31 = vsel %vm16963_vm6, %v9236_v47, 0.0  ;;  %v17057_v35 = vadd.f32 %v18989_v4, %v16916_v2  ;;  %v17060_v48 = vadd.f32 %v8769_v1, %v16786_v23  ;;  %v18991_v62 = vld [vmem:[#allocation23_spill] sm:$0xff] }
 0x642   :  { %v8882_v61 = vpop.f32.mrf.mxu1  ;;  %v8779_v24 = vpop.f32.mrf.mxu0  ;;  %v17040_v6 = vadd.f32 %v18984_v5, %v16879_v7  ;;  %v18987_v17 = vld [vmem:[#allocation40_spill] sm:$0xff]  ;;  %v18990_v5 = vld [vmem:[#allocation117_spill] sm:$0xff] }
 0x643   :  { %v9238_v34 = vadd.f32 %v18983_v26, %v8881_v0  ;;  %v8883_v3 = vadd.f32 %v8882_v61, %v8730_v37  ;;  %v9237_v38 = vadd.f32 %v18987_v17, %v8879_v56  ;;  %v18988_v0 = vld [vmem:[#allocation125_spill] sm:$0xff]  ;;  %v17064_v56 = vadd.f32 %v8773_v25, %v18991_v62  ;;  %v18995_v23 = vld [vmem:[#allocation32_spill] sm:$0xff]  ;;  %v18997_v25 = vld [vmem:[#allocation87_spill] sm:$0xff] }
 0x644   :  { %v8886_v16 = vpop.f32.mrf.mxu1  ;;  %v8816_v7 = vpop.f32.mrf.mxu0  ;;  %v17075_v1 = vadd.f32 %v8775_v55, %v18995_v23  ;;  %v19000_v55 = vld [vmem:[#allocation105_spill] sm:$0xff]  ;;  %v19001_v23 = vld [vmem:[#allocation19_spill] sm:$0xff]  ;;  %v9307_v20 = vsel %vm17070_vm10, %v17040_v6, 0.0 }
 0x645   :  { %v9313_v37 = vsel %vm16968_vm7, %v9238_v34, 0.0  ;;  %v9239_v61 = vadd.f32 %v18988_v0, %v8883_v3  ;;  %v8887_v44 = vadd.f32 %v8886_v16, %v8734_v9  ;;  %v8817_v47 = vadd.f32 %v8816_v7, %v18990_v5  ;;  %v18992_v3 = vld [vmem:[#allocation49_spill] sm:$0xff]  ;;  %v18998_v7 = vld [vmem:[#allocation34_spill] sm:$0xff] }
 0x646   :  { %v9379_v26 = vadd.f32 %v9313_v37, %v9311_v31  ;;  %v8888_v27 = vpop.f32.mrf.mxu1  ;;  %v8818_v9 = vpop.f32.mrf.mxu0  ;;  %v18996_v31 = vld [vmem:[#allocation108_spill] sm:$0xff] }
 0x647   :  { %v9314_v34 = vsel %vm16968_vm7, %v9239_v61, 0.0  ;;  %v9240_v17 = vadd.f32 %v18992_v3, %v8887_v44  ;;  %v8889_v16 = vadd.f32 %v8888_v27, %v8736_v58  ;;  %v17078_v37 = vadd.f32 %v8777_v28, %v18996_v31  ;;  %v18999_v58 = vld [vmem:[#allocation42_spill] sm:$0xff] }
 0x648   :  { %v9212_v0 = vadd.f32 %v18997_v25, %v8817_v47  ;;  %v8819_v4 = vadd.f32 %v8818_v9, %v18998_v7  ;;  %v8890_v61 = vpop.f32.mrf.mxu1  ;;  %v9312_v44 = vsel %vm16963_vm6, %v9237_v38, 0.0  ;;  %v8820_v27 = vpop.f32.mrf.mxu0  ;;  %v17088_v3 = vadd.f32 %v8779_v24, %v19000_v55  ;;  %v19002_v47 = vld [vmem:[#allocation84_spill] sm:$0xff] }
 0x649   :  { %v9315_v33 = vsel %vm16975_vm8, %v9240_v17, 0.0  ;;  %v9241_v5 = vadd.f32 %v18999_v58, %v8889_v16  ;;  %v8891_v62 = vadd.f32 %v8890_v61, %v8738_v12  ;;  %v9390_v28 = vadd.f32 %v9314_v34, %v9312_v44  ;;  %v17092_v7 = vpop.eup %10667  ;;  %v19003_v16 = vld [vmem:[#allocation89_spill] sm:$0xff]  ;;  %v19006_v44 = vld [vmem:[#allocation52_spill] sm:$0xff] }
 0x64a   :  { %v9213_v31 = vadd.f32 %v19001_v23, %v8819_v4  ;;  %v8821_v25 = vadd.f32 %v8820_v27, %v19002_v47  ;;  %v8892_v9 = vpop.f32.mrf.mxu1  ;;  %v9287_v38 = vsel %vm16963_vm6, %v9212_v0, 0.0  ;;  %v8822_v12 = vpop.f32.mrf.mxu0  ;;  %v9380_v34 = vadd.f32 %v9379_v26, %v9315_v33  ;;  %v19007_v0 = vld [vmem:[#allocation30_spill] sm:$0xff]  ;;  %v19009_v33 = vld [vmem:[#allocation124_spill] sm:$0xff] }
 0x64b   :  { %v9316_v17 = vsel %vm16975_vm8, %v9241_v5, 0.0  ;;  %v9242_v58 = vadd.f32 %v19003_v16, %v8891_v62  ;;  %v8893_v61 = vadd.f32 %v8892_v9, %v8740_v15  ;;  %v8823_v55 = vadd.f32 %v8822_v12, %v19007_v0  ;;  %v19008_v15 = vld [vmem:[#allocation136_spill] sm:$0xff]  ;;  %v19010_v16 = vld [vmem:[#allocation33_spill] sm:$0xff] }
 0x64c   :  { %v9288_v4 = vsel %vm16963_vm6, %v9213_v31, 0.0  ;;  %v9214_v27 = vadd.f32 %v19006_v44, %v8821_v25  ;;  %v8896_v23 = vpop.f32.mrf.mxu1  ;;  %v9391_v5 = vadd.f32 %v9390_v28, %v9316_v17  ;;  %v8826_v9 = vpop.f32.mrf.mxu0  ;;  %v19011_v17 = vld [vmem:[#allocation93_spill] sm:$0xff] }
 0x64d   :  { %v9317_v62 = vsel %vm17025_vm9, %v9242_v58, 0.0  ;;  %v9243_v47 = vadd.f32 %v19008_v15, %v8893_v61  ;;  %v8897_v51 = vadd.f32 %v8896_v23, %v16997_v41  ;;  %v9215_v31 = vadd.f32 %v19009_v33, %v8823_v55 }
 0x64e   :  { %v9289_v60 = vsel %vm16968_vm7, %v9214_v27, 0.0  ;;  %v9381_v26 = vadd.f32 %v9380_v34, %v9317_v62  ;;  %v8827_v25 = vadd.f32 %v8826_v9, %v19010_v16  ;;  %v8898_v44 = vpop.f32.mrf.mxu1  ;;  %v8828_v0 = vpop.f32.mrf.mxu0  ;;  %v19012_v27 = vld [vmem:[#allocation113_spill] sm:$0xff]  ;;  %v19013_v62 = vld [vmem:[#allocation38_spill] sm:$0xff] }
 0x64f   :  { %v9335_v12 = vadd.f32 %v9289_v60, %v9287_v38  ;;  %v9318_v28 = vsel %vm17025_vm9, %v9243_v47, 0.0  ;;  %v9244_v58 = vadd.f32 %v19011_v17, %v8897_v51  ;;  %v8899_v61 = vadd.f32 %v8898_v44, %v17002_v42  ;;  %v19014_v60 = vld [vmem:[#allocation106_spill] sm:$0xff]  ;;  %v19016_v44 = vld [vmem:[#allocation35_spill] sm:$0xff] }
 0x650   :  { %v9290_v41 = vsel %vm16968_vm7, %v9215_v31, 0.0  ;;  %v9392_v23 = vadd.f32 %v9391_v5, %v9318_v28  ;;  %v9216_v34 = vadd.f32 %v19012_v27, %v8827_v25  ;;  %v8829_v55 = vadd.f32 %v8828_v0, %v19013_v62  ;;  %v8900_v15 = vpop.f32.mrf.mxu1  ;;  %v8830_v33 = vpop.f32.mrf.mxu0  ;;  %v19015_v31 = vld [vmem:[#allocation44_spill] sm:$0xff]  ;;  %v19017_v0 = vld [vmem:[#allocation115_spill] sm:$0xff] }
 0x651   :  { %v9346_v9 = vadd.f32 %v9290_v41, %v9288_v4  ;;  %v9319_v38 = vsel %vm17070_vm10, %v9244_v58, 0.0  ;;  %v9245_v47 = vadd.f32 %v19014_v60, %v8899_v61  ;;  %v8901_v51 = vadd.f32 %v8900_v15, %v17006_v18  ;;  %v19019_v62 = vld [vmem:[#allocation123_spill] sm:$0xff] }
 0x652   :  { %v9291_v42 = vsel %vm16975_vm8, %v9216_v34, 0.0  ;;  %v9382_v16 = vadd.f32 %v9381_v26, %v9319_v38  ;;  %v9217_v5 = vadd.f32 %v19015_v31, %v8829_v55  ;;  %v8831_v25 = vadd.f32 %v8830_v33, %v19016_v44  ;;  %v8902_v28 = vpop.f32.mrf.mxu1  ;;  %v8832_v41 = vpop.f32.mrf.mxu0  ;;  %v19018_v34 = vld [vmem:[#allocation134_spill] sm:$0xff]  ;;  %v19020_v60 = vld [vmem:[#allocation31_spill] sm:$0xff] }
 0x653   :  { %v9336_v17 = vadd.f32 %v9335_v12, %v9291_v42  ;;  %v9320_v4 = vsel %vm17070_vm10, %v9245_v47, 0.0  ;;  %v9246_v58 = vadd.f32 %v19017_v0, %v8901_v51  ;;  %v8903_v61 = vadd.f32 %v8902_v28, %v17010_v63  ;;  %v19021_v31 = vld [vmem:[#allocation90_spill] sm:$0xff] }
 0x654   :  { %v9292_v18 = vsel %vm16975_vm8, %v9217_v5, 0.0  ;;  %v9393_v27 = vadd.f32 %v9392_v23, %v9320_v4  ;;  %v9218_v26 = vadd.f32 %v19018_v34, %v8831_v25  ;;  %v8833_v55 = vadd.f32 %v8832_v41, %v19019_v62  ;;  %v8906_v15 = vpop.f32.mrf.mxu1  ;;  %v8836_v33 = vpop.f32.mrf.mxu0  ;;  %v19022_v5 = vld [vmem:[#allocation128_spill] sm:$0xff]  ;;  %v19023_v4 = vld [vmem:[#allocation37_spill] sm:$0xff] }
 0x655   :  { %v9347_v38 = vadd.f32 %v9346_v9, %v9292_v18  ;;  %v9321_v12 = vsel %vm17101_vm11, %v9246_v58, 0.0  ;;  %v9247_v47 = vadd.f32 %v19020_v60, %v8903_v61  ;;  %v8907_v51 = vadd.f32 %v8906_v15, %v17014_v21 }
 0x656   :  { %v9293_v63 = vsel %vm17025_vm9, %v9218_v26, 0.0  ;;  %v9383_v42 = vadd.f32 %v9382_v16, %v9321_v12  ;;  %v9219_v23 = vadd.f32 %v19021_v31, %v8833_v55  ;;  %v8837_v44 = vadd.f32 %v8836_v33, %v19022_v5  ;;  %v8908_v25 = vpop.f32.mrf.mxu1  ;;  %v8838_v58 = vpop.f32.mrf.mxu0  ;;  %v19024_v16 = vld [vmem:[#allocation94_spill] sm:$0xff]  ;;  %v19025_v55 = vld [vmem:[#allocation63_spill] sm:$0xff] }
 0x657   :  { %v9337_v28 = vadd.f32 %v9336_v17, %v9293_v63  ;;  %v9322_v9 = vsel %vm17101_vm11, %v9247_v47, 0.0  ;;  %v9248_v0 = vadd.f32 %v19023_v4, %v8907_v51  ;;  %v8909_v41 = vadd.f32 %v8908_v25, %v17018_v8  ;;  %v19026_v12 = vld [vmem:[#allocation118_spill] sm:$0xff] }
 0x658   :  { %v9384_v61 = vrot.slane %v9383_v42, 4  ;;  %v9294_v21 = vsel %vm17025_vm9, %v9219_v23, 0.0  ;;  %v9394_v18 = vadd.f32 %v9393_v27, %v9322_v9  ;;  %v9220_v34 = vadd.f32 %v19024_v16, %v8837_v44  ;;  %v8910_v26 = vpop.f32.mrf.mxu1  ;;  %v8840_v47 = vpop.f32.mrf.mxu0  ;;  %v19027_v63 = vld [vmem:[#allocation18_spill] sm:$0xff] }
 0x659   :  { %v9348_v62 = vadd.f32 %v9347_v38, %v9294_v21  ;;  %v9323_v17 = vsel %vm16963_vm6, %v9248_v0, 0.0  ;;  %v8839_v15 = vadd.f32 %v8838_v58, %v19025_v55  ;;  %v9249_v60 = vadd.f32 %v19026_v12, %v8909_v41  ;;  %v19028_v5 = vld [vmem:[#allocation114_spill] sm:$0xff]  ;;  %v19029_v58 = vld [vmem:[#allocation121_spill] sm:$0xff] }
 0x65a   :  { %v9385_v33 = vadd.f32 %v9384_v61, %v9383_v42  ;;  %v9395_v51 = vrot.slane %v9394_v18, 4  ;;  %v9295_v8 = vsel %vm17070_vm10, %v9220_v34, 0.0  ;;  %v8841_v31 = vadd.f32 %v8840_v47, %v19027_v63  ;;  %v8912_v27 = vpop.f32.mrf.mxu1  ;;  %v8842_v9 = vpop.f32.mrf.mxu0  ;;  %v19030_v41 = vld [vmem:[#allocation69_spill] sm:$0xff] }
 0x65b   :  { %v9338_v23 = vadd.f32 %v9337_v28, %v9295_v8  ;;  %v9221_v44 = vadd.f32 %v19028_v5, %v8839_v15  ;;  %v9324_v38 = vsel %vm16963_vm6, %v9249_v60, 0.0  ;;  %v8911_v25 = vadd.f32 %v8910_v26, %v17022_v40  ;;  %v19031_v34 = vld [vmem:[#allocation97_spill] sm:$0xff] }
 0x65c   :  { %v9386_v4 = vrot.slane %v9385_v33, 2  ;;  %v9396_v0 = vadd.f32 %v9395_v51, %v9394_v18  ;;  %v9222_v42 = vadd.f32 %v19029_v58, %v8841_v31  ;;  %v8843_v61 = vadd.f32 %v8842_v9, %v19030_v41  ;;  %v8916_v21 = vpop.f32.mrf.mxu1  ;;  %v8846_v15 = vpop.f32.mrf.mxu0  ;;  %v19032_v63 = vld [vmem:[#allocation57_spill] sm:$0xff] }
 0x65d   :  { %v9296_v16 = vsel %vm17070_vm10, %v9221_v44, 0.0  ;;  %v9250_v28 = vadd.f32 %v19031_v34, %v8911_v25  ;;  %v8913_v55 = vadd.f32 %v8912_v27, %v17031_v59  ;;  %v8917_v12 = vadd.f32 %v8916_v21, %v17035_v57  ;;  %v19033_v5 = vld [vmem:[#allocation25_spill] sm:$0xff]  ;;  %v19034_v57 = vld [vmem:[#allocation58_spill] sm:$0xff] }
 0x65e   :  { %v9387_v60 = vadd.f32 %v9386_v4, %v9385_v33  ;;  %v9397_v40 = vrot.slane %v9396_v0, 2  ;;  %v9349_v26 = vadd.f32 %v9348_v62, %v9296_v16  ;;  %v9297_v18 = vsel %vm17101_vm11, %v9222_v42, 0.0  ;;  %v8918_v47 = vpop.f32.mrf.mxu1  ;;  %v8848_v25 = vpop.f32.mrf.mxu0 }
 0x65f   :  { %v9339_v51 = vadd.f32 %v9338_v23, %v9297_v18  ;;  %v9325_v8 = vsel %vm16968_vm7, %v9250_v28, 0.0  ;;  %v9223_v31 = vadd.f32 %v19032_v63, %v8843_v61  ;;  %v9251_v44 = vadd.f32 %v19033_v5, %v8913_v55 }
 0x660   :  { %v9388_v59 = vrot.slane %v9387_v60, 1  ;;  %v9398_v27 = vadd.f32 %v9397_v40, %v9396_v0  ;;  %v9401_v9 = vadd.f32 %v9325_v8, %v9323_v17  ;;  %v8847_v33 = vadd.f32 %v8846_v15, %v19034_v57  ;;  %v8920_v4 = vpop.f32.mrf.mxu1  ;;  %v8850_v41 = vpop.f32.mrf.mxu0  ;;  %v19035_v17 = vld [vmem:[#allocation107_spill] sm:$0xff]  ;;  %v19036_v40 = vld [vmem:[#allocation64_spill] sm:$0xff] }
 0x661   :  { %v9340_v62 = vrot.slane %v9339_v51, 4  ;;  %v9298_v58 = vsel %vm17101_vm11, %v9223_v31, 0.0  ;;  %v9326_v23 = vsel %vm16968_vm7, %v9251_v44, 0.0  ;;  %v9252_v42 = vadd.f32 %v16882_v13, %v8917_v12 }
 0x662   :  { %v9389_v61 = vadd.f32 %v9388_v59, %v9387_v60  ;;  %v9399_v21 = vrot.slane %v9398_v27, 1  ;;  %v9350_v16 = vadd.f32 %v9349_v26, %v9298_v58  ;;  %v9412_v34 = vadd.f32 %v9326_v23, %v9324_v38  ;;  %v8922_v28 = vpop.f32.mrf.mxu1  ;;  %v8852_v8 = vpop.f32.mrf.mxu0 }
 0x663   :  { %v9341_v0 = vadd.f32 %v9340_v62, %v9339_v51  ;;  %v9224_v55 = vadd.f32 %v19035_v17, %v8847_v33  ;;  %v9327_v15 = vsel %vm16975_vm8, %v9252_v42, 0.0  ;;  %v8849_v18 = vadd.f32 %v8848_v25, %v19036_v40  ;;  %v19040_v62 = vld [vmem:[#allocation85_spill] sm:$0xff] }
 0x664   :  { %v19037_v63 = vlaneseq  ;;  %v9430_v13 = vmul.f32 %v17092_v7, %v9389_v61  ;;  %v9400_v12 = vadd.f32 %v9399_v21, %v9398_v27  ;;  %v9351_v60 = vrot.slane %v9350_v16, 4  ;;  %v8926_v26 = vpop.f32.mrf.mxu1  ;;  %v8856_v59 = vpop.f32.mrf.mxu0  ;;  %v19041_v61 = vld [vmem:[#allocation36_spill] sm:$0xff] }
 0x665   :  { %v9402_v38 = vadd.f32 %v9401_v9, %v9327_v15  ;;  %v9342_v51 = vrot.slane %v9341_v0, 2  ;;  %v9299_v5 = vsel %vm16963_vm6, %v9224_v55, 0.0  ;;  %v9225_v44 = vadd.f32 %v16885_v54, %v8849_v18 }
 0x666   :  { %vm17191_vm12 = vcmp.lt.s32.totalorder %v19037_v63, 256  ;;  %v8919_v25 = vadd.f32 %v8918_v47, %v17044_v36  ;;  %v9431_v57 = vmul.f32 %v17092_v7, %v9400_v12  ;;  %v9352_v33 = vadd.f32 %v9351_v60, %v9350_v16  ;;  %v8858_v17 = vpop.f32.mrf.mxu0  ;;  %v8928_v16 = vpop.f32.mrf.mxu1 }
 0x667   :  { %v8851_v58 = vadd.f32 %v8850_v41, %v19040_v62  ;;  %v8921_v23 = vadd.f32 %v8920_v4, %v17047_v49  ;;  %v9343_v27 = vadd.f32 %v9342_v51, %v9341_v0  ;;  %v9300_v9 = vsel %vm16963_vm6, %v9225_v44, 0.0  ;;  %v19042_v51 = vld [vmem:[#allocation120_spill] sm:$0xff] }
 0x668   :  { %v9253_v42 = vadd.f32 %v16888_v22, %v8919_v25  ;;  %v8853_v21 = vadd.f32 %v8852_v8, %v19041_v61  ;;  %v9472_v54 = vcombine.low %v9430_v13, %v9431_v57  ;;  %v9353_v55 = vrot.slane %v9352_v33, 2  ;;  %v8860_v63 = vpop.f32.mrf.mxu0  ;;  %v8930_v12 = vpop.f32.mrf.mxu1  ;;  %v19043_v57 = vld [vmem:[#allocation39_spill] sm:$0xff]  ;;  %v19044_v62 = vld [vmem:[#allocation48_spill] sm:$0xff] }
 0x669   :  { %v9226_v36 = vadd.f32 %v16899_v45, %v8851_v58  ;;  %v9254_v47 = vadd.f32 %v16902_v29, %v8921_v23  ;;  %v9344_v15 = vrot.slane %v9343_v27, 1  ;;  %v8923_v32 = vadd.f32 %v8922_v28, %v17060_v48  ;;  %v19045_v23 = vld [vmem:[#allocation126_spill] sm:$0xff] }
 0x66a   :  { %v9328_v49 = vsel %vm16975_vm8, %v9253_v42, 0.0  ;;  %v9227_v4 = vadd.f32 %v16909_v46, %v8853_v21  ;;  %v9479_v22 = vrot.slane %v9472_v54, %v16981_v53  ;;  %v9354_v41 = vadd.f32 %v9353_v55, %v9352_v33 }
 0x66b   :  { %v9413_v0 = vadd.f32 %v9412_v34, %v9328_v49  ;;  %v9301_v40 = vsel %vm16968_vm7, %v9226_v36, 0.0  ;;  %v9345_v18 = vadd.f32 %v9344_v15, %v9343_v27  ;;  %v9329_v29 = vsel %vm17025_vm9, %v9254_v47, 0.0  ;;  %v8862_v36 = vpop.f32.mrf.mxu0 }
 0x66c   :  { %v9357_v45 = vadd.f32 %v9301_v40, %v9299_v5  ;;  %v9302_v8 = vsel %vm16968_vm7, %v9227_v4, 0.0  ;;  %v9486_v46 = vrot.slane %v9479_v22, %v16981_v53  ;;  %v9355_v13 = vrot.slane %v9354_v41, 1  ;;  %v19047_v22 = vld [vmem:[#allocation112_spill] sm:$0xff] }
 0x66d   :  { %v9403_v48 = vadd.f32 %v9402_v38, %v9329_v29  ;;  %v9368_v28 = vadd.f32 %v9302_v8, %v9300_v9  ;;  %v9426_v34 = vmul.f32 %v17092_v7, %v9345_v18  ;;  %v9255_v60 = vadd.f32 %v16912_v43, %v8923_v32  ;;  %v19046_v32 = vld [vmem:[#allocation41_spill] sm:$0xff] }
 0x66e   :  { %v8857_v44 = vadd.f32 %v8856_v59, %v19042_v51  ;;  %v8927_v5 = vadd.f32 %v8926_v26, %v17064_v56  ;;  %v9356_v25 = vadd.f32 %v9355_v13, %v9354_v41  ;;  %v8859_v33 = vadd.f32 %v8858_v17, %v19043_v57  ;;  %9512 = vst.msk [vmem:[#allocation13 + $0x4] sm:$0x3] %vm17191_vm12, %v9486_v46  ;;  %v19050_v46 = vld [vmem:[#allocation29_spill] sm:$0xff] }
 0x66f   :  { %v8929_v30 = vadd.f32 %v8928_v16, %v17075_v1  ;;  %v8861_v58 = vadd.f32 %v8860_v63, %v19044_v62  ;;  %v9330_v38 = vsel %vm17025_vm9, %v9255_v60, 0.0  ;;  %v8931_v59 = vadd.f32 %v8930_v12, %v17078_v37  ;;  %v19053_v12 = vld [vmem:[#allocation46_spill] sm:$0xff]  ;;  %v19054_v60 = vld [vmem:[#allocation132_spill] sm:$0xff] }
 0x670   :  { %v9228_v27 = vadd.f32 %v19045_v23, %v8857_v44  ;;  %v9256_v43 = vadd.f32 %v16931_v10, %v8927_v5  ;;  %v9427_v56 = vmul.f32 %v17092_v7, %v9356_v25  ;;  %v9414_v26 = vadd.f32 %v9413_v0, %v9330_v38  ;;  %v19048_v0 = vld [vmem:[#allocation102_spill] sm:$0xff]  ;;  %v19055_v44 = vld [vmem:[#allocation43_spill] sm:$0xff] }
 0x671   :  { %v9229_v9 = vadd.f32 %v16934_v19, %v8859_v33  ;;  %v9257_v1 = vadd.f32 %v16953_v14, %v8929_v30  ;;  %v9230_v21 = vadd.f32 %v16925_v11, %v8861_v58  ;;  %v9258_v17 = vadd.f32 %v16956_v50, %v8931_v59  ;;  %v8932_v19 = vpop.f32.mrf.mxu1  ;;  %v19057_v25 = vld [vmem:[#allocation86_spill] sm:$0xff] }
 0x672   :  { %v9303_v42 = vsel %vm16975_vm8, %v9228_v27, 0.0  ;;  %v9331_v61 = vsel %vm17070_vm10, %v9256_v43, 0.0  ;;  %v9442_v10 = vcombine.low %v9426_v34, %v9427_v56  ;;  %v8873_v41 = vadd.f32 %v19047_v22, %v19046_v32 }
 0x673   :  { %v9358_v54 = vadd.f32 %v9357_v45, %v9303_v42  ;;  %v9404_v37 = vadd.f32 %v9403_v48, %v9331_v61  ;;  %v9304_v55 = vsel %vm16975_vm8, %v9229_v9, 0.0  ;;  %v9332_v14 = vsel %vm17070_vm10, %v9257_v1, 0.0 }
 0x674   :  { %v9369_v47 = vadd.f32 %v9368_v28, %v9304_v55  ;;  %v9305_v16 = vsel %vm17025_vm9, %v9230_v21, 0.0  ;;  %v9333_v11 = vsel %vm17101_vm11, %v9258_v17, 0.0  ;;  %v9449_v50 = vrot.slane %v9442_v10, %v16981_v53  ;;  %v19052_v28 = vld [vmem:[#allocation27_spill] sm:$0xff] }
 0x675   :  { %v9415_v15 = vadd.f32 %v9414_v26, %v9332_v14  ;;  %v9359_v49 = vadd.f32 %v9358_v54, %v9305_v16  ;;  %v9405_v4 = vadd.f32 %v9404_v37, %v9333_v11  ;;  %v8863_v40 = vadd.f32 %v8862_v36, %v19048_v0 }
 0x676   :  { %v8933_v18 = vadd.f32 %v8932_v19, %v17088_v3  ;;  %v9456_v45 = vrot.slane %v9449_v50, %v16981_v53  ;;  %v19049_v63 = vrot.slane %v16906_v52, 3  ;;  %v19051_v13 = vrot.slane %v19050_v46, 3 }
 0x677   :  { %v9360_v29 = vadd.f32 %v9359_v49, %v9307_v20  ;;  %v9406_v8 = vrot.slane %v9405_v4, 4  ;;  %v9233_v6 = vadd.f32 %v19053_v12, %v19052_v28  ;;  %v9309_v34 = vsel %vm17101_vm11, %v17057_v35, 0.0 }
 0x678   :  { %v9163_v48 = vsel %vm613_vm5, %v19051_v13, %v19049_v63  ;;  %v9231_v51 = vadd.f32 %v19054_v60, %v8863_v40  ;;  %v19056_v5 = vrot.slane %v19055_v44, 3  ;;  %v19058_v57 = vrot.slane %v19057_v25, 3  ;;  %9510 = vst.msk [vmem:[#allocation13] sm:$0x3] %vm17191_vm12, %v9456_v45 }
 0x679   :  { %v9259_v3 = vadd.f32 %v9163_v48, %v8933_v18  ;;  %v9361_v33 = vadd.f32 %v9360_v29, %v9309_v34  ;;  %v9407_v30 = vadd.f32 %v9406_v8, %v9405_v4  ;;  %v9308_v59 = vsel %vm17070_vm10, %v9233_v6, 0.0 }
 0x67a   :  { %v9111_v52 = vsel %vm613_vm5, %v19058_v57, %v19056_v5  ;;  %v9306_v58 = vsel %vm17025_vm9, %v9231_v51, 0.0 }
 0x67b   :  { %v9235_v62 = vadd.f32 %v9111_v52, %v8873_v41  ;;  %v9334_v35 = vsel %vm17101_vm11, %v9259_v3, 0.0  ;;  %v9362_v38 = vrot.slane %v9361_v33, 4  ;;  %v9408_v23 = vrot.slane %v9407_v30, 2 }
 0x67c   :  { %v9370_v27 = vadd.f32 %v9369_v47, %v9306_v58  ;;  %v9416_v43 = vadd.f32 %v9415_v15, %v9334_v35 }
 0x67d   :  { %v9363_v56 = vadd.f32 %v9362_v38, %v9361_v33  ;;  %v9409_v26 = vadd.f32 %v9408_v23, %v9407_v30  ;;  %v9310_v42 = vsel %vm17101_vm11, %v9235_v62, 0.0 }
 0x67e   :  { %v9371_v9 = vadd.f32 %v9370_v27, %v9308_v59  ;;  %v9417_v1 = vrot.slane %v9416_v43, 4 }
 0x67f   :  { %v9364_v61 = vrot.slane %v9363_v56, 2  ;;  %v9410_v10 = vrot.slane %v9409_v26, 1 }
 0x680   :  { %v9372_v39 = vadd.f32 %v9371_v9, %v9310_v42  ;;  %v9418_v21 = vadd.f32 %v9417_v1, %v9416_v43 }
 0x681   :  { %v9365_v17 = vadd.f32 %v9364_v61, %v9363_v56  ;;  %v9411_v47 = vadd.f32 %v9410_v10, %v9409_v26 }
 0x682   :  { %v9373_v54 = vrot.slane %v9372_v39, 4  ;;  %v9419_v37 = vrot.slane %v9418_v21, 2 }
 0x683   :  { %v9366_v19 = vrot.slane %v9365_v17, 1  ;;  %v9432_v15 = vmul.f32 %v17092_v7, %v9411_v47 }
 0x684   :  { %v9374_v55 = vadd.f32 %v9373_v54, %v9372_v39  ;;  %v9420_v36 = vadd.f32 %v9419_v37, %v9418_v21 }
 0x685   :  { %v9367_v50 = vadd.f32 %v9366_v19, %v9365_v17 }
 0x686   :  { %v9375_v2 = vrot.slane %v9374_v55, 2  ;;  %v9421_v14 = vrot.slane %v9420_v36, 1 }
 0x687   :  { %v9428_v32 = vmul.f32 %v17092_v7, %v9367_v50 }
 0x688   :  { %v9376_v16 = vadd.f32 %v9375_v2, %v9374_v55  ;;  %v9422_v11 = vadd.f32 %v9421_v14, %v9420_v36 }
 0x68a   :  { %v9377_v24 = vrot.slane %v9376_v16, 1  ;;  %v9433_v49 = vmul.f32 %v17092_v7, %v9422_v11 }
 0x68c   :  { %v9378_v4 = vadd.f32 %v9377_v24, %v9376_v16  ;;  %v9487_v20 = vcombine.low %v9432_v15, %v9433_v49 }
 0x68e   :  { %v9429_v22 = vmul.f32 %v17092_v7, %v9378_v4  ;;  %v9494_v41 = vrot.slane %v9487_v20, %v16981_v53 }
 0x690   :  { %v9457_v0 = vcombine.low %v9428_v32, %v9429_v22  ;;  %v9501_v40 = vrot.slane %v9494_v41, %v16981_v53 }
 0x692   :  { %v9464_v18 = vrot.slane %v9457_v0, %v16981_v53  ;;  %9513 = vst.msk [vmem:[#allocation13 + $0x6] sm:$0x3] %vm17191_vm12, %v9501_v40 }
 0x694   :  { %v9471_v45 = vrot.slane %v9464_v18, %v16981_v53 }
 0x696   :  { %9511 = vst.msk [vmem:[#allocation13 + $0x2] sm:$0x3] %vm17191_vm12, %v9471_v45 }
 0x697   :  { %10788 = shalt.err (!%p10785_p1)
}
 0x698   :  { %s10817_s28 = smov 32   ;;  %s10818_s29 = smov 2  }
 0x699   :  { %9525 = dma.vmem_to_hbm [thread:$0]  %s9520_s26, 128, %s17308_s6, [#allocation6], %s10817_s28, %s10817_s28, %s10818_s29  }
 0x69a   :  { %10803 = dma.done.wait [#allocation6], 128  }
 0x69b   :  { %10804 = vsyncadd [#allocation6], 4294967168 }
 0x69c   :  { %9529 = vsyncpa [#allocation5], 1 }
 0x69d   :  { %9530 = vsyncpa [#allocation8], 1 }
 0x69e   :  { %9531 = vsyncpa [#allocation11], 1 }
 0x69f   :  { %9532 = vsyncpa [#allocation6], 1 }

</bundles_post_ra>
